<compile_context>
chip_gen: v6e
topology: v6e:2x2x1
jax: 0.10.0
libtpu: 0.0.40
codegen_flags: <defaults>
</compile_context>

<pallas_src>
import functools

import jax
import jax.numpy as jnp
from jax.experimental import pallas as pl
from jax.experimental.pallas import tpu as pltpu

BF16 = jnp.bfloat16
F32 = jnp.float32


# --------------------------------------------------------------------------
# small helpers
# --------------------------------------------------------------------------
def _vmem_limit_bytes():
    # ~80% of physical VMEM: ~51 MiB on v7x (64 MiB), ~102 MiB on v5e/v6e
    # (128 MiB).  Leaves headroom for compiler temporaries / double buffers.
    try:
        cap = int(pltpu.get_tpu_info().vmem_capacity_bytes)
    except Exception:
        cap = 64 * 1024 * 1024
    return int(cap * 0.8)


def _zero_pad_into(p_ref, val, pad_hi):
    """Zero the 1-px top/left halo (and bottom/right when pad_hi=1) of a bf16
    padded scratch and write `val` into the interior starting at (1, 1).
    Halo-only zeroing; the interior is written exactly once."""
    n, hv, wv, c = val.shape
    wp = wv + 1 + pad_hi
    p_ref[:, 0:1, :, :] = jnp.zeros((n, 1, wp, c), BF16)
    p_ref[:, 1:hv + 1, 0:1, :] = jnp.zeros((n, hv, 1, c), BF16)
    if pad_hi:
        p_ref[:, hv + 1:hv + 2, :, :] = jnp.zeros((n, 1, wp, c), BF16)
        p_ref[:, 1:hv + 1, wv + 1:wv + 2, :] = jnp.zeros((n, hv, 1, c), BF16)
    p_ref[:, 1:hv + 1, 1:wv + 1, :] = val


def _conv3x3(tap, w_ref, cols_ref, cin, cout):
    """3x3 conv over 9 tap slabs, each tap(t) -> (Mt, cin) bf16.

    cols_ref is None  -> 9 accumulating MXU dots (no im2col buffer, no masked
                         narrow stores); preferred at cin >= 128 where K
                         already fills the MXU and v7x's MRB accumulates in
                         place.
    cols_ref is a ref -> fused big-K (K = 9*cin) matmul through a small
                         per-tile im2col scratch; preferred at cin < 128.
    """
    if cols_ref is None:
        acc = jnp.dot(tap(0), w_ref[0], preferred_element_type=F32)
        for t in range(1, 9):
            acc = acc + jnp.dot(tap(t), w_ref[t], preferred_element_type=F32)
        return acc
    for t in range(9):
        cols_ref[:, t * cin:(t + 1) * cin] = tap(t)
    return jnp.dot(cols_ref[...], w_ref[...].reshape(9 * cin, cout),
                   preferred_element_type=F32)


def _fold_bn(s1, s2, gamma, beta, count, eps=1e-5):
    """Two-phase training-mode BatchNorm finalize: per-tile partial sums ->
    folded per-channel (scale, bias).  Biased batch variance, clamped before
    rsqrt to avoid NaN from f32 cancellation at large M."""
    s1 = jnp.sum(s1, axis=(0, 1))
    s2 = jnp.sum(s2, axis=(0, 1))
    mean = s1 / count
    var = jnp.maximum(s2 / count - mean * mean, 0.0)
    scale = gamma.reshape(-1).astype(F32) * jax.lax.rsqrt(var + eps)
    bias = beta.reshape(-1).astype(F32) - mean * scale
    return scale.reshape(1, -1), bias.reshape(1, -1)


# --------------------------------------------------------------------------
# kernels
# --------------------------------------------------------------------------
def _make_pass1_kernel(*, Nt, H, W, Ho, Wo, Cin, Cout, stride, isdownsample,
                       fuse_k):
    """conv1 (3x3, stride 1|2) raw output + BN1 partial sums; optionally the
    1x1/stride-2 projection raw output + its BN partial sums."""
    Mt = Nt * Ho * Wo
    n_src = 1 if stride == 1 else 4
    n_in = n_src + 1 + (1 if isdownsample else 0)
    n_out = 6 if isdownsample else 3

    def kernel(*refs):
        srcs = refs[:n_src]
        w1_ref = refs[n_src]
        wds_ref = refs[n_src + 1] if isdownsample else None
        outs = refs[n_in:n_in + n_out]
        y1_ref, s1_ref, s2_ref = outs[:3]
        if isdownsample:
            r_ref, sd1_ref, sd2_ref = outs[3:]
        scratch = refs[n_in + n_out:]
        pads = scratch[:n_src]
        cols_ref = scratch[n_src] if fuse_k else None

        if stride == 1:
            _zero_pad_into(pads[0], srcs[0][...].astype(BF16), 1)

            def tap(t):
                kh, kw = divmod(t, 3)
                return pads[0][:, kh:kh + Ho, kw:kw + Wo, :].reshape(Mt, Cin)
        else:
            # srcs are the 4 parity planes x[:, r::2, c::2, :] in (r, c)-major
            # order; pad each with a zero row/col at top/left so every tap
            # below is a plain contiguous slice (no strided loads).
            for p_ref, s_ref in zip(pads, srcs):
                _zero_pad_into(p_ref, s_ref[...].astype(BF16), 0)

            def tap(t):
                kh, kw = divmod(t, 3)
                rp, cp = (kh + 1) % 2, (kw + 1) % 2
                dh = 0 if kh == 0 else 1
                dw = 0 if kw == 0 else 1
                p = pads[2 * rp + cp]
                return p[:, dh:dh + Ho, dw:dw + Wo, :].reshape(Mt, Cin)

        y = _conv3x3(tap, w1_ref, cols_ref, Cin, Cout)        # (Mt, Cout) f32
        s1_ref[...] = jnp.sum(y, axis=0, keepdims=True).reshape(1, 1, Cout)
        s2_ref[...] = jnp.sum(y * y, axis=0, keepdims=True).reshape(1, 1, Cout)
        y1_ref[...] = y.astype(BF16).reshape(Nt, Ho, Wo, Cout)

        if isdownsample:
            # 1x1 / stride-2 projection reads x[:, 0::2, 0::2, :] == srcs[0]
            # straight from the still-resident ref (nothing kept live across
            # the main-path matmul above).
            xc = srcs[0][...].astype(BF16).reshape(Mt, Cin)
            r = jnp.dot(xc, wds_ref[...], preferred_element_type=F32)
            sd1_ref[...] = jnp.sum(r, axis=0, keepdims=True).reshape(1, 1, Cout)
            sd2_ref[...] = jnp.sum(r * r, axis=0,
                                   keepdims=True).reshape(1, 1, Cout)
            r_ref[...] = r.astype(BF16).reshape(Nt, Ho, Wo, Cout)

    return kernel


def _make_pass2_kernel(*, Nt, Ho, Wo, Cout, fuse_k):
    """bn1 (folded scale/bias) + relu + conv2 (3x3, stride 1) raw output + BN2
    partial sums."""
    Mt = Nt * Ho * Wo

    def kernel(*refs):
        y1_ref, sc_ref, bi_ref, w2_ref, y2_ref, s1_ref, s2_ref = refs[:7]
        pad_ref = refs[7]
        cols_ref = refs[8] if fuse_k else None

        sc = sc_ref[...].reshape(1, 1, 1, Cout)
        bi = bi_ref[...].reshape(1, 1, 1, Cout)
        # bn1 + relu in f32, stored straight into the bf16 padded scratch
        # (no f32 staging buffer, no per-tap cast later).
        h = jnp.maximum(y1_ref[...].astype(F32) * sc + bi, 0.0)
        _zero_pad_into(pad_ref, h.astype(BF16), 1)

        def tap(t):
            kh, kw = divmod(t, 3)
            return pad_ref[:, kh:kh + Ho, kw:kw + Wo, :].reshape(Mt, Cout)

        y = _conv3x3(tap, w2_ref, cols_ref, Cout, Cout)
        s1_ref[...] = jnp.sum(y, axis=0, keepdims=True).reshape(1, 1, Cout)
        s2_ref[...] = jnp.sum(y * y, axis=0, keepdims=True).reshape(1, 1, Cout)
        y2_ref[...] = y.astype(BF16).reshape(Nt, Ho, Wo, Cout)

    return kernel


def _make_pass3_kernel(*, Cout, isdownsample, out_dtype):
    """bn2 (folded) + residual add (identity x, or bn_ds of the projection) +
    final relu."""
    def kernel(*refs):
        if isdownsample:
            y2_ref, sc_ref, bi_ref, r_ref, scd_ref, bid_ref, o_ref = refs
        else:
            y2_ref, sc_ref, bi_ref, x_ref, o_ref = refs
        sc = sc_ref[...].reshape(1, 1, 1, Cout)
        bi = bi_ref[...].reshape(1, 1, 1, Cout)
        y = y2_ref[...].astype(F32) * sc + bi
        if isdownsample:
            scd = scd_ref[...].reshape(1, 1, 1, Cout)
            bid = bid_ref[...].reshape(1, 1, 1, Cout)
            res = r_ref[...].astype(F32) * scd + bid
        else:
            res = x_ref[...].astype(F32)
        o_ref[...] = jnp.maximum(y + res, 0.0).astype(out_dtype)

    return kernel


# --------------------------------------------------------------------------
# wrapper
# --------------------------------------------------------------------------
@functools.partial(
    jax.jit,
    static_argnames=("isdownsample", "stride", "batch_tile", "out_dtype"))
def residual_block_pallas(x_nchw, params, *, isdownsample, stride,
                          batch_tile=1, out_dtype=jnp.bfloat16):
    eps = 1e-5
    x = jnp.transpose(x_nchw, (0, 2, 3, 1)).astype(F32)        # NCHW -> NHWC
    N, H, W, Cin = x.shape
    Cout = params["w1"].shape[-1]

    assert stride in (1, 2)
    # The PyTorch module's projection conv is hardcoded stride-2, so the
    # residual add only type-checks for (stride=1, identity) or
    # (stride=2, downsample).
    assert isdownsample == (stride == 2)
    if stride == 1:
        assert Cin == Cout, "identity residual needs matching channels"
        Ho, Wo = H, W
    else:
        assert H % 2 == 0 and W % 2 == 0
        Ho, Wo = H // 2, W // 2

    Nt = batch_tile
    assert N % Nt == 0
    G = N // Nt
    M = N * Ho * Wo

    # big-K fused im2col matmul for narrow channels (and the only regime the
    # toy test hits); 9 accumulating dots once K=C already fills the MXU.
    fuse1 = Cin < 128
    fuse2 = Cout < 128

    cparams = pltpu.CompilerParams(
        dimension_semantics=("parallel",),        # megacore-shardable on v7x
        vmem_limit_bytes=_vmem_limit_bytes())

    w1 = params["w1"].reshape(9, Cin, Cout).astype(BF16)
    w2 = params["w2"].reshape(9, Cout, Cout).astype(BF16)

    def tile_spec(shape):                         # batch-tiled 4D arrays
        return pl.BlockSpec((Nt,) + tuple(shape[1:]), lambda i: (i, 0, 0, 0))

    def full_spec(shape):                         # resident across all tiles
        nd = len(shape)
        return pl.BlockSpec(tuple(shape), lambda i, _nd=nd: (0,) * _nd)

    stat_shape = jax.ShapeDtypeStruct((G, 1, Cout), F32)
    stat_spec = pl.BlockSpec((1, 1, Cout), lambda i: (i, 0, 0))
    act_shape = jax.ShapeDtypeStruct((N, Ho, Wo, Cout), BF16)
    act_spec = tile_spec((N, Ho, Wo, Cout))
    vec_spec = full_spec((1, Cout))

    # -------- pass 1: conv1 (+ 1x1/s2 projection) + BN partial sums ---------
    if stride == 1:
        srcs = [x]                                 # halo zeroed in VMEM only
        pad_scr = [pltpu.VMEM((Nt, H + 2, W + 2, Cin), BF16)]
    else:
        srcs = [x[:, 0::2, 0::2, :], x[:, 0::2, 1::2, :],
                x[:, 1::2, 0::2, :], x[:, 1::2, 1::2, :]]
        pad_scr = [pltpu.VMEM((Nt, Ho + 1, Wo + 1, Cin), BF16)
                   for _ in range(4)]

    p1_inputs = srcs + [w1]
    p1_in_specs = [tile_spec(s.shape) for s in srcs] + [full_spec(w1.shape)]
    if isdownsample:
        p1_inputs.append(params["wds"].reshape(Cin, Cout).astype(BF16))
        p1_in_specs.append(full_spec((Cin, Cout)))

    p1_out_shape = [act_shape, stat_shape, stat_shape]
    p1_out_specs = [act_spec, stat_spec, stat_spec]
    if isdownsample:
        p1_out_shape += [act_shape, stat_shape, stat_shape]
        p1_out_specs += [act_spec, stat_spec, stat_spec]

    p1_scratch = list(pad_scr)
    if fuse1:
        p1_scratch.append(pltpu.VMEM((Nt * Ho * Wo, 9 * Cin), BF16))

    p1_out = pl.pallas_call(
        _make_pass1_kernel(Nt=Nt, H=H, W=W, Ho=Ho, Wo=Wo, Cin=Cin, Cout=Cout,
                           stride=stride, isdownsample=isdownsample,
                           fuse_k=fuse1),
        grid=(G,),
        in_specs=p1_in_specs,
        out_specs=tuple(p1_out_specs),
        out_shape=tuple(p1_out_shape),
        scratch_shapes=p1_scratch,
        compiler_params=cparams,
    )(*p1_inputs)

    if isdownsample:
        y1_raw, s1a, s2a, r_raw, sd1, sd2 = p1_out
    else:
        y1_raw, s1a, s2a = p1_out

    scale1, bias1 = _fold_bn(s1a, s2a, params["g1"], params["b1"], M, eps)

    # -------- pass 2: bn1 + relu + conv2 + BN partial sums ------------------
    p2_scratch = [pltpu.VMEM((Nt, Ho + 2, Wo + 2, Cout), BF16)]
    if fuse2:
        p2_scratch.append(pltpu.VMEM((Nt * Ho * Wo, 9 * Cout), BF16))

    y2_raw, s1b, s2b = pl.pallas_call(
        _make_pass2_kernel(Nt=Nt, Ho=Ho, Wo=Wo, Cout=Cout, fuse_k=fuse2),
        grid=(G,),
        in_specs=[act_spec, vec_spec, vec_spec, full_spec(w2.shape)],
        out_specs=(act_spec, stat_spec, stat_spec),
        out_shape=(act_shape, stat_shape, stat_shape),
        scratch_shapes=p2_scratch,
        compiler_params=cparams,
    )(y1_raw, scale1, bias1, w2)

    scale2, bias2 = _fold_bn(s1b, s2b, params["g2"], params["b2"], M, eps)

    # -------- pass 3: bn2 + residual add + final relu -----------------------
    if isdownsample:
        scale_d, bias_d = _fold_bn(sd1, sd2, params["gds"], params["bds"],
                                   M, eps)
        p3_inputs = [y2_raw, scale2, bias2, r_raw, scale_d, bias_d]
        p3_in_specs = [act_spec, vec_spec, vec_spec,
                       act_spec, vec_spec, vec_spec]
    else:
        p3_inputs = [y2_raw, scale2, bias2, x]
        p3_in_specs = [act_spec, vec_spec, vec_spec, tile_spec(x.shape)]

    out = pl.pallas_call(
        _make_pass3_kernel(Cout=Cout, isdownsample=isdownsample,
                           out_dtype=out_dtype),
        grid=(G,),
        in_specs=p3_in_specs,
        out_specs=tile_spec((N, Ho, Wo, Cout)),
        out_shape=jax.ShapeDtypeStruct((N, Ho, Wo, Cout), out_dtype),
        compiler_params=cparams,
    )(*p3_inputs)

    return jnp.transpose(out, (0, 3, 1, 2))                    # NHWC -> NCHW


# --------------------------------------------------------------------------
# reference (plain JAX, f32) and deterministic params
# --------------------------------------------------------------------------
def residual_block_ref(x_nchw, p, *, isdownsample, stride):
    x = jnp.transpose(x_nchw, (0, 2, 3, 1)).astype(F32)

    def conv(x, w, s, pad):
        return jax.lax.conv_general_dilated(
            x, w, (s, s), [(pad, pad), (pad, pad)],
            dimension_numbers=("NHWC", "HWIO", "NHWC"))

    def bn(y, g, b, eps=1e-5):
        m = y.mean(axis=(0, 1, 2), keepdims=True)
        v = ((y - m) ** 2).mean(axis=(0, 1, 2), keepdims=True)
        return (y - m) / jnp.sqrt(v + eps) * g.reshape(1, 1, 1, -1) \
               + b.reshape(1, 1, 1, -1)

    out = jax.nn.relu(bn(conv(x, p["w1"], stride, 1), p["g1"], p["b1"]))
    out = bn(conv(out, p["w2"], 1, 1), p["g2"], p["b2"])
    res = x
    if isdownsample:
        res = bn(conv(x, p["wds"], 2, 0), p["gds"], p["bds"])
    out = jax.nn.relu(out + res)
    return jnp.transpose(out, (0, 3, 1, 2))


def init_params(key, cin, cout):
    ks = jax.random.split(key, 9)
    return dict(
        w1=0.1 * jax.random.normal(ks[0], (3, 3, cin, cout), F32),   # HWIO
        g1=1.0 + 0.1 * jax.random.normal(ks[1], (1, cout), F32),
        b1=0.1 * jax.random.normal(ks[2], (1, cout), F32),
        w2=0.1 * jax.random.normal(ks[3], (3, 3, cout, cout), F32),  # HWIO
        g2=1.0 + 0.1 * jax.random.normal(ks[4], (1, cout), F32),
        b2=0.1 * jax.random.normal(ks[5], (1, cout), F32),
        wds=0.1 * jax.random.normal(ks[6], (1, 1, cin, cout), F32),  # 1x1 proj
        gds=1.0 + 0.1 * jax.random.normal(ks[7], (1, cout), F32),
        bds=0.1 * jax.random.normal(ks[8], (1, cout), F32),
    )


if __name__ == "__main__":
    key = jax.random.PRNGKey(0)
    kx, kp1, kp2, kp3, kx3 = jax.random.split(key, 5)

    x = jax.random.normal(kx, (2, 4, 16, 16), F32)     # NCHW, like PyTorch

    # bf16 MXU operands, bf16 staged activations and bf16 block output vs. the
    # f32 reference -> loosened tolerances.
    ATOL, RTOL = 1e-1, 1e-1

    # Case 1: identity residual (stride=1, 4 -> 4 channels, fused big-K path).
    p1 = init_params(kp1, 4, 4)
    out1 = jax.block_until_ready(
        residual_block_pallas(x, p1, isdownsample=False, stride=1))
    ref1 = residual_block_ref(x, p1, isdownsample=False, stride=1)
    assert out1.shape == (2, 4, 16, 16)
    assert jnp.allclose(out1.astype(F32), ref1, atol=ATOL, rtol=RTOL)

    # Case 2: projection residual (stride=2, 4 -> 8 channels, fused big-K).
    p2 = init_params(kp2, 4, 8)
    out2 = jax.block_until_ready(
        residual_block_pallas(x, p2, isdownsample=True, stride=2))
    ref2 = residual_block_ref(x, p2, isdownsample=True, stride=2)
    assert out2.shape == (2, 8, 8, 8)
    assert jnp.allclose(out2.astype(F32), ref2, atol=ATOL, rtol=RTOL)

    # Case 3: wider channels (64 -> 128) exercising the 9-accumulating-dot
    # (no-im2col) conv2 path used at real ResNet10 channel counts.
    x3 = jax.random.normal(kx3, (2, 64, 16, 16), F32)
    p3 = init_params(kp3, 64, 128)
    out3 = jax.block_until_ready(
        residual_block_pallas(x3, p3, isdownsample=True, stride=2))
    ref3 = residual_block_ref(x3, p3, isdownsample=True, stride=2)
    assert out3.shape == (2, 128, 8, 8)
    assert jnp.allclose(out3.astype(F32), ref3, atol=ATOL, rtol=RTOL)

    print("KERNEL_OK")
</pallas_src>

<mosaic_0001>
module attributes {stable_mosaic.version = 11 : i64} {
  func.func @kernel(%arg0: i32, %arg1: memref<1x16x16x4xf32, #tpu.memory_space<vmem>>, %arg2: memref<9x4x4xbf16, #tpu.memory_space<vmem>>, %arg3: memref<1x16x16x4xbf16, #tpu.memory_space<vmem>>, %arg4: memref<1x1x4xf32, #tpu.memory_space<vmem>>, %arg5: memref<1x1x4xf32, #tpu.memory_space<vmem>>, %arg6: memref<1x18x18x4xbf16, #tpu.memory_space<vmem>>, %arg7: memref<256x36xbf16, #tpu.memory_space<vmem>>) attributes {dimension_semantics = [#tpu.dimension_semantics<parallel>], iteration_bounds = array<i64: 2>, scalar_prefetch = 0 : i64, scratch_operands = 2 : i64, tpu.core_type = #tpu.core_type<tc>, window_params = [{transform_indices = @transform_0, window_bounds = array<i64: 1, 16, 16, 4>}, {pipeline_mode = #tpu.pipeline_mode<synchronous>, transform_indices = @transform_1, window_bounds = array<i64: 9, 4, 4>}, {transform_indices = @transform_2, window_bounds = array<i64: 1, 16, 16, 4>}, {transform_indices = @transform_3, window_bounds = array<i64: 1, 1, 4>}, {transform_indices = @transform_4, window_bounds = array<i64: 1, 1, 4>}]} {
    %c0 = arith.constant 0 : index
    %c0_0 = arith.constant 0 : index
    %c0_1 = arith.constant 0 : index
    %c0_2 = arith.constant 0 : index
    %0 = vector.load %arg1[%c0, %c0_0, %c0_1, %c0_2] : memref<1x16x16x4xf32, #tpu.memory_space<vmem>>, vector<1x16x16x4xf32>
    %1 = arith.truncf %0 : vector<1x16x16x4xf32> to vector<1x16x16x4xbf16>
    %cst = arith.constant 0.000000e+00 : bf16
    %2 = vector.broadcast %cst : bf16 to vector<1x1x18x4xbf16>
    %c0_3 = arith.constant 0 : index
    %c0_4 = arith.constant 0 : index
    %c0_5 = arith.constant 0 : index
    %c0_6 = arith.constant 0 : index
    %3 = vector.load %arg6[%c0_3, %c0_4, %c0_5, %c0_6] : memref<1x18x18x4xbf16, #tpu.memory_space<vmem>>, vector<1x1x18x4xbf16>
    tpu.vector_store %arg6[%c0_3, %c0_4, %c0_5, %c0_6], %2 {strides = array<i32>} : memref<1x18x18x4xbf16, #tpu.memory_space<vmem>>, vector<1x1x18x4xbf16>,
    %cst_7 = arith.constant 0.000000e+00 : bf16
    %4 = vector.broadcast %cst_7 : bf16 to vector<1x16x1x4xbf16>
    %c0_8 = arith.constant 0 : index
    %c1 = arith.constant 1 : index
    %c0_9 = arith.constant 0 : index
    %c0_10 = arith.constant 0 : index
    %5 = vector.load %arg6[%c0_8, %c1, %c0_9, %c0_10] : memref<1x18x18x4xbf16, #tpu.memory_space<vmem>>, vector<1x16x1x4xbf16>
    tpu.vector_store %arg6[%c0_8, %c1, %c0_9, %c0_10], %4 {strides = array<i32>} : memref<1x18x18x4xbf16, #tpu.memory_space<vmem>>, vector<1x16x1x4xbf16>,
    %cst_11 = arith.constant 0.000000e+00 : bf16
    %6 = vector.broadcast %cst_11 : bf16 to vector<1x1x18x4xbf16>
    %c0_12 = arith.constant 0 : index
    %c17 = arith.constant 17 : index
    %c0_13 = arith.constant 0 : index
    %c0_14 = arith.constant 0 : index
    %7 = vector.load %arg6[%c0_12, %c17, %c0_13, %c0_14] : memref<1x18x18x4xbf16, #tpu.memory_space<vmem>>, vector<1x1x18x4xbf16>
    tpu.vector_store %arg6[%c0_12, %c17, %c0_13, %c0_14], %6 {strides = array<i32>} : memref<1x18x18x4xbf16, #tpu.memory_space<vmem>>, vector<1x1x18x4xbf16>,
    %cst_15 = arith.constant 0.000000e+00 : bf16
    %8 = vector.broadcast %cst_15 : bf16 to vector<1x16x1x4xbf16>
    %c0_16 = arith.constant 0 : index
    %c1_17 = arith.constant 1 : index
    %c17_18 = arith.constant 17 : index
    %c0_19 = arith.constant 0 : index
    %9 = vector.load %arg6[%c0_16, %c1_17, %c17_18, %c0_19] : memref<1x18x18x4xbf16, #tpu.memory_space<vmem>>, vector<1x16x1x4xbf16>
    tpu.vector_store %arg6[%c0_16, %c1_17, %c17_18, %c0_19], %8 {strides = array<i32>} : memref<1x18x18x4xbf16, #tpu.memory_space<vmem>>, vector<1x16x1x4xbf16>,
    %c0_20 = arith.constant 0 : index
    %c1_21 = arith.constant 1 : index
    %c1_22 = arith.constant 1 : index
    %c0_23 = arith.constant 0 : index
    %10 = vector.load %arg6[%c0_20, %c1_21, %c1_22, %c0_23] : memref<1x18x18x4xbf16, #tpu.memory_space<vmem>>, vector<1x16x16x4xbf16>
    tpu.vector_store %arg6[%c0_20, %c1_21, %c1_22, %c0_23], %1 {strides = array<i32>} : memref<1x18x18x4xbf16, #tpu.memory_space<vmem>>, vector<1x16x16x4xbf16>,
    %c0_24 = arith.constant 0 : index
    %c0_25 = arith.constant 0 : index
    %c0_26 = arith.constant 0 : index
    %c0_27 = arith.constant 0 : index
    %11 = vector.load %arg6[%c0_24, %c0_25, %c0_26, %c0_27] : memref<1x18x18x4xbf16, #tpu.memory_space<vmem>>, vector<1x16x16x4xbf16>
    %12 = vector.shape_cast %11 : vector<1x16x16x4xbf16> to vector<256x4xbf16>
    %c0_28 = arith.constant 0 : index
    %c0_29 = arith.constant 0 : index
    %13 = vector.load %arg7[%c0_28, %c0_29] : memref<256x36xbf16, #tpu.memory_space<vmem>>, vector<256x4xbf16>
    tpu.vector_store %arg7[%c0_28, %c0_29], %12 {strides = array<i32>} : memref<256x36xbf16, #tpu.memory_space<vmem>>, vector<256x4xbf16>,
    %c0_30 = arith.constant 0 : index
    %c0_31 = arith.constant 0 : index
    %c1_32 = arith.constant 1 : index
    %c0_33 = arith.constant 0 : index
    %14 = vector.load %arg6[%c0_30, %c0_31, %c1_32, %c0_33] : memref<1x18x18x4xbf16, #tpu.memory_space<vmem>>, vector<1x16x16x4xbf16>
    %15 = vector.shape_cast %14 : vector<1x16x16x4xbf16> to vector<256x4xbf16>
    %c0_34 = arith.constant 0 : index
    %c4 = arith.constant 4 : index
    %16 = vector.load %arg7[%c0_34, %c4] : memref<256x36xbf16, #tpu.memory_space<vmem>>, vector<256x4xbf16>
    tpu.vector_store %arg7[%c0_34, %c4], %15 {strides = array<i32>} : memref<256x36xbf16, #tpu.memory_space<vmem>>, vector<256x4xbf16>,
    %c0_35 = arith.constant 0 : index
    %c0_36 = arith.constant 0 : index
    %c2 = arith.constant 2 : index
    %c0_37 = arith.constant 0 : index
    %17 = vector.load %arg6[%c0_35, %c0_36, %c2, %c0_37] : memref<1x18x18x4xbf16, #tpu.memory_space<vmem>>, vector<1x16x16x4xbf16>
    %18 = vector.shape_cast %17 : vector<1x16x16x4xbf16> to vector<256x4xbf16>
    %c0_38 = arith.constant 0 : index
    %c8 = arith.constant 8 : index
    %19 = vector.load %arg7[%c0_38, %c8] : memref<256x36xbf16, #tpu.memory_space<vmem>>, vector<256x4xbf16>
    tpu.vector_store %arg7[%c0_38, %c8], %18 {strides = array<i32>} : memref<256x36xbf16, #tpu.memory_space<vmem>>, vector<256x4xbf16>,
    %c0_39 = arith.constant 0 : index
    %c1_40 = arith.constant 1 : index
    %c0_41 = arith.constant 0 : index
    %c0_42 = arith.constant 0 : index
    %20 = vector.load %arg6[%c0_39, %c1_40, %c0_41, %c0_42] : memref<1x18x18x4xbf16, #tpu.memory_space<vmem>>, vector<1x16x16x4xbf16>
    %21 = vector.shape_cast %20 : vector<1x16x16x4xbf16> to vector<256x4xbf16>
    %c0_43 = arith.constant 0 : index
    %c12 = arith.constant 12 : index
    %22 = vector.load %arg7[%c0_43, %c12] : memref<256x36xbf16, #tpu.memory_space<vmem>>, vector<256x4xbf16>
    tpu.vector_store %arg7[%c0_43, %c12], %21 {strides = array<i32>} : memref<256x36xbf16, #tpu.memory_space<vmem>>, vector<256x4xbf16>,
    %c0_44 = arith.constant 0 : index
    %c1_45 = arith.constant 1 : index
    %c1_46 = arith.constant 1 : index
    %c0_47 = arith.constant 0 : index
    %23 = vector.load %arg6[%c0_44, %c1_45, %c1_46, %c0_47] : memref<1x18x18x4xbf16, #tpu.memory_space<vmem>>, vector<1x16x16x4xbf16>
    %24 = vector.shape_cast %23 : vector<1x16x16x4xbf16> to vector<256x4xbf16>
    %c0_48 = arith.constant 0 : index
    %c16 = arith.constant 16 : index
    %25 = vector.load %arg7[%c0_48, %c16] : memref<256x36xbf16, #tpu.memory_space<vmem>>, vector<256x4xbf16>
    tpu.vector_store %arg7[%c0_48, %c16], %24 {strides = array<i32>} : memref<256x36xbf16, #tpu.memory_space<vmem>>, vector<256x4xbf16>,
    %c0_49 = arith.constant 0 : index
    %c1_50 = arith.constant 1 : index
    %c2_51 = arith.constant 2 : index
    %c0_52 = arith.constant 0 : index
    %26 = vector.load %arg6[%c0_49, %c1_50, %c2_51, %c0_52] : memref<1x18x18x4xbf16, #tpu.memory_space<vmem>>, vector<1x16x16x4xbf16>
    %27 = vector.shape_cast %26 : vector<1x16x16x4xbf16> to vector<256x4xbf16>
    %c0_53 = arith.constant 0 : index
    %c20 = arith.constant 20 : index
    %28 = vector.load %arg7[%c0_53, %c20] : memref<256x36xbf16, #tpu.memory_space<vmem>>, vector<256x4xbf16>
    tpu.vector_store %arg7[%c0_53, %c20], %27 {strides = array<i32>} : memref<256x36xbf16, #tpu.memory_space<vmem>>, vector<256x4xbf16>,
    %c0_54 = arith.constant 0 : index
    %c2_55 = arith.constant 2 : index
    %c0_56 = arith.constant 0 : index
    %c0_57 = arith.constant 0 : index
    %29 = vector.load %arg6[%c0_54, %c2_55, %c0_56, %c0_57] : memref<1x18x18x4xbf16, #tpu.memory_space<vmem>>, vector<1x16x16x4xbf16>
    %30 = vector.shape_cast %29 : vector<1x16x16x4xbf16> to vector<256x4xbf16>
    %c0_58 = arith.constant 0 : index
    %c24 = arith.constant 24 : index
    %31 = vector.load %arg7[%c0_58, %c24] : memref<256x36xbf16, #tpu.memory_space<vmem>>, vector<256x4xbf16>
    tpu.vector_store %arg7[%c0_58, %c24], %30 {strides = array<i32>} : memref<256x36xbf16, #tpu.memory_space<vmem>>, vector<256x4xbf16>,
    %c0_59 = arith.constant 0 : index
    %c2_60 = arith.constant 2 : index
    %c1_61 = arith.constant 1 : index
    %c0_62 = arith.constant 0 : index
    %32 = vector.load %arg6[%c0_59, %c2_60, %c1_61, %c0_62] : memref<1x18x18x4xbf16, #tpu.memory_space<vmem>>, vector<1x16x16x4xbf16>
    %33 = vector.shape_cast %32 : vector<1x16x16x4xbf16> to vector<256x4xbf16>
    %c0_63 = arith.constant 0 : index
    %c28 = arith.constant 28 : index
    %34 = vector.load %arg7[%c0_63, %c28] : memref<256x36xbf16, #tpu.memory_space<vmem>>, vector<256x4xbf16>
    tpu.vector_store %arg7[%c0_63, %c28], %33 {strides = array<i32>} : memref<256x36xbf16, #tpu.memory_space<vmem>>, vector<256x4xbf16>,
    %c0_64 = arith.constant 0 : index
    %c2_65 = arith.constant 2 : index
    %c2_66 = arith.constant 2 : index
    %c0_67 = arith.constant 0 : index
    %35 = vector.load %arg6[%c0_64, %c2_65, %c2_66, %c0_67] : memref<1x18x18x4xbf16, #tpu.memory_space<vmem>>, vector<1x16x16x4xbf16>
    %36 = vector.shape_cast %35 : vector<1x16x16x4xbf16> to vector<256x4xbf16>
    %c0_68 = arith.constant 0 : index
    %c32 = arith.constant 32 : index
    %37 = vector.load %arg7[%c0_68, %c32] : memref<256x36xbf16, #tpu.memory_space<vmem>>, vector<256x4xbf16>
    tpu.vector_store %arg7[%c0_68, %c32], %36 {strides = array<i32>} : memref<256x36xbf16, #tpu.memory_space<vmem>>, vector<256x4xbf16>,
    %c0_69 = arith.constant 0 : index
    %c0_70 = arith.constant 0 : index
    %38 = vector.load %arg7[%c0_69, %c0_70] : memref<256x36xbf16, #tpu.memory_space<vmem>>, vector<256x36xbf16>
    %c0_71 = arith.constant 0 : index
    %c0_72 = arith.constant 0 : index
    %c0_73 = arith.constant 0 : index
    %39 = vector.load %arg2[%c0_71, %c0_72, %c0_73] : memref<9x4x4xbf16, #tpu.memory_space<vmem>>, vector<9x4x4xbf16>
    %40 = vector.shape_cast %39 : vector<9x4x4xbf16> to vector<36x4xbf16>
    %cst_74 = arith.constant dense<0.000000e+00> : vector<256x4xf32>
    %41 = tpu.matmul %38, %40, %cst_74 {dimension_numbers = #tpu.dot_dimension_numbers<[1], [0], [0], [1], [0, 0, 1, 1], [], []>} : vector<256x36xbf16>, vector<36x4xbf16>, vector<256x4xf32> -> vector<256x4xf32>
    %cst_75 = arith.constant dense<0.000000e+00> : vector<4xf32>
    %42 = vector.multi_reduction <add>, %41, %cst_75 [0] : vector<256x4xf32> to vector<4xf32>
    %43 = vector.shape_cast %42 : vector<4xf32> to vector<1x4xf32>
    %44 = vector.shape_cast %43 : vector<1x4xf32> to vector<1x1x4xf32>
    %c0_76 = arith.constant 0 : index
    %c0_77 = arith.constant 0 : index
    %c0_78 = arith.constant 0 : index
    %45 = vector.load %arg4[%c0_76, %c0_77, %c0_78] : memref<1x1x4xf32, #tpu.memory_space<vmem>>, vector<1x1x4xf32>
    tpu.vector_store %arg4[%c0_76, %c0_77, %c0_78], %44 {strides = array<i32>} : memref<1x1x4xf32, #tpu.memory_space<vmem>>, vector<1x1x4xf32>,
    %46 = arith.mulf %41, %41 : vector<256x4xf32>
    %cst_79 = arith.constant dense<0.000000e+00> : vector<4xf32>
    %47 = vector.multi_reduction <add>, %46, %cst_79 [0] : vector<256x4xf32> to vector<4xf32>
    %48 = vector.shape_cast %47 : vector<4xf32> to vector<1x4xf32>
    %49 = vector.shape_cast %48 : vector<1x4xf32> to vector<1x1x4xf32>
    %c0_80 = arith.constant 0 : index
    %c0_81 = arith.constant 0 : index
    %c0_82 = arith.constant 0 : index
    %50 = vector.load %arg5[%c0_80, %c0_81, %c0_82] : memref<1x1x4xf32, #tpu.memory_space<vmem>>, vector<1x1x4xf32>
    tpu.vector_store %arg5[%c0_80, %c0_81, %c0_82], %49 {strides = array<i32>} : memref<1x1x4xf32, #tpu.memory_space<vmem>>, vector<1x1x4xf32>,
    %51 = arith.truncf %41 : vector<256x4xf32> to vector<256x4xbf16>
    %52 = vector.shape_cast %51 : vector<256x4xbf16> to vector<1x16x16x4xbf16>
    %c0_83 = arith.constant 0 : index
    %c0_84 = arith.constant 0 : index
    %c0_85 = arith.constant 0 : index
    %c0_86 = arith.constant 0 : index
    %53 = vector.load %arg3[%c0_83, %c0_84, %c0_85, %c0_86] : memref<1x16x16x4xbf16, #tpu.memory_space<vmem>>, vector<1x16x16x4xbf16>
    tpu.vector_store %arg3[%c0_83, %c0_84, %c0_85, %c0_86], %52 {strides = array<i32>} : memref<1x16x16x4xbf16, #tpu.memory_space<vmem>>, vector<1x16x16x4xbf16>,
    return
  }
  func.func @transform_0(%arg0: i32) -> (i32, i32, i32, i32) {
    %c0_i32 = arith.constant 0 : i32
    %c0_i32_0 = arith.constant 0 : i32
    %c0_i32_1 = arith.constant 0 : i32
    %c0_i32_2 = arith.constant 0 : i32
    return %arg0, %c0_i32, %c0_i32_0, %c0_i32_1 : i32, i32, i32, i32
  }
  func.func @transform_1(%arg0: i32) -> (i32, i32, i32) {
    %c0_i32 = arith.constant 0 : i32
    %c0_i32_0 = arith.constant 0 : i32
    %c0_i32_1 = arith.constant 0 : i32
    %c0_i32_2 = arith.constant 0 : i32
    return %c0_i32, %c0_i32_0, %c0_i32_1 : i32, i32, i32
  }
  func.func @transform_2(%arg0: i32) -> (i32, i32, i32, i32) {
    %c0_i32 = arith.constant 0 : i32
    %c0_i32_0 = arith.constant 0 : i32
    %c0_i32_1 = arith.constant 0 : i32
    %c0_i32_2 = arith.constant 0 : i32
    return %arg0, %c0_i32, %c0_i32_0, %c0_i32_1 : i32, i32, i32, i32
  }
  func.func @transform_3(%arg0: i32) -> (i32, i32, i32) {
    %c0_i32 = arith.constant 0 : i32
    %c0_i32_0 = arith.constant 0 : i32
    %c0_i32_1 = arith.constant 0 : i32
    return %arg0, %c0_i32, %c0_i32_0 : i32, i32, i32
  }
  func.func @transform_4(%arg0: i32) -> (i32, i32, i32) {
    %c0_i32 = arith.constant 0 : i32
    %c0_i32_0 = arith.constant 0 : i32
    %c0_i32_1 = arith.constant 0 : i32
    return %arg0, %c0_i32, %c0_i32_0 : i32, i32, i32
  }
}

module attributes {stable_mosaic.version = 11 : i64} {
  func.func @kernel(%arg0: i32, %arg1: memref<1x16x16x4xbf16, #tpu.memory_space<vmem>>, %arg2: memref<1x4xf32, #tpu.memory_space<vmem>>, %arg3: memref<1x4xf32, #tpu.memory_space<vmem>>, %arg4: memref<1x16x16x4xf32, #tpu.memory_space<vmem>>, %arg5: memref<1x16x16x4xbf16, #tpu.memory_space<vmem>>) attributes {dimension_semantics = [#tpu.dimension_semantics<parallel>], iteration_bounds = array<i64: 2>, scalar_prefetch = 0 : i64, scratch_operands = 0 : i64, tpu.core_type = #tpu.core_type<tc>, window_params = [{transform_indices = @transform_0, window_bounds = array<i64: 1, 16, 16, 4>}, {pipeline_mode = #tpu.pipeline_mode<synchronous>, transform_indices = @transform_1, window_bounds = array<i64: 1, 4>}, {pipeline_mode = #tpu.pipeline_mode<synchronous>, transform_indices = @transform_2, window_bounds = array<i64: 1, 4>}, {transform_indices = @transform_3, window_bounds = array<i64: 1, 16, 16, 4>}, {transform_indices = @transform_4, window_bounds = array<i64: 1, 16, 16, 4>}]} {
    %c0 = arith.constant 0 : index
    %c0_0 = arith.constant 0 : index
    %0 = vector.load %arg2[%c0, %c0_0] : memref<1x4xf32, #tpu.memory_space<vmem>>, vector<1x4xf32>
    %1 = vector.shape_cast %0 : vector<1x4xf32> to vector<1x1x1x4xf32>
    %c0_1 = arith.constant 0 : index
    %c0_2 = arith.constant 0 : index
    %2 = vector.load %arg3[%c0_1, %c0_2] : memref<1x4xf32, #tpu.memory_space<vmem>>, vector<1x4xf32>
    %3 = vector.shape_cast %2 : vector<1x4xf32> to vector<1x1x1x4xf32>
    %c0_3 = arith.constant 0 : index
    %c0_4 = arith.constant 0 : index
    %c0_5 = arith.constant 0 : index
    %c0_6 = arith.constant 0 : index
    %4 = vector.load %arg1[%c0_3, %c0_4, %c0_5, %c0_6] : memref<1x16x16x4xbf16, #tpu.memory_space<vmem>>, vector<1x16x16x4xbf16>
    %5 = arith.extf %4 : vector<1x16x16x4xbf16> to vector<1x16x16x4xf32>
    %6 = vector.broadcast %1 : vector<1x1x1x4xf32> to vector<1x16x16x4xf32>
    %7 = arith.mulf %5, %6 : vector<1x16x16x4xf32>
    %8 = vector.broadcast %3 : vector<1x1x1x4xf32> to vector<1x16x16x4xf32>
    %9 = arith.addf %7, %8 : vector<1x16x16x4xf32>
    %c0_7 = arith.constant 0 : index
    %c0_8 = arith.constant 0 : index
    %c0_9 = arith.constant 0 : index
    %c0_10 = arith.constant 0 : index
    %10 = vector.load %arg4[%c0_7, %c0_8, %c0_9, %c0_10] : memref<1x16x16x4xf32, #tpu.memory_space<vmem>>, vector<1x16x16x4xf32>
    %11 = arith.addf %9, %10 : vector<1x16x16x4xf32>
    %cst = arith.constant 0.000000e+00 : f32
    %12 = vector.broadcast %cst : f32 to vector<1x16x16x4xf32>
    %13 = arith.maximumf %11, %12 : vector<1x16x16x4xf32>
    %14 = arith.truncf %13 : vector<1x16x16x4xf32> to vector<1x16x16x4xbf16>
    %c0_11 = arith.constant 0 : index
    %c0_12 = arith.constant 0 : index
    %c0_13 = arith.constant 0 : index
    %c0_14 = arith.constant 0 : index
    %15 = vector.load %arg5[%c0_11, %c0_12, %c0_13, %c0_14] : memref<1x16x16x4xbf16, #tpu.memory_space<vmem>>, vector<1x16x16x4xbf16>
    tpu.vector_store %arg5[%c0_11, %c0_12, %c0_13, %c0_14], %14 {strides = array<i32>} : memref<1x16x16x4xbf16, #tpu.memory_space<vmem>>, vector<1x16x16x4xbf16>,
    return
  }
  func.func @transform_0(%arg0: i32) -> (i32, i32, i32, i32) {
    %c0_i32 = arith.constant 0 : i32
    %c0_i32_0 = arith.constant 0 : i32
    %c0_i32_1 = arith.constant 0 : i32
    %c0_i32_2 = arith.constant 0 : i32
    return %arg0, %c0_i32, %c0_i32_0, %c0_i32_1 : i32, i32, i32, i32
  }
  func.func @transform_1(%arg0: i32) -> (i32, i32) {
    %c0_i32 = arith.constant 0 : i32
    %c0_i32_0 = arith.constant 0 : i32
    %c0_i32_1 = arith.constant 0 : i32
    return %c0_i32, %c0_i32_0 : i32, i32
  }
  func.func @transform_2(%arg0: i32) -> (i32, i32) {
    %c0_i32 = arith.constant 0 : i32
    %c0_i32_0 = arith.constant 0 : i32
    %c0_i32_1 = arith.constant 0 : i32
    return %c0_i32, %c0_i32_0 : i32, i32
  }
  func.func @transform_3(%arg0: i32) -> (i32, i32, i32, i32) {
    %c0_i32 = arith.constant 0 : i32
    %c0_i32_0 = arith.constant 0 : i32
    %c0_i32_1 = arith.constant 0 : i32
    %c0_i32_2 = arith.constant 0 : i32
    return %arg0, %c0_i32, %c0_i32_0, %c0_i32_1 : i32, i32, i32, i32
  }
  func.func @transform_4(%arg0: i32) -> (i32, i32, i32, i32) {
    %c0_i32 = arith.constant 0 : i32
    %c0_i32_0 = arith.constant 0 : i32
    %c0_i32_1 = arith.constant 0 : i32
    %c0_i32_2 = arith.constant 0 : i32
    return %arg0, %c0_i32, %c0_i32_0, %c0_i32_1 : i32, i32, i32, i32
  }
}

module attributes {stable_mosaic.version = 11 : i64} {
  func.func @kernel(%arg0: i32, %arg1: memref<1x16x16x4xbf16, #tpu.memory_space<vmem>>, %arg2: memref<1x4xf32, #tpu.memory_space<vmem>>, %arg3: memref<1x4xf32, #tpu.memory_space<vmem>>, %arg4: memref<9x4x4xbf16, #tpu.memory_space<vmem>>, %arg5: memref<1x16x16x4xbf16, #tpu.memory_space<vmem>>, %arg6: memref<1x1x4xf32, #tpu.memory_space<vmem>>, %arg7: memref<1x1x4xf32, #tpu.memory_space<vmem>>, %arg8: memref<1x18x18x4xbf16, #tpu.memory_space<vmem>>, %arg9: memref<256x36xbf16, #tpu.memory_space<vmem>>) attributes {dimension_semantics = [#tpu.dimension_semantics<parallel>], iteration_bounds = array<i64: 2>, scalar_prefetch = 0 : i64, scratch_operands = 2 : i64, tpu.core_type = #tpu.core_type<tc>, window_params = [{transform_indices = @transform_0, window_bounds = array<i64: 1, 16, 16, 4>}, {pipeline_mode = #tpu.pipeline_mode<synchronous>, transform_indices = @transform_1, window_bounds = array<i64: 1, 4>}, {pipeline_mode = #tpu.pipeline_mode<synchronous>, transform_indices = @transform_2, window_bounds = array<i64: 1, 4>}, {pipeline_mode = #tpu.pipeline_mode<synchronous>, transform_indices = @transform_3, window_bounds = array<i64: 9, 4, 4>}, {transform_indices = @transform_4, window_bounds = array<i64: 1, 16, 16, 4>}, {transform_indices = @transform_5, window_bounds = array<i64: 1, 1, 4>}, {transform_indices = @transform_6, window_bounds = array<i64: 1, 1, 4>}]} {
    %c0 = arith.constant 0 : index
    %c0_0 = arith.constant 0 : index
    %0 = vector.load %arg2[%c0, %c0_0] : memref<1x4xf32, #tpu.memory_space<vmem>>, vector<1x4xf32>
    %1 = vector.shape_cast %0 : vector<1x4xf32> to vector<1x1x1x4xf32>
    %c0_1 = arith.constant 0 : index
    %c0_2 = arith.constant 0 : index
    %2 = vector.load %arg3[%c0_1, %c0_2] : memref<1x4xf32, #tpu.memory_space<vmem>>, vector<1x4xf32>
    %3 = vector.shape_cast %2 : vector<1x4xf32> to vector<1x1x1x4xf32>
    %c0_3 = arith.constant 0 : index
    %c0_4 = arith.constant 0 : index
    %c0_5 = arith.constant 0 : index
    %c0_6 = arith.constant 0 : index
    %4 = vector.load %arg1[%c0_3, %c0_4, %c0_5, %c0_6] : memref<1x16x16x4xbf16, #tpu.memory_space<vmem>>, vector<1x16x16x4xbf16>
    %5 = arith.extf %4 : vector<1x16x16x4xbf16> to vector<1x16x16x4xf32>
    %6 = vector.broadcast %1 : vector<1x1x1x4xf32> to vector<1x16x16x4xf32>
    %7 = arith.mulf %5, %6 : vector<1x16x16x4xf32>
    %8 = vector.broadcast %3 : vector<1x1x1x4xf32> to vector<1x16x16x4xf32>
    %9 = arith.addf %7, %8 : vector<1x16x16x4xf32>
    %cst = arith.constant 0.000000e+00 : f32
    %10 = vector.broadcast %cst : f32 to vector<1x16x16x4xf32>
    %11 = arith.maximumf %9, %10 : vector<1x16x16x4xf32>
    %12 = arith.truncf %11 : vector<1x16x16x4xf32> to vector<1x16x16x4xbf16>
    %cst_7 = arith.constant 0.000000e+00 : bf16
    %13 = vector.broadcast %cst_7 : bf16 to vector<1x1x18x4xbf16>
    %c0_8 = arith.constant 0 : index
    %c0_9 = arith.constant 0 : index
    %c0_10 = arith.constant 0 : index
    %c0_11 = arith.constant 0 : index
    %14 = vector.load %arg8[%c0_8, %c0_9, %c0_10, %c0_11] : memref<1x18x18x4xbf16, #tpu.memory_space<vmem>>, vector<1x1x18x4xbf16>
    tpu.vector_store %arg8[%c0_8, %c0_9, %c0_10, %c0_11], %13 {strides = array<i32>} : memref<1x18x18x4xbf16, #tpu.memory_space<vmem>>, vector<1x1x18x4xbf16>,
    %cst_12 = arith.constant 0.000000e+00 : bf16
    %15 = vector.broadcast %cst_12 : bf16 to vector<1x16x1x4xbf16>
    %c0_13 = arith.constant 0 : index
    %c1 = arith.constant 1 : index
    %c0_14 = arith.constant 0 : index
    %c0_15 = arith.constant 0 : index
    %16 = vector.load %arg8[%c0_13, %c1, %c0_14, %c0_15] : memref<1x18x18x4xbf16, #tpu.memory_space<vmem>>, vector<1x16x1x4xbf16>
    tpu.vector_store %arg8[%c0_13, %c1, %c0_14, %c0_15], %15 {strides = array<i32>} : memref<1x18x18x4xbf16, #tpu.memory_space<vmem>>, vector<1x16x1x4xbf16>,
    %cst_16 = arith.constant 0.000000e+00 : bf16
    %17 = vector.broadcast %cst_16 : bf16 to vector<1x1x18x4xbf16>
    %c0_17 = arith.constant 0 : index
    %c17 = arith.constant 17 : index
    %c0_18 = arith.constant 0 : index
    %c0_19 = arith.constant 0 : index
    %18 = vector.load %arg8[%c0_17, %c17, %c0_18, %c0_19] : memref<1x18x18x4xbf16, #tpu.memory_space<vmem>>, vector<1x1x18x4xbf16>
    tpu.vector_store %arg8[%c0_17, %c17, %c0_18, %c0_19], %17 {strides = array<i32>} : memref<1x18x18x4xbf16, #tpu.memory_space<vmem>>, vector<1x1x18x4xbf16>,
    %cst_20 = arith.constant 0.000000e+00 : bf16
    %19 = vector.broadcast %cst_20 : bf16 to vector<1x16x1x4xbf16>
    %c0_21 = arith.constant 0 : index
    %c1_22 = arith.constant 1 : index
    %c17_23 = arith.constant 17 : index
    %c0_24 = arith.constant 0 : index
    %20 = vector.load %arg8[%c0_21, %c1_22, %c17_23, %c0_24] : memref<1x18x18x4xbf16, #tpu.memory_space<vmem>>, vector<1x16x1x4xbf16>
    tpu.vector_store %arg8[%c0_21, %c1_22, %c17_23, %c0_24], %19 {strides = array<i32>} : memref<1x18x18x4xbf16, #tpu.memory_space<vmem>>, vector<1x16x1x4xbf16>,
    %c0_25 = arith.constant 0 : index
    %c1_26 = arith.constant 1 : index
    %c1_27 = arith.constant 1 : index
    %c0_28 = arith.constant 0 : index
    %21 = vector.load %arg8[%c0_25, %c1_26, %c1_27, %c0_28] : memref<1x18x18x4xbf16, #tpu.memory_space<vmem>>, vector<1x16x16x4xbf16>
    tpu.vector_store %arg8[%c0_25, %c1_26, %c1_27, %c0_28], %12 {strides = array<i32>} : memref<1x18x18x4xbf16, #tpu.memory_space<vmem>>, vector<1x16x16x4xbf16>,
    %c0_29 = arith.constant 0 : index
    %c0_30 = arith.constant 0 : index
    %c0_31 = arith.constant 0 : index
    %c0_32 = arith.constant 0 : index
    %22 = vector.load %arg8[%c0_29, %c0_30, %c0_31, %c0_32] : memref<1x18x18x4xbf16, #tpu.memory_space<vmem>>, vector<1x16x16x4xbf16>
    %23 = vector.shape_cast %22 : vector<1x16x16x4xbf16> to vector<256x4xbf16>
    %c0_33 = arith.constant 0 : index
    %c0_34 = arith.constant 0 : index
    %24 = vector.load %arg9[%c0_33, %c0_34] : memref<256x36xbf16, #tpu.memory_space<vmem>>, vector<256x4xbf16>
    tpu.vector_store %arg9[%c0_33, %c0_34], %23 {strides = array<i32>} : memref<256x36xbf16, #tpu.memory_space<vmem>>, vector<256x4xbf16>,
    %c0_35 = arith.constant 0 : index
    %c0_36 = arith.constant 0 : index
    %c1_37 = arith.constant 1 : index
    %c0_38 = arith.constant 0 : index
    %25 = vector.load %arg8[%c0_35, %c0_36, %c1_37, %c0_38] : memref<1x18x18x4xbf16, #tpu.memory_space<vmem>>, vector<1x16x16x4xbf16>
    %26 = vector.shape_cast %25 : vector<1x16x16x4xbf16> to vector<256x4xbf16>
    %c0_39 = arith.constant 0 : index
    %c4 = arith.constant 4 : index
    %27 = vector.load %arg9[%c0_39, %c4] : memref<256x36xbf16, #tpu.memory_space<vmem>>, vector<256x4xbf16>
    tpu.vector_store %arg9[%c0_39, %c4], %26 {strides = array<i32>} : memref<256x36xbf16, #tpu.memory_space<vmem>>, vector<256x4xbf16>,
    %c0_40 = arith.constant 0 : index
    %c0_41 = arith.constant 0 : index
    %c2 = arith.constant 2 : index
    %c0_42 = arith.constant 0 : index
    %28 = vector.load %arg8[%c0_40, %c0_41, %c2, %c0_42] : memref<1x18x18x4xbf16, #tpu.memory_space<vmem>>, vector<1x16x16x4xbf16>
    %29 = vector.shape_cast %28 : vector<1x16x16x4xbf16> to vector<256x4xbf16>
    %c0_43 = arith.constant 0 : index
    %c8 = arith.constant 8 : index
    %30 = vector.load %arg9[%c0_43, %c8] : memref<256x36xbf16, #tpu.memory_space<vmem>>, vector<256x4xbf16>
    tpu.vector_store %arg9[%c0_43, %c8], %29 {strides = array<i32>} : memref<256x36xbf16, #tpu.memory_space<vmem>>, vector<256x4xbf16>,
    %c0_44 = arith.constant 0 : index
    %c1_45 = arith.constant 1 : index
    %c0_46 = arith.constant 0 : index
    %c0_47 = arith.constant 0 : index
    %31 = vector.load %arg8[%c0_44, %c1_45, %c0_46, %c0_47] : memref<1x18x18x4xbf16, #tpu.memory_space<vmem>>, vector<1x16x16x4xbf16>
    %32 = vector.shape_cast %31 : vector<1x16x16x4xbf16> to vector<256x4xbf16>
    %c0_48 = arith.constant 0 : index
    %c12 = arith.constant 12 : index
    %33 = vector.load %arg9[%c0_48, %c12] : memref<256x36xbf16, #tpu.memory_space<vmem>>, vector<256x4xbf16>
    tpu.vector_store %arg9[%c0_48, %c12], %32 {strides = array<i32>} : memref<256x36xbf16, #tpu.memory_space<vmem>>, vector<256x4xbf16>,
    %c0_49 = arith.constant 0 : index
    %c1_50 = arith.constant 1 : index
    %c1_51 = arith.constant 1 : index
    %c0_52 = arith.constant 0 : index
    %34 = vector.load %arg8[%c0_49, %c1_50, %c1_51, %c0_52] : memref<1x18x18x4xbf16, #tpu.memory_space<vmem>>, vector<1x16x16x4xbf16>
    %35 = vector.shape_cast %34 : vector<1x16x16x4xbf16> to vector<256x4xbf16>
    %c0_53 = arith.constant 0 : index
    %c16 = arith.constant 16 : index
    %36 = vector.load %arg9[%c0_53, %c16] : memref<256x36xbf16, #tpu.memory_space<vmem>>, vector<256x4xbf16>
    tpu.vector_store %arg9[%c0_53, %c16], %35 {strides = array<i32>} : memref<256x36xbf16, #tpu.memory_space<vmem>>, vector<256x4xbf16>,
    %c0_54 = arith.constant 0 : index
    %c1_55 = arith.constant 1 : index
    %c2_56 = arith.constant 2 : index
    %c0_57 = arith.constant 0 : index
    %37 = vector.load %arg8[%c0_54, %c1_55, %c2_56, %c0_57] : memref<1x18x18x4xbf16, #tpu.memory_space<vmem>>, vector<1x16x16x4xbf16>
    %38 = vector.shape_cast %37 : vector<1x16x16x4xbf16> to vector<256x4xbf16>
    %c0_58 = arith.constant 0 : index
    %c20 = arith.constant 20 : index
    %39 = vector.load %arg9[%c0_58, %c20] : memref<256x36xbf16, #tpu.memory_space<vmem>>, vector<256x4xbf16>
    tpu.vector_store %arg9[%c0_58, %c20], %38 {strides = array<i32>} : memref<256x36xbf16, #tpu.memory_space<vmem>>, vector<256x4xbf16>,
    %c0_59 = arith.constant 0 : index
    %c2_60 = arith.constant 2 : index
    %c0_61 = arith.constant 0 : index
    %c0_62 = arith.constant 0 : index
    %40 = vector.load %arg8[%c0_59, %c2_60, %c0_61, %c0_62] : memref<1x18x18x4xbf16, #tpu.memory_space<vmem>>, vector<1x16x16x4xbf16>
    %41 = vector.shape_cast %40 : vector<1x16x16x4xbf16> to vector<256x4xbf16>
    %c0_63 = arith.constant 0 : index
    %c24 = arith.constant 24 : index
    %42 = vector.load %arg9[%c0_63, %c24] : memref<256x36xbf16, #tpu.memory_space<vmem>>, vector<256x4xbf16>
    tpu.vector_store %arg9[%c0_63, %c24], %41 {strides = array<i32>} : memref<256x36xbf16, #tpu.memory_space<vmem>>, vector<256x4xbf16>,
    %c0_64 = arith.constant 0 : index
    %c2_65 = arith.constant 2 : index
    %c1_66 = arith.constant 1 : index
    %c0_67 = arith.constant 0 : index
    %43 = vector.load %arg8[%c0_64, %c2_65, %c1_66, %c0_67] : memref<1x18x18x4xbf16, #tpu.memory_space<vmem>>, vector<1x16x16x4xbf16>
    %44 = vector.shape_cast %43 : vector<1x16x16x4xbf16> to vector<256x4xbf16>
    %c0_68 = arith.constant 0 : index
    %c28 = arith.constant 28 : index
    %45 = vector.load %arg9[%c0_68, %c28] : memref<256x36xbf16, #tpu.memory_space<vmem>>, vector<256x4xbf16>
    tpu.vector_store %arg9[%c0_68, %c28], %44 {strides = array<i32>} : memref<256x36xbf16, #tpu.memory_space<vmem>>, vector<256x4xbf16>,
    %c0_69 = arith.constant 0 : index
    %c2_70 = arith.constant 2 : index
    %c2_71 = arith.constant 2 : index
    %c0_72 = arith.constant 0 : index
    %46 = vector.load %arg8[%c0_69, %c2_70, %c2_71, %c0_72] : memref<1x18x18x4xbf16, #tpu.memory_space<vmem>>, vector<1x16x16x4xbf16>
    %47 = vector.shape_cast %46 : vector<1x16x16x4xbf16> to vector<256x4xbf16>
    %c0_73 = arith.constant 0 : index
    %c32 = arith.constant 32 : index
    %48 = vector.load %arg9[%c0_73, %c32] : memref<256x36xbf16, #tpu.memory_space<vmem>>, vector<256x4xbf16>
    tpu.vector_store %arg9[%c0_73, %c32], %47 {strides = array<i32>} : memref<256x36xbf16, #tpu.memory_space<vmem>>, vector<256x4xbf16>,
    %c0_74 = arith.constant 0 : index
    %c0_75 = arith.constant 0 : index
    %49 = vector.load %arg9[%c0_74, %c0_75] : memref<256x36xbf16, #tpu.memory_space<vmem>>, vector<256x36xbf16>
    %c0_76 = arith.constant 0 : index
    %c0_77 = arith.constant 0 : index
    %c0_78 = arith.constant 0 : index
    %50 = vector.load %arg4[%c0_76, %c0_77, %c0_78] : memref<9x4x4xbf16, #tpu.memory_space<vmem>>, vector<9x4x4xbf16>
    %51 = vector.shape_cast %50 : vector<9x4x4xbf16> to vector<36x4xbf16>
    %cst_79 = arith.constant dense<0.000000e+00> : vector<256x4xf32>
    %52 = tpu.matmul %49, %51, %cst_79 {dimension_numbers = #tpu.dot_dimension_numbers<[1], [0], [0], [1], [0, 0, 1, 1], [], []>} : vector<256x36xbf16>, vector<36x4xbf16>, vector<256x4xf32> -> vector<256x4xf32>
    %cst_80 = arith.constant dense<0.000000e+00> : vector<4xf32>
    %53 = vector.multi_reduction <add>, %52, %cst_80 [0] : vector<256x4xf32> to vector<4xf32>
    %54 = vector.shape_cast %53 : vector<4xf32> to vector<1x4xf32>
    %55 = vector.shape_cast %54 : vector<1x4xf32> to vector<1x1x4xf32>
    %c0_81 = arith.constant 0 : index
    %c0_82 = arith.constant 0 : index
    %c0_83 = arith.constant 0 : index
    %56 = vector.load %arg6[%c0_81, %c0_82, %c0_83] : memref<1x1x4xf32, #tpu.memory_space<vmem>>, vector<1x1x4xf32>
    tpu.vector_store %arg6[%c0_81, %c0_82, %c0_83], %55 {strides = array<i32>} : memref<1x1x4xf32, #tpu.memory_space<vmem>>, vector<1x1x4xf32>,
    %57 = arith.mulf %52, %52 : vector<256x4xf32>
    %cst_84 = arith.constant dense<0.000000e+00> : vector<4xf32>
    %58 = vector.multi_reduction <add>, %57, %cst_84 [0] : vector<256x4xf32> to vector<4xf32>
    %59 = vector.shape_cast %58 : vector<4xf32> to vector<1x4xf32>
    %60 = vector.shape_cast %59 : vector<1x4xf32> to vector<1x1x4xf32>
    %c0_85 = arith.constant 0 : index
    %c0_86 = arith.constant 0 : index
    %c0_87 = arith.constant 0 : index
    %61 = vector.load %arg7[%c0_85, %c0_86, %c0_87] : memref<1x1x4xf32, #tpu.memory_space<vmem>>, vector<1x1x4xf32>
    tpu.vector_store %arg7[%c0_85, %c0_86, %c0_87], %60 {strides = array<i32>} : memref<1x1x4xf32, #tpu.memory_space<vmem>>, vector<1x1x4xf32>,
    %62 = arith.truncf %52 : vector<256x4xf32> to vector<256x4xbf16>
    %63 = vector.shape_cast %62 : vector<256x4xbf16> to vector<1x16x16x4xbf16>
    %c0_88 = arith.constant 0 : index
    %c0_89 = arith.constant 0 : index
    %c0_90 = arith.constant 0 : index
    %c0_91 = arith.constant 0 : index
    %64 = vector.load %arg5[%c0_88, %c0_89, %c0_90, %c0_91] : memref<1x16x16x4xbf16, #tpu.memory_space<vmem>>, vector<1x16x16x4xbf16>
    tpu.vector_store %arg5[%c0_88, %c0_89, %c0_90, %c0_91], %63 {strides = array<i32>} : memref<1x16x16x4xbf16, #tpu.memory_space<vmem>>, vector<1x16x16x4xbf16>,
    return
  }
  func.func @transform_0(%arg0: i32) -> (i32, i32, i32, i32) {
    %c0_i32 = arith.constant 0 : i32
    %c0_i32_0 = arith.constant 0 : i32
    %c0_i32_1 = arith.constant 0 : i32
    %c0_i32_2 = arith.constant 0 : i32
    return %arg0, %c0_i32, %c0_i32_0, %c0_i32_1 : i32, i32, i32, i32
  }
  func.func @transform_1(%arg0: i32) -> (i32, i32) {
    %c0_i32 = arith.constant 0 : i32
    %c0_i32_0 = arith.constant 0 : i32
    %c0_i32_1 = arith.constant 0 : i32
    return %c0_i32, %c0_i32_0 : i32, i32
  }
  func.func @transform_2(%arg0: i32) -> (i32, i32) {
    %c0_i32 = arith.constant 0 : i32
    %c0_i32_0 = arith.constant 0 : i32
    %c0_i32_1 = arith.constant 0 : i32
    return %c0_i32, %c0_i32_0 : i32, i32
  }
  func.func @transform_3(%arg0: i32) -> (i32, i32, i32) {
    %c0_i32 = arith.constant 0 : i32
    %c0_i32_0 = arith.constant 0 : i32
    %c0_i32_1 = arith.constant 0 : i32
    %c0_i32_2 = arith.constant 0 : i32
    return %c0_i32, %c0_i32_0, %c0_i32_1 : i32, i32, i32
  }
  func.func @transform_4(%arg0: i32) -> (i32, i32, i32, i32) {
    %c0_i32 = arith.constant 0 : i32
    %c0_i32_0 = arith.constant 0 : i32
    %c0_i32_1 = arith.constant 0 : i32
    %c0_i32_2 = arith.constant 0 : i32
    return %arg0, %c0_i32, %c0_i32_0, %c0_i32_1 : i32, i32, i32, i32
  }
  func.func @transform_5(%arg0: i32) -> (i32, i32, i32) {
    %c0_i32 = arith.constant 0 : i32
    %c0_i32_0 = arith.constant 0 : i32
    %c0_i32_1 = arith.constant 0 : i32
    return %arg0, %c0_i32, %c0_i32_0 : i32, i32, i32
  }
  func.func @transform_6(%arg0: i32) -> (i32, i32, i32) {
    %c0_i32 = arith.constant 0 : i32
    %c0_i32_0 = arith.constant 0 : i32
    %c0_i32_1 = arith.constant 0 : i32
    return %arg0, %c0_i32, %c0_i32_0 : i32, i32, i32
  }
}

</mosaic_0001>

<bundles_post_ra>
// kernel: residual_block_pallas.5
= control target key start
LH: loop header
LB: loop body
LE: loop exit
PB: predicated region body
PF: predicated region fallthrough
CT: control target
= control target key end

     0   :  { %s886_s15 = smov 0   ;;  %s1106_s0 = inlined_call_operand.vmem [shape: bf16[2,16,16,4], index: 0, kind: input, shape index: {}]   ;;  %s1107_s1 = inlined_call_operand.vmem [shape: f32[1,4], index: 1, kind: input, shape index: {}]   ;;  %s1108_s2 = inlined_call_operand.vmem [shape: f32[1,4], index: 2, kind: input, shape index: {}]   ;;  %s1109_s3 = inlined_call_operand.vmem [shape: f32[2,16,16,4], index: 3, kind: input, shape index: {}]   ;;  %s1110_s4 = inlined_call_operand.vmem [shape: bf16[2,16,16,4], index: 4, kind: output, shape index: {}]  }
   0x1 LB: > { %s684_s16 = sadd.s32 4294967295, %s859_s15   ;;  %p688_p0 = scmp.ge.s32.totalorder %s859_s15, 1  ;;  %s859_s15 = sphi %s886_s15, %s14_s15  }
   0x2   : > { %p172_p1 = scmp.lt.s32.totalorder %s859_s15, 3 }
   0x4   : > { %p173_p2 = pnand %p688_p0, %p172_p1 }
   0x5   : > { %p203_p3 = scmp.lt.s32.totalorder (!%p173_p2), %s684_s16, 1 }
   0x6   : > { %176 = sbr.rel (%p173_p2) target bundleno = 66 (0x42), region = 36 }
   0xb   : > { %s1112_s16 = smov (!%p203_p3, %s684_s16), 1  ;;  %v908_v0 = vld [vmem:[%s1107_s1] ss:$0 sm:$0xff]  ;;  %vm584_vm0 = vcmask 27648  }
   0xc   : > { %s731_s17 = sshll.u32 %s1112_s16, 7  ;;  %s732_s18 = sshll.u32 %s1112_s16, 8  ;;  %v920_v5 = vld [vmem:[%s1108_s2] ss:$0 sm:$0xff] }
   0xd   : > { %s903_s21 = scalar_lea.vmem %s1106_s0, %s731_s17  ;;  %s914_s26 = scalar_lea.vmem %s1109_s3, %s732_s18 }
   0xe   : > { %v767_v1 = vld [vmem:[%s903_s21] sm:$0xff]   ;;  %v830_v4 = vld [vmem:[%s903_s21 + $0x8] sm:$0xff]   ;;  %v831_v8 = vld [vmem:[%s903_s21 + $0x10] sm:$0xff]   ;;  %s953_s5 = scalar_lea.vmem %s1110_s4, %s731_s17 }
   0xf   : > { %v768_v2 = vunpack.c.l.bf16 %v767_v1  ;;  %v769_v3 = vunpack.c.h.bf16 %v767_v1  ;;  %v772_v6 = vunpack.c.l.bf16 %v830_v4  ;;  %v773_v7 = vunpack.c.h.bf16 %v830_v4  ;;  %v832_v13 = vld [vmem:[%s903_s21 + $0x18] sm:$0xff]   ;;  %v360_v14 = vld [vmem:[%s914_s26] sm:$0xff]  ;;  %v361_v15 = vld [vmem:[%s914_s26 + $0x8] sm:$0xff] }
  0x10   : > { %v776_v11 = vunpack.c.l.bf16 %v831_v8  ;;  %v777_v12 = vunpack.c.h.bf16 %v831_v8  ;;  %v780_v18 = vunpack.c.l.bf16 %v832_v13  ;;  %v781_v19 = vunpack.c.h.bf16 %v832_v13  ;;  %v362_v22 = vld [vmem:[%s914_s26 + $0x10] sm:$0xff]  ;;  %v363_v23 = vld [vmem:[%s914_s26 + $0x18] sm:$0xff]  ;;  %v364_v28 = vld [vmem:[%s914_s26 + $0x20] sm:$0xff] }
  0x11   : > { %v290_v9 = vmul.f32 %v768_v2, %v908_v0  ;;  %v291_v10 = vmul.f32 %v769_v3, %v908_v0  ;;  %v292_v16 = vmul.f32 %v772_v6, %v908_v0  ;;  %v293_v17 = vmul.f32 %v773_v7, %v908_v0  ;;  %v365_v29 = vld [vmem:[%s914_s26 + $0x28] sm:$0xff]  ;;  %v366_v36 = vld [vmem:[%s914_s26 + $0x30] sm:$0xff]  ;;  %v367_v37 = vld [vmem:[%s914_s26 + $0x38] sm:$0xff] }
  0x12   : > { %v294_v24 = vmul.f32 %v776_v11, %v908_v0  ;;  %v295_v25 = vmul.f32 %v777_v12, %v908_v0  ;;  %v296_v30 = vmul.f32 %v780_v18, %v908_v0  ;;  %v297_v31 = vmul.f32 %v781_v19, %v908_v0  ;;  %v833_v50 = vld [vmem:[%s903_s21 + $0x20] sm:$0xff]   ;;  %v834_v55 = vld [vmem:[%s903_s21 + $0x28] sm:$0xff]   ;;  %v835_v60 = vld [vmem:[%s903_s21 + $0x30] sm:$0xff]  }
  0x13   : > { %v328_v20 = vadd.f32 %v920_v5, %v290_v9  ;;  %v329_v21 = vadd.f32 %v920_v5, %v291_v10  ;;  %v330_v26 = vadd.f32 %v920_v5, %v292_v16  ;;  %v331_v27 = vadd.f32 %v920_v5, %v293_v17  ;;  %v836_v2 = vld [vmem:[%s903_s21 + $0x38] sm:$0xff]   ;;  %v368_v12 = vld [vmem:[%s914_s26 + $0x40] sm:$0xff]  ;;  %v369_v13 = vld [vmem:[%s914_s26 + $0x48] sm:$0xff] }
  0x14   : > { %v332_v34 = vadd.f32 %v920_v5, %v294_v24  ;;  %v333_v35 = vadd.f32 %v920_v5, %v295_v25  ;;  %v334_v40 = vadd.f32 %v920_v5, %v296_v30  ;;  %v335_v41 = vadd.f32 %v920_v5, %v297_v31 }
  0x15   : > { %v392_v32 = vadd.f32 %v360_v14, %v328_v20  ;;  %v393_v33 = vadd.f32 %v361_v15, %v329_v21  ;;  %v394_v38 = vadd.f32 %v362_v22, %v330_v26  ;;  %v395_v39 = vadd.f32 %v363_v23, %v331_v27  ;;  %v370_v20 = vld [vmem:[%s914_s26 + $0x50] sm:$0xff]  ;;  %v371_v21 = vld [vmem:[%s914_s26 + $0x58] sm:$0xff]  ;;  %v372_v26 = vld [vmem:[%s914_s26 + $0x60] sm:$0xff] }
  0x16   : > { %v396_v44 = vadd.f32 %v364_v28, %v332_v34  ;;  %v397_v45 = vadd.f32 %v365_v29, %v333_v35  ;;  %v398_v48 = vadd.f32 %v366_v36, %v334_v40  ;;  %v399_v49 = vadd.f32 %v367_v37, %v335_v41  ;;  %v373_v27 = vld [vmem:[%s914_s26 + $0x68] sm:$0xff]  ;;  %v374_v34 = vld [vmem:[%s914_s26 + $0x70] sm:$0xff]  ;;  %v375_v35 = vld [vmem:[%s914_s26 + $0x78] sm:$0xff] }
  0x17   : > { %v424_v42 = vmax.f32 %v392_v32, 0.0  ;;  %v425_v43 = vmax.f32 %v393_v33, 0.0  ;;  %v426_v46 = vmax.f32 %v394_v38, 0.0  ;;  %v427_v47 = vmax.f32 %v395_v39, 0.0 }
  0x18   : > { %v428_v53 = vmax.f32 %v396_v44, 0.0  ;;  %v429_v54 = vmax.f32 %v397_v45, 0.0  ;;  %v430_v58 = vmax.f32 %v398_v48, 0.0  ;;  %v431_v59 = vmax.f32 %v399_v49, 0.0  ;;  %v837_v48 = vld [vmem:[%s903_s21 + $0x40] sm:$0xff]  }
  0x19   : > { %v734_v51 = vpack.c.bf16 %v424_v42, %v424_v42  ;;  %v735_v52 = vpack.c.bf16 %v425_v43, %v425_v43  ;;  %v736_v56 = vpack.c.bf16 %v426_v46, %v426_v46  ;;  %v737_v57 = vpack.c.bf16 %v427_v47, %v427_v47 }
  0x1a   : > { %v738_v61 = vpack.c.bf16 %v428_v53, %v428_v53  ;;  %v739_v62 = vpack.c.bf16 %v429_v54, %v429_v54  ;;  %v784_v63 = vunpack.c.l.bf16 %v833_v50  ;;  %v785_v1 = vunpack.c.h.bf16 %v833_v50  ;;  %v838_v53 = vld [vmem:[%s903_s21 + $0x48] sm:$0xff]  }
  0x1b   : > { %585 = vst.msk [vmem:[%s953_s5] sm:$0xf] %vm584_vm0, %v734_v51  ;;  %586 = vst.msk [vmem:[%s953_s5 + $0x4] sm:$0xf] %vm584_vm0, %v735_v52  ;;  %v740_v3 = vpack.c.bf16 %v430_v58, %v430_v58  ;;  %v741_v4 = vpack.c.bf16 %v431_v59, %v431_v59  ;;  %v788_v6 = vunpack.c.l.bf16 %v834_v55  ;;  %v789_v7 = vunpack.c.h.bf16 %v834_v55  ;;  %v839_v58 = vld [vmem:[%s903_s21 + $0x50] sm:$0xff]  }
  0x1c   : > { %587 = vst.msk [vmem:[%s953_s5 + $0x8] sm:$0xf] %vm584_vm0, %v736_v56  ;;  %588 = vst.msk [vmem:[%s953_s5 + $0xc] sm:$0xf] %vm584_vm0, %v737_v57  ;;  %v298_v8 = vmul.f32 %v784_v63, %v908_v0  ;;  %v299_v9 = vmul.f32 %v785_v1, %v908_v0  ;;  %v792_v10 = vunpack.c.l.bf16 %v835_v60  ;;  %v793_v11 = vunpack.c.h.bf16 %v835_v60  ;;  %v840_v63 = vld [vmem:[%s903_s21 + $0x58] sm:$0xff]  }
  0x1d   : > { %589 = vst.msk [vmem:[%s953_s5 + $0x10] sm:$0xf] %vm584_vm0, %v738_v61  ;;  %590 = vst.msk [vmem:[%s953_s5 + $0x14] sm:$0xf] %vm584_vm0, %v739_v62  ;;  %v300_v14 = vmul.f32 %v788_v6, %v908_v0  ;;  %v301_v15 = vmul.f32 %v789_v7, %v908_v0  ;;  %v796_v16 = vunpack.c.l.bf16 %v836_v2  ;;  %v797_v17 = vunpack.c.h.bf16 %v836_v2 }
  0x1e   : > { %591 = vst.msk [vmem:[%s953_s5 + $0x18] sm:$0xf] %vm584_vm0, %v740_v3  ;;  %592 = vst.msk [vmem:[%s953_s5 + $0x1c] sm:$0xf] %vm584_vm0, %v741_v4  ;;  %v336_v18 = vadd.f32 %v920_v5, %v298_v8  ;;  %v337_v19 = vadd.f32 %v920_v5, %v299_v9  ;;  %v302_v22 = vmul.f32 %v792_v10, %v908_v0  ;;  %v800_v61 = vunpack.c.l.bf16 %v837_v48  ;;  %v376_v10 = vld [vmem:[%s914_s26 + $0x80] sm:$0xff] }
  0x1f   : > { %v303_v23 = vmul.f32 %v793_v11, %v908_v0  ;;  %v338_v24 = vadd.f32 %v920_v5, %v300_v14  ;;  %v339_v25 = vadd.f32 %v920_v5, %v301_v15  ;;  %v304_v28 = vmul.f32 %v796_v16, %v908_v0  ;;  %v377_v11 = vld [vmem:[%s914_s26 + $0x88] sm:$0xff] }
  0x20   : > { %v305_v29 = vmul.f32 %v797_v17, %v908_v0  ;;  %v400_v30 = vadd.f32 %v368_v12, %v336_v18  ;;  %v401_v31 = vadd.f32 %v369_v13, %v337_v19  ;;  %v340_v32 = vadd.f32 %v920_v5, %v302_v22  ;;  %v378_v18 = vld [vmem:[%s914_s26 + $0x90] sm:$0xff]  ;;  %v379_v19 = vld [vmem:[%s914_s26 + $0x98] sm:$0xff] }
  0x21   : > { %v341_v33 = vadd.f32 %v920_v5, %v303_v23  ;;  %v402_v36 = vadd.f32 %v370_v20, %v338_v24  ;;  %v403_v37 = vadd.f32 %v371_v21, %v339_v25  ;;  %v342_v38 = vadd.f32 %v920_v5, %v304_v28  ;;  %v380_v24 = vld [vmem:[%s914_s26 + $0xa0] sm:$0xff]  ;;  %v381_v25 = vld [vmem:[%s914_s26 + $0xa8] sm:$0xff] }
  0x22   : > { %v343_v39 = vadd.f32 %v920_v5, %v305_v29  ;;  %v432_v40 = vmax.f32 %v400_v30, 0.0  ;;  %v433_v41 = vmax.f32 %v401_v31, 0.0  ;;  %v404_v42 = vadd.f32 %v372_v26, %v340_v32  ;;  %v382_v32 = vld [vmem:[%s914_s26 + $0xb0] sm:$0xff] }
  0x23   : > { %v405_v43 = vadd.f32 %v373_v27, %v341_v33  ;;  %v434_v44 = vmax.f32 %v402_v36, 0.0  ;;  %v435_v45 = vmax.f32 %v403_v37, 0.0  ;;  %v406_v46 = vadd.f32 %v374_v34, %v342_v38  ;;  %v383_v33 = vld [vmem:[%s914_s26 + $0xb8] sm:$0xff] }
  0x24   : > { %v407_v47 = vadd.f32 %v375_v35, %v343_v39  ;;  %v742_v49 = vpack.c.bf16 %v432_v40, %v432_v40  ;;  %v743_v50 = vpack.c.bf16 %v433_v41, %v433_v41  ;;  %v436_v51 = vmax.f32 %v404_v42, 0.0 }
  0x25   : > { %v437_v52 = vmax.f32 %v405_v43, 0.0  ;;  %v744_v54 = vpack.c.bf16 %v434_v44, %v434_v44  ;;  %v745_v55 = vpack.c.bf16 %v435_v45, %v435_v45  ;;  %v438_v56 = vmax.f32 %v406_v46, 0.0  ;;  %v841_v46 = vld [vmem:[%s903_s21 + $0x60] sm:$0xff]  }
  0x26   : > { %v439_v57 = vmax.f32 %v407_v47, 0.0  ;;  %593 = vst.msk [vmem:[%s953_s5 + $0x20] sm:$0xf] %vm584_vm0, %v742_v49  ;;  %594 = vst.msk [vmem:[%s953_s5 + $0x24] sm:$0xf] %vm584_vm0, %v743_v50  ;;  %v746_v59 = vpack.c.bf16 %v436_v51, %v436_v51  ;;  %v801_v62 = vunpack.c.h.bf16 %v837_v48  ;;  %v804_v3 = vunpack.c.l.bf16 %v838_v53  ;;  %v842_v51 = vld [vmem:[%s903_s21 + $0x68] sm:$0xff]  }
  0x27   : > { %v747_v60 = vpack.c.bf16 %v437_v52, %v437_v52  ;;  %595 = vst.msk [vmem:[%s953_s5 + $0x28] sm:$0xf] %vm584_vm0, %v744_v54  ;;  %596 = vst.msk [vmem:[%s953_s5 + $0x2c] sm:$0xf] %vm584_vm0, %v745_v55  ;;  %v748_v1 = vpack.c.bf16 %v438_v56, %v438_v56  ;;  %v805_v4 = vunpack.c.h.bf16 %v838_v53  ;;  %v306_v6 = vmul.f32 %v800_v61, %v908_v0  ;;  %v843_v56 = vld [vmem:[%s903_s21 + $0x70] sm:$0xff]   ;;  %v844_v61 = vld [vmem:[%s903_s21 + $0x78] sm:$0xff]  }
  0x28   : > { %v749_v2 = vpack.c.bf16 %v439_v57, %v439_v57  ;;  %597 = vst.msk [vmem:[%s953_s5 + $0x30] sm:$0xf] %vm584_vm0, %v746_v59  ;;  %v307_v7 = vmul.f32 %v801_v62, %v908_v0  ;;  %v808_v8 = vunpack.c.l.bf16 %v839_v58  ;;  %v809_v9 = vunpack.c.h.bf16 %v839_v58 }
  0x29   : > { %598 = vst.msk [vmem:[%s953_s5 + $0x34] sm:$0xf] %vm584_vm0, %v747_v60  ;;  %599 = vst.msk [vmem:[%s953_s5 + $0x38] sm:$0xf] %vm584_vm0, %v748_v1  ;;  %v308_v12 = vmul.f32 %v804_v3, %v908_v0  ;;  %v309_v13 = vmul.f32 %v805_v4, %v908_v0  ;;  %v812_v14 = vunpack.c.l.bf16 %v840_v63  ;;  %v813_v15 = vunpack.c.h.bf16 %v840_v63 }
  0x2a   : > { %600 = vst.msk [vmem:[%s953_s5 + $0x3c] sm:$0xf] %vm584_vm0, %v749_v2  ;;  %v344_v16 = vadd.f32 %v920_v5, %v306_v6  ;;  %v345_v17 = vadd.f32 %v920_v5, %v307_v7  ;;  %v310_v20 = vmul.f32 %v808_v8, %v908_v0  ;;  %v311_v21 = vmul.f32 %v809_v9, %v908_v0  ;;  %v384_v8 = vld [vmem:[%s914_s26 + $0xc0] sm:$0xff]  ;;  %v385_v9 = vld [vmem:[%s914_s26 + $0xc8] sm:$0xff] }
  0x2b   : > { %v346_v22 = vadd.f32 %v920_v5, %v308_v12  ;;  %v347_v23 = vadd.f32 %v920_v5, %v309_v13  ;;  %v312_v26 = vmul.f32 %v812_v14, %v908_v0  ;;  %v313_v27 = vmul.f32 %v813_v15, %v908_v0 }
  0x2c   : > { %v408_v28 = vadd.f32 %v376_v10, %v344_v16  ;;  %v409_v29 = vadd.f32 %v377_v11, %v345_v17  ;;  %v348_v30 = vadd.f32 %v920_v5, %v310_v20  ;;  %v349_v31 = vadd.f32 %v920_v5, %v311_v21  ;;  %v386_v16 = vld [vmem:[%s914_s26 + $0xd0] sm:$0xff]  ;;  %v387_v17 = vld [vmem:[%s914_s26 + $0xd8] sm:$0xff] }
  0x2d   : > { %v410_v34 = vadd.f32 %v378_v18, %v346_v22  ;;  %v411_v35 = vadd.f32 %v379_v19, %v347_v23  ;;  %v350_v36 = vadd.f32 %v920_v5, %v312_v26  ;;  %v351_v37 = vadd.f32 %v920_v5, %v313_v27  ;;  %v388_v22 = vld [vmem:[%s914_s26 + $0xe0] sm:$0xff]  ;;  %v389_v23 = vld [vmem:[%s914_s26 + $0xe8] sm:$0xff] }
  0x2e   : > { %v440_v38 = vmax.f32 %v408_v28, 0.0  ;;  %v441_v39 = vmax.f32 %v409_v29, 0.0  ;;  %v412_v40 = vadd.f32 %v380_v24, %v348_v30  ;;  %v413_v41 = vadd.f32 %v381_v25, %v349_v31  ;;  %v390_v30 = vld [vmem:[%s914_s26 + $0xf0] sm:$0xff]  ;;  %v391_v31 = vld [vmem:[%s914_s26 + $0xf8] sm:$0xff] }
  0x2f   : > { %v442_v42 = vmax.f32 %v410_v34, 0.0  ;;  %v443_v43 = vmax.f32 %v411_v35, 0.0  ;;  %v414_v44 = vadd.f32 %v382_v32, %v350_v36  ;;  %v415_v45 = vadd.f32 %v383_v33, %v351_v37 }
  0x30   : > { %v750_v47 = vpack.c.bf16 %v440_v38, %v440_v38  ;;  %v751_v48 = vpack.c.bf16 %v441_v39, %v441_v39  ;;  %v444_v49 = vmax.f32 %v412_v40, 0.0  ;;  %v445_v50 = vmax.f32 %v413_v41, 0.0 }
  0x31   : > { %v752_v52 = vpack.c.bf16 %v442_v42, %v442_v42  ;;  %v753_v53 = vpack.c.bf16 %v443_v43, %v443_v43  ;;  %v446_v54 = vmax.f32 %v414_v44, 0.0  ;;  %v447_v55 = vmax.f32 %v415_v45, 0.0 }
  0x32   : > { %601 = vst.msk [vmem:[%s953_s5 + $0x40] sm:$0xf] %vm584_vm0, %v750_v47  ;;  %602 = vst.msk [vmem:[%s953_s5 + $0x44] sm:$0xf] %vm584_vm0, %v751_v48  ;;  %v754_v57 = vpack.c.bf16 %v444_v49, %v444_v49  ;;  %v755_v58 = vpack.c.bf16 %v445_v50, %v445_v50  ;;  %v816_v59 = vunpack.c.l.bf16 %v841_v46  ;;  %v817_v60 = vunpack.c.h.bf16 %v841_v46 }
  0x33   : > { %603 = vst.msk [vmem:[%s953_s5 + $0x48] sm:$0xf] %vm584_vm0, %v752_v52  ;;  %604 = vst.msk [vmem:[%s953_s5 + $0x4c] sm:$0xf] %vm584_vm0, %v753_v53  ;;  %v756_v62 = vpack.c.bf16 %v446_v54, %v446_v54  ;;  %v757_v63 = vpack.c.bf16 %v447_v55, %v447_v55  ;;  %v820_v1 = vunpack.c.l.bf16 %v842_v51  ;;  %v821_v2 = vunpack.c.h.bf16 %v842_v51 }
  0x34   : > { %605 = vst.msk [vmem:[%s953_s5 + $0x50] sm:$0xf] %vm584_vm0, %v754_v57  ;;  %606 = vst.msk [vmem:[%s953_s5 + $0x54] sm:$0xf] %vm584_vm0, %v755_v58  ;;  %v314_v3 = vmul.f32 %v816_v59, %v908_v0  ;;  %v315_v4 = vmul.f32 %v817_v60, %v908_v0  ;;  %v824_v6 = vunpack.c.l.bf16 %v843_v56  ;;  %v825_v7 = vunpack.c.h.bf16 %v843_v56 }
  0x35   : > { %607 = vst.msk [vmem:[%s953_s5 + $0x58] sm:$0xf] %vm584_vm0, %v756_v62  ;;  %608 = vst.msk [vmem:[%s953_s5 + $0x5c] sm:$0xf] %vm584_vm0, %v757_v63  ;;  %v316_v10 = vmul.f32 %v820_v1, %v908_v0  ;;  %v317_v11 = vmul.f32 %v821_v2, %v908_v0  ;;  %v828_v12 = vunpack.c.l.bf16 %v844_v61  ;;  %v829_v13 = vunpack.c.h.bf16 %v844_v61 }
  0x36   : > { %v352_v14 = vadd.f32 %v920_v5, %v314_v3  ;;  %v353_v15 = vadd.f32 %v920_v5, %v315_v4  ;;  %v318_v18 = vmul.f32 %v824_v6, %v908_v0  ;;  %v319_v19 = vmul.f32 %v825_v7, %v908_v0 }
  0x37   : > { %v354_v20 = vadd.f32 %v920_v5, %v316_v10  ;;  %v355_v21 = vadd.f32 %v920_v5, %v317_v11  ;;  %v320_v24 = vmul.f32 %v828_v12, %v908_v0  ;;  %v321_v25 = vmul.f32 %v829_v13, %v908_v0 }
  0x38   : > { %v416_v26 = vadd.f32 %v384_v8, %v352_v14  ;;  %v417_v27 = vadd.f32 %v385_v9, %v353_v15  ;;  %v356_v28 = vadd.f32 %v920_v5, %v318_v18  ;;  %v357_v29 = vadd.f32 %v920_v5, %v319_v19 }
  0x39   : > { %v418_v32 = vadd.f32 %v386_v16, %v354_v20  ;;  %v419_v33 = vadd.f32 %v387_v17, %v355_v21  ;;  %v358_v34 = vadd.f32 %v920_v5, %v320_v24  ;;  %v359_v35 = vadd.f32 %v920_v5, %v321_v25 }
  0x3a   : > { %v448_v36 = vmax.f32 %v416_v26, 0.0  ;;  %v449_v37 = vmax.f32 %v417_v27, 0.0  ;;  %v420_v38 = vadd.f32 %v388_v22, %v356_v28  ;;  %v421_v0 = vadd.f32 %v389_v23, %v357_v29 }
  0x3b   : > { %v450_v39 = vmax.f32 %v418_v32, 0.0  ;;  %v451_v40 = vmax.f32 %v419_v33, 0.0  ;;  %v422_v41 = vadd.f32 %v390_v30, %v358_v34  ;;  %v423_v42 = vadd.f32 %v391_v31, %v359_v35 }
  0x3c   : > { %v758_v43 = vpack.c.bf16 %v448_v36, %v448_v36  ;;  %v759_v44 = vpack.c.bf16 %v449_v37, %v449_v37  ;;  %v452_v45 = vmax.f32 %v420_v38, 0.0  ;;  %v453_v46 = vmax.f32 %v421_v0, 0.0 }
  0x3d   : > { %v760_v5 = vpack.c.bf16 %v450_v39, %v450_v39  ;;  %v761_v47 = vpack.c.bf16 %v451_v40, %v451_v40  ;;  %v454_v48 = vmax.f32 %v422_v41, 0.0  ;;  %v455_v49 = vmax.f32 %v423_v42, 0.0 }
  0x3e   : > { %609 = vst.msk [vmem:[%s953_s5 + $0x60] sm:$0xf] %vm584_vm0, %v758_v43  ;;  %610 = vst.msk [vmem:[%s953_s5 + $0x64] sm:$0xf] %vm584_vm0, %v759_v44  ;;  %v762_v50 = vpack.c.bf16 %v452_v45, %v452_v45  ;;  %v763_v51 = vpack.c.bf16 %v453_v46, %v453_v46 }
  0x3f   : > { %611 = vst.msk [vmem:[%s953_s5 + $0x68] sm:$0xf] %vm584_vm0, %v760_v5  ;;  %612 = vst.msk [vmem:[%s953_s5 + $0x6c] sm:$0xf] %vm584_vm0, %v761_v47  ;;  %v764_v52 = vpack.c.bf16 %v454_v48, %v454_v48  ;;  %v765_v53 = vpack.c.bf16 %v455_v49, %v455_v49 }
  0x40   : > { %613 = vst.msk [vmem:[%s953_s5 + $0x70] sm:$0xf] %vm584_vm0, %v762_v50  ;;  %614 = vst.msk [vmem:[%s953_s5 + $0x74] sm:$0xf] %vm584_vm0, %v763_v51 }
  0x41   : > { %615 = vst.msk [vmem:[%s953_s5 + $0x78] sm:$0xf] %vm584_vm0, %v764_v52  ;;  %616 = vst.msk [vmem:[%s953_s5 + $0x7c] sm:$0xf] %vm584_vm0, %v765_v53 }
  0x42 PF: > { %s14_s15 = sadd.s32 1, %s859_s15  }
  0x43   : > { %p11_p4 = scmp.ge.s32.totalorder %s14_s15, 4  }
  0x45   :  { %13 = sbr.rel (!%p11_p4) target bundleno = 1 (0x1), region = 69 }

// kernel: residual_block_pallas.3
= control target key start
LH: loop header
LB: loop body
LE: loop exit
PB: predicated region body
PF: predicated region fallthrough
CT: control target
= control target key end

     0   :  { %s5231_s15 = smov 0   ;;  %s6752_s0 = inlined_call_operand.vmem [shape: f32[2,16,16,4], index: 0, kind: input, shape index: {}]   ;;  %s6753_s1 = inlined_call_operand.vmem [shape: bf16[9,4,4], index: 1, kind: input, shape index: {}]   ;;  %s6754_s2 = inlined_call_operand.vmem [shape: bf16[2,16,16,4], index: 2, kind: output, shape index: {0}]   ;;  %s6755_s3 = inlined_call_operand.vmem [shape: f32[2,1,4], index: 3, kind: output, shape index: {1}]   ;;  %s6756_s4 = inlined_call_operand.vmem [shape: f32[2,1,4], index: 4, kind: output, shape index: {2}]  }
   0x1 LB: > { %s4867_s16 = sadd.s32 4294967295, %s5194_s15   ;;  %p4871_p0 = scmp.ge.s32.totalorder %s5194_s15, 1  ;;  %s5194_s15 = sphi %s5231_s15, %s15_s15  }
   0x2   : > { %p167_p1 = scmp.lt.s32.totalorder %s5194_s15, 3 }
   0x4   : > { %p168_p2 = pnand %p4871_p0, %p167_p1 }
   0x5   : > { %p199_p3 = scmp.lt.s32.totalorder (!%p168_p2), %s4867_s16, 1  ;;  %s5197_s21 = smov (!%p168_p2), 4  }
   0x6   : > { %171 = sbr.rel (%p168_p2) target bundleno = 962 (0x3c2), region = 28  ;;  %s5198_s22 = smov (!%p168_p2), 8  }
   0x7   : > { %s5199_s23 = smov (!%p168_p2), 12   ;;  %s5200_s24 = smov (!%p168_p2), 16  }
   0x8   : > { %s5201_s25 = smov (!%p168_p2), 20   ;;  %s5202_s26 = smov (!%p168_p2), 24  }
   0x9   : > { %s5204_s9 = smov (!%p168_p2), 28   ;;  %s5205_s27 = smov (!%p168_p2), 32  }
   0xb   : > { %vm264_vm0 = vcmask 27648   ;;  %v5196_v0 = vmov 0   ;;  %vm267_vm1 = vcmask 24576   ;;  %vm271_vm2 = vsmask.f32 256  ;;  %s6770_s16 = smov (!%p199_p3, %s4867_s16), 1 }
   0xc   : > { %265 = vst.msk [vmem:[#allocation2] sm:$0xf] %vm264_vm0, %v5196_v0  ;;  %266 = vst.msk [vmem:[#allocation2 + $0x4] sm:$0xf] %vm264_vm0, %v5196_v0  ;;  %v273_v2 = vld [vmem:[#allocation2 + $0xc] sm:$0x1]  ;;  %s211_s29 = scalar_lea.vmem %s6755_s3, %s6770_s16  ;;  %s214_s6 = scalar_lea.vmem %s6756_s4, %s6770_s16 }
   0xd   : > { %322 = vst.msk [vmem:[#allocation2 + $0xcc] sm:$0xf] %vm264_vm0, %v5196_v0  ;;  %323 = vst.msk [vmem:[#allocation2 + $0xd0] sm:$0xf] %vm264_vm0, %v5196_v0  ;;  %vm325_vm4 = vsmask.f32 7938 }
   0xe   : > { %vm5245_vm3 = vmand %vm267_vm1, %vm271_vm2  ;;  %268 = vst.msk [vmem:[#allocation2 + $0x8] sm:$0x1] %vm267_vm1, %v5196_v0  ;;  %vm1003_vm5 = vsmask.f32 3328  ;;  %vm1004_vm6 = vsmask.f32 7440 }
   0xf   : > { %324 = vst.msk [vmem:[#allocation2 + $0xd4] sm:$0x1] %vm267_vm1, %v5196_v0  ;;  %v274_v3 = vsel %vm5245_vm3, 0, %v273_v2  ;;  %v327_v4 = vld [vmem:[#allocation2 + $0x14] sm:$0x1]  ;;  %s5023_s17 = sshll.u32 %s6770_s16, 8  ;;  %vm5260_vm7 = vmand %vm267_vm1, %vm325_vm4 }
  0x10   : > { %v276_v5 = vld [vmem:[#allocation2 + $0x18] sm:$0x1]  ;;  %275 = vst [vmem:[#allocation2 + $0xc] sm:$0x1] %v274_v3  ;;  %v330_v7 = vld [vmem:[#allocation2 + $0x20] sm:$0x1]  ;;  %s5269_s20 = scalar_lea.vmem %s6752_s0, %s5023_s17  ;;  %vm5293_vm10 = vmand %vm264_vm0, %vm325_vm4 }
  0x11   : > { %v277_v6 = vsel %vm5245_vm3, 0, %v276_v5  ;;  %v279_v8 = vld [vmem:[#allocation2 + $0x24] sm:$0x1]  ;;  %v333_v11 = vld [vmem:[#allocation2 + $0x2c] sm:$0x1]  ;;  %v328_v13 = vsel %vm5260_vm7, 0, %v327_v4  ;;  %vm5299_vm11 = vmor %vm1003_vm5, %vm1004_vm6 }
  0x12   : > { %278 = vst [vmem:[#allocation2 + $0x18] sm:$0x1] %v277_v6  ;;  %v280_v10 = vsel %vm5245_vm3, 0, %v279_v8  ;;  %v282_v12 = vld [vmem:[#allocation2 + $0x30] sm:$0x1]  ;;  %v331_v14 = vsel %vm5260_vm7, 0, %v330_v7 }
  0x13   : > { %281 = vst [vmem:[#allocation2 + $0x24] sm:$0x1] %v280_v10  ;;  %v334_v15 = vsel %vm5260_vm7, 0, %v333_v11  ;;  %v283_v16 = vsel %vm5245_vm3, 0, %v282_v12  ;;  %v336_v17 = vld [vmem:[#allocation2 + $0x38] sm:$0x1] }
  0x14   : > { %v216_v18 = vld [vmem:[%s5269_s20] sm:$0xff]  ;;  %v217_v19 = vld [vmem:[%s5269_s20 + $0x8] sm:$0xff]  ;;  %vm455_vm8 = vsmask.f32 4368  ;;  %329 = vst [vmem:[#allocation2 + $0x14] sm:$0x1] %v328_v13 }
  0x15   : > { %v218_v20 = vld [vmem:[%s5269_s20 + $0x10] sm:$0xff]  ;;  %332 = vst [vmem:[#allocation2 + $0x20] sm:$0x1] %v331_v14  ;;  %335 = vst [vmem:[#allocation2 + $0x2c] sm:$0x1] %v334_v15  ;;  %v337_v21 = vsel %vm5260_vm7, 0, %v336_v17  ;;  %v5025_v24 = vpack.c.bf16 %v216_v18, %v216_v18  ;;  %v5026_v25 = vpack.c.bf16 %v217_v19, %v217_v19 }
  0x16   : > { %284 = vst [vmem:[#allocation2 + $0x30] sm:$0x1] %v283_v16  ;;  %v955_v22 = vld [vmem:[#allocation2] sm:$0xf]  ;;  %v956_v23 = vld [vmem:[#allocation2 + $0x4] sm:$0xf]  ;;  %v5027_v27 = vpack.c.bf16 %v218_v20, %v218_v20  ;;  %vm5287_vm9 = vmor %vm271_vm2, %vm455_vm8 }
  0x17   : > { %v219_v26 = vld [vmem:[%s5269_s20 + $0x18] sm:$0xff]  ;;  %338 = vst [vmem:[#allocation2 + $0x38] sm:$0x1] %v337_v21  ;;  %v1007_v28 = vshrl.u32 %v955_v22, 16  ;;  %v1010_v29 = vshll.u32 %v955_v22, 16  ;;  %v1016_v30 = vshll.u32 %v956_v23, 16 }
  0x18   : > { %v1020_v31 = vshrl.u32 %v956_v23, 16  ;;  %v957_v32 = vld [vmem:[#allocation2 + $0x8] sm:$0x1]  ;;  %v458_v33 = vshrl.u32 %v5025_v24, 16  ;;  %v461_v34 = vshll.u32 %v5025_v24, 16  ;;  %v466_v35 = vshrl.u32 %v5026_v25, 16 }
  0x19   : > { %v469_v36 = vshll.u32 %v5026_v25, 16  ;;  %v1009_v37 = vrot.slane %v1007_v28, 4  ;;  %v1012_v38 = vrot.slane %v1010_v29, 5  ;;  %v1018_v39 = vrot.slane %v1016_v30, 5  ;;  %v779_v48 = vld [vmem:[#allocation2 + $0xc] sm:$0xf] }
  0x1a   : > { %v1022_v40 = vrot.slane %v1020_v31, 4  ;;  %v460_v42 = vrot.slane %v458_v33, 7  ;;  %v468_v43 = vrot.slane %v466_v35, 7  ;;  %v1026_v44 = vshll.u32 %v957_v32, 16  ;;  %v220_v62 = vld [vmem:[%s5269_s20 + $0x20] sm:$0xff]  ;;  %v221_v63 = vld [vmem:[%s5269_s20 + $0x28] sm:$0xff] }
  0x1b   : > { %v5028_v45 = vpack.c.bf16 %v219_v26, %v219_v26  ;;  %v1013_v46 = vor.u32 %v1012_v38, %v1009_v37  ;;  %v475_v50 = vshrl.u32 %v5027_v27, 16  ;;  %v478_v51 = vshll.u32 %v5027_v27, 16  ;;  %v783_v57 = vld [vmem:[#allocation2 + $0x14] sm:$0x1]  ;;  %v786_v5 = vld [vmem:[#allocation2 + $0x18] sm:$0xf] }
  0x1c   : > { %v1023_v49 = vor.u32 %v1022_v40, %v1018_v39  ;;  %v463_v53 = vor.u32 %v461_v34, %v460_v42  ;;  %v464_v54 = vrot.slane %v460_v42, 4  ;;  %v471_v55 = vor.u32 %v469_v36, %v468_v43  ;;  %v222_v6 = vld [vmem:[%s5269_s20 + $0x30] sm:$0xff]  ;;  %v223_v7 = vld [vmem:[%s5269_s20 + $0x38] sm:$0xff]  ;;  %v790_v19 = vld [vmem:[#allocation2 + $0x20] sm:$0x1] }
  0x1d   : > { %v1028_v56 = vrot.slane %v1026_v44, 5  ;;  %v1014_v58 = vrot.slane %v1013_v46, 4  ;;  %v473_v60 = vrot.slane %v468_v43, 4  ;;  %v477_v61 = vrot.slane %v475_v50, 7  ;;  %v285_v13 = vld [vmem:[#allocation2 + $0x3c] sm:$0x1] }
  0x1e   : > { %v1024_v59 = vrot.slane %v1023_v49, 4  ;;  %v472_v0 = vsel %vm5287_vm9, %v464_v54, %v471_v55  ;;  %v780_v2 = vsel %vm5293_vm10, %v463_v53, %v779_v48  ;;  %v483_v3 = vshrl.u32 %v5028_v45, 16  ;;  %v224_v27 = vld [vmem:[%s5269_s20 + $0x40] sm:$0xff]  ;;  %v225_v32 = vld [vmem:[%s5269_s20 + $0x48] sm:$0xff] }
  0x1f   : > { %v486_v4 = vshll.u32 %v5028_v45, 16  ;;  %v1019_v8 = vsel %vm5299_vm11, %v1014_v58, %v1018_v39  ;;  %781 = vst [vmem:[#allocation2 + $0xc] sm:$0xf] %v780_v2  ;;  %782 = vst.msk [vmem:[#allocation2 + $0x10] sm:$0xf] %vm264_vm0, %v472_v0  ;;  %v784_v11 = vsel %vm5245_vm3, %v473_v60, %v783_v57  ;;  %v480_v12 = vor.u32 %v478_v51, %v477_v61 }
  0x20   : > { %v1029_v10 = vsel %vm5299_vm11, %v1024_v59, %v1028_v56  ;;  %1390 = vrot.lane.b32.xlu0 %v1019_v8, %s5197_s21  ;;  %785 = vst [vmem:[#allocation2 + $0x14] sm:$0x1] %v784_v11  ;;  %v481_v14 = vrot.slane %v477_v61, 4  ;;  %v485_v15 = vrot.slane %v483_v3, 7  ;;  %v5029_v16 = vpack.c.bf16 %v220_v62, %v220_v62  ;;  %v793_v38 = vld [vmem:[#allocation2 + $0x24] sm:$0xf] }
  0x21   : > { %v5030_v17 = vpack.c.bf16 %v221_v63, %v221_v63  ;;  %v787_v18 = vsel %vm5293_vm10, %v480_v12, %v786_v5  ;;  %v5031_v20 = vpack.c.bf16 %v222_v6, %v222_v6  ;;  %v5321_v21 = vpack.c.bf16 %v223_v7, %v223_v7  ;;  %v797_v60 = vld [vmem:[#allocation2 + $0x2c] sm:$0x1]  ;;  %v226_v61 = vld [vmem:[%s5269_s20 + $0x50] sm:$0xff] }
  0x22   : > { %v286_v22 = vsel %vm5245_vm3, 0, %v285_v13  ;;  %v488_v23 = vor.u32 %v486_v4, %v485_v15  ;;  %788 = vst [vmem:[#allocation2 + $0x18] sm:$0xf] %v787_v18  ;;  %v490_v24 = vrot.slane %v485_v15, 4  ;;  %v492_v25 = vshrl.u32 %v5029_v16, 16 }
  0x23   : > { %v495_v26 = vshll.u32 %v5029_v16, 16  ;;  %287 = vst [vmem:[#allocation2 + $0x3c] sm:$0x1] %v286_v22  ;;  %v500_v28 = vshrl.u32 %v5030_v17, 16  ;;  %v503_v29 = vshll.u32 %v5030_v17, 16  ;;  %v509_v30 = vshrl.u32 %v5031_v20, 16 }
  0x24   : > { %v512_v31 = vshll.u32 %v5031_v20, 16  ;;  %1392 = vrot.lane.b32.xlu0 %v1029_v10, %s5197_s21  ;;  %v489_v33 = vsel %vm5287_vm9, %v481_v14, %v488_v23  ;;  %v791_v34 = vsel %vm5245_vm3, %v490_v24, %v790_v19  ;;  %v494_v35 = vrot.slane %v492_v25, 7  ;;  %v800_v13 = vld [vmem:[#allocation2 + $0x30] sm:$0xf] }
  0x25   : > { %v517_v36 = vshrl.u32 %v5321_v21, 16  ;;  %789 = vst.msk [vmem:[#allocation2 + $0x1c] sm:$0xf] %vm264_vm0, %v489_v33  ;;  %792 = vst [vmem:[#allocation2 + $0x20] sm:$0x1] %v791_v34  ;;  %v502_v37 = vrot.slane %v500_v28, 7  ;;  %v5337_v42 = vpack.c.bf16 %v224_v27, %v224_v27  ;;  %v5341_v49 = vpack.c.bf16 %v225_v32, %v225_v32 }
  0x26   : > { %v5334_v39 = vrot.slane %v509_v30, 7  ;;  %v520_v40 = vshll.u32 %v5321_v21, 16  ;;  %v958_v43 = vld [vmem:[#allocation2 + $0xc] sm:$0xf]  ;;  %v959_v44 = vld [vmem:[#allocation2 + $0x10] sm:$0xf]  ;;  %v497_v45 = vor.u32 %v495_v26, %v494_v35  ;;  %v5353_v19 = vpack.c.bf16 %v226_v61, %v226_v61 }
  0x27   : > { %v498_v46 = vrot.slane %v494_v35, 4  ;;  %v5339_v48 = vrot.slane %v517_v36, 7  ;;  %v1031_v50 = vshrl.u32 %v958_v43, 16  ;;  %v1034_v51 = vshll.u32 %v958_v43, 16  ;;  %v960_v55 = vld [vmem:[#allocation2 + $0x14] sm:$0x1] }
  0x28   : > { %v1040_v53 = vshll.u32 %v959_v44, 16  ;;  %v1044_v54 = vshrl.u32 %v959_v44, 16  ;;  %v1050_v56 = vshll.u32 %v960_v55, 16  ;;  %v505_v57 = vor.u32 %v503_v29, %v502_v37  ;;  %v804_v32 = vld [vmem:[#allocation2 + $0x38] sm:$0x1] }
  0x29   : > { %v794_v58 = vsel %vm5293_vm10, %v497_v45, %v793_v38  ;;  %v507_v59 = vrot.slane %v502_v37, 4  ;;  %v1033_v62 = vrot.slane %v1031_v50, 4  ;;  %v1036_v63 = vrot.slane %v1034_v51, 5  ;;  %v961_v3 = vld [vmem:[#allocation2 + $0x18] sm:$0xf] }
  0x2a   : > { %v1042_v0 = vrot.slane %v1040_v53, 5  ;;  %v1046_v2 = vrot.slane %v1044_v54, 4  ;;  %795 = vst [vmem:[#allocation2 + $0x24] sm:$0xf] %v794_v58  ;;  %v1052_v4 = vrot.slane %v1050_v56, 5  ;;  %v1055_v5 = vshrl.u32 %v961_v3, 16 }
  0x2b   : > { %v1058_v6 = vshll.u32 %v961_v3, 16  ;;  %v506_v7 = vsel %vm5287_vm9, %v498_v46, %v505_v57  ;;  %v1037_v8 = vor.u32 %v1036_v63, %v1033_v62  ;;  %v798_v11 = vsel %vm5245_vm3, %v507_v59, %v797_v60 }
  0x2c   : > { %v1047_v10 = vor.u32 %v1046_v2, %v1042_v0  ;;  %796 = vst.msk [vmem:[#allocation2 + $0x28] sm:$0xf] %vm264_vm0, %v506_v7  ;;  %v514_v12 = vor.u32 %v512_v31, %v5334_v39  ;;  %v962_v14 = vld [vmem:[#allocation2 + $0x1c] sm:$0xf]  ;;  %v1057_v15 = vrot.slane %v1055_v5, 4  ;;  %v522_v18 = vor.u32 %v520_v40, %v5339_v48 }
  0x2d   : > { %v1060_v16 = vrot.slane %v1058_v6, 5  ;;  %v963_v17 = vld [vmem:[#allocation2 + $0x20] sm:$0x1]  ;;  %799 = vst [vmem:[#allocation2 + $0x2c] sm:$0x1] %v798_v11  ;;  %v1038_v20 = vrot.slane %v1037_v8, 4 }
  0x2e   : > { %v1048_v21 = vrot.slane %v1047_v10, 4  ;;  %v1064_v22 = vshll.u32 %v962_v14, 16  ;;  %v1068_v23 = vshrl.u32 %v962_v14, 16  ;;  %v1074_v25 = vshll.u32 %v963_v17, 16  ;;  %v339_v2 = vld [vmem:[#allocation2 + $0x44] sm:$0x1] }
  0x2f   : > { %v1061_v24 = vor.u32 %v1060_v16, %v1057_v15  ;;  %v515_v26 = vrot.slane %v5334_v39, 4  ;;  %v801_v27 = vsel %vm5293_vm10, %v514_v12, %v800_v13  ;;  %v1043_v28 = vsel %vm5299_vm11, %v1038_v20, %v1042_v0  ;;  %v807_v0 = vld [vmem:[#allocation2 + $0x3c] sm:$0xf]  ;;  %v288_v13 = vld [vmem:[#allocation2 + $0x48] sm:$0x1] }
  0x30   : > { %v1053_v29 = vsel %vm5299_vm11, %v1048_v21, %v1052_v4  ;;  %v1066_v30 = vrot.slane %v1064_v22, 5  ;;  %v1070_v31 = vrot.slane %v1068_v23, 4  ;;  %802 = vst [vmem:[#allocation2 + $0x30] sm:$0xf] %v801_v27  ;;  %1394 = vrot.lane.b32.xlu1 %v1043_v28, %s5197_s21  ;;  %v1076_v34 = vrot.slane %v1074_v25, 5 }
  0x31   : > { %v1062_v33 = vrot.slane %v1061_v24, 4  ;;  %v964_v35 = vld [vmem:[#allocation2 + $0x24] sm:$0xf]  ;;  %v523_v36 = vsel %vm5287_vm9, %v515_v26, %v522_v18  ;;  %v524_v37 = vrot.slane %v5339_v48, 4  ;;  %v526_v43 = vshrl.u32 %v5337_v42, 16  ;;  %v227_v18 = vld [vmem:[%s5269_s20 + $0x58] sm:$0xff] }
  0x32   : > { %v1071_v38 = vor.u32 %v1070_v31, %v1066_v30  ;;  %v1079_v39 = vshrl.u32 %v964_v35, 16  ;;  %v1082_v40 = vshll.u32 %v964_v35, 16  ;;  %803 = vst.msk [vmem:[#allocation2 + $0x34] sm:$0xf] %vm264_vm0, %v523_v36  ;;  %v529_v50 = vshll.u32 %v5337_v42, 16 }
  0x33   : > { %v1067_v44 = vsel %vm5299_vm11, %v1062_v33, %v1066_v30  ;;  %v965_v45 = vld [vmem:[#allocation2 + $0x28] sm:$0xf]  ;;  %v805_v46 = vsel %vm5245_vm3, %v524_v37, %v804_v32  ;;  %v534_v51 = vshrl.u32 %v5341_v49, 16  ;;  %v528_v59 = vrot.slane %v526_v43, 7  ;;  %v342_v33 = vld [vmem:[#allocation2 + $0x50] sm:$0x1] }
  0x34   : > { %1398 = vrot.lane.b32.xlu0 %v1067_v44, %s5197_s21  ;;  %v1072_v48 = vrot.slane %v1071_v38, 4  ;;  %v1081_v53 = vrot.slane %v1079_v39, 4  ;;  %v1084_v54 = vrot.slane %v1082_v40, 5  ;;  %v1088_v55 = vshll.u32 %v965_v45, 16  ;;  %v966_v56 = vld [vmem:[#allocation2 + $0x2c] sm:$0x1]  ;;  %1396 = vrot.lane.b32.xlu1 %v1053_v29, %s5197_s21 }
  0x35   : > { %806 = vst [vmem:[#allocation2 + $0x38] sm:$0x1] %v805_v46  ;;  %v1092_v57 = vshrl.u32 %v965_v45, 16  ;;  %v1098_v58 = vshll.u32 %v966_v56, 16  ;;  %v5376_v60 = vrot.slane %v534_v51, 7  ;;  %v537_v63 = vshll.u32 %v5341_v49, 16 }
  0x36   : > { %v1077_v42 = vsel %vm5299_vm11, %v1072_v48, %v1076_v34  ;;  %v1085_v61 = vor.u32 %v1084_v54, %v1081_v53  ;;  %v1090_v62 = vrot.slane %v1088_v55, 5  ;;  %v531_v6 = vor.u32 %v529_v50, %v528_v59  ;;  %v291_v34 = vld [vmem:[#allocation2 + $0x54] sm:$0x1]  ;;  %v228_v39 = vld [vmem:[%s5269_s20 + $0x60] sm:$0xff]  ;;  %v229_v40 = vld [vmem:[%s5269_s20 + $0x68] sm:$0xff] }
  0x37   : > { %v1094_v3 = vrot.slane %v1092_v57, 4  ;;  %v1100_v4 = vrot.slane %v1098_v58, 5  ;;  %v967_v5 = vld [vmem:[#allocation2 + $0x30] sm:$0xf]  ;;  %v532_v7 = vrot.slane %v528_v59, 4  ;;  %v539_v12 = vor.u32 %v537_v63, %v5376_v60  ;;  %v231_v58 = vld [vmem:[%s5269_s20 + $0x78] sm:$0xff] }
  0x38   : > { %v1086_v8 = vrot.slane %v1085_v61, 4  ;;  %v1103_v10 = vshrl.u32 %v967_v5, 16  ;;  %v1106_v11 = vshll.u32 %v967_v5, 16  ;;  %1400 = vrot.lane.b32.xlu1 %v1077_v42, %s5197_s21  ;;  %v808_v49 = vsel %vm5293_vm10, %v531_v6, %v807_v0  ;;  %v230_v50 = vld [vmem:[%s5269_s20 + $0x70] sm:$0xff] }
  0x39   : > { %v1095_v14 = vor.u32 %v1094_v3, %v1090_v62  ;;  %v968_v15 = vld [vmem:[#allocation2 + $0x34] sm:$0xf]  ;;  %v340_v16 = vsel %vm5260_vm7, 0, %v339_v2  ;;  %v541_v17 = vrot.slane %v5376_v60, 4  ;;  %809 = vst [vmem:[#allocation2 + $0x3c] sm:$0xf] %v808_v49  ;;  %v540_v27 = vsel %vm5287_vm9, %v532_v7, %v539_v12 }
  0x3a   : > { %v1091_v20 = vsel %vm5299_vm11, %v1086_v8, %v1090_v62  ;;  %v1105_v21 = vrot.slane %v1103_v10, 4  ;;  %v1108_v22 = vrot.slane %v1106_v11, 5  ;;  %v1112_v23 = vshll.u32 %v968_v15, 16  ;;  %341 = vst [vmem:[#allocation2 + $0x44] sm:$0x1] %v340_v16  ;;  %v232_v49 = vld [vmem:[%s5269_s20 + $0x80] sm:$0xff] }
  0x3b   : > { %1402 = vrot.lane.b32.xlu0 %v1091_v20, %s5197_s21  ;;  %v1096_v24 = vrot.slane %v1095_v14, 4  ;;  %v1116_v25 = vshrl.u32 %v968_v15, 16  ;;  %v289_v28 = vsel %vm5245_vm3, 0, %v288_v13  ;;  %810 = vst.msk [vmem:[#allocation2 + $0x40] sm:$0xf] %vm264_vm0, %v540_v27  ;;  %v5036_v32 = vpack.c.bf16 %v227_v18, %v227_v18 }
  0x3c   : > { %v969_v26 = vld [vmem:[#allocation2 + $0x38] sm:$0x1]  ;;  %v1109_v29 = vor.u32 %v1108_v22, %v1105_v21  ;;  %v1114_v30 = vrot.slane %v1112_v23, 5  ;;  %290 = vst [vmem:[#allocation2 + $0x48] sm:$0x1] %v289_v28  ;;  %v543_v37 = vshrl.u32 %v5353_v19, 16  ;;  %v5037_v56 = vpack.c.bf16 %v228_v39, %v228_v39 }
  0x3d   : > { %v1122_v31 = vshll.u32 %v969_v26, 16  ;;  %v1101_v35 = vsel %vm5299_vm11, %v1096_v24, %v1100_v4  ;;  %v1118_v36 = vrot.slane %v1116_v25, 4  ;;  %v546_v38 = vshll.u32 %v5353_v19, 16  ;;  %v345_v21 = vld [vmem:[#allocation2 + $0x5c] sm:$0x1] }
  0x3e   : > { %1404 = vrot.lane.b32.xlu1 %v1101_v35, %s5197_s21  ;;  %v1110_v43 = vrot.slane %v1109_v29, 4  ;;  %v551_v45 = vshrl.u32 %v5036_v32, 16  ;;  %v554_v46 = vshll.u32 %v5036_v32, 16  ;;  %v545_v48 = vrot.slane %v543_v37, 7  ;;  %v294_v26 = vld [vmem:[#allocation2 + $0x60] sm:$0x1] }
  0x3f   : > { %v1124_v44 = vrot.slane %v1122_v31, 5  ;;  %v1119_v51 = vor.u32 %v1118_v36, %v1114_v30  ;;  %v343_v53 = vsel %vm5260_vm7, 0, %v342_v33  ;;  %v292_v54 = vsel %vm5245_vm3, 0, %v291_v34  ;;  %v348_v37 = vld [vmem:[#allocation2 + $0x68] sm:$0x1] }
  0x40   : > { %v1115_v19 = vsel %vm5299_vm11, %v1110_v43, %v1114_v30  ;;  %v553_v55 = vrot.slane %v551_v45, 7  ;;  %344 = vst [vmem:[#allocation2 + $0x50] sm:$0x1] %v343_v53  ;;  %293 = vst [vmem:[#allocation2 + $0x54] sm:$0x1] %v292_v54  ;;  %v5038_v57 = vpack.c.bf16 %v229_v40, %v229_v40  ;;  %v548_v61 = vor.u32 %v546_v38, %v545_v48  ;;  %v233_v53 = vld [vmem:[%s5269_s20 + $0x88] sm:$0xff] }
  0x41   : > { %1406 = vrot.lane.b32.xlu0 %v1115_v19, %s5197_s21  ;;  %v1120_v59 = vrot.slane %v1119_v51, 4  ;;  %v970_v60 = vld [vmem:[#allocation2 + $0x3c] sm:$0xf]  ;;  %v811_v42 = vld [vmem:[#allocation2 + $0x44] sm:$0x1]  ;;  %v549_v62 = vrot.slane %v545_v48, 4  ;;  %v5413_v63 = vpack.c.bf16 %v230_v50, %v230_v50  ;;  %v5419_v11 = vpack.c.bf16 %v231_v58, %v231_v58 }
  0x42   : > { %v1127_v0 = vshrl.u32 %v970_v60, 16  ;;  %v1130_v2 = vshll.u32 %v970_v60, 16  ;;  %v812_v3 = vsel %vm5245_vm3, %v541_v17, %v811_v42  ;;  %v556_v4 = vor.u32 %v554_v46, %v553_v55  ;;  %v971_v6 = vld [vmem:[#allocation2 + $0x40] sm:$0xf] }
  0x43   : > { %v1125_v5 = vsel %vm5299_vm11, %v1120_v59, %v1124_v44  ;;  %813 = vst [vmem:[#allocation2 + $0x44] sm:$0x1] %v812_v3  ;;  %v814_v7 = vld [vmem:[#allocation2 + $0x48] sm:$0xf]  ;;  %v558_v8 = vrot.slane %v553_v55, 4  ;;  %v560_v10 = vshrl.u32 %v5037_v56, 16  ;;  %v5428_v32 = vpack.c.bf16 %v232_v49, %v232_v49 }
  0x44   : > { %1408 = vrot.lane.b32.xlu1 %v1125_v5, %s5197_s21  ;;  %v1129_v12 = vrot.slane %v1127_v0, 4  ;;  %v1132_v13 = vrot.slane %v1130_v2, 5  ;;  %v1136_v14 = vshll.u32 %v971_v6, 16  ;;  %v1140_v15 = vshrl.u32 %v971_v6, 16  ;;  %v297_v44 = vld [vmem:[#allocation2 + $0x6c] sm:$0x1] }
  0x45   : > { %v557_v16 = vsel %vm5287_vm9, %v549_v62, %v556_v4  ;;  %v815_v17 = vsel %vm5293_vm10, %v548_v61, %v814_v7  ;;  %v562_v18 = vrot.slane %v560_v10, 7  ;;  %v563_v20 = vshll.u32 %v5037_v56, 16  ;;  %v234_v7 = vld [vmem:[%s5269_s20 + $0x90] sm:$0xff] }
  0x46   : > { %v1133_v22 = vor.u32 %v1132_v13, %v1129_v12  ;;  %v1138_v23 = vrot.slane %v1136_v14, 5  ;;  %v1142_v24 = vrot.slane %v1140_v15, 4  ;;  %816 = vst [vmem:[#allocation2 + $0x48] sm:$0xf] %v815_v17  ;;  %817 = vst.msk [vmem:[#allocation2 + $0x4c] sm:$0xf] %vm264_vm0, %v557_v16  ;;  %v5457_v2 = vpack.c.bf16 %v233_v53, %v233_v53 }
  0x47   : > { %v568_v25 = vshrl.u32 %v5038_v57, 16  ;;  %v818_v27 = vld [vmem:[#allocation2 + $0x50] sm:$0x1]  ;;  %v565_v28 = vor.u32 %v563_v20, %v562_v18  ;;  %v566_v29 = vrot.slane %v562_v18, 4  ;;  %v571_v30 = vshll.u32 %v5038_v57, 16 }
  0x48   : > { %v821_v31 = vld [vmem:[#allocation2 + $0x54] sm:$0xf]  ;;  %v1134_v33 = vrot.slane %v1133_v22, 4  ;;  %v1143_v34 = vor.u32 %v1142_v24, %v1138_v23  ;;  %v819_v35 = vsel %vm5245_vm3, %v558_v8, %v818_v27  ;;  %v346_v39 = vsel %vm5260_vm7, 0, %v345_v21 }
  0x49   : > { %v5432_v36 = vrot.slane %v568_v25, 7  ;;  %820 = vst [vmem:[#allocation2 + $0x50] sm:$0x1] %v819_v35  ;;  %v822_v38 = vsel %vm5293_vm10, %v565_v28, %v821_v31  ;;  %v295_v40 = vsel %vm5245_vm3, 0, %v294_v26  ;;  %v577_v43 = vshrl.u32 %v5413_v63, 16 }
  0x4a   : > { %v1139_v45 = vsel %vm5299_vm11, %v1134_v33, %v1138_v23  ;;  %v972_v46 = vld [vmem:[#allocation2 + $0x44] sm:$0x1]  ;;  %v1144_v50 = vrot.slane %v1143_v34, 4  ;;  %823 = vst [vmem:[#allocation2 + $0x54] sm:$0xf] %v822_v38  ;;  %v580_v55 = vshll.u32 %v5413_v63, 16  ;;  %v5465_v23 = vpack.c.bf16 %v234_v7, %v234_v7 }
  0x4b   : > { %v573_v51 = vor.u32 %v571_v30, %v5432_v36  ;;  %347 = vst [vmem:[#allocation2 + $0x5c] sm:$0x1] %v346_v39  ;;  %v575_v48 = vrot.slane %v5432_v36, 4  ;;  %296 = vst [vmem:[#allocation2 + $0x60] sm:$0x1] %v295_v40  ;;  %1410 = vrot.lane.b32.xlu0 %v1139_v45, %s5197_s21  ;;  %v1146_v54 = vshll.u32 %v972_v46, 16 }
  0x4c   : > { %v579_v19 = vrot.slane %v577_v43, 7  ;;  %v585_v56 = vshrl.u32 %v5419_v11, 16  ;;  %v588_v58 = vshll.u32 %v5419_v11, 16  ;;  %v349_v59 = vsel %vm5260_vm7, 0, %v348_v37  ;;  %v351_v33 = vld [vmem:[#allocation2 + $0x74] sm:$0x1] }
  0x4d   : > { %v574_v57 = vsel %vm5287_vm9, %v566_v29, %v573_v51  ;;  %v298_v60 = vsel %vm5245_vm3, 0, %v297_v44  ;;  %v1148_v42 = vrot.slane %v1146_v54, 5  ;;  %v973_v61 = vld [vmem:[#allocation2 + $0x48] sm:$0xf]  ;;  %v974_v62 = vld [vmem:[#allocation2 + $0x4c] sm:$0xf] }
  0x4e   : > { %824 = vst.msk [vmem:[#allocation2 + $0x58] sm:$0xf] %vm264_vm0, %v574_v57  ;;  %v582_v63 = vor.u32 %v580_v55, %v579_v19  ;;  %v583_v0 = vrot.slane %v579_v19, 4  ;;  %350 = vst [vmem:[#allocation2 + $0x68] sm:$0x1] %v349_v59  ;;  %v1151_v3 = vshrl.u32 %v973_v61, 16 }
  0x4f   : > { %299 = vst [vmem:[#allocation2 + $0x6c] sm:$0x1] %v298_v60  ;;  %v1154_v4 = vshll.u32 %v973_v61, 16  ;;  %v1160_v5 = vshll.u32 %v974_v62, 16  ;;  %v1164_v6 = vshrl.u32 %v974_v62, 16  ;;  %v1149_v8 = vsel %vm5299_vm11, %v1144_v50, %v1148_v42  ;;  %v235_v39 = vld [vmem:[%s5269_s20 + $0x98] sm:$0xff] }
  0x50   : > { %v587_v10 = vrot.slane %v585_v56, 7  ;;  %v594_v11 = vshrl.u32 %v5428_v32, 16  ;;  %v597_v12 = vshll.u32 %v5428_v32, 16  ;;  %1412 = vrot.lane.b32.xlu1 %v1149_v8, %s5197_s21  ;;  %v1153_v13 = vrot.slane %v1151_v3, 4  ;;  %v975_v49 = vld [vmem:[#allocation2 + $0x50] sm:$0x1] }
  0x51   : > { %v1156_v14 = vrot.slane %v1154_v4, 5  ;;  %v1162_v15 = vrot.slane %v1160_v5, 5  ;;  %v1166_v16 = vrot.slane %v1164_v6, 4  ;;  %v1170_v17 = vshll.u32 %v975_v49, 16  ;;  %v976_v18 = vld [vmem:[#allocation2 + $0x54] sm:$0xf] }
  0x52   : > { %v825_v20 = vld [vmem:[#allocation2 + $0x5c] sm:$0x1]  ;;  %v590_v21 = vor.u32 %v588_v58, %v587_v10  ;;  %v592_v22 = vrot.slane %v587_v10, 4  ;;  %v1175_v26 = vshrl.u32 %v976_v18, 16  ;;  %v1178_v27 = vshll.u32 %v976_v18, 16  ;;  %v237_v3 = vld [vmem:[%s5269_s20 + $0xa8] sm:$0xff] }
  0x53   : > { %v1157_v24 = vor.u32 %v1156_v14, %v1153_v13  ;;  %v1167_v25 = vor.u32 %v1166_v16, %v1162_v15  ;;  %v828_v28 = vld [vmem:[#allocation2 + $0x60] sm:$0xf]  ;;  %v1172_v29 = vrot.slane %v1170_v17, 5  ;;  %v826_v30 = vsel %vm5245_vm3, %v575_v48, %v825_v20  ;;  %v300_v19 = vld [vmem:[#allocation2 + $0x78] sm:$0x1] }
  0x54   : > { %v591_v31 = vsel %vm5287_vm9, %v583_v0, %v590_v21  ;;  %v829_v32 = vsel %vm5293_vm10, %v582_v63, %v828_v28  ;;  %v1177_v37 = vrot.slane %v1175_v26, 4  ;;  %v1180_v38 = vrot.slane %v1178_v27, 5  ;;  %827 = vst [vmem:[#allocation2 + $0x5c] sm:$0x1] %v826_v30  ;;  %v891_v55 = vld [vmem:[#allocation2] sm:$0xf] }
  0x55   : > { %v1158_v34 = vrot.slane %v1157_v24, 4  ;;  %v1168_v35 = vrot.slane %v1167_v25, 4  ;;  %v977_v36 = vld [vmem:[#allocation2 + $0x58] sm:$0xf]  ;;  %830 = vst [vmem:[#allocation2 + $0x60] sm:$0xf] %v829_v32  ;;  %v5044_v7 = vpack.c.bf16 %v235_v39, %v235_v39  ;;  %v5504_v18 = vpack.c.bf16 %v237_v3, %v237_v3 }
  0x56   : > { %831 = vst.msk [vmem:[#allocation2 + $0x64] sm:$0xf] %vm264_vm0, %v591_v31  ;;  %v1184_v40 = vshll.u32 %v977_v36, 16  ;;  %v1188_v43 = vshrl.u32 %v977_v36, 16  ;;  %v832_v44 = vld [vmem:[#allocation2 + $0x68] sm:$0x1]  ;;  %v1181_v48 = vor.u32 %v1180_v38, %v1177_v37 }
  0x57   : > { %v596_v45 = vrot.slane %v594_v11, 7  ;;  %v602_v46 = vshrl.u32 %v5457_v2, 16  ;;  %v1163_v50 = vsel %vm5299_vm11, %v1158_v34, %v1162_v15  ;;  %v1173_v51 = vsel %vm5299_vm11, %v1168_v35, %v1172_v29  ;;  %v835_v54 = vld [vmem:[#allocation2 + $0x6c] sm:$0xf]  ;;  %923 = vst.msk [vmem:[#allocation3] sm:$0xf] %vm264_vm0, %v891_v55 }
  0x58   : > { %v833_v53 = vsel %vm5245_vm3, %v592_v22, %v832_v44  ;;  %1414 = vrot.lane.b32.xlu0 %v1163_v50, %s5197_s21  ;;  %1416 = vrot.lane.b32.xlu1 %v1173_v51, %s5197_s21  ;;  %v1186_v56 = vrot.slane %v1184_v40, 5  ;;  %v1190_v57 = vrot.slane %v1188_v43, 4  ;;  %v893_v60 = vld [vmem:[#allocation2 + $0xc] sm:$0xf]  ;;  %v1182_v42 = vrot.slane %v1181_v48, 4  ;;  %v236_v0 = vld [vmem:[%s5269_s20 + $0xa0] sm:$0xff] }
  0x59   : > { %834 = vst [vmem:[#allocation2 + $0x68] sm:$0x1] %v833_v53  ;;  %v599_v58 = vor.u32 %v597_v12, %v596_v45  ;;  %v600_v59 = vrot.slane %v596_v45, 4  ;;  %v604_v61 = vrot.slane %v602_v46, 7  ;;  %v605_v62 = vshll.u32 %v5457_v2, 16 }
  0x5a   : > { %v352_v63 = vsel %vm5260_vm7, 0, %v351_v33  ;;  %925 = vst.msk [vmem:[#allocation3 + $0x8] sm:$0xf] %vm264_vm0, %v893_v60  ;;  %v1191_v4 = vor.u32 %v1190_v57, %v1186_v56  ;;  %v301_v6 = vsel %vm5245_vm3, 0, %v300_v19  ;;  %v892_v8 = vld [vmem:[#allocation2 + $0x4] sm:$0xf]  ;;  %v1187_v2 = vsel %vm5299_vm11, %v1182_v42, %v1186_v56 }
  0x5b   : > { %v836_v5 = vsel %vm5293_vm10, %v599_v58, %v835_v54  ;;  %353 = vst [vmem:[#allocation2 + $0x74] sm:$0x1] %v352_v63  ;;  %v894_v10 = vld [vmem:[#allocation2 + $0x10] sm:$0xf]  ;;  %v607_v11 = vor.u32 %v605_v62, %v604_v61  ;;  %v609_v12 = vrot.slane %v604_v61, 4  ;;  %v611_v13 = vshrl.u32 %v5465_v23, 16 }
  0x5c   : > { %837 = vst [vmem:[#allocation2 + $0x6c] sm:$0xf] %v836_v5  ;;  %302 = vst [vmem:[#allocation2 + $0x78] sm:$0x1] %v301_v6  ;;  %1418 = vrot.lane.b32.xlu0 %v1187_v2, %s5197_s21  ;;  %v978_v14 = vld [vmem:[#allocation2 + $0x5c] sm:$0x1]  ;;  %v5502_v17 = vpack.c.bf16 %v236_v0, %v236_v0 }
  0x5d   : > { %924 = vst.msk [vmem:[#allocation3 + $0x4] sm:$0xf] %vm264_vm0, %v892_v8  ;;  %926 = vst.msk [vmem:[#allocation3 + $0xc] sm:$0xf] %vm264_vm0, %v894_v10  ;;  %v1192_v15 = vrot.slane %v1191_v4, 4  ;;  %v614_v16 = vshll.u32 %v5465_v23, 16  ;;  %v608_v25 = vsel %vm5287_vm9, %v600_v59, %v607_v11 }
  0x5e   : > { %v979_v49 = vld [vmem:[#allocation2 + $0x60] sm:$0xf]  ;;  %v1194_v20 = vshll.u32 %v978_v14, 16  ;;  %v980_v21 = vld [vmem:[#allocation2 + $0x64] sm:$0xf]  ;;  %v613_v28 = vrot.slane %v611_v13, 7 }
  0x5f   : > { %v1199_v22 = vshrl.u32 %v979_v49, 16  ;;  %v1202_v24 = vshll.u32 %v979_v49, 16  ;;  %v1208_v26 = vshll.u32 %v980_v21, 16  ;;  %v1212_v27 = vshrl.u32 %v980_v21, 16  ;;  %838 = vst.msk [vmem:[#allocation2 + $0x70] sm:$0xf] %vm264_vm0, %v608_v25 }
  0x60   : > { %v619_v29 = vshrl.u32 %v5044_v7, 16  ;;  %v354_v30 = vld [vmem:[#allocation2 + $0x80] sm:$0x1]  ;;  %v1196_v31 = vrot.slane %v1194_v20, 5  ;;  %v981_v33 = vld [vmem:[#allocation2 + $0x68] sm:$0x1]  ;;  %v616_v38 = vor.u32 %v614_v16, %v613_v28 }
  0x61   : > { %v1201_v23 = vrot.slane %v1199_v22, 4  ;;  %v1204_v32 = vrot.slane %v1202_v24, 5  ;;  %v622_v34 = vshll.u32 %v5044_v7, 16  ;;  %v1210_v35 = vrot.slane %v1208_v26, 5  ;;  %v303_v46 = vld [vmem:[#allocation2 + $0x84] sm:$0x1] }
  0x62   : > { %v1214_v36 = vrot.slane %v1212_v27, 4  ;;  %v1218_v37 = vshll.u32 %v981_v33, 16  ;;  %v1197_v39 = vsel %vm5299_vm11, %v1192_v15, %v1196_v31  ;;  %v839_v43 = vld [vmem:[#allocation2 + $0x74] sm:$0x1]  ;;  %v617_v44 = vrot.slane %v613_v28, 4  ;;  %v240_v20 = vld [vmem:[%s5269_s20 + $0xc0] sm:$0xff] }
  0x63   : > { %v1205_v40 = vor.u32 %v1204_v32, %v1201_v23  ;;  %v5511_v45 = vrot.slane %v619_v29, 7  ;;  %1420 = vrot.lane.b32.xlu1 %v1197_v39, %s5197_s21  ;;  %v982_v48 = vld [vmem:[#allocation2 + $0x6c] sm:$0xf]  ;;  %v840_v53 = vsel %vm5245_vm3, %v609_v12, %v839_v43  ;;  %v842_v54 = vld [vmem:[#allocation2 + $0x78] sm:$0xf]  ;;  %v355_v19 = vsel %vm5260_vm7, 0, %v354_v30 }
  0x64   : > { %v1215_v50 = vor.u32 %v1214_v36, %v1210_v35  ;;  %v1220_v51 = vrot.slane %v1218_v37, 5  ;;  %v1223_v56 = vshrl.u32 %v982_v48, 16  ;;  %v1226_v57 = vshll.u32 %v982_v48, 16  ;;  %841 = vst [vmem:[#allocation2 + $0x74] sm:$0x1] %v840_v53  ;;  %v238_v63 = vld [vmem:[%s5269_s20 + $0xb0] sm:$0xff] }
  0x65   : > { %v1206_v55 = vrot.slane %v1205_v40, 4  ;;  %v624_v58 = vor.u32 %v622_v34, %v5511_v45  ;;  %356 = vst [vmem:[#allocation2 + $0x80] sm:$0x1] %v355_v19  ;;  %v843_v60 = vsel %vm5293_vm10, %v616_v38, %v842_v54  ;;  %v626_v42 = vrot.slane %v5511_v45, 4  ;;  %v357_v62 = vld [vmem:[#allocation2 + $0x8c] sm:$0x1] }
  0x66   : > { %v1216_v59 = vrot.slane %v1215_v50, 4  ;;  %v304_v61 = vsel %vm5245_vm3, 0, %v303_v46  ;;  %v983_v3 = vld [vmem:[#allocation2 + $0x70] sm:$0xf]  ;;  %v1225_v4 = vrot.slane %v1223_v56, 4  ;;  %v1228_v5 = vrot.slane %v1226_v57, 5 }
  0x67   : > { %v1211_v0 = vsel %vm5299_vm11, %v1206_v55, %v1210_v35  ;;  %v625_v6 = vsel %vm5287_vm9, %v617_v44, %v624_v58  ;;  %844 = vst [vmem:[#allocation2 + $0x78] sm:$0xf] %v843_v60  ;;  %305 = vst [vmem:[#allocation2 + $0x84] sm:$0x1] %v304_v61  ;;  %v306_v7 = vld [vmem:[#allocation2 + $0x90] sm:$0x1]  ;;  %v5554_v50 = vpack.c.bf16 %v240_v20, %v240_v20 }
  0x68   : > { %1422 = vrot.lane.b32.xlu0 %v1211_v0, %s5197_s21  ;;  %v1221_v8 = vsel %vm5299_vm11, %v1216_v59, %v1220_v51  ;;  %v1232_v10 = vshll.u32 %v983_v3, 16  ;;  %v1236_v2 = vshrl.u32 %v983_v3, 16  ;;  %845 = vst.msk [vmem:[#allocation2 + $0x7c] sm:$0xf] %vm264_vm0, %v625_v6  ;;  %v628_v11 = vshrl.u32 %v5502_v17, 16  ;;  %v239_v12 = vld [vmem:[%s5269_s20 + $0xb8] sm:$0xff] }
  0x69   : > { %v895_v13 = vld [vmem:[#allocation2 + $0x18] sm:$0xf]  ;;  %1424 = vrot.lane.b32.xlu1 %v1221_v8, %s5197_s21  ;;  %v1229_v14 = vor.u32 %v1228_v5, %v1225_v4  ;;  %v631_v15 = vshll.u32 %v5502_v17, 16  ;;  %v636_v49 = vshrl.u32 %v5504_v18, 16  ;;  %v639_v16 = vshll.u32 %v5504_v18, 16  ;;  %v241_v30 = vld [vmem:[%s5269_s20 + $0xc8] sm:$0xff] }
  0x6a   : > { %927 = vst.msk [vmem:[#allocation3 + $0x10] sm:$0xf] %vm264_vm0, %v895_v13  ;;  %v896_v21 = vld [vmem:[#allocation2 + $0x1c] sm:$0xf]  ;;  %v1234_v22 = vrot.slane %v1232_v10, 5  ;;  %v1238_v24 = vrot.slane %v1236_v2, 4  ;;  %v5047_v18 = vpack.c.bf16 %v238_v63, %v238_v63  ;;  %v5048_v36 = vpack.c.bf16 %v239_v12, %v239_v12 }
  0x6b   : > { %v630_v25 = vrot.slane %v628_v11, 7  ;;  %v358_v26 = vsel %vm5260_vm7, 0, %v357_v62  ;;  %928 = vst.msk [vmem:[#allocation3 + $0x14] sm:$0xf] %vm264_vm0, %v896_v21  ;;  %v897_v27 = vld [vmem:[#allocation2 + $0x24] sm:$0xf]  ;;  %v5556_v51 = vpack.c.bf16 %v241_v30, %v241_v30 }
  0x6c   : > { %v1230_v28 = vrot.slane %v1229_v14, 4  ;;  %v638_v17 = vrot.slane %v636_v49, 7  ;;  %359 = vst [vmem:[#allocation2 + $0x8c] sm:$0x1] %v358_v26  ;;  %v307_v29 = vsel %vm5245_vm3, 0, %v306_v7  ;;  %v1239_v32 = vor.u32 %v1238_v24, %v1234_v22 }
  0x6d   : > { %929 = vst.msk [vmem:[#allocation3 + $0x18] sm:$0xf] %vm264_vm0, %v897_v27  ;;  %v898_v31 = vld [vmem:[#allocation2 + $0x28] sm:$0xf]  ;;  %v984_v23 = vld [vmem:[#allocation2 + $0x74] sm:$0x1]  ;;  %v633_v34 = vor.u32 %v631_v15, %v630_v25 }
  0x6e   : > { %v846_v33 = vld [vmem:[#allocation2 + $0x80] sm:$0x1]  ;;  %v634_v35 = vrot.slane %v630_v25, 4  ;;  %308 = vst [vmem:[#allocation2 + $0x90] sm:$0x1] %v307_v29  ;;  %v1235_v37 = vsel %vm5299_vm11, %v1230_v28, %v1234_v22  ;;  %v1242_v38 = vshll.u32 %v984_v23, 16  ;;  %v641_v40 = vor.u32 %v639_v16, %v638_v17 }
  0x6f   : > { %930 = vst.msk [vmem:[#allocation3 + $0x1c] sm:$0xf] %vm264_vm0, %v898_v31  ;;  %v847_v39 = vsel %vm5245_vm3, %v626_v42, %v846_v33  ;;  %1426 = vrot.lane.b32.xlu0 %v1235_v37, %s5197_s21  ;;  %v1240_v43 = vrot.slane %v1239_v32, 4  ;;  %v985_v44 = vld [vmem:[#allocation2 + $0x78] sm:$0xf]  ;;  %v643_v46 = vrot.slane %v638_v17, 4 }
  0x70   : > { %848 = vst [vmem:[#allocation2 + $0x80] sm:$0x1] %v847_v39  ;;  %v849_v45 = vld [vmem:[#allocation2 + $0x84] sm:$0xf]  ;;  %v1244_v48 = vrot.slane %v1242_v38, 5  ;;  %v1247_v54 = vshrl.u32 %v985_v44, 16  ;;  %v642_v55 = vsel %vm5287_vm9, %v634_v35, %v641_v40 }
  0x71   : > { %v986_v53 = vld [vmem:[#allocation2 + $0x7c] sm:$0xf]  ;;  %v1250_v19 = vshll.u32 %v985_v44, 16  ;;  %v850_v58 = vsel %vm5293_vm10, %v633_v34, %v849_v45  ;;  %852 = vst.msk [vmem:[#allocation2 + $0x88] sm:$0xf] %vm264_vm0, %v642_v55  ;;  %v645_v59 = vshrl.u32 %v5047_v18, 16 }
  0x72   : > { %v1256_v56 = vshll.u32 %v986_v53, 16  ;;  %v1260_v57 = vshrl.u32 %v986_v53, 16  ;;  %v360_v60 = vld [vmem:[#allocation2 + $0x98] sm:$0x1]  ;;  %v1245_v42 = vsel %vm5299_vm11, %v1240_v43, %v1244_v48  ;;  %v1249_v61 = vrot.slane %v1247_v54, 4  ;;  %v242_v33 = vld [vmem:[%s5269_s20 + $0xd0] sm:$0xff] }
  0x73   : > { %v1252_v62 = vrot.slane %v1250_v19, 5  ;;  %851 = vst [vmem:[#allocation2 + $0x84] sm:$0xf] %v850_v58  ;;  %v648_v63 = vshll.u32 %v5047_v18, 16  ;;  %v309_v0 = vld [vmem:[#allocation2 + $0x9c] sm:$0x1]  ;;  %1428 = vrot.lane.b32.xlu1 %v1245_v42, %s5197_s21 }
  0x74   : > { %v1258_v3 = vrot.slane %v1256_v56, 5  ;;  %v1262_v4 = vrot.slane %v1260_v57, 4  ;;  %v853_v5 = vld [vmem:[#allocation2 + $0x8c] sm:$0x1]  ;;  %v647_v6 = vrot.slane %v645_v59, 7  ;;  %v653_v7 = vshrl.u32 %v5048_v36, 16 }
  0x75   : > { %v1253_v8 = vor.u32 %v1252_v62, %v1249_v61  ;;  %v854_v10 = vsel %vm5245_vm3, %v643_v46, %v853_v5  ;;  %v656_v2 = vshll.u32 %v5048_v36, 16  ;;  %v856_v11 = vld [vmem:[#allocation2 + $0x90] sm:$0xf]  ;;  %v361_v12 = vsel %vm5260_vm7, 0, %v360_v60  ;;  %v900_v20 = vld [vmem:[#allocation2 + $0x34] sm:$0xf] }
  0x76   : > { %v1263_v13 = vor.u32 %v1262_v4, %v1258_v3  ;;  %855 = vst [vmem:[#allocation2 + $0x8c] sm:$0x1] %v854_v10  ;;  %v650_v14 = vor.u32 %v648_v63, %v647_v6  ;;  %v651_v15 = vrot.slane %v647_v6, 4  ;;  %v655_v49 = vrot.slane %v653_v7, 7  ;;  %362 = vst [vmem:[#allocation2 + $0x98] sm:$0x1] %v361_v12 }
  0x77   : > { %v899_v16 = vld [vmem:[#allocation2 + $0x30] sm:$0xf]  ;;  %v1254_v21 = vrot.slane %v1253_v8, 4  ;;  %v987_v22 = vld [vmem:[#allocation2 + $0x80] sm:$0x1]  ;;  %v310_v24 = vsel %vm5245_vm3, 0, %v309_v0  ;;  %v5051_v59 = vpack.c.bf16 %v242_v33, %v242_v33 }
  0x78   : > { %v662_v25 = vshrl.u32 %v5554_v50, 16  ;;  %v665_v26 = vshll.u32 %v5554_v50, 16  ;;  %931 = vst.msk [vmem:[#allocation3 + $0x20] sm:$0xf] %vm264_vm0, %v899_v16  ;;  %932 = vst.msk [vmem:[#allocation3 + $0x24] sm:$0xf] %vm264_vm0, %v900_v20  ;;  %v658_v17 = vor.u32 %v656_v2, %v655_v49  ;;  %v857_v29 = vsel %vm5293_vm10, %v650_v14, %v856_v11 }
  0x79   : > { %v1264_v27 = vrot.slane %v1263_v13, 4  ;;  %v1266_v28 = vshll.u32 %v987_v22, 16  ;;  %311 = vst [vmem:[#allocation2 + $0x9c] sm:$0x1] %v310_v24  ;;  %v1259_v18 = vsel %vm5299_vm11, %v1254_v21, %v1258_v3  ;;  %v989_v30 = vld [vmem:[#allocation2 + $0x88] sm:$0xf] }
  0x7a   : > { %858 = vst [vmem:[#allocation2 + $0x90] sm:$0xf] %v857_v29  ;;  %v660_v31 = vrot.slane %v655_v49, 4  ;;  %v664_v23 = vrot.slane %v662_v25, 7  ;;  %v670_v32 = vshrl.u32 %v5556_v51, 16  ;;  %1430 = vrot.lane.b32.xlu0 %v1259_v18, %s5197_s21  ;;  %v1280_v36 = vshll.u32 %v989_v30, 16 }
  0x7b   : > { %v1268_v34 = vrot.slane %v1266_v28, 5  ;;  %v988_v35 = vld [vmem:[#allocation2 + $0x84] sm:$0xf]  ;;  %v1284_v37 = vshrl.u32 %v989_v30, 16  ;;  %v659_v38 = vsel %vm5287_vm9, %v651_v15, %v658_v17  ;;  %v243_v39 = vld [vmem:[%s5269_s20 + $0xd8] sm:$0xff]  ;;  %v673_v63 = vshll.u32 %v5556_v51, 16 }
  0x7c   : > { %v1271_v40 = vshrl.u32 %v988_v35, 16  ;;  %v1274_v43 = vshll.u32 %v988_v35, 16  ;;  %859 = vst.msk [vmem:[#allocation2 + $0x94] sm:$0xf] %vm264_vm0, %v659_v38  ;;  %v667_v44 = vor.u32 %v665_v26, %v664_v23  ;;  %v668_v45 = vrot.slane %v664_v23, 4  ;;  %v245_v33 = vld [vmem:[%s5269_s20 + $0xe8] sm:$0xff] }
  0x7d   : > { %v363_v46 = vld [vmem:[#allocation2 + $0xa4] sm:$0x1]  ;;  %v1269_v50 = vsel %vm5299_vm11, %v1264_v27, %v1268_v34  ;;  %v1282_v48 = vrot.slane %v1280_v36, 5  ;;  %v1286_v53 = vrot.slane %v1284_v37, 4  ;;  %v5589_v54 = vrot.slane %v670_v32, 7 }
  0x7e   : > { %v312_v19 = vld [vmem:[#allocation2 + $0xa8] sm:$0x1]  ;;  %1432 = vrot.lane.b32.xlu1 %v1269_v50, %s5197_s21  ;;  %v1273_v55 = vrot.slane %v1271_v40, 4  ;;  %v1276_v56 = vrot.slane %v1274_v43, 5  ;;  %v990_v57 = vld [vmem:[#allocation2 + $0x8c] sm:$0x1]  ;;  %v5052_v60 = vpack.c.bf16 %v243_v39, %v243_v39 }
  0x7f   : > { %v860_v58 = vld [vmem:[#allocation2 + $0x98] sm:$0x1]  ;;  %v1287_v42 = vor.u32 %v1286_v53, %v1282_v48  ;;  %v1290_v61 = vshll.u32 %v990_v57, 16  ;;  %v364_v4 = vsel %vm5260_vm7, 0, %v363_v46  ;;  %v677_v5 = vrot.slane %v5589_v54, 4  ;;  %v244_v32 = vld [vmem:[%s5269_s20 + $0xe0] sm:$0xff] }
  0x80   : > { %v861_v62 = vsel %vm5245_vm3, %v660_v31, %v860_v58  ;;  %v1277_v0 = vor.u32 %v1276_v56, %v1273_v55  ;;  %v863_v3 = vld [vmem:[#allocation2 + $0x9c] sm:$0xf]  ;;  %v313_v6 = vsel %vm5245_vm3, 0, %v312_v19  ;;  %v675_v2 = vor.u32 %v673_v63, %v5589_v54  ;;  %365 = vst [vmem:[#allocation2 + $0xa4] sm:$0x1] %v364_v4 }
  0x81   : > { %862 = vst [vmem:[#allocation2 + $0x98] sm:$0x1] %v861_v62  ;;  %v1288_v7 = vrot.slane %v1287_v42, 4  ;;  %v1292_v8 = vrot.slane %v1290_v61, 5  ;;  %v991_v10 = vld [vmem:[#allocation2 + $0x90] sm:$0xf]  ;;  %v864_v11 = vsel %vm5293_vm10, %v667_v44, %v863_v3  ;;  %v5053_v53 = vpack.c.bf16 %v244_v32, %v244_v32 }
  0x82   : > { %314 = vst [vmem:[#allocation2 + $0xa8] sm:$0x1] %v313_v6  ;;  %v366_v51 = vld [vmem:[#allocation2 + $0xb0] sm:$0x1]  ;;  %v1278_v12 = vrot.slane %v1277_v0, 4  ;;  %v1295_v13 = vshrl.u32 %v991_v10, 16  ;;  %v676_v21 = vsel %vm5287_vm9, %v668_v45, %v675_v2  ;;  %v5054_v54 = vpack.c.bf16 %v245_v33, %v245_v33 }
  0x83   : > { %v1298_v14 = vshll.u32 %v991_v10, 16  ;;  %865 = vst [vmem:[#allocation2 + $0x9c] sm:$0xf] %v864_v11  ;;  %v679_v15 = vshrl.u32 %v5051_v59, 16  ;;  %v901_v49 = vld [vmem:[#allocation2 + $0x3c] sm:$0xf]  ;;  %v1293_v16 = vsel %vm5299_vm11, %v1288_v7, %v1292_v8 }
  0x84   : > { %v992_v20 = vld [vmem:[#allocation2 + $0x94] sm:$0xf]  ;;  %v682_v22 = vshll.u32 %v5051_v59, 16  ;;  %v687_v24 = vshrl.u32 %v5052_v60, 16  ;;  %933 = vst.msk [vmem:[#allocation3 + $0x28] sm:$0xf] %vm264_vm0, %v901_v49  ;;  %v1283_v26 = vsel %vm5299_vm11, %v1278_v12, %v1282_v48  ;;  %1436 = vrot.lane.b32.xlu1 %v1293_v16, %s5197_s21 }
  0x85   : > { %v315_v25 = vld [vmem:[#allocation2 + $0xb4] sm:$0x1]  ;;  %v1297_v27 = vrot.slane %v1295_v13, 4  ;;  %v1300_v28 = vrot.slane %v1298_v14, 5  ;;  %v1304_v17 = vshll.u32 %v992_v20, 16  ;;  %1434 = vrot.lane.b32.xlu0 %v1283_v26, %s5197_s21  ;;  %v1308_v18 = vshrl.u32 %v992_v20, 16 }
  0x86   : > { %866 = vst.msk [vmem:[#allocation2 + $0xa0] sm:$0xf] %vm264_vm0, %v676_v21  ;;  %v902_v29 = vld [vmem:[#allocation2 + $0x40] sm:$0xf]  ;;  %v681_v30 = vrot.slane %v679_v15, 7  ;;  %v689_v31 = vrot.slane %v687_v24, 7 }
  0x87   : > { %v690_v23 = vshll.u32 %v5052_v60, 16  ;;  %934 = vst.msk [vmem:[#allocation3 + $0x2c] sm:$0xf] %vm264_vm0, %v902_v29  ;;  %v1301_v34 = vor.u32 %v1300_v28, %v1297_v27  ;;  %v1306_v35 = vrot.slane %v1304_v17, 5  ;;  %v367_v36 = vsel %vm5260_vm7, 0, %v366_v51 }
  0x88   : > { %v316_v37 = vsel %vm5245_vm3, 0, %v315_v25  ;;  %v993_v38 = vld [vmem:[#allocation2 + $0x98] sm:$0x1]  ;;  %v1310_v39 = vrot.slane %v1308_v18, 4  ;;  %v684_v40 = vor.u32 %v682_v22, %v681_v30  ;;  %v685_v43 = vrot.slane %v681_v30, 4 }
  0x89   : > { %v692_v44 = vor.u32 %v690_v23, %v689_v31  ;;  %368 = vst [vmem:[#allocation2 + $0xb0] sm:$0x1] %v367_v36  ;;  %317 = vst [vmem:[#allocation2 + $0xb4] sm:$0x1] %v316_v37  ;;  %v1302_v45 = vrot.slane %v1301_v34, 4  ;;  %v1314_v46 = vshll.u32 %v993_v38, 16 }
  0x8a   : > { %v867_v50 = vld [vmem:[#allocation2 + $0xa4] sm:$0x1]  ;;  %v870_v48 = vld [vmem:[#allocation2 + $0xa8] sm:$0xf]  ;;  %v1311_v19 = vor.u32 %v1310_v39, %v1306_v35  ;;  %v994_v55 = vld [vmem:[#allocation2 + $0x9c] sm:$0xf] }
  0x8b   : > { %v868_v56 = vsel %vm5245_vm3, %v677_v5, %v867_v50  ;;  %v693_v57 = vsel %vm5287_vm9, %v685_v43, %v692_v44  ;;  %v871_v58 = vsel %vm5293_vm10, %v684_v40, %v870_v48  ;;  %v903_v59 = vld [vmem:[#allocation2 + $0x48] sm:$0xf]  ;;  %v1307_v60 = vsel %vm5299_vm11, %v1302_v45, %v1306_v35  ;;  %v904_v63 = vld [vmem:[#allocation2 + $0x4c] sm:$0xf]  ;;  %v369_v14 = vld [vmem:[#allocation2 + $0xbc] sm:$0x1] }
  0x8c   : > { %v1316_v42 = vrot.slane %v1314_v46, 5  ;;  %v1319_v61 = vshrl.u32 %v994_v55, 16  ;;  %v1322_v62 = vshll.u32 %v994_v55, 16  ;;  %869 = vst [vmem:[#allocation2 + $0xa4] sm:$0x1] %v868_v56  ;;  %1438 = vrot.lane.b32.xlu0 %v1307_v60, %s5197_s21  ;;  %v1312_v0 = vrot.slane %v1311_v19, 4 }
  0x8d   : > { %872 = vst [vmem:[#allocation2 + $0xa8] sm:$0xf] %v871_v58  ;;  %873 = vst.msk [vmem:[#allocation2 + $0xac] sm:$0xf] %vm264_vm0, %v693_v57  ;;  %v995_v3 = vld [vmem:[#allocation2 + $0xa0] sm:$0xf] }
  0x8e   : > { %935 = vst.msk [vmem:[#allocation3 + $0x30] sm:$0xf] %vm264_vm0, %v903_v59  ;;  %v694_v4 = vrot.slane %v689_v31, 4  ;;  %v696_v5 = vshrl.u32 %v5053_v53, 16  ;;  %v699_v6 = vshll.u32 %v5053_v53, 16  ;;  %v1321_v7 = vrot.slane %v1319_v61, 4 }
  0x8f   : > { %936 = vst.msk [vmem:[#allocation3 + $0x34] sm:$0xf] %vm264_vm0, %v904_v63  ;;  %v1324_v8 = vrot.slane %v1322_v62, 5  ;;  %v1328_v10 = vshll.u32 %v995_v3, 16  ;;  %v1332_v2 = vshrl.u32 %v995_v3, 16  ;;  %v1317_v11 = vsel %vm5299_vm11, %v1312_v0, %v1316_v42 }
  0x90   : > { %v698_v51 = vrot.slane %v696_v5, 7  ;;  %v704_v12 = vshrl.u32 %v5054_v54, 16  ;;  %v707_v13 = vshll.u32 %v5054_v54, 16  ;;  %1440 = vrot.lane.b32.xlu1 %v1317_v11, %s5197_s21  ;;  %v874_v20 = vld [vmem:[#allocation2 + $0xb0] sm:$0x1]  ;;  %v370_v29 = vsel %vm5260_vm7, 0, %v369_v14 }
  0x91   : > { %v1325_v15 = vor.u32 %v1324_v8, %v1321_v7  ;;  %v1330_v49 = vrot.slane %v1328_v10, 5  ;;  %v1334_v16 = vrot.slane %v1332_v2, 4  ;;  %v877_v21 = vld [vmem:[#allocation2 + $0xb4] sm:$0xf]  ;;  %v875_v22 = vsel %vm5245_vm3, %v694_v4, %v874_v20  ;;  %v906_v18 = vld [vmem:[#allocation2 + $0x58] sm:$0xf] }
  0x92   : > { %v701_v24 = vor.u32 %v699_v6, %v698_v51  ;;  %v702_v25 = vrot.slane %v698_v51, 4  ;;  %v706_v26 = vrot.slane %v704_v12, 7  ;;  %v905_v27 = vld [vmem:[#allocation2 + $0x54] sm:$0xf]  ;;  %876 = vst [vmem:[#allocation2 + $0xb0] sm:$0x1] %v875_v22 }
  0x93   : > { %v1326_v28 = vrot.slane %v1325_v15, 4  ;;  %v1335_v17 = vor.u32 %v1334_v16, %v1330_v49  ;;  %937 = vst.msk [vmem:[#allocation3 + $0x38] sm:$0xf] %vm264_vm0, %v905_v27  ;;  %v996_v30 = vld [vmem:[#allocation2 + $0xa4] sm:$0x1]  ;;  %vm1615_vm12 = vcmask 1042432  }
  0x94   : > { %v997_v31 = vld [vmem:[#allocation2 + $0xa8] sm:$0xf]  ;;  %v998_v23 = vld [vmem:[#allocation2 + $0xac] sm:$0xf]  ;;  %v709_v32 = vor.u32 %v707_v13, %v706_v26  ;;  %v878_v33 = vsel %vm5293_vm10, %v701_v24, %v877_v21  ;;  %371 = vst [vmem:[#allocation2 + $0xbc] sm:$0x1] %v370_v29 }
  0x95   : > { %938 = vst.msk [vmem:[#allocation3 + $0x3c] sm:$0xf] %vm264_vm0, %v906_v18  ;;  %v1331_v34 = vsel %vm5299_vm11, %v1326_v28, %v1330_v49  ;;  %v1336_v35 = vrot.slane %v1335_v17, 4  ;;  %v1338_v36 = vshll.u32 %v996_v30, 16  ;;  %v1343_v37 = vshrl.u32 %v997_v31, 16 }
  0x96   : > { %879 = vst [vmem:[#allocation2 + $0xb4] sm:$0xf] %v878_v33  ;;  %1442 = vrot.lane.b32.xlu0 %v1331_v34, %s5197_s21  ;;  %v1346_v38 = vshll.u32 %v997_v31, 16  ;;  %v1352_v39 = vshll.u32 %v998_v23, 16  ;;  %v1356_v40 = vshrl.u32 %v998_v23, 16  ;;  %v710_v43 = vsel %vm5287_vm9, %v702_v25, %v709_v32  ;;  %v5662_v25 = vpop.permute.xlu0 %1390 }
  0x97   : > { %v1340_v44 = vrot.slane %v1338_v36, 5  ;;  %v1345_v45 = vrot.slane %v1343_v37, 4  ;;  %880 = vst.msk [vmem:[#allocation2 + $0xb8] sm:$0xf] %vm264_vm0, %v710_v43  ;;  %v711_v53 = vrot.slane %v706_v26, 4  ;;  %vm1616_vm13 = vcmask 1046532  }
  0x98   : > { %v1348_v46 = vrot.slane %v1346_v38, 5  ;;  %v1354_v50 = vrot.slane %v1352_v39, 5  ;;  %v1358_v48 = vrot.slane %v1356_v40, 4  ;;  %v907_v3 = vld [vmem:[#allocation2 + $0x60] sm:$0xf]  ;;  %vm5666_vm14 = vmor %vm1615_vm12, %vm1616_vm13  ;;  %vm1486_vm15 = vcmask 60448  }
  0x99   : > { %v1341_v54 = vsel %vm5299_vm11, %v1336_v35, %v1340_v44  ;;  %v999_v55 = vld [vmem:[#allocation2 + $0xb0] sm:$0x1]  ;;  %939 = vst.msk [vmem:[#allocation3 + $0x40] sm:$0xf] %vm264_vm0, %v907_v3  ;;  %v1519_v2 = vld [vmem:[#allocation2] sm:$0xe] }
  0x9a   : > { %1444 = vrot.lane.b32.xlu1 %v1341_v54, %s5197_s21  ;;  %v1349_v19 = vor.u32 %v1348_v46, %v1345_v45  ;;  %v1359_v56 = vor.u32 %v1358_v48, %v1354_v50  ;;  %v1362_v57 = vshll.u32 %v999_v55, 16  ;;  %v1520_v51 = vld [vmem:[#allocation2 + $0x4] sm:$0xf]  ;;  %v1521_v15 = vld [vmem:[#allocation2 + $0x8] sm:$0x1]  ;;  %v4908_v22 = vrot.slane %v1519_v2, 9  ;;  %v1393_v45 = vpop.permute.xlu0 %1392 }
  0x9b   : > { %v881_v58 = vld [vmem:[#allocation2 + $0xbc] sm:$0x1]  ;;  %v908_v12 = vld [vmem:[#allocation2 + $0x64] sm:$0xf]  ;;  %v1522_v16 = vld [vmem:[#allocation2 + $0xc] sm:$0xe] }
  0x9c   : > { %v1350_v59 = vrot.slane %v1349_v19, 4  ;;  %v1360_v60 = vrot.slane %v1359_v56, 4  ;;  %v882_v61 = vsel %vm5245_vm3, %v711_v53, %v881_v58  ;;  %v1364_v62 = vrot.slane %v1362_v57, 5  ;;  %940 = vst.msk [vmem:[#allocation3 + $0x44] sm:$0xf] %vm264_vm0, %v908_v12 }
  0x9d   : > { %v1000_v42 = vld [vmem:[#allocation2 + $0xb4] sm:$0xf]  ;;  %883 = vst [vmem:[#allocation2 + $0xbc] sm:$0x1] %v882_v61  ;;  %v909_v20 = vld [vmem:[#allocation2 + $0x6c] sm:$0xf] }
  0x9e   : > { %v1367_v63 = vshrl.u32 %v1000_v42, 16  ;;  %v1370_v0 = vshll.u32 %v1000_v42, 16  ;;  %v1355_v4 = vsel %vm5299_vm11, %v1350_v59, %v1354_v50  ;;  %v1001_v5 = vld [vmem:[#allocation2 + $0xb8] sm:$0xf]  ;;  %v1365_v6 = vsel %vm5299_vm11, %v1360_v60, %v1364_v62  ;;  %941 = vst.msk [vmem:[#allocation3 + $0x48] sm:$0xf] %vm264_vm0, %v909_v20 }
  0x9f   : > { %1446 = vrot.lane.b32.xlu0 %v1355_v4, %s5197_s21  ;;  %v1376_v10 = vshll.u32 %v1001_v5, 16  ;;  %1448 = vrot.lane.b32.xlu1 %v1365_v6, %s5197_s21  ;;  %v1380_v11 = vshrl.u32 %v1001_v5, 16  ;;  %v1620_v24 = vrot.slane %v1520_v51, 5  ;;  %v910_v26 = vld [vmem:[#allocation2 + $0x70] sm:$0xf]  ;;  %v1623_v32 = vrot.slane %v1521_v15, 5 }
  0xa0   : > { %v1369_v7 = vrot.slane %v1367_v63, 4  ;;  %v1372_v8 = vrot.slane %v1370_v0, 5  ;;  %v1523_v29 = vld [vmem:[#allocation2 + $0x10] sm:$0xf]  ;;  %942 = vst.msk [vmem:[#allocation3 + $0x4c] sm:$0xf] %vm264_vm0, %v910_v26 }
  0xa1   : > { %v1378_v14 = vrot.slane %v1376_v10, 5  ;;  %v1382_v49 = vrot.slane %v1380_v11, 4  ;;  %v1524_v31 = vld [vmem:[#allocation2 + $0x14] sm:$0x1]  ;;  %v4909_v33 = vrot.slane %v1522_v16, 9  ;;  %v1621_v36 = vsel %vm5666_vm14, %v4908_v22, %v1620_v24 }
  0xa2   : > { %v1373_v13 = vor.u32 %v1372_v8, %v1369_v7  ;;  %v1526_v34 = vld [vmem:[#allocation2 + $0x1c] sm:$0xf]  ;;  %v1622_v37 = vrot.slane %v1620_v24, 4  ;;  %v1627_v38 = vrot.slane %v1523_v29, 5  ;;  %v911_v39 = vld [vmem:[#allocation2 + $0x78] sm:$0xf]  ;;  %v1395_v60 = vpop.permute.xlu1 %1394 }
  0xa3   : > { %v1383_v28 = vor.u32 %v1382_v49, %v1378_v14  ;;  %v1525_v40 = vld [vmem:[#allocation2 + $0x18] sm:$0xe]  ;;  %943 = vst.msk [vmem:[#allocation3 + $0x50] sm:$0xf] %vm264_vm0, %v911_v39  ;;  %v912_v43 = vld [vmem:[#allocation2 + $0x7c] sm:$0xf] }
  0xa4   : > { %v1374_v21 = vrot.slane %v1373_v13, 4  ;;  %v1002_v27 = vld [vmem:[#allocation2 + $0xbc] sm:$0x1]  ;;  %944 = vst.msk [vmem:[#allocation3 + $0x54] sm:$0xf] %vm264_vm0, %v912_v43  ;;  %v1630_v46 = vrot.slane %v1524_v31, 5  ;;  %v1624_v53 = vsel %vm5666_vm14, %v1622_v37, %v1623_v32  ;;  %v1628_v54 = vsel %vm5666_vm14, %v4909_v33, %v1627_v38 }
  0xa5   : > { %v1386_v30 = vshll.u32 %v1002_v27, 16  ;;  %v1384_v23 = vrot.slane %v1383_v28, 4  ;;  %v1634_v50 = vrot.slane %v1526_v34, 5  ;;  %v913_v48 = vld [vmem:[#allocation2 + $0x84] sm:$0xf]  ;;  %v1629_v19 = vrot.slane %v1627_v38, 4 }
  0xa6   : > { %v1379_v18 = vsel %vm5299_vm11, %v1374_v21, %v1378_v14  ;;  %v4910_v55 = vrot.slane %v1525_v40, 9  ;;  %v1527_v56 = vld [vmem:[#allocation2 + $0x20] sm:$0x1]  ;;  %945 = vst.msk [vmem:[#allocation3 + $0x58] sm:$0xf] %vm264_vm0, %v913_v48  ;;  %v1399_v6 = vpop.permute.xlu0 %1398  ;;  %v1397_v2 = vpop.permute.xlu1 %1396  ;;  %vm1826_vm2 = vcmask 93248  }
  0xa7   : > { %1450 = vrot.lane.b32.xlu0 %v1379_v18, %s5197_s21  ;;  %v1388_v35 = vrot.slane %v1386_v30, 5  ;;  %v914_v57 = vld [vmem:[#allocation2 + $0x88] sm:$0xf]  ;;  %v1528_v58 = vld [vmem:[#allocation2 + $0x24] sm:$0xe]  ;;  %v1636_v42 = vrot.slane %v1634_v50, 4  ;;  %v1631_v63 = vsel %vm5666_vm14, %v1629_v19, %v1630_v46 }
  0xa8   : > { %v1529_v59 = vld [vmem:[#allocation2 + $0x28] sm:$0xf]  ;;  %946 = vst.msk [vmem:[#allocation3 + $0x5c] sm:$0xf] %vm264_vm0, %v914_v57  ;;  %v1637_v61 = vrot.slane %v1527_v56, 5  ;;  %v1635_v0 = vsel %vm5666_vm14, %v4910_v55, %v1634_v50  ;;  %v4911_v3 = vrot.slane %v1528_v58, 9 }
  0xa9   : > { %v1389_v44 = vsel %vm5299_vm11, %v1384_v23, %v1388_v35  ;;  %v915_v62 = vld [vmem:[#allocation2 + $0x90] sm:$0xf]  ;;  %v1641_v4 = vrot.slane %v1529_v59, 5  ;;  %v1530_v5 = vld [vmem:[#allocation2 + $0x2c] sm:$0x1]  ;;  %vm4264_vm4 = vcmask 1041408  }
  0xaa   : > { %1452 = vrot.lane.b32.xlu1 %v1389_v44, %s5197_s21  ;;  %947 = vst.msk [vmem:[#allocation3 + $0x60] sm:$0xf] %vm264_vm0, %v915_v62  ;;  %v916_v7 = vld [vmem:[#allocation2 + $0x94] sm:$0xf]  ;;  %v1531_v8 = vld [vmem:[#allocation2 + $0x30] sm:$0xe]  ;;  %v1638_v51 = vsel %vm5666_vm14, %v1636_v42, %v1637_v61  ;;  %v1401_v24 = vpop.permute.xlu1 %1400 }
  0xab   : > { %1730 = vrot.lane.b32.xlu0 %v1621_v36, %s5198_s22  ;;  %v1532_v10 = vld [vmem:[#allocation2 + $0x34] sm:$0xf]  ;;  %948 = vst.msk [vmem:[#allocation3 + $0x64] sm:$0xf] %vm264_vm0, %v916_v7  ;;  %v917_v11 = vld [vmem:[#allocation2 + $0x9c] sm:$0xf]  ;;  %v1642_v15 = vsel %vm5666_vm14, %v4911_v3, %v1641_v4 }
  0xac   : > { %v1644_v12 = vrot.slane %v1530_v5, 5  ;;  %v1534_v13 = vld [vmem:[#allocation2 + $0x3c] sm:$0xe]  ;;  %1487 = vst.msk [vmem:[#allocation3] sm:$0xf] %vm1486_vm15, %v5662_v25  ;;  %v1643_v49 = vrot.slane %v1641_v4, 4 }
  0xad   : > { %1489 = vst.msk [vmem:[#allocation3 + $0x8] sm:$0xf] %vm1486_vm15, %v1395_v60  ;;  %1488 = vst.msk [vmem:[#allocation3 + $0x4] sm:$0xf] %vm1486_vm15, %v1393_v45  ;;  %v918_v14 = vld [vmem:[#allocation2 + $0xa0] sm:$0xf]  ;;  %v1403_v28 = vpop.permute.xlu0 %1402 }
  0xae   : > { %1732 = vrot.lane.b32.xlu1 %v1624_v53, %s5198_s22  ;;  %1490 = vst.msk [vmem:[#allocation3 + $0xc] sm:$0xf] %vm1486_vm15, %v1397_v2  ;;  %1491 = vst.msk [vmem:[#allocation3 + $0x10] sm:$0xf] %vm1486_vm15, %v1399_v6  ;;  %v4912_v16 = vrot.slane %v1531_v8, 9  ;;  %v1648_v20 = vrot.slane %v1532_v10, 5  ;;  %v1645_v18 = vsel %vm5666_vm14, %v1643_v49, %v1644_v12 }
  0xaf   : > { %1734 = vrot.lane.b32.xlu0 %v1628_v54, %s5198_s22  ;;  %949 = vst.msk [vmem:[#allocation3 + $0x68] sm:$0xf] %vm264_vm0, %v917_v11  ;;  %v1535_v21 = vld [vmem:[#allocation2 + $0x40] sm:$0xf]  ;;  %950 = vst.msk [vmem:[#allocation3 + $0x6c] sm:$0xf] %vm264_vm0, %v918_v14 }
  0xb0   : > { %v1533_v22 = vld [vmem:[#allocation2 + $0x38] sm:$0x1]  ;;  %1492 = vst.msk [vmem:[#allocation3 + $0x14] sm:$0xf] %vm1486_vm15, %v1401_v24  ;;  %v919_v25 = vld [vmem:[#allocation2 + $0xa8] sm:$0xf]  ;;  %v1649_v30 = vsel %vm5666_vm14, %v4912_v16, %v1648_v20  ;;  %v1405_v35 = vpop.permute.xlu1 %1404 }
  0xb1   : > { %v4913_v26 = vrot.slane %v1534_v13, 9  ;;  %v1655_v27 = vrot.slane %v1535_v21, 5  ;;  %951 = vst.msk [vmem:[#allocation3 + $0x70] sm:$0xf] %vm264_vm0, %v919_v25  ;;  %v920_v29 = vld [vmem:[#allocation2 + $0xac] sm:$0xf] }
  0xb2   : > { %1736 = vrot.lane.b32.xlu1 %v1631_v63, %s5198_s22  ;;  %v1650_v31 = vrot.slane %v1648_v20, 4  ;;  %v1651_v23 = vrot.slane %v1533_v22, 5  ;;  %1493 = vst.msk [vmem:[#allocation3 + $0x18] sm:$0xf] %vm1486_vm15, %v1403_v28  ;;  %v1536_v32 = vld [vmem:[#allocation2 + $0x44] sm:$0x1] }
  0xb3   : > { %1738 = vrot.lane.b32.xlu0 %v1635_v0, %s5198_s22  ;;  %952 = vst.msk [vmem:[#allocation3 + $0x74] sm:$0xf] %vm264_vm0, %v920_v29  ;;  %v1537_v33 = vld [vmem:[#allocation2 + $0x48] sm:$0xe]  ;;  %v1538_v34 = vld [vmem:[#allocation2 + $0x4c] sm:$0xf]  ;;  %v1656_v37 = vsel %vm5666_vm14, %v4913_v26, %v1655_v27  ;;  %v1407_v53 = vpop.permute.xlu0 %1406 }
  0xb4   : > { %v921_v36 = vld [vmem:[#allocation2 + $0xb4] sm:$0xf]  ;;  %v1657_v38 = vrot.slane %v1655_v27, 4  ;;  %1494 = vst.msk [vmem:[#allocation3 + $0x1c] sm:$0xf] %vm1486_vm15, %v1405_v35  ;;  %v1652_v43 = vsel %vm5666_vm14, %v1650_v31, %v1651_v23  ;;  %v1658_v44 = vrot.slane %v1536_v32, 5 }
  0xb5   : > { %v1540_v39 = vld [vmem:[#allocation2 + $0x54] sm:$0xe]  ;;  %953 = vst.msk [vmem:[#allocation3 + $0x78] sm:$0xf] %vm264_vm0, %v921_v36  ;;  %v922_v40 = vld [vmem:[#allocation2 + $0xb8] sm:$0xf] }
  0xb6   : > { %1740 = vrot.lane.b32.xlu1 %v1638_v51, %s5198_s22  ;;  %v4914_v45 = vrot.slane %v1537_v33, 9  ;;  %v1662_v46 = vrot.slane %v1538_v34, 5  ;;  %v1541_v50 = vld [vmem:[#allocation2 + $0x58] sm:$0xf]  ;;  %954 = vst.msk [vmem:[#allocation3 + $0x7c] sm:$0xf] %vm264_vm0, %v922_v40  ;;  %v1659_v55 = vsel %vm5666_vm14, %v1657_v38, %v1658_v44  ;;  %v1409_v59 = vpop.permute.xlu1 %1408 }
  0xb7   : > { %1742 = vrot.lane.b32.xlu0 %v1642_v15, %s5198_s22  ;;  %v1539_v48 = vld [vmem:[#allocation2 + $0x50] sm:$0x1]  ;;  %1495 = vst.msk [vmem:[#allocation3 + $0x20] sm:$0xf] %vm1486_vm15, %v1407_v53  ;;  %v4915_v54 = vrot.slane %v1540_v39, 9  ;;  %v1669_v19 = vrot.slane %v1541_v50, 5 }
  0xb8   : > { %v1663_v56 = vsel %vm5666_vm14, %v4914_v45, %v1662_v46  ;;  %v1664_v57 = vrot.slane %v1662_v46, 4  ;;  %v1665_v58 = vrot.slane %v1539_v48, 5  ;;  %v1542_v60 = vld [vmem:[#allocation2 + $0x5c] sm:$0x1]  ;;  %v1543_v42 = vld [vmem:[#allocation2 + $0x60] sm:$0xe] }
  0xb9   : > { %v1544_v61 = vld [vmem:[#allocation2 + $0x64] sm:$0xf]  ;;  %1496 = vst.msk [vmem:[#allocation3 + $0x24] sm:$0xf] %vm1486_vm15, %v1409_v59  ;;  %v1670_v62 = vsel %vm5666_vm14, %v4915_v54, %v1669_v19  ;;  %v1671_v63 = vrot.slane %v1669_v19, 4  ;;  %v1672_v4 = vrot.slane %v1542_v60, 5 }
  0xba   : > { %1744 = vrot.lane.b32.xlu1 %v1645_v18, %s5198_s22  ;;  %v1545_v0 = vld [vmem:[#allocation2 + $0x68] sm:$0x1]  ;;  %v1666_v3 = vsel %vm5666_vm14, %v1664_v57, %v1665_v58  ;;  %v4916_v5 = vrot.slane %v1543_v42, 9  ;;  %v1676_v6 = vrot.slane %v1544_v61, 5  ;;  %v1546_v7 = vld [vmem:[#allocation2 + $0x6c] sm:$0xe] }
  0xbb   : > { %1746 = vrot.lane.b32.xlu0 %v1649_v30, %s5198_s22  ;;  %v1547_v8 = vld [vmem:[#allocation2 + $0x70] sm:$0xf]  ;;  %v1679_v10 = vrot.slane %v1545_v0, 5  ;;  %v4917_v2 = vrot.slane %v1546_v7, 9  ;;  %v1673_v51 = vsel %vm5666_vm14, %v1671_v63, %v1672_v4  ;;  %v1548_v15 = vld [vmem:[#allocation2 + $0x74] sm:$0x1] }
  0xbc   : > { %v1677_v12 = vsel %vm5666_vm14, %v4916_v5, %v1676_v6  ;;  %v1678_v13 = vrot.slane %v1676_v6, 4  ;;  %v1683_v14 = vrot.slane %v1547_v8, 5  ;;  %v1549_v49 = vld [vmem:[#allocation2 + $0x78] sm:$0xe]  ;;  %v1550_v16 = vld [vmem:[#allocation2 + $0x7c] sm:$0xf] }
  0xbd   : > { %v1411_v11 = vpop.permute.xlu0 %1410  ;;  %v1686_v20 = vrot.slane %v1548_v15, 5  ;;  %v4918_v21 = vrot.slane %v1549_v49, 9  ;;  %v1690_v26 = vrot.slane %v1550_v16, 5  ;;  %v1551_v27 = vld [vmem:[#allocation2 + $0x80] sm:$0x1]  ;;  %vm2019_vm5 = vcmask 126048  }
  0xbe   : > { %1748 = vrot.lane.b32.xlu1 %v1652_v43, %s5198_s22  ;;  %1497 = vst.msk [vmem:[#allocation3 + $0x28] sm:$0xf] %vm1486_vm15, %v1411_v11  ;;  %v1680_v22 = vsel %vm5666_vm14, %v1678_v13, %v1679_v10  ;;  %v1684_v24 = vsel %vm5666_vm14, %v4917_v2, %v1683_v14  ;;  %v1685_v25 = vrot.slane %v1683_v14, 4  ;;  %v1553_v28 = vld [vmem:[#allocation2 + $0x88] sm:$0xf]  ;;  %v1693_v30 = vrot.slane %v1551_v27, 5 }
  0xbf   : > { %1750 = vrot.lane.b32.xlu0 %v1656_v37, %s5198_s22  ;;  %v1552_v18 = vld [vmem:[#allocation2 + $0x84] sm:$0xe]  ;;  %v1697_v31 = vrot.slane %v1553_v28, 5  ;;  %v1691_v32 = vsel %vm5666_vm14, %v4918_v21, %v1690_v26  ;;  %v1692_v33 = vrot.slane %v1690_v26, 4  ;;  %v1554_v35 = vld [vmem:[#allocation2 + $0x8c] sm:$0x1] }
  0xc0   : > { %v1687_v23 = vsel %vm5666_vm14, %v1685_v25, %v1686_v20  ;;  %v4919_v34 = vrot.slane %v1552_v18, 9  ;;  %v1555_v36 = vld [vmem:[#allocation2 + $0x90] sm:$0xe]  ;;  %v1556_v37 = vld [vmem:[#allocation2 + $0x94] sm:$0xf]  ;;  %v1700_v39 = vrot.slane %v1554_v35, 5 }
  0xc1   : > { %v1699_v38 = vrot.slane %v1697_v31, 4  ;;  %v1694_v44 = vsel %vm5666_vm14, %v1692_v33, %v1693_v30  ;;  %v4920_v46 = vrot.slane %v1555_v36, 9  ;;  %v1704_v50 = vrot.slane %v1556_v37, 5  ;;  %v1557_v48 = vld [vmem:[#allocation2 + $0x98] sm:$0x1] }
  0xc2   : > { %1752 = vrot.lane.b32.xlu1 %v1659_v55, %s5198_s22  ;;  %v1413_v29 = vpop.permute.xlu1 %1412  ;;  %v1698_v45 = vsel %vm5666_vm14, %v4919_v34, %v1697_v31  ;;  %v1558_v53 = vld [vmem:[#allocation2 + $0x9c] sm:$0xe]  ;;  %v1559_v54 = vld [vmem:[#allocation2 + $0xa0] sm:$0xf]  ;;  %v1707_v55 = vrot.slane %v1557_v48, 5  ;;  %vm2580_vm6 = vcmask 158848  }
  0xc3   : > { %1754 = vrot.lane.b32.xlu0 %v1663_v56, %s5198_s22  ;;  %1498 = vst.msk [vmem:[#allocation3 + $0x2c] sm:$0xf] %vm1486_vm15, %v1413_v29  ;;  %v1701_v19 = vsel %vm5666_vm14, %v1699_v38, %v1700_v39  ;;  %v1560_v56 = vld [vmem:[#allocation2 + $0xa4] sm:$0x1]  ;;  %v1705_v58 = vsel %vm5666_vm14, %v4920_v46, %v1704_v50  ;;  %v1706_v59 = vrot.slane %v1704_v50, 4  ;;  %v4921_v60 = vrot.slane %v1558_v53, 9 }
  0xc4   : > { %v1711_v42 = vrot.slane %v1559_v54, 5  ;;  %v1561_v61 = vld [vmem:[#allocation2 + $0xa8] sm:$0xe]  ;;  %v1714_v63 = vrot.slane %v1560_v56, 5  ;;  %v1563_v7 = vld [vmem:[#allocation2 + $0xb0] sm:$0x1] }
  0xc5   : > { %v4922_v0 = vrot.slane %v1561_v61, 9  ;;  %v1564_v8 = vld [vmem:[#allocation2 + $0xb4] sm:$0xe]  ;;  %v1565_v10 = vld [vmem:[#allocation2 + $0xb8] sm:$0xf]  ;;  %v1721_v11 = vrot.slane %v1563_v7, 5 }
  0xc6   : > { %1756 = vrot.lane.b32.xlu1 %v1666_v3, %s5198_s22  ;;  %v1708_v3 = vsel %vm5666_vm14, %v1706_v59, %v1707_v55  ;;  %v1712_v4 = vsel %vm5666_vm14, %v4921_v60, %v1711_v42  ;;  %v1713_v5 = vrot.slane %v1711_v42, 4  ;;  %v1725_v15 = vrot.slane %v1565_v10, 5  ;;  %v1566_v49 = vld [vmem:[#allocation2 + $0xbc] sm:$0x1]  ;;  %v1859_v28 = vld [vmem:[#allocation2 + $0xc] sm:$0xf] }
  0xc7   : > { %1758 = vrot.lane.b32.xlu0 %v1670_v62, %s5198_s22  ;;  %v1562_v62 = vld [vmem:[#allocation2 + $0xac] sm:$0xf]  ;;  %v1728_v25 = vrot.slane %v1566_v49, 5  ;;  %v1860_v18 = vld [vmem:[#allocation2 + $0x10] sm:$0xf]  ;;  %vm2917_vm8 = vcmask 191648  }
  0xc8   : > { %v1718_v6 = vrot.slane %v1562_v62, 5  ;;  %v1861_v30 = vld [vmem:[#allocation2 + $0x18] sm:$0xf]  ;;  %v1862_v31 = vld [vmem:[#allocation2 + $0x1c] sm:$0xf]  ;;  %vm3111_vm12 = vcmask 224448  }
  0xc9   : > { %v1864_v33 = vld [vmem:[#allocation2 + $0x28] sm:$0xf]  ;;  %v1865_v34 = vld [vmem:[#allocation2 + $0x30] sm:$0xf]  ;;  %v1866_v36 = vld [vmem:[#allocation2 + $0x34] sm:$0xf] }
  0xca   : > { %1760 = vrot.lane.b32.xlu1 %v1673_v51, %s5198_s22  ;;  %v1415_v40 = vpop.permute.xlu0 %1414  ;;  %v1417_v43 = vpop.permute.xlu1 %1416  ;;  %v4923_v51 = vrot.slane %v1564_v8, 9  ;;  %v1719_v13 = vsel %vm5666_vm14, %v4922_v0, %v1718_v6  ;;  %v1720_v14 = vrot.slane %v1718_v6, 4  ;;  %v1867_v37 = vld [vmem:[#allocation2 + $0x3c] sm:$0xf]  ;;  %v2052_v38 = vld [vmem:[#allocation2 + $0xc] sm:$0xf] }
  0xcb   : > { %1762 = vrot.lane.b32.xlu0 %v1677_v12, %s5198_s22  ;;  %1499 = vst.msk [vmem:[#allocation3 + $0x30] sm:$0xf] %vm1486_vm15, %v1415_v40  ;;  %1500 = vst.msk [vmem:[#allocation3 + $0x34] sm:$0xf] %vm1486_vm15, %v1417_v43  ;;  %v1715_v12 = vsel %vm5666_vm14, %v1713_v5, %v1714_v63  ;;  %v2101_v43 = vshrl.u32 %v2052_v38, 16  ;;  %vm3672_vm13 = vcmask 257248  }
  0xcc   : > { %v1722_v21 = vsel %vm5666_vm14, %v1720_v14, %v1721_v11  ;;  %v1869_v46 = vld [vmem:[#allocation2 + $0x48] sm:$0xf]  ;;  %v2053_v50 = vld [vmem:[#allocation2 + $0x10] sm:$0xf]  ;;  %v2055_v48 = vld [vmem:[#allocation2 + $0x18] sm:$0xf] }
  0xcd   : > { %v2103_v53 = vrot.slane %v2101_v43, 4  ;;  %v2114_v55 = vshrl.u32 %v2053_v50, 16  ;;  %v1870_v56 = vld [vmem:[#allocation2 + $0x4c] sm:$0xf]  ;;  %v2128_v59 = vshll.u32 %v2055_v48, 16 }
  0xce   : > { %1764 = vrot.lane.b32.xlu1 %v1680_v22, %s5198_s22  ;;  %v1419_v57 = vpop.permute.xlu0 %1418  ;;  %v1726_v22 = vsel %vm5666_vm14, %v4923_v51, %v1725_v15  ;;  %v2056_v42 = vld [vmem:[#allocation2 + $0x1c] sm:$0xf]  ;;  %v1872_v61 = vld [vmem:[#allocation2 + $0x58] sm:$0xf]  ;;  %v1873_v62 = vld [vmem:[#allocation2 + $0x60] sm:$0xf] }
  0xcf   : > { %1766 = vrot.lane.b32.xlu0 %v1684_v24, %s5198_s22  ;;  %1501 = vst.msk [vmem:[#allocation3 + $0x38] sm:$0xf] %vm1486_vm15, %v1419_v57  ;;  %v1727_v24 = vrot.slane %v1725_v15, 4  ;;  %v1871_v57 = vld [vmem:[#allocation2 + $0x54] sm:$0xf]  ;;  %v2130_v7 = vrot.slane %v2128_v59, 5 }
  0xd0   : > { %v2054_v5 = vld [vmem:[#allocation2 + $0x14] sm:$0x1]  ;;  %v2134_v8 = vshll.u32 %v2056_v42, 16  ;;  %v2138_v10 = vshrl.u32 %v2056_v42, 16  ;;  %v2057_v49 = vld [vmem:[#allocation2 + $0x20] sm:$0x1] }
  0xd1   : > { %v1729_v27 = vsel %vm5666_vm14, %v1727_v24, %v1728_v25  ;;  %v2120_v51 = vshll.u32 %v2054_v5, 16  ;;  %v2144_v24 = vshll.u32 %v2057_v49, 16  ;;  %v2618_v43 = vld [vmem:[#allocation2 + $0x20] sm:$0x1] }
  0xd2   : > { %1768 = vrot.lane.b32.xlu1 %v1687_v23, %s5198_s22  ;;  %v1863_v23 = vld [vmem:[#allocation2 + $0x24] sm:$0xf]  ;;  %v2136_v15 = vrot.slane %v2134_v8, 5 }
  0xd3   : > { %1770 = vrot.lane.b32.xlu0 %v1691_v32, %s5198_s22 }
  0xd5   : > { %v1421_v2 = vpop.permute.xlu1 %1420 }
  0xd6   : > { %1772 = vrot.lane.b32.xlu1 %v1694_v44, %s5198_s22  ;;  %1502 = vst.msk [vmem:[#allocation3 + $0x3c] sm:$0xf] %vm1486_vm15, %v1421_v2  ;;  %v2104_v44 = vshll.u32 %v2052_v38, 16  ;;  %v1874_v2 = vld [vmem:[#allocation2 + $0x64] sm:$0xf] }
  0xd7   : > { %1774 = vrot.lane.b32.xlu0 %v1698_v45, %s5198_s22  ;;  %v1868_v45 = vld [vmem:[#allocation2 + $0x40] sm:$0xf]  ;;  %v2617_v38 = vld [vmem:[#allocation2 + $0x1c] sm:$0xf] }
  0xd8   : > { %v2106_v54 = vrot.slane %v2104_v44, 5 }
  0xda   : > { %1776 = vrot.lane.b32.xlu1 %v1701_v19, %s5198_s22  ;;  %v1423_v16 = vpop.permute.xlu0 %1422  ;;  %v2110_v19 = vshll.u32 %v2053_v50, 16  ;;  %v2107_v63 = vor.u32 %v2106_v54, %v2103_v53  ;;  %v3145_v53 = vld [vmem:[#allocation2 + $0x1c] sm:$0xf] }
  0xdb   : > { %1778 = vrot.lane.b32.xlu0 %v1705_v58, %s5198_s22  ;;  %1503 = vst.msk [vmem:[#allocation3 + $0x40] sm:$0xf] %vm1486_vm15, %v1423_v16  ;;  %v1425_v20 = vpop.permute.xlu1 %1424  ;;  %v2125_v58 = vshrl.u32 %v2055_v48, 16  ;;  %v2140_v16 = vrot.slane %v2138_v10, 4  ;;  %v3206_v59 = vshrl.u32 %v3145_v53, 16 }
  0xdc   : > { %1504 = vst.msk [vmem:[#allocation3 + $0x44] sm:$0xf] %vm1486_vm15, %v1425_v20  ;;  %v2112_v0 = vrot.slane %v2110_v19, 5  ;;  %v2108_v11 = vrot.slane %v2107_v63, 4  ;;  %v2718_v19 = vrot.slane %v2617_v38, 5 }
  0xdd   : > { %v2127_v6 = vrot.slane %v2125_v58, 4  ;;  %v3202_v58 = vshll.u32 %v3145_v53, 16 }
  0xde   : > { %1780 = vrot.lane.b32.xlu1 %v1708_v3, %s5198_s22  ;;  %v2116_v3 = vrot.slane %v2114_v55, 4  ;;  %v2113_v25 = vsel %vm5299_vm11, %v2108_v11, %v2112_v0  ;;  %v3208_v11 = vrot.slane %v3206_v59, 4  ;;  %v5203_v59 = vmov 1983009808  }
  0xdf   : > { %1782 = vrot.lane.b32.xlu0 %v1712_v4, %s5198_s22  ;;  %v2131_v14 = vor.u32 %v2130_v7, %v2127_v6  ;;  %v5854_v10 = vrot.slane %v3202_v58, 5  ;;  %v4079_v58 = vld [vmem:[%s6753_s1 + $0xa] sm:$0x3] }
  0xe1   : > { %v1427_v26 = vpop.permute.xlu0 %1426 }
  0xe2   : > { %1784 = vrot.lane.b32.xlu1 %v1715_v12, %s5198_s22  ;;  %1505 = vst.msk [vmem:[#allocation3 + $0x48] sm:$0xf] %vm1486_vm15, %v1427_v26  ;;  %v1875_v12 = vld [vmem:[#allocation2 + $0x6c] sm:$0xf] }
  0xe3   : > { %1786 = vrot.lane.b32.xlu0 %v1719_v13, %s5198_s22  ;;  %v2117_v13 = vor.u32 %v2116_v3, %v2112_v0  ;;  %v2720_v3 = vrot.slane %v2718_v19, 4 }
  0xe5   : > { %v1429_v29 = vpop.permute.xlu1 %1428  ;;  %v2118_v26 = vrot.slane %v2117_v13, 4  ;;  %v3149_v13 = vld [vmem:[#allocation2 + $0x2c] sm:$0x1] }
  0xe6   : > { %1788 = vrot.lane.b32.xlu1 %v1722_v21, %s5198_s22  ;;  %1506 = vst.msk [vmem:[#allocation3 + $0x4c] sm:$0xf] %vm1486_vm15, %v1429_v29  ;;  %v1876_v21 = vld [vmem:[#allocation2 + $0x70] sm:$0xf]  ;;  %v2613_v29 = vld [vmem:[#allocation2 + $0xc] sm:$0xe] }
  0xe7   : > { %1790 = vrot.lane.b32.xlu0 %v1726_v22, %s5198_s22  ;;  %v2122_v22 = vrot.slane %v2120_v51, 5 }
  0xea   : > { %1792 = vrot.lane.b32.xlu1 %v1729_v27, %s5198_s22  ;;  %v2132_v27 = vrot.slane %v2131_v14, 4 }
  0xeb   : > { %1923 = vrot.lane.b32.xlu0 %v1859_v28, %s5199_s23  ;;  %v2141_v28 = vor.u32 %v2140_v16, %v2136_v15  ;;  %v5860_v16 = vld [vmem:[#allocation2 + $0x1c] sm:$0xf] }
  0xec   : > { %v1431_v32 = vpop.permute.xlu0 %1430 }
  0xed   : > { %1507 = vst.msk [vmem:[#allocation3 + $0x50] sm:$0xf] %vm1486_vm15, %v1431_v32  ;;  %v2123_v32 = vsel %vm5299_vm11, %v2118_v26, %v2122_v22  ;;  %v3209_v26 = vor.u32 %v3208_v11, %v5854_v10 }
  0xee   : > { %1925 = vrot.lane.b32.xlu1 %v1860_v18, %s5199_s23  ;;  %v2614_v18 = vld [vmem:[#allocation2 + $0x10] sm:$0xf] }
  0xef   : > { %1927 = vrot.lane.b32.xlu0 %v1861_v30, %s5199_s23 }
  0xf0   : > { %v1433_v35 = vpop.permute.xlu1 %1432 }
  0xf1   : > { %1508 = vst.msk [vmem:[#allocation3 + $0x54] sm:$0xf] %vm1486_vm15, %v1433_v35  ;;  %v2146_v35 = vrot.slane %v2144_v24, 5 }
  0xf2   : > { %1929 = vrot.lane.b32.xlu1 %v1862_v31, %s5199_s23  ;;  %v4924_v31 = vrot.slane %v2613_v29, 9  ;;  %v2952_v29 = vld [vmem:[#allocation2 + $0x1c] sm:$0xf] }
  0xf3   : > { %1931 = vrot.lane.b32.xlu0 %v1863_v23, %s5199_s23  ;;  %v2711_v23 = vrot.slane %v2614_v18, 5  ;;  %v2953_v18 = vld [vmem:[#allocation2 + $0x24] sm:$0xf] }
  0xf6   : > { %1933 = vrot.lane.b32.xlu1 %v1864_v33, %s5199_s23  ;;  %v1437_v39 = vpop.permute.xlu1 %1436  ;;  %v2137_v33 = vsel %vm5299_vm11, %v2132_v27, %v2136_v15  ;;  %v2951_v15 = vld [vmem:[#allocation2 + $0x18] sm:$0xf]  ;;  %v3236_v27 = vshll.u32 %v3149_v13, 16 }
  0xf7   : > { %1935 = vrot.lane.b32.xlu0 %v1865_v34, %s5199_s23  ;;  %v1435_v40 = vpop.permute.xlu0 %1434  ;;  %1510 = vst.msk [vmem:[#allocation3 + $0x5c] sm:$0xf] %vm1486_vm15, %v1437_v39  ;;  %v2142_v34 = vrot.slane %v2141_v28, 4  ;;  %v3144_v39 = vld [vmem:[#allocation2 + $0x18] sm:$0xf] }
  0xf8   : > { %1509 = vst.msk [vmem:[#allocation3 + $0x58] sm:$0xf] %vm1486_vm15, %v1435_v40  ;;  %v3193_v55 = vshrl.u32 %v3144_v39, 16  ;;  %v5867_v28 = vld [vmem:[#allocation2 + $0x18] sm:$0xe] }
  0xf9   : > { %v2147_v54 = vsel %vm5299_vm11, %v2142_v34, %v2146_v35  ;;  %v4940_v38 = vrot.slane %v5867_v28, 9  ;;  %v4075_v28 = vld [vmem:[%s6753_s1 + $0x2] sm:$0x3] }
  0xfa   : > { %1937 = vrot.lane.b32.xlu1 %v1866_v36, %s5199_s23  ;;  %v2615_v36 = vld [vmem:[#allocation2 + $0x14] sm:$0x1] }
  0xfb   : > { %1939 = vrot.lane.b32.xlu0 %v1867_v37, %s5199_s23  ;;  %v2616_v37 = vld [vmem:[#allocation2 + $0x18] sm:$0xe]  ;;  %v2714_v50 = vrot.slane %v2615_v36, 5 }
  0xfc   : > { %v4925_v48 = vrot.slane %v2616_v37, 9 }
  0xfe   : > { %1941 = vrot.lane.b32.xlu1 %v1868_v45, %s5199_s23  ;;  %v1439_v60 = vpop.permute.xlu0 %1438  ;;  %v2712_v45 = vsel %vm5666_vm14, %v4924_v31, %v2711_v23  ;;  %v2719_v0 = vsel %vm5666_vm14, %v4925_v48, %v2718_v19  ;;  %v3803_v31 = vrot.slane %v5860_v16, 5  ;;  %v5892_v19 = vld [vmem:[#allocation2 + $0x24] sm:$0xe] }
  0xff   : > { %1943 = vrot.lane.b32.xlu0 %v1869_v46, %s5199_s23  ;;  %1511 = vst.msk [vmem:[#allocation3 + $0x60] sm:$0xf] %vm1486_vm15, %v1439_v60  ;;  %v2713_v46 = vrot.slane %v2711_v23, 4  ;;  %v3148_v60 = vld [vmem:[#allocation2 + $0x28] sm:$0xf] }
 0x100   : > { %v3226_v7 = vshll.u32 %v3148_v60, 16  ;;  %v3230_v8 = vshrl.u32 %v3148_v60, 16  ;;  %v4175_v60 = vunpack.c.l.s4 %v5203_v59 }
 0x101   : > { %v2715_v42 = vsel %vm5666_vm14, %v2713_v46, %v2714_v50  ;;  %v5886_v50 = vrot.slane %v3803_v31, 4 }
 0x102   : > { %1945 = vrot.lane.b32.xlu1 %v1870_v56, %s5199_s23  ;;  %v1441_v4 = vpop.permute.xlu1 %1440  ;;  %v3196_v56 = vshll.u32 %v3144_v39, 16  ;;  %v5862_v24 = vrot.slane %v3226_v7, 5  ;;  %v4177_v39 = vlaneseq  ;;  %v4176_v7 = vunpack.c.0.s8 %v4175_v60 }
 0x103   : > { %1947 = vrot.lane.b32.xlu0 %v1871_v57, %s5199_s23  ;;  %1512 = vst.msk [vmem:[#allocation3 + $0x64] sm:$0xf] %vm1486_vm15, %v1441_v4  ;;  %v3147_v57 = vld [vmem:[#allocation2 + $0x24] sm:$0xf]  ;;  %v3195_v4 = vrot.slane %v3193_v55, 4 }
 0x104   : > { %v3220_v63 = vshll.u32 %v3147_v57, 16  ;;  %v3198_v5 = vrot.slane %v3196_v56, 5  ;;  %v5894_v55 = vld [vmem:[#allocation2 + $0x28] sm:$0xf] }
 0x106   : > { %1949 = vrot.lane.b32.xlu1 %v1872_v61, %s5199_s23  ;;  %v2721_v61 = vrot.slane %v2618_v43, 5  ;;  %v3199_v49 = vor.u32 %v3198_v5, %v3195_v4  ;;  %v5882_v43 = vrot.slane %v3236_v27, 5  ;;  %v4080_v4 = vld [vmem:[%s6753_s1 + $0xc] sm:$0x3]  ;;  %v4074_v27 = vld [vmem:[%s6753_s1] sm:$0x3] }
 0x107   : > { %1951 = vrot.lane.b32.xlu0 %v1873_v62, %s5199_s23  ;;  %v3217_v62 = vshrl.u32 %v3147_v57, 16  ;;  %v4078_v57 = vld [vmem:[%s6753_s1 + $0x8] sm:$0x3] }
 0x108   : > { %v1443_v20 = vpop.permute.xlu0 %1442  ;;  %v2722_v14 = vsel %vm5666_vm14, %v2720_v3, %v2721_v61  ;;  %v3200_v23 = vrot.slane %v3199_v49, 4  ;;  %v2061_v3 = vld [vmem:[#allocation2 + $0x30] sm:$0xf]  ;;  %v4081_v49 = vld [vmem:[%s6753_s1 + $0xe] sm:$0x3] }
 0x109   : > { %1513 = vst.msk [vmem:[#allocation3 + $0x68] sm:$0xf] %vm1486_vm15, %v1443_v20  ;;  %v3219_v51 = vrot.slane %v3217_v62, 4 }
 0x10a   : > { %1953 = vrot.lane.b32.xlu1 %v1874_v2, %s5199_s23  ;;  %v3146_v2 = vld [vmem:[#allocation2 + $0x20] sm:$0x1] }
 0x10b   : > { %1955 = vrot.lane.b32.xlu0 %v1875_v12, %s5199_s23  ;;  %v3222_v12 = vrot.slane %v3220_v63, 5  ;;  %v3212_v22 = vshll.u32 %v3146_v2, 16 }
 0x10c   : > { %v1445_v30 = vpop.permute.xlu1 %1444 }
 0x10d   : > { %1514 = vst.msk [vmem:[#allocation3 + $0x6c] sm:$0xf] %vm1486_vm15, %v1445_v30  ;;  %v3223_v30 = vor.u32 %v3222_v12, %v3219_v51  ;;  %v5874_v36 = vrot.slane %v3212_v22, 5  ;;  %v2062_v51 = vld [vmem:[#allocation2 + $0x34] sm:$0xf]  ;;  %v3804_v22 = vsel %vm5666_vm14, %v4940_v38, %v3803_v31 }
 0x10e   : > { %1957 = vrot.lane.b32.xlu1 %v1876_v21, %s5199_s23 }
 0x10f   : > { %2484 = vrot.lane.b32.xlu0 %v2113_v25, %s5200_s24  ;;  %v3232_v25 = vrot.slane %v3230_v8, 4  ;;  %v3224_v46 = vrot.slane %v3223_v30, 4  ;;  %v4189_v8 = vcombine.low %v4078_v57, %v4079_v58 }
 0x111   : > { %v1447_v40 = vpop.permute.xlu0 %1446  ;;  %v1449_v44 = vpop.permute.xlu1 %1448  ;;  %v3233_v37 = vor.u32 %v3232_v25, %v5862_v24  ;;  %v3229_v2 = vsel %vm5299_vm11, %v3224_v46, %v5862_v24  ;;  %v4941_v24 = vrot.slane %v5892_v19, 9  ;;  %v3810_v25 = vrot.slane %v5894_v55, 5 }
 0x112   : > { %2486 = vrot.lane.b32.xlu1 %v2123_v32, %s5200_s24  ;;  %1515 = vst.msk [vmem:[#allocation3 + $0x70] sm:$0xf] %vm1486_vm15, %v1447_v40  ;;  %1516 = vst.msk [vmem:[#allocation3 + $0x74] sm:$0xf] %vm1486_vm15, %v1449_v44  ;;  %v5872_v32 = vld [vmem:[#allocation2 + $0x20] sm:$0x1] }
 0x113   : > { %2488 = vrot.lane.b32.xlu0 %v2137_v33, %s5200_s24  ;;  %v2058_v33 = vld [vmem:[#allocation2 + $0x24] sm:$0xf]  ;;  %v5880_v40 = vrot.slane %v3209_v26, 4  ;;  %v2059_v44 = vld [vmem:[#allocation2 + $0x28] sm:$0xf]  ;;  %v3806_v48 = vrot.slane %v5872_v32, 5  ;;  %v4190_v26 = vcombine.low %v4080_v4, %v4081_v49  ;;  %v3811_v57 = vsel %vm5666_vm14, %v4941_v24, %v3810_v25 }
 0x114   : > { %v2149_v53 = vshrl.u32 %v2058_v33, 16  ;;  %v2152_v56 = vshll.u32 %v2058_v33, 16  ;;  %v5902_v63 = vrot.slane %v3233_v37, 4  ;;  %v2162_v5 = vshrl.u32 %v2059_v44, 16  ;;  %v4077_v33 = vld [vmem:[%s6753_s1 + $0x6] sm:$0x3] }
 0x115   : > { %v4172_v37 = vcombine.low %v4074_v27, %v4075_v28  ;;  %v3812_v59 = vrot.slane %v3810_v25, 4  ;;  %v2621_v49 = vld [vmem:[#allocation2 + $0x2c] sm:$0x1]  ;;  %v2622_v24 = vld [vmem:[#allocation2 + $0x30] sm:$0xe] }
 0x116   : > { %2490 = vrot.lane.b32.xlu1 %v2147_v54, %s5200_s24  ;;  %v3205_v54 = vsel %vm5299_vm11, %v3200_v23, %v5854_v10  ;;  %v3215_v10 = vsel %vm5299_vm11, %v5880_v40, %v5874_v36  ;;  %v2151_v11 = vrot.slane %v2149_v53, 4  ;;  %v2154_v13 = vrot.slane %v2152_v56, 5  ;;  %v4076_v23 = vld [vmem:[%s6753_s1 + $0x4] sm:$0x3]  ;;  %v2060_v40 = vld [vmem:[#allocation2 + $0x2c] sm:$0x1] }
 0x117   : > { %2821 = vrot.lane.b32.xlu0 %v2712_v45, %s5201_s25  ;;  %v2954_v45 = vld [vmem:[#allocation2 + $0x28] sm:$0xf]  ;;  %v2164_v30 = vrot.slane %v2162_v5, 4  ;;  %v4173_v38 = vcombine.low %v4076_v23, %v4077_v33  ;;  %v3807_v56 = vsel %vm5666_vm14, %v5886_v50, %v3806_v48  ;;  %v2623_v27 = vld [vmem:[#allocation2 + $0x34] sm:$0xf] }
 0x118   : > { %v3150_v28 = vld [vmem:[#allocation2 + $0x30] sm:$0xf]  ;;  %v2624_v23 = vld [vmem:[#allocation2 + $0x38] sm:$0x1]  ;;  %v3151_v33 = vld [vmem:[#allocation2 + $0x34] sm:$0xf] }
 0x119   : > { %v1451_v6 = vpop.permute.xlu0 %1450 }
 0x11a   : > { %1517 = vst.msk [vmem:[#allocation3 + $0x78] sm:$0xf] %vm1486_vm15, %v1451_v6  ;;  %2823 = vrot.lane.b32.xlu1 %v2715_v42, %s5201_s25  ;;  %v4178_v42 = vshrl.u32 %v4177_v39, 7  ;;  %v2155_v39 = vor.u32 %v2154_v13, %v2151_v11  ;;  %v2619_v11 = vld [vmem:[#allocation2 + $0x24] sm:$0xe] }
 0x11b   : > { %2825 = vrot.lane.b32.xlu0 %v2719_v0, %s5201_s25  ;;  %v2158_v0 = vshll.u32 %v2059_v44, 16  ;;  %v4972_v6 = vld.sshfl [vmem:[%s6753_s1 + $0x10] sm:$0x3 pattern:$0x76325410] }
 0x11c   : > { %v1453_v20 = vpop.permute.xlu1 %1452  ;;  %v4266_v12 = vsel %vm4264_vm4, %v4972_v6, 0  ;;  %5152 = vmatprep.subr.msk.bf16.mxu0 %vm4264_vm4, %v4972_v6  ;;  %v4179_v16 = vsub.s32 %v4176_v7, %v4178_v42  ;;  %5153 = vmatprep.subr.msk.bf16.mxu1 %vm4264_vm4, %v4972_v6  ;;  %v2168_v42 = vshll.u32 %v2060_v40, 16 }
 0x11d   : > { %v1731_v21 = vpop.permute.xlu0 %1730  ;;  %1518 = vst.msk [vmem:[#allocation3 + $0x7c] sm:$0xf] %vm1486_vm15, %v1453_v20  ;;  %5109 = vmatpush3.bf16.msra.mxu0 %v4266_v12  ;;  %5149 = vmatpush3.bf16.msra.mxu1 %v4266_v12  ;;  %vm4009_vm15 = vcmask 290048  }
 0x11e   : > { %1827 = vst.msk [vmem:[#allocation3] sm:$0xf] %vm1826_vm2, %v1731_v21  ;;  %2827 = vrot.lane.b32.xlu1 %v2722_v14, %s5201_s25  ;;  %v2173_v14 = vshrl.u32 %v2061_v3, 16  ;;  %v4197_v31 = vrot.slane %v4189_v8, %v4179_v16  ;;  %v4204_v36 = vrot.slane %v4190_v26, %v4179_v16  ;;  %v4180_v19 = vrot.slane %v4172_v37, %v4179_v16 }
 0x11f   : > { %3015 = vrot.lane.b32.xlu0 %v2951_v15, %s5202_s26  ;;  %v2176_v15 = vshll.u32 %v2061_v3, 16  ;;  %v4187_v55 = vrot.slane %v4173_v38, %v4179_v16  ;;  %v2170_v5 = vrot.slane %v2168_v42, 5  ;;  %v3244_v37 = vshll.u32 %v3150_v28, 16  ;;  %v3153_v38 = vld [vmem:[#allocation2 + $0x3c] sm:$0xf] }
 0x120   : > { %v1733_v34 = vpop.permute.xlu1 %1732 }
 0x121   : > { %v1735_v35 = vpop.permute.xlu0 %1734  ;;  %1828 = vst.msk [vmem:[#allocation3 + $0x4] sm:$0xf] %vm1826_vm2, %v1733_v34  ;;  %v3710_v34 = vld [vmem:[#allocation2 + $0x2c] sm:$0x1]  ;;  %v2178_v44 = vrot.slane %v2176_v15, 5 }
 0x122   : > { %1829 = vst.msk [vmem:[#allocation3 + $0x8] sm:$0xf] %vm1826_vm2, %v1735_v35  ;;  %3017 = vrot.lane.b32.xlu1 %v2952_v29, %s5202_s26  ;;  %v3239_v29 = vsel %vm5299_vm11, %v5902_v63, %v5882_v43  ;;  %v2182_v35 = vshll.u32 %v2062_v51, 16  ;;  %v2175_v43 = vrot.slane %v2173_v14, 4  ;;  %v3813_v58 = vrot.slane %v3710_v34, 5 }
 0x123   : > { %3019 = vrot.lane.b32.xlu0 %v2953_v18, %s5202_s26  ;;  %v5943_v18 = vrot.slane %v2158_v0, 5  ;;  %v2063_v0 = vld [vmem:[#allocation2 + $0x38] sm:$0x1]  ;;  %v4926_v14 = vrot.slane %v2619_v11, 9  ;;  %v3155_v11 = vld [vmem:[#allocation2 + $0x44] sm:$0x1] }
 0x124   : > { %v1737_v61 = vpop.permute.xlu1 %1736  ;;  %v2179_v32 = vor.u32 %v2178_v44, %v2175_v43  ;;  %v2184_v63 = vrot.slane %v2182_v35, 5  ;;  %v3814_v4 = vsel %vm5666_vm14, %v3812_v59, %v3813_v58  ;;  %v2192_v6 = vshll.u32 %v2063_v0, 16  ;;  %v3154_v58 = vld [vmem:[#allocation2 + $0x40] sm:$0xf] }
 0x125   : > { %v1739_v62 = vpop.permute.xlu0 %1738  ;;  %1830 = vst.msk [vmem:[#allocation3 + $0xc] sm:$0xf] %vm1826_vm2, %v1737_v61  ;;  %v2165_v60 = vor.u32 %v2164_v30, %v5943_v18  ;;  %v4188_v61 = vcombine.low %v4180_v19, %v4187_v55  ;;  %v2732_v35 = vrot.slane %v2623_v27, 5  ;;  %v3250_v43 = vshll.u32 %v3151_v33, 16  ;;  %v3712_v27 = vld [vmem:[#allocation2 + $0x34] sm:$0xf] }
 0x126   : > { %1831 = vst.msk [vmem:[#allocation3 + $0x10] sm:$0xf] %vm1826_vm2, %v1739_v62  ;;  %3021 = vrot.lane.b32.xlu1 %v2954_v45, %s5202_s26  ;;  %v2186_v45 = vshrl.u32 %v2062_v51, 16  ;;  %v2156_v62 = vrot.slane %v2155_v39, 4  ;;  %v2620_v51 = vld [vmem:[#allocation2 + $0x28] sm:$0xf] }
 0x127   : > { %3576 = vrot.lane.b32.xlu0 %v3205_v54, %s5204_s9  ;;  %v4205_v54 = vcombine.low %v4197_v31, %v4204_v36  ;;  %v2166_v8 = vrot.slane %v2165_v60, 4  ;;  %v2725_v15 = vrot.slane %v2620_v51, 5  ;;  %v4927_v31 = vrot.slane %v2622_v24, 9  ;;  %v3711_v24 = vld [vmem:[#allocation2 + $0x30] sm:$0xe] }
 0x128   : > { %v1741_v20 = vpop.permute.xlu1 %1740  ;;  %v2188_v3 = vrot.slane %v2186_v45, 4  ;;  %v2161_v7 = vsel %vm5299_vm11, %v2156_v62, %v5943_v18  ;;  %v3241_v36 = vshrl.u32 %v3150_v28, 16  ;;  %v3254_v44 = vshrl.u32 %v3151_v33, 16  ;;  %v3152_v62 = vld [vmem:[#allocation2 + $0x38] sm:$0x1] }
 0x129   : > { %v1743_v21 = vpop.permute.xlu0 %1742  ;;  %1832 = vst.msk [vmem:[#allocation3 + $0x14] sm:$0xf] %vm1826_vm2, %v1741_v20  ;;  %5110 = vmatprep.subr.bf16.mxu0 %v4205_v54  ;;  %5147 = vmatprep.subr.bf16.mxu1 %v4205_v54  ;;  %v2171_v16 = vsel %vm5299_vm11, %v2166_v8, %v2170_v5  ;;  %v2726_v18 = vsel %vm5666_vm14, %v4926_v14, %v2725_v15  ;;  %v2727_v30 = vrot.slane %v2725_v15, 4  ;;  %v2734_v55 = vrot.slane %v2732_v35, 4  ;;  %v2958_v28 = vld [vmem:[#allocation2 + $0x40] sm:$0xf] }
 0x12a   : > { %1833 = vst.msk [vmem:[#allocation3 + $0x18] sm:$0xf] %vm1826_vm2, %v1743_v21  ;;  %3578 = vrot.lane.b32.xlu1 %v3215_v10, %s5204_s9  ;;  %5111 = vmatpush3.bf16.msra.mxu0 %v4205_v54  ;;  %v2180_v10 = vrot.slane %v2179_v32, 4  ;;  %v2733_v19 = vsel %vm5666_vm14, %v4927_v31, %v2732_v35  ;;  %v3252_v42 = vrot.slane %v3250_v43, 5  ;;  %v3274_v0 = vshll.u32 %v3154_v58, 16 }
 0x12b   : > { %3580 = vrot.lane.b32.xlu0 %v3229_v2, %s5204_s9  ;;  %5150 = vmatpush3.bf16.msra.mxu1 %v4205_v54  ;;  %v2189_v2 = vor.u32 %v2188_v3, %v2184_v63  ;;  %v3268_v54 = vshll.u32 %v3153_v38, 16  ;;  %v3278_v3 = vshrl.u32 %v3154_v58, 16  ;;  %v3260_v8 = vshll.u32 %v3152_v62, 16  ;;  %v2067_v35 = vld [vmem:[#allocation2 + $0x48] sm:$0xf] }
 0x12c   : > { %v1745_v46 = vpop.permute.xlu1 %1744  ;;  %5112 = vmatprep.subr.bf16.mxu0 %v4188_v61  ;;  %5148 = vmatprep.subr.bf16.mxu1 %v4188_v61  ;;  %v2185_v20 = vsel %vm5299_vm11, %v2180_v10, %v2184_v63 }
 0x12d   : > { %v1747_v53 = vpop.permute.xlu0 %1746  ;;  %1834 = vst.msk [vmem:[#allocation3 + $0x1c] sm:$0xf] %vm1826_vm2, %v1745_v46  ;;  %v2190_v21 = vrot.slane %v2189_v2, 4  ;;  %v2735_v46 = vrot.slane %v2624_v23, 5  ;;  %v3270_v63 = vrot.slane %v3268_v54, 5  ;;  %v3276_v2 = vrot.slane %v3274_v0, 5 }
 0x12e   : > { %1835 = vst.msk [vmem:[#allocation3 + $0x20] sm:$0xf] %vm1826_vm2, %v1747_v53  ;;  %3582 = vrot.lane.b32.xlu1 %v3239_v29, %s5204_s9  ;;  %5113 = vmatpush3.bf16.msra.mxu0 %v4188_v61  ;;  %v2728_v29 = vrot.slane %v2621_v49, 5  ;;  %v3265_v53 = vshrl.u32 %v3153_v38, 16  ;;  %v3280_v51 = vrot.slane %v3278_v3, 4  ;;  %v3817_v38 = vrot.slane %v3712_v27, 5 }
 0x12f   : > { %3913 = vrot.lane.b32.xlu0 %v3804_v22, %s5205_s27  ;;  %5151 = vmatpush3.bf16.msra.mxu1 %v4188_v61  ;;  %v2194_v22 = vrot.slane %v2192_v6, 5  ;;  %v3256_v61 = vrot.slane %v3254_v44, 4  ;;  %v3716_v0 = vld [vmem:[#allocation2 + $0x44] sm:$0x1] }
 0x130   : > { %v1749_v50 = vpop.permute.xlu1 %1748  ;;  %v2729_v45 = vsel %vm5666_vm14, %v2727_v30, %v2728_v29  ;;  %v3267_v32 = vrot.slane %v3265_v53, 4 }
 0x131   : > { %v1751_v48 = vpop.permute.xlu0 %1750  ;;  %1836 = vst.msk [vmem:[#allocation3 + $0x24] sm:$0xf] %vm1826_vm2, %v1749_v50  ;;  %v2195_v34 = vsel %vm5299_vm11, %v2190_v21, %v2194_v22  ;;  %v2736_v50 = vsel %vm5666_vm14, %v2734_v55, %v2735_v46  ;;  %v3262_v21 = vrot.slane %v3260_v8, 5  ;;  %v3284_v22 = vshll.u32 %v3155_v11, 16  ;;  %v2068_v55 = vld [vmem:[#allocation2 + $0x4c] sm:$0xf] }
 0x132   : > { %1837 = vst.msk [vmem:[#allocation3 + $0x28] sm:$0xf] %vm1826_vm2, %v1751_v48  ;;  %3915 = vrot.lane.b32.xlu1 %v3807_v56, %s5205_s27  ;;  %v3243_v56 = vrot.slane %v3241_v36, 4  ;;  %v2955_v48 = vld [vmem:[#allocation2 + $0x30] sm:$0xf]  ;;  %v3271_v10 = vor.u32 %v3270_v63, %v3267_v32  ;;  %v2234_v8 = vshrl.u32 %v2068_v55, 16 }
 0x133   : > { %3917 = vrot.lane.b32.xlu0 %v3811_v57, %s5205_s27  ;;  %v3246_v57 = vrot.slane %v3244_v37, 5  ;;  %v3286_v37 = vrot.slane %v3284_v22, 5 }
 0x134   : > { %v1753_v12 = vpop.permute.xlu1 %1752  ;;  %v2236_v22 = vrot.slane %v2234_v8, 4  ;;  %v3160_v8 = vld [vmem:[#allocation2 + $0x58] sm:$0xf] }
 0x135   : > { %v1755_v13 = vpop.permute.xlu0 %1754  ;;  %1838 = vst.msk [vmem:[#allocation3 + $0x2c] sm:$0xf] %vm1826_vm2, %v1753_v12  ;;  %v2956_v12 = vld [vmem:[#allocation2 + $0x34] sm:$0xf] }
 0x136   : > { %1839 = vst.msk [vmem:[#allocation3 + $0x30] sm:$0xf] %vm1826_vm2, %v1755_v13  ;;  %3919 = vrot.lane.b32.xlu1 %v3814_v4, %s5205_s27  ;;  %v3247_v4 = vor.u32 %v3246_v57, %v3243_v56  ;;  %v2957_v13 = vld [vmem:[#allocation2 + $0x3c] sm:$0xf]  ;;  %v2221_v56 = vshrl.u32 %v2067_v35, 16  ;;  %v2224_v57 = vshll.u32 %v2067_v35, 16 }
 0x137   : > { %2492 = vrot.lane.b32.xlu0 %v2161_v7, %s5200_s24  ;;  %v3257_v7 = vor.u32 %v3256_v61, %v3252_v42  ;;  %v3819_v61 = vrot.slane %v3817_v38, 4 }
 0x138   : > { %v1757_v25 = vpop.permute.xlu1 %1756  ;;  %v3248_v14 = vrot.slane %v3247_v4, 4 }
 0x139   : > { %v1759_v26 = vpop.permute.xlu0 %1758  ;;  %1840 = vst.msk [vmem:[#allocation3 + $0x34] sm:$0xf] %vm1826_vm2, %v1757_v25  ;;  %v3272_v25 = vrot.slane %v3271_v10, 4 }
 0x13a   : > { %1841 = vst.msk [vmem:[#allocation3 + $0x38] sm:$0xf] %vm1826_vm2, %v1759_v26  ;;  %2494 = vrot.lane.b32.xlu1 %v2171_v16, %s5200_s24  ;;  %v2064_v16 = vld [vmem:[#allocation2 + $0x3c] sm:$0xf]  ;;  %v3281_v26 = vor.u32 %v3280_v51, %v3276_v2  ;;  %v3253_v29 = vsel %vm5299_vm11, %v3248_v14, %v3252_v42  ;;  %v3827_v51 = vrot.slane %v3716_v0, 5 }
 0x13b   : > { %2496 = vrot.lane.b32.xlu0 %v2185_v20, %s5200_s24  ;;  %v3258_v20 = vrot.slane %v3257_v7, 4  ;;  %v2197_v30 = vshrl.u32 %v2064_v16, 16  ;;  %v2200_v31 = vshll.u32 %v2064_v16, 16  ;;  %v3277_v43 = vsel %vm5299_vm11, %v3272_v25, %v3276_v2 }
 0x13c   : > { %v1761_v39 = vpop.permute.xlu1 %1760  ;;  %v3282_v44 = vrot.slane %v3281_v26, 4  ;;  %v2226_v7 = vrot.slane %v2224_v57, 5 }
 0x13d   : > { %v1763_v40 = vpop.permute.xlu0 %1762  ;;  %1842 = vst.msk [vmem:[#allocation3 + $0x3c] sm:$0xf] %vm1826_vm2, %v1761_v39  ;;  %v3263_v36 = vsel %vm5299_vm11, %v3258_v20, %v3262_v21  ;;  %v3713_v39 = vld [vmem:[#allocation2 + $0x38] sm:$0x1]  ;;  %v2199_v54 = vrot.slane %v2197_v30, 4 }
 0x13e   : > { %1843 = vst.msk [vmem:[#allocation3 + $0x40] sm:$0xf] %vm1826_vm2, %v1763_v40  ;;  %2498 = vrot.lane.b32.xlu1 %v2195_v34, %s5200_s24  ;;  %v4942_v34 = vrot.slane %v3711_v24, 9  ;;  %v3714_v40 = vld [vmem:[#allocation2 + $0x3c] sm:$0xe]  ;;  %v3287_v63 = vsel %vm5299_vm11, %v3282_v44, %v3286_v37 }
 0x13f   : > { %2829 = vrot.lane.b32.xlu0 %v2726_v18, %s5201_s25  ;;  %v2065_v18 = vld [vmem:[#allocation2 + $0x40] sm:$0xf]  ;;  %v4943_v62 = vrot.slane %v3714_v40, 9  ;;  %v2069_v21 = vld [vmem:[#allocation2 + $0x50] sm:$0x1] }
 0x140   : > { %v1765_v59 = vpop.permute.xlu1 %1764  ;;  %v2206_v46 = vshll.u32 %v2065_v18, 16  ;;  %v2210_v53 = vshrl.u32 %v2065_v18, 16  ;;  %v3818_v42 = vsel %vm5666_vm14, %v4942_v34, %v3817_v38  ;;  %v2627_v38 = vld [vmem:[#allocation2 + $0x44] sm:$0x1] }
 0x141   : > { %v1767_v60 = vpop.permute.xlu0 %1766  ;;  %1844 = vst.msk [vmem:[#allocation3 + $0x44] sm:$0xf] %vm1826_vm2, %v1765_v59 }
 0x142   : > { %1845 = vst.msk [vmem:[#allocation3 + $0x48] sm:$0xf] %vm1826_vm2, %v1767_v60  ;;  %2831 = vrot.lane.b32.xlu1 %v2729_v45, %s5201_s25  ;;  %v3715_v45 = vld [vmem:[#allocation2 + $0x40] sm:$0xf]  ;;  %v3820_v60 = vrot.slane %v3713_v39, 5  ;;  %v2208_v3 = vrot.slane %v2206_v46, 5 }
 0x143   : > { %2833 = vrot.lane.b32.xlu0 %v2733_v19, %s5201_s25  ;;  %v2202_v19 = vrot.slane %v2200_v31, 5  ;;  %v3824_v32 = vrot.slane %v3715_v45, 5  ;;  %v2628_v45 = vld [vmem:[#allocation2 + $0x48] sm:$0xe]  ;;  %v2629_v46 = vld [vmem:[#allocation2 + $0x4c] sm:$0xf] }
 0x144   : > { %v1769_v5 = vpop.permute.xlu1 %1768  ;;  %v3821_v11 = vsel %vm5666_vm14, %v3819_v61, %v3820_v60  ;;  %v4929_v57 = vrot.slane %v2628_v45, 9  ;;  %v3157_v61 = vld [vmem:[#allocation2 + $0x4c] sm:$0xf]  ;;  %v2962_v45 = vld [vmem:[#allocation2 + $0x58] sm:$0xf] }
 0x145   : > { %v1771_v6 = vpop.permute.xlu0 %1770  ;;  %1846 = vst.msk [vmem:[#allocation3 + $0x4c] sm:$0xf] %vm1826_vm2, %v1769_v5  ;;  %v2203_v4 = vor.u32 %v2202_v19, %v2199_v54  ;;  %v2066_v5 = vld [vmem:[#allocation2 + $0x44] sm:$0x1]  ;;  %v3156_v19 = vld [vmem:[#allocation2 + $0x48] sm:$0xf] }
 0x146   : > { %1847 = vst.msk [vmem:[#allocation3 + $0x50] sm:$0xf] %vm1826_vm2, %v1771_v6  ;;  %2835 = vrot.lane.b32.xlu1 %v2736_v50, %s5201_s25  ;;  %v2212_v50 = vrot.slane %v2210_v53, 4  ;;  %v2223_v6 = vrot.slane %v2221_v56, 4  ;;  %v2742_v56 = vrot.slane %v2627_v38, 5 }
 0x147   : > { %3023 = vrot.lane.b32.xlu0 %v2955_v48, %s5202_s26  ;;  %v2230_v48 = vshll.u32 %v2068_v55, 16 }
 0x148   : > { %v1773_v15 = vpop.permute.xlu1 %1772  ;;  %v2213_v14 = vor.u32 %v2212_v50, %v2208_v3  ;;  %v2227_v16 = vor.u32 %v2226_v7, %v2223_v6  ;;  %v3298_v6 = vshll.u32 %v3157_v61, 16  ;;  %v3302_v7 = vshrl.u32 %v3157_v61, 16  ;;  %v2073_v61 = vld [vmem:[#allocation2 + $0x60] sm:$0xf] }
 0x149   : > { %v1775_v49 = vpop.permute.xlu0 %1774  ;;  %1848 = vst.msk [vmem:[#allocation3 + $0x54] sm:$0xf] %vm1826_vm2, %v1773_v15  ;;  %v2216_v15 = vshll.u32 %v2066_v5, 16  ;;  %v2232_v20 = vrot.slane %v2230_v48, 5 }
 0x14a   : > { %1849 = vst.msk [vmem:[#allocation3 + $0x58] sm:$0xf] %vm1826_vm2, %v1775_v49  ;;  %3025 = vrot.lane.b32.xlu1 %v2956_v12, %s5202_s26  ;;  %v3825_v12 = vsel %vm5666_vm14, %v4943_v62, %v3824_v32  ;;  %v2204_v49 = vrot.slane %v2203_v4, 4  ;;  %v2214_v30 = vrot.slane %v2213_v14, 4  ;;  %v2228_v31 = vrot.slane %v2227_v16, 4 }
 0x14b   : > { %3027 = vrot.lane.b32.xlu0 %v2957_v13, %s5202_s26  ;;  %v3826_v13 = vrot.slane %v3824_v32, 4  ;;  %v2218_v27 = vrot.slane %v2216_v15, 5  ;;  %v3289_v62 = vshrl.u32 %v3156_v19, 16  ;;  %v3292_v32 = vshll.u32 %v3156_v19, 16 }
 0x14c   : > { %v1777_v23 = vpop.permute.xlu1 %1776  ;;  %v2209_v18 = vsel %vm5299_vm11, %v2204_v49, %v2208_v3  ;;  %v2233_v40 = vsel %vm5299_vm11, %v2228_v31, %v2232_v20  ;;  %v3159_v3 = vld [vmem:[#allocation2 + $0x54] sm:$0xf]  ;;  %v3322_v14 = vshll.u32 %v3160_v8, 16  ;;  %v3326_v15 = vshrl.u32 %v3160_v8, 16  ;;  %v3161_v31 = vld [vmem:[#allocation2 + $0x5c] sm:$0x1] }
 0x14d   : > { %v1779_v33 = vpop.permute.xlu0 %1778  ;;  %1850 = vst.msk [vmem:[#allocation3 + $0x5c] sm:$0xf] %vm1826_vm2, %v1777_v23  ;;  %v3828_v26 = vsel %vm5666_vm14, %v3826_v13, %v3827_v51  ;;  %v2237_v23 = vor.u32 %v2236_v22, %v2232_v20  ;;  %v2219_v39 = vsel %vm5299_vm11, %v2214_v30, %v2218_v27  ;;  %v3316_v51 = vshll.u32 %v3159_v3, 16  ;;  %v2959_v20 = vld [vmem:[#allocation2 + $0x48] sm:$0xf] }
 0x14e   : > { %1851 = vst.msk [vmem:[#allocation3 + $0x60] sm:$0xf] %vm1826_vm2, %v1779_v33  ;;  %3029 = vrot.lane.b32.xlu1 %v2958_v28, %s5202_s26  ;;  %v2240_v28 = vshll.u32 %v2069_v21, 16  ;;  %v2625_v33 = vld [vmem:[#allocation2 + $0x3c] sm:$0xe]  ;;  %v3300_v16 = vrot.slane %v3298_v6, 5 }
 0x14f   : > { %3584 = vrot.lane.b32.xlu0 %v3253_v29, %s5204_s9  ;;  %v2626_v29 = vld [vmem:[#allocation2 + $0x40] sm:$0xf]  ;;  %v4928_v37 = vrot.slane %v2625_v33, 9  ;;  %v3304_v22 = vrot.slane %v3302_v7, 4  ;;  %v2960_v30 = vld [vmem:[#allocation2 + $0x4c] sm:$0xf] }
 0x150   : > { %v1781_v58 = vpop.permute.xlu1 %1780  ;;  %v2242_v44 = vrot.slane %v2240_v28, 5  ;;  %v3158_v28 = vld [vmem:[#allocation2 + $0x50] sm:$0x1]  ;;  %v3720_v8 = vld [vmem:[#allocation2 + $0x54] sm:$0xe] }
 0x151   : > { %v1783_v59 = vpop.permute.xlu0 %1782  ;;  %1852 = vst.msk [vmem:[#allocation3 + $0x64] sm:$0xf] %vm1826_vm2, %v1781_v58  ;;  %v2746_v58 = vrot.slane %v2629_v46, 5  ;;  %v3717_v46 = vld [vmem:[#allocation2 + $0x48] sm:$0xe] }
 0x152   : > { %1853 = vst.msk [vmem:[#allocation3 + $0x68] sm:$0xf] %vm1826_vm2, %v1783_v59  ;;  %3586 = vrot.lane.b32.xlu1 %v3263_v36, %s5204_s9  ;;  %v2739_v36 = vrot.slane %v2626_v29, 5  ;;  %v2630_v59 = vld [vmem:[#allocation2 + $0x50] sm:$0x1]  ;;  %v6078_v29 = vrot.slane %v3322_v14, 5 }
 0x153   : > { %3588 = vrot.lane.b32.xlu0 %v3277_v43, %s5204_s9  ;;  %v2238_v43 = vrot.slane %v2237_v23, 4  ;;  %v2749_v48 = vrot.slane %v2630_v59, 5  ;;  %v2747_v4 = vsel %vm5666_vm14, %v4929_v57, %v2746_v58  ;;  %v2748_v5 = vrot.slane %v2746_v58, 4  ;;  %v2961_v23 = vld [vmem:[#allocation2 + $0x54] sm:$0xf] }
 0x154   : > { %v1785_v10 = vpop.permute.xlu1 %1784  ;;  %v2741_v55 = vrot.slane %v2739_v36, 4  ;;  %v2071_v58 = vld [vmem:[#allocation2 + $0x58] sm:$0xf] }
 0x155   : > { %v1787_v2 = vpop.permute.xlu0 %1786  ;;  %1854 = vst.msk [vmem:[#allocation3 + $0x6c] sm:$0xf] %vm1826_vm2, %v1785_v10  ;;  %v2243_v60 = vsel %vm5299_vm11, %v2238_v43, %v2242_v44  ;;  %v3291_v10 = vrot.slane %v3289_v62, 4  ;;  %v2750_v49 = vsel %vm5666_vm14, %v2748_v5, %v2749_v48  ;;  %v3332_v43 = vshll.u32 %v3161_v31, 16  ;;  %v3718_v44 = vld [vmem:[#allocation2 + $0x4c] sm:$0xf] }
 0x156   : > { %1855 = vst.msk [vmem:[#allocation3 + $0x70] sm:$0xf] %vm1826_vm2, %v1787_v2  ;;  %3590 = vrot.lane.b32.xlu1 %v3287_v63, %s5204_s9  ;;  %v2743_v50 = vsel %vm5666_vm14, %v2741_v55, %v2742_v56  ;;  %v3294_v2 = vrot.slane %v3292_v32, 5  ;;  %v2258_v5 = vshrl.u32 %v2071_v58, 16 }
 0x157   : > { %3921 = vrot.lane.b32.xlu0 %v3818_v42, %s5205_s27  ;;  %v2740_v42 = vsel %vm5666_vm14, %v4928_v37, %v2739_v36  ;;  %v2070_v37 = vld [vmem:[#allocation2 + $0x54] sm:$0xf]  ;;  %v3334_v32 = vrot.slane %v3332_v43, 5  ;;  %v2075_v43 = vld [vmem:[#allocation2 + $0x68] sm:$0x1] }
 0x158   : > { %v1789_v24 = vpop.permute.xlu1 %1788  ;;  %v3295_v21 = vor.u32 %v3294_v2, %v3291_v10  ;;  %v2269_v10 = vshrl.u32 %v2073_v61, 16  ;;  %v2272_v2 = vshll.u32 %v2073_v61, 16  ;;  %v2631_v61 = vld [vmem:[#allocation2 + $0x54] sm:$0xe] }
 0x159   : > { %v1791_v25 = vpop.permute.xlu0 %1790  ;;  %1856 = vst.msk [vmem:[#allocation3 + $0x74] sm:$0xf] %vm1826_vm2, %v1789_v24 }
 0x15a   : > { %1857 = vst.msk [vmem:[#allocation3 + $0x78] sm:$0xf] %vm1826_vm2, %v1791_v25  ;;  %3923 = vrot.lane.b32.xlu1 %v3821_v11, %s5205_s27  ;;  %v3313_v11 = vshrl.u32 %v3159_v3, 16  ;;  %v3318_v25 = vrot.slane %v3316_v51, 5  ;;  %v3296_v33 = vrot.slane %v3295_v21, 4 }
 0x15b   : > { %3925 = vrot.lane.b32.xlu0 %v3825_v12, %s5205_s27  ;;  %v3721_v3 = vld [vmem:[#allocation2 + $0x58] sm:$0xf]  ;;  %v3722_v21 = vld [vmem:[#allocation2 + $0x5c] sm:$0x1] }
 0x15c   : > { %v1793_v34 = vpop.permute.xlu1 %1792  ;;  %v3315_v24 = vrot.slane %v3313_v11, 4  ;;  %v3301_v19 = vsel %vm5299_vm11, %v3296_v33, %v3300_v16 }
 0x15d   : > { %v1924_v35 = vpop.permute.xlu0 %1923  ;;  %1858 = vst.msk [vmem:[#allocation3 + $0x7c] sm:$0xf] %vm1826_vm2, %v1793_v34  ;;  %v3305_v34 = vor.u32 %v3304_v22, %v3300_v16  ;;  %v3838_v16 = vrot.slane %v3721_v3, 5  ;;  %vm4215_vm2 = vcmask 293888  }
 0x15e   : > { %2020 = vst.msk [vmem:[#allocation3] sm:$0xf] %vm2019_vm5, %v1924_v35  ;;  %3927 = vrot.lane.b32.xlu1 %v3828_v26, %s5205_s27  ;;  %v3308_v35 = vshll.u32 %v3158_v28, 16  ;;  %v3319_v36 = vor.u32 %v3318_v25, %v3315_v24  ;;  %v2260_v25 = vrot.slane %v2258_v5, 4  ;;  %v2274_v28 = vrot.slane %v2272_v2, 5 }
 0x15f   : > { %2500 = vrot.lane.b32.xlu0 %v2209_v18, %s5200_s24  ;;  %v3328_v18 = vrot.slane %v3326_v15, 4  ;;  %v3306_v55 = vrot.slane %v3305_v34, 4  ;;  %v3840_v33 = vrot.slane %v3838_v16, 4  ;;  %v2634_v5 = vld [vmem:[#allocation2 + $0x60] sm:$0xe] }
 0x160   : > { %v1926_v53 = vpop.permute.xlu1 %1925  ;;  %v3310_v56 = vrot.slane %v3308_v35, 5  ;;  %v3320_v57 = vrot.slane %v3319_v36, 4  ;;  %v3841_v35 = vrot.slane %v3722_v21, 5 }
 0x161   : > { %v1928_v54 = vpop.permute.xlu0 %1927  ;;  %2021 = vst.msk [vmem:[#allocation3 + $0x4] sm:$0xf] %vm2019_vm5, %v1926_v53  ;;  %v2245_v53 = vshrl.u32 %v2070_v37, 16 }
 0x162   : > { %2022 = vst.msk [vmem:[#allocation3 + $0x8] sm:$0xf] %vm2019_vm5, %v1928_v54  ;;  %2502 = vrot.lane.b32.xlu1 %v2219_v39, %s5200_s24  ;;  %v2248_v54 = vshll.u32 %v2070_v37, 16  ;;  %v3311_v6 = vsel %vm5299_vm11, %v3306_v55, %v3310_v56  ;;  %v3325_v7 = vsel %vm5299_vm11, %v3320_v57, %v6078_v29  ;;  %v2632_v55 = vld [vmem:[#allocation2 + $0x58] sm:$0xf] }
 0x163   : > { %2504 = vrot.lane.b32.xlu0 %v2233_v40, %s5200_s24  ;;  %v3329_v40 = vor.u32 %v3328_v18, %v6078_v29 }
 0x164   : > { %v1930_v63 = vpop.permute.xlu1 %1929  ;;  %v2250_v48 = vrot.slane %v2248_v54, 5 }
 0x165   : > { %v1932_v0 = vpop.permute.xlu0 %1931  ;;  %2023 = vst.msk [vmem:[#allocation3 + $0xc] sm:$0xf] %vm2019_vm5, %v1930_v63  ;;  %v3330_v62 = vrot.slane %v3329_v40, 4  ;;  %v4944_v63 = vrot.slane %v3717_v46, 9 }
 0x166   : > { %2024 = vst.msk [vmem:[#allocation3 + $0x10] sm:$0xf] %vm2019_vm5, %v1932_v0  ;;  %2506 = vrot.lane.b32.xlu1 %v2243_v60, %s5200_s24  ;;  %v3719_v0 = vld [vmem:[#allocation2 + $0x50] sm:$0x1] }
 0x167   : > { %2837 = vrot.lane.b32.xlu0 %v2740_v42, %s5201_s25  ;;  %v3831_v42 = vrot.slane %v3718_v44, 5  ;;  %v3335_v14 = vsel %vm5299_vm11, %v3330_v62, %v3334_v32  ;;  %v2753_v62 = vrot.slane %v2632_v55, 5 }
 0x168   : > { %v1934_v12 = vpop.permute.xlu1 %1933 }
 0x169   : > { %v1936_v13 = vpop.permute.xlu0 %1935  ;;  %2025 = vst.msk [vmem:[#allocation3 + $0x14] sm:$0xf] %vm2019_vm5, %v1934_v12  ;;  %v3833_v12 = vrot.slane %v3831_v42, 4  ;;  %v3832_v15 = vsel %vm5666_vm14, %v4944_v63, %v3831_v42  ;;  %v2633_v63 = vld [vmem:[#allocation2 + $0x5c] sm:$0x1] }
 0x16a   : > { %2026 = vst.msk [vmem:[#allocation3 + $0x18] sm:$0xf] %vm2019_vm5, %v1936_v13  ;;  %2839 = vrot.lane.b32.xlu1 %v2743_v50, %s5201_s25  ;;  %v2247_v50 = vrot.slane %v2245_v53, 4  ;;  %v2074_v13 = vld [vmem:[#allocation2 + $0x64] sm:$0xf]  ;;  %v3842_v53 = vsel %vm5666_vm14, %v3840_v33, %v3841_v35  ;;  %v2756_v2 = vrot.slane %v2633_v63, 5 }
 0x16b   : > { %2841 = vrot.lane.b32.xlu0 %v2747_v4, %s5201_s25  ;;  %v2254_v4 = vshll.u32 %v2071_v58, 16  ;;  %v2278_v29 = vshll.u32 %v2074_v13, 16  ;;  %v2282_v18 = vshrl.u32 %v2074_v13, 16 }
 0x16c   : > { %v1938_v26 = vpop.permute.xlu1 %1937  ;;  %v2251_v22 = vor.u32 %v2250_v48, %v2247_v50 }
 0x16d   : > { %v1940_v27 = vpop.permute.xlu0 %1939  ;;  %2027 = vst.msk [vmem:[#allocation3 + $0x1c] sm:$0xf] %vm2019_vm5, %v1938_v26  ;;  %v2256_v24 = vrot.slane %v2254_v4, 5  ;;  %v2072_v26 = vld [vmem:[#allocation2 + $0x5c] sm:$0x1]  ;;  %v2280_v40 = vrot.slane %v2278_v29, 5 }
 0x16e   : > { %2028 = vst.msk [vmem:[#allocation3 + $0x20] sm:$0xf] %vm2019_vm5, %v1940_v27  ;;  %2843 = vrot.lane.b32.xlu1 %v2750_v49, %s5201_s25  ;;  %v3834_v49 = vrot.slane %v3719_v0, 5  ;;  %v2271_v27 = vrot.slane %v2269_v10, 4  ;;  %v2252_v36 = vrot.slane %v2251_v22, 4  ;;  %v2264_v37 = vshll.u32 %v2072_v26, 16 }
 0x16f   : > { %3031 = vrot.lane.b32.xlu0 %v2959_v20, %s5202_s26  ;;  %v4945_v20 = vrot.slane %v3720_v8, 9  ;;  %v2284_v44 = vrot.slane %v2282_v18, 4  ;;  %v2635_v0 = vld [vmem:[#allocation2 + $0x64] sm:$0xf]  ;;  %v4930_v4 = vrot.slane %v2631_v61, 9  ;;  %v2755_v10 = vrot.slane %v2753_v62, 4 }
 0x170   : > { %v1942_v38 = vpop.permute.xlu1 %1941  ;;  %v2266_v54 = vrot.slane %v2264_v37, 5  ;;  %v2257_v56 = vsel %vm5299_vm11, %v2252_v36, %v2256_v24  ;;  %v3162_v8 = vld [vmem:[#allocation2 + $0x60] sm:$0xf]  ;;  %v3165_v22 = vld [vmem:[#allocation2 + $0x6c] sm:$0xf] }
 0x171   : > { %v1944_v39 = vpop.permute.xlu0 %1943  ;;  %2029 = vst.msk [vmem:[#allocation3 + $0x24] sm:$0xf] %vm2019_vm5, %v1942_v38  ;;  %v3839_v34 = vsel %vm5666_vm14, %v4945_v20, %v3838_v16  ;;  %v2261_v38 = vor.u32 %v2260_v25, %v2256_v24  ;;  %v2754_v13 = vsel %vm5666_vm14, %v4930_v4, %v2753_v62  ;;  %v3340_v16 = vshll.u32 %v3162_v8, 16 }
 0x172   : > { %2030 = vst.msk [vmem:[#allocation3 + $0x28] sm:$0xf] %vm2019_vm5, %v1944_v39  ;;  %3033 = vrot.lane.b32.xlu1 %v2960_v30, %s5202_s26  ;;  %v2275_v39 = vor.u32 %v2274_v28, %v2271_v27  ;;  %v2757_v24 = vsel %vm5666_vm14, %v2755_v10, %v2756_v2  ;;  %v3364_v33 = vshll.u32 %v3165_v22, 16 }
 0x173   : > { %3035 = vrot.lane.b32.xlu0 %v2961_v23, %s5202_s26  ;;  %v3835_v23 = vsel %vm5666_vm14, %v3833_v12, %v3834_v49  ;;  %v2262_v57 = vrot.slane %v2261_v38, 4  ;;  %v3337_v49 = vshrl.u32 %v3162_v8, 16  ;;  %v3723_v8 = vld [vmem:[#allocation2 + $0x60] sm:$0xe] }
 0x174   : > { %v1946_v59 = vpop.permute.xlu1 %1945  ;;  %v2276_v58 = vrot.slane %v2275_v39, 4 }
 0x175   : > { %v1948_v60 = vpop.permute.xlu0 %1947  ;;  %2031 = vst.msk [vmem:[#allocation3 + $0x2c] sm:$0xf] %vm2019_vm5, %v1946_v59  ;;  %v2285_v59 = vor.u32 %v2284_v44, %v2280_v40  ;;  %v2267_v3 = vsel %vm5299_vm11, %v2262_v57, %v2266_v54  ;;  %v3339_v18 = vrot.slane %v3337_v49, 4  ;;  %v3727_v49 = vld [vmem:[#allocation2 + $0x70] sm:$0xf] }
 0x176   : > { %2032 = vst.msk [vmem:[#allocation3 + $0x30] sm:$0xf] %vm2019_vm5, %v1948_v60  ;;  %3037 = vrot.lane.b32.xlu1 %v2962_v45, %s5202_s26  ;;  %v2281_v50 = vsel %vm5299_vm11, %v2276_v58, %v2280_v40  ;;  %v2963_v40 = vld [vmem:[#allocation2 + $0x60] sm:$0xf]  ;;  %v2964_v58 = vld [vmem:[#allocation2 + $0x64] sm:$0xf] }
 0x177   : > { %3592 = vrot.lane.b32.xlu0 %v3301_v19, %s5204_s9  ;;  %v2288_v19 = vshll.u32 %v2075_v43, 16  ;;  %v2286_v48 = vrot.slane %v2285_v59, 4  ;;  %v2965_v59 = vld [vmem:[#allocation2 + $0x6c] sm:$0xf] }
 0x178   : > { %v1950_v11 = vpop.permute.xlu1 %1949 }
 0x179   : > { %v1952_v51 = vpop.permute.xlu0 %1951  ;;  %2033 = vst.msk [vmem:[#allocation3 + $0x34] sm:$0xf] %vm2019_vm5, %v1950_v11  ;;  %v2290_v32 = vrot.slane %v2288_v19, 5  ;;  %v2760_v11 = vrot.slane %v2635_v0, 5  ;;  %v3164_v19 = vld [vmem:[#allocation2 + $0x68] sm:$0x1] }
 0x17a   : > { %2034 = vst.msk [vmem:[#allocation3 + $0x38] sm:$0xf] %vm2019_vm5, %v1952_v51  ;;  %3594 = vrot.lane.b32.xlu1 %v3311_v6, %s5204_s9  ;;  %v4931_v51 = vrot.slane %v2634_v5, 9  ;;  %v3356_v61 = vshll.u32 %v3164_v19, 16 }
 0x17b   : > { %3596 = vrot.lane.b32.xlu0 %v3325_v7, %s5204_s9  ;;  %v2291_v12 = vsel %vm5299_vm11, %v2286_v48, %v2290_v32  ;;  %v2762_v25 = vrot.slane %v2760_v11, 4  ;;  %v3724_v48 = vld [vmem:[#allocation2 + $0x64] sm:$0xf] }
 0x17c   : > { %v1954_v30 = vpop.permute.xlu1 %1953  ;;  %v2761_v26 = vsel %vm5666_vm14, %v4931_v51, %v2760_v11  ;;  %v3845_v51 = vrot.slane %v3724_v48, 5 }
 0x17d   : > { %v1956_v31 = vpop.permute.xlu0 %1955  ;;  %2035 = vst.msk [vmem:[#allocation3 + $0x3c] sm:$0xf] %vm2019_vm5, %v1954_v30  ;;  %v3342_v30 = vrot.slane %v3340_v16, 5 }
 0x17e   : > { %2036 = vst.msk [vmem:[#allocation3 + $0x40] sm:$0xf] %vm2019_vm5, %v1956_v31  ;;  %3598 = vrot.lane.b32.xlu1 %v3335_v14, %s5204_s9  ;;  %v2636_v14 = vld [vmem:[#allocation2 + $0x68] sm:$0x1]  ;;  %v3166_v31 = vld [vmem:[#allocation2 + $0x70] sm:$0xf] }
 0x17f   : > { %3929 = vrot.lane.b32.xlu0 %v3832_v15, %s5205_s27  ;;  %v3163_v15 = vld [vmem:[#allocation2 + $0x64] sm:$0xf]  ;;  %v2763_v27 = vrot.slane %v2636_v14, 5  ;;  %v3370_v38 = vshll.u32 %v3166_v31, 16  ;;  %v3374_v39 = vshrl.u32 %v3166_v31, 16  ;;  %v3343_v43 = vor.u32 %v3342_v30, %v3339_v18 }
 0x180   : > { %v1958_v45 = vpop.permute.xlu1 %1957  ;;  %v3346_v28 = vshll.u32 %v3163_v15, 16  ;;  %v3350_v29 = vshrl.u32 %v3163_v15, 16  ;;  %v4946_v14 = vrot.slane %v3723_v8, 9  ;;  %v3725_v15 = vld [vmem:[#allocation2 + $0x68] sm:$0x1]  ;;  %v3852_v30 = vrot.slane %v3727_v49, 5 }
 0x181   : > { %v2485_v46 = vpop.permute.xlu0 %2484  ;;  %2037 = vst.msk [vmem:[#allocation3 + $0x44] sm:$0xf] %vm2019_vm5, %v1958_v45  ;;  %v2764_v36 = vsel %vm5666_vm14, %v2762_v25, %v2763_v27  ;;  %v3372_v55 = vrot.slane %v3370_v38, 5  ;;  %v3376_v57 = vrot.slane %v3374_v39, 4  ;;  %v2077_v25 = vld [vmem:[#allocation2 + $0x70] sm:$0xf] }
 0x182   : > { %2581 = vst.msk [vmem:[#allocation3] sm:$0xf] %vm2580_vm6, %v2485_v46  ;;  %3931 = vrot.lane.b32.xlu1 %v3835_v23, %s5205_s27  ;;  %v3361_v23 = vshrl.u32 %v3165_v22, 16  ;;  %v3348_v37 = vrot.slane %v3346_v28, 5  ;;  %v3352_v44 = vrot.slane %v3350_v29, 4  ;;  %v3366_v46 = vrot.slane %v3364_v33, 5 }
 0x183   : > { %3933 = vrot.lane.b32.xlu0 %v3839_v34, %s5205_s27  ;;  %v2079_v28 = vld [vmem:[#allocation2 + $0x78] sm:$0xf]  ;;  %v3847_v29 = vrot.slane %v3845_v51, 4  ;;  %v3848_v18 = vrot.slane %v3725_v15, 5 }
 0x184   : > { %v2487_v60 = vpop.permute.xlu1 %2486  ;;  %v3363_v45 = vrot.slane %v3361_v23, 4  ;;  %v3846_v23 = vsel %vm5666_vm14, %v4946_v14, %v3845_v51  ;;  %v2317_v38 = vshrl.u32 %v2079_v28, 16  ;;  %v2320_v39 = vshll.u32 %v2079_v28, 16  ;;  %v1878_v51 = vld [vmem:[#allocation2 + $0x7c] sm:$0xf] }
 0x185   : > { %v2489_v42 = vpop.permute.xlu0 %2488  ;;  %2582 = vst.msk [vmem:[#allocation3 + $0x4] sm:$0xf] %vm2580_vm6, %v2487_v60  ;;  %v3344_v60 = vrot.slane %v3343_v43, 4  ;;  %v318_v14 = vld [vmem:[#allocation2 + $0xc0] sm:$0x1] }
 0x186   : > { %2583 = vst.msk [vmem:[#allocation3 + $0x8] sm:$0xf] %vm2580_vm6, %v2489_v42  ;;  %3935 = vrot.lane.b32.xlu1 %v3842_v53, %s5205_s27  ;;  %v3353_v42 = vor.u32 %v3352_v44, %v3348_v37  ;;  %v3367_v62 = vor.u32 %v3366_v46, %v3363_v45  ;;  %v3849_v46 = vsel %vm5666_vm14, %v3847_v29, %v3848_v18  ;;  %v2637_v28 = vld [vmem:[#allocation2 + $0x6c] sm:$0xe] }
 0x187   : > { %2508 = vrot.lane.b32.xlu0 %v2257_v56, %s5200_s24  ;;  %v3167_v56 = vld [vmem:[#allocation2 + $0x74] sm:$0x1]  ;;  %v3349_v4 = vsel %vm5299_vm11, %v3344_v60, %v3348_v37  ;;  %v2080_v37 = vld [vmem:[#allocation2 + $0x7c] sm:$0xf]  ;;  %v2322_v60 = vrot.slane %v2320_v39, 5 }
 0x188   : > { %v2491_v6 = vpop.permute.xlu1 %2490  ;;  %v3380_v0 = vshll.u32 %v3167_v56, 16  ;;  %v3354_v5 = vrot.slane %v3353_v42, 4  ;;  %v2330_v56 = vshrl.u32 %v2080_v37, 16 }
 0x189   : > { %v2822_v7 = vpop.permute.xlu0 %2821  ;;  %2584 = vst.msk [vmem:[#allocation3 + $0xc] sm:$0xf] %vm2580_vm6, %v2491_v6  ;;  %v3358_v6 = vrot.slane %v3356_v61, 5 }
 0x18a   : > { %2918 = vst.msk [vmem:[#allocation3] sm:$0xf] %vm2917_vm8, %v2822_v7  ;;  %2510 = vrot.lane.b32.xlu1 %v2267_v3, %s5200_s24  ;;  %v2966_v3 = vld [vmem:[#allocation2 + $0x70] sm:$0xf]  ;;  %v3368_v7 = vrot.slane %v3367_v62, 4  ;;  %v3382_v11 = vrot.slane %v3380_v0, 5 }
 0x18b   : > { %2512 = vrot.lane.b32.xlu0 %v2281_v50, %s5200_s24  ;;  %v3377_v50 = vor.u32 %v3376_v57, %v3372_v55  ;;  %v3359_v16 = vsel %vm5299_vm11, %v3354_v5, %v3358_v6  ;;  %v2081_v6 = vld [vmem:[#allocation2 + $0x80] sm:$0x1] }
 0x18c   : > { %v2824_v20 = vpop.permute.xlu1 %2823 }
 0x18d   : > { %v2826_v21 = vpop.permute.xlu0 %2825  ;;  %2919 = vst.msk [vmem:[#allocation3 + $0x4] sm:$0xf] %vm2917_vm8, %v2824_v20  ;;  %v3373_v20 = vsel %vm5299_vm11, %v3368_v7, %v3372_v55  ;;  %v2326_v55 = vshll.u32 %v2080_v37, 16  ;;  %v2641_v37 = vld [vmem:[#allocation2 + $0x7c] sm:$0xf] }
 0x18e   : > { %2920 = vst.msk [vmem:[#allocation3 + $0x8] sm:$0xf] %vm2917_vm8, %v2826_v21  ;;  %2514 = vrot.lane.b32.xlu1 %v2291_v12, %s5200_s24  ;;  %v2076_v12 = vld [vmem:[#allocation2 + $0x6c] sm:$0xf] }
 0x18f   : > { %2845 = vrot.lane.b32.xlu0 %v2754_v13, %s5201_s25  ;;  %v3378_v13 = vrot.slane %v3377_v50, 4  ;;  %v3726_v21 = vld [vmem:[#allocation2 + $0x6c] sm:$0xe]  ;;  %v2296_v27 = vshll.u32 %v2076_v12, 16  ;;  %v6192_v0 = vrot.slane %v2326_v55, 5 }
 0x190   : > { %v2828_v34 = vpop.permute.xlu1 %2827  ;;  %v4947_v33 = vrot.slane %v3726_v21, 9  ;;  %v1877_v50 = vld [vmem:[#allocation2 + $0x78] sm:$0xf]  ;;  %v319_v21 = vsel %vm5245_vm3, 0, %v318_v14 }
 0x191   : > { %v3016_v35 = vpop.permute.xlu0 %3015  ;;  %2921 = vst.msk [vmem:[#allocation3 + $0xc] sm:$0xf] %vm2917_vm8, %v2828_v34  ;;  %v3383_v31 = vsel %vm5299_vm11, %v3378_v13, %v3382_v11  ;;  %v3728_v34 = vld [vmem:[#allocation2 + $0x74] sm:$0x1]  ;;  %v2298_v45 = vrot.slane %v2296_v27, 5  ;;  %v2336_v13 = vshll.u32 %v2081_v6, 16 }
 0x192   : > { %3112 = vst.msk [vmem:[#allocation3] sm:$0xf] %vm3111_vm12, %v3016_v35  ;;  %2847 = vrot.lane.b32.xlu1 %v2757_v24, %s5201_s25  ;;  %v2302_v35 = vshll.u32 %v2077_v25, 16  ;;  %v3855_v19 = vrot.slane %v3728_v34, 5  ;;  %v2638_v11 = vld [vmem:[#allocation2 + $0x70] sm:$0xf] }
 0x193   : > { %2849 = vrot.lane.b32.xlu0 %v2761_v26, %s5201_s25  ;;  %v2293_v26 = vshrl.u32 %v2076_v12, 16  ;;  %v2767_v29 = vrot.slane %v2638_v11, 5  ;;  %320 = vst [vmem:[#allocation2 + $0xc0] sm:$0x1] %v319_v21 }
 0x194   : > { %v3018_v53 = vpop.permute.xlu1 %3017  ;;  %v2304_v57 = vrot.slane %v2302_v35, 5  ;;  %v4932_v35 = vrot.slane %v2637_v28, 9 }
 0x195   : > { %v3020_v54 = vpop.permute.xlu0 %3019  ;;  %3113 = vst.msk [vmem:[#allocation3 + $0x4] sm:$0xf] %vm3111_vm12, %v3018_v53  ;;  %v2295_v44 = vrot.slane %v2293_v26, 4  ;;  %v3854_v53 = vrot.slane %v3852_v30, 4 }
 0x196   : > { %3114 = vst.msk [vmem:[#allocation3 + $0x8] sm:$0xf] %vm3111_vm12, %v3020_v54  ;;  %2851 = vrot.lane.b32.xlu1 %v2764_v36, %s5201_s25  ;;  %v2306_v36 = vshrl.u32 %v2077_v25, 16  ;;  %v3853_v54 = vsel %vm5666_vm14, %v4947_v33, %v3852_v30 }
 0x197   : > { %3039 = vrot.lane.b32.xlu0 %v2963_v40, %s5202_s26  ;;  %v2299_v62 = vor.u32 %v2298_v45, %v2295_v44  ;;  %v2769_v44 = vrot.slane %v2767_v29, 4  ;;  %v2640_v45 = vld [vmem:[#allocation2 + $0x78] sm:$0xe] }
 0x198   : > { %v3022_v32 = vpop.permute.xlu1 %3021 }
 0x199   : > { %v3577_v63 = vpop.permute.xlu0 %3576  ;;  %3115 = vst.msk [vmem:[#allocation3 + $0xc] sm:$0xf] %vm3111_vm12, %v3022_v32  ;;  %v2078_v32 = vld [vmem:[#allocation2 + $0x74] sm:$0x1] }
 0x19a   : > { %3673 = vst.msk [vmem:[#allocation3] sm:$0xf] %vm3672_vm13, %v3577_v63  ;;  %3041 = vrot.lane.b32.xlu1 %v2964_v58, %s5202_s26  ;;  %v2308_v58 = vrot.slane %v2306_v36, 4  ;;  %v3856_v63 = vsel %vm5666_vm14, %v3854_v53, %v3855_v19  ;;  %v2639_v36 = vld [vmem:[#allocation2 + $0x74] sm:$0x1] }
 0x19b   : > { %3043 = vrot.lane.b32.xlu0 %v2965_v59, %s5202_s26  ;;  %v2319_v59 = vrot.slane %v2317_v38, 4 }
 0x19c   : > { %v3579_v10 = vpop.permute.xlu1 %3578  ;;  %v2309_v48 = vor.u32 %v2308_v58, %v2304_v57  ;;  %v2774_v58 = vrot.slane %v2641_v37, 5 }
 0x19d   : > { %v3581_v2 = vpop.permute.xlu0 %3580  ;;  %3674 = vst.msk [vmem:[#allocation3 + $0x4] sm:$0xf] %vm3672_vm13, %v3579_v10  ;;  %v2323_v5 = vor.u32 %v2322_v60, %v2319_v59 }
 0x19e   : > { %3675 = vst.msk [vmem:[#allocation3 + $0x8] sm:$0xf] %vm3672_vm13, %v3581_v2  ;;  %3045 = vrot.lane.b32.xlu1 %v2966_v3, %s5202_s26  ;;  %v2332_v3 = vrot.slane %v2330_v56, 4  ;;  %v2300_v2 = vrot.slane %v2299_v62, 4  ;;  %v2310_v15 = vrot.slane %v2309_v48, 4  ;;  %v4933_v62 = vrot.slane %v2640_v45, 9 }
 0x19f   : > { %3600 = vrot.lane.b32.xlu0 %v3349_v4, %s5204_s9  ;;  %v2312_v4 = vshll.u32 %v2078_v32, 16  ;;  %v372_v56 = vld [vmem:[#allocation2 + $0xc8] sm:$0x1]  ;;  %v2642_v32 = vld [vmem:[#allocation2 + $0x80] sm:$0x1] }
 0x1a0   : > { %v3583_v22 = vpop.permute.xlu1 %3582  ;;  %v2333_v12 = vor.u32 %v2332_v3, %v6192_v0  ;;  %v2305_v27 = vsel %vm5299_vm11, %v2300_v2, %v2304_v57  ;;  %v2770_v57 = vrot.slane %v2639_v36, 5  ;;  %v3169_v48 = vld [vmem:[#allocation2 + $0x7c] sm:$0xf]  ;;  %v2776_v2 = vrot.slane %v2774_v58, 4 }
 0x1a1   : > { %v3914_v24 = vpop.permute.xlu0 %3913  ;;  %3676 = vst.msk [vmem:[#allocation3 + $0xc] sm:$0xf] %vm3672_vm13, %v3583_v22  ;;  %v2314_v49 = vrot.slane %v2312_v4, 5  ;;  %v247_v22 = vld [vmem:[%s5269_s20 + $0xf8] sm:$0xff]  ;;  %v2777_v11 = vrot.slane %v2642_v32, 5  ;;  %v2775_v47 = vsel %vm5666_vm14, %v4933_v62, %v2774_v58 }
 0x1a2   : > { %4010 = vst.msk [vmem:[#allocation3] sm:$0xf] %vm4009_vm15, %v3914_v24  ;;  %3602 = vrot.lane.b32.xlu1 %v3359_v16, %s5204_s9  ;;  %v2324_v16 = vrot.slane %v2323_v5, 4  ;;  %v5056_v30 = vpack.c.bf16 %v247_v22, %v247_v22  ;;  %v2771_v9 = vsel %vm5666_vm14, %v2769_v44, %v2770_v57  ;;  %v2967_v22 = vld [vmem:[#allocation2 + $0x78] sm:$0xf] }
 0x1a3   : > { %3604 = vrot.lane.b32.xlu0 %v3373_v20, %s5204_s9  ;;  %v246_v20 = vld [vmem:[%s5269_s20 + $0xf0] sm:$0xff]  ;;  %v2315_v34 = vsel %vm5299_vm11, %v2310_v15, %v2314_v49  ;;  %v3172_v49 = vld [vmem:[#allocation2 + $0x88] sm:$0xf]  ;;  %v2778_v21 = vsel %vm5666_vm14, %v2776_v2, %v2777_v11  ;;  %v2969_v44 = vld [vmem:[#allocation2 + $0x84] sm:$0xf]  ;;  %s5024_s20 = sshll.u32 %s6770_s16, 7 }
 0x1a4   : > { %v3916_v40 = vpop.permute.xlu1 %3915  ;;  %v5055_v18 = vpack.c.bf16 %v246_v20, %v246_v20  ;;  %v721_v38 = vshrl.u32 %v5056_v30, 16  ;;  %v724_v55 = vshll.u32 %v5056_v30, 16  ;;  %v3170_v30 = vld [vmem:[#allocation2 + $0x80] sm:$0x1]  ;;  %v3729_v62 = vld [vmem:[#allocation2 + $0x78] sm:$0xe] }
 0x1a5   : > { %v3918_v43 = vpop.permute.xlu0 %3917  ;;  %4011 = vst.msk [vmem:[#allocation3 + $0x4] sm:$0xf] %vm4009_vm15, %v3916_v40  ;;  %v3404_v37 = vshll.u32 %v3170_v30, 16 }
 0x1a6   : > { %4012 = vst.msk [vmem:[#allocation3 + $0x8] sm:$0xf] %vm4009_vm15, %v3918_v43  ;;  %3606 = vrot.lane.b32.xlu1 %v3383_v31, %s5204_s9  ;;  %v2334_v31 = vrot.slane %v2333_v12, 4  ;;  %v713_v33 = vshrl.u32 %v5055_v18, 16  ;;  %v2329_v43 = vsel %vm5299_vm11, %v2324_v16, %v6192_v0  ;;  %v716_v53 = vshll.u32 %v5055_v18, 16 }
 0x1a7   : > { %3937 = vrot.lane.b32.xlu0 %v3846_v23, %s5205_s27  ;;  %v2338_v23 = vrot.slane %v2336_v13, 5  ;;  %v6218_v19 = vrot.slane %v721_v38, 7  ;;  %v3398_v12 = vshrl.u32 %v3169_v48, 16 }
 0x1a8   : > { %v3920_v42 = vpop.permute.xlu1 %3919 }
 0x1a9   : > { %v2493_v61 = vpop.permute.xlu0 %2492  ;;  %4013 = vst.msk [vmem:[#allocation3 + $0xc] sm:$0xf] %vm4009_vm15, %v3920_v42  ;;  %v2339_v42 = vsel %vm5299_vm11, %v2334_v31, %v2338_v23  ;;  %v726_v0 = vor.u32 %v724_v55, %v6218_v19 }
 0x1aa   : > { %2585 = vst.msk [vmem:[#allocation3 + $0x10] sm:$0xf] %vm2580_vm6, %v2493_v61  ;;  %3939 = vrot.lane.b32.xlu1 %v3849_v46, %s5205_s27  ;;  %v715_v46 = vrot.slane %v713_v33, 7  ;;  %v2768_v61 = vsel %vm5666_vm14, %v4932_v35, %v2767_v29  ;;  %v728_v33 = vrot.slane %v6218_v19, 4  ;;  %v2968_v35 = vld [vmem:[#allocation2 + $0x7c] sm:$0xf] }
 0x1ab   : > { %3941 = vrot.lane.b32.xlu0 %v3853_v54, %s5205_s27  ;;  %v3168_v54 = vld [vmem:[#allocation2 + $0x78] sm:$0xf]  ;;  %v2970_v19 = vld [vmem:[#allocation2 + $0x88] sm:$0xf] }
 0x1ac   : > { %v2495_v7 = vpop.permute.xlu1 %2494  ;;  %v5172_v8 = vld [vmem:[#allocation3] sm:$0xff]   ;;  %v718_v59 = vor.u32 %v716_v53, %v715_v46  ;;  %v719_v60 = vrot.slane %v715_v46, 4  ;;  %v3385_v4 = vshrl.u32 %v3168_v54, 16  ;;  %v3388_v5 = vshll.u32 %v3168_v54, 16  ;;  %v3173_v53 = vld [vmem:[#allocation2 + $0x8c] sm:$0x1] }
 0x1ad   : > { %v2497_v10 = vpop.permute.xlu0 %2496  ;;  %2586 = vst.msk [vmem:[#allocation3 + $0x14] sm:$0xf] %vm2580_vm6, %v2495_v7  ;;  %5114 = vmatprep.mubr.msk.bf16.mxu0 %vm4215_vm2, %v5172_v8  ;;  %v373_v7 = vsel %vm5260_vm7, 0, %v372_v56  ;;  %v3171_v8 = vld [vmem:[#allocation2 + $0x84] sm:$0xf]  ;;  %v3406_v56 = vrot.slane %v3404_v37, 5 }
 0x1ae   : > { %2587 = vst.msk [vmem:[#allocation3 + $0x18] sm:$0xf] %vm2580_vm6, %v2497_v10  ;;  %3943 = vrot.lane.b32.xlu1 %v3856_v63, %s5205_s27  ;;  %v884_v63 = vld [vmem:[#allocation2 + $0xc0] sm:$0xf]  ;;  %v727_v10 = vsel %vm5287_vm9, %v719_v60, %v726_v0  ;;  %374 = vst [vmem:[#allocation2 + $0xc8] sm:$0x1] %v373_v7 }
 0x1af   : > { %1959 = vrot.lane.b32.xlu0 %v1877_v50, %s5199_s23  ;;  %v885_v6 = vsel %vm5293_vm10, %v718_v59, %v884_v63  ;;  %887 = vst.msk [vmem:[#allocation2 + $0xc4] sm:$0xf] %vm264_vm0, %v727_v10  ;;  %v3387_v14 = vrot.slane %v3385_v4, 4  ;;  %v3390_v15 = vrot.slane %v3388_v5, 5  ;;  %v3409_v16 = vshrl.u32 %v3171_v8, 16 }
 0x1b0   : > { %v2499_v24 = vpop.permute.xlu1 %2498  ;;  %v5173_v25 = vld [vmem:[#allocation3 + $0x8] sm:$0xff]   ;;  %886 = vst [vmem:[#allocation2 + $0xc0] sm:$0xf] %v885_v6  ;;  %v3412_v20 = vshll.u32 %v3171_v8, 16  ;;  %v3428_v58 = vshll.u32 %v3173_v53, 16  ;;  %v4948_v7 = vrot.slane %v3729_v62, 9 }
 0x1b1   : > { %v2830_v26 = vpop.permute.xlu0 %2829  ;;  %2588 = vst.msk [vmem:[#allocation3 + $0x1c] sm:$0xf] %vm2580_vm6, %v2499_v24  ;;  %5115 = vmatmul.mubr.msk.bf16.vlgmr.msra.gmra.mxu0 %vm4215_vm2, %v5173_v25  ;;  %v3400_v25 = vrot.slane %v3398_v12, 4  ;;  %v3391_v18 = vor.u32 %v3390_v15, %v3387_v14  ;;  %v3411_v31 = vrot.slane %v3409_v16, 4  ;;  %v3730_v59 = vld [vmem:[#allocation2 + $0x7c] sm:$0xf] }
 0x1b2   : > { %2922 = vst.msk [vmem:[#allocation3 + $0x10] sm:$0xf] %vm2917_vm8, %v2830_v26  ;;  %1961 = vrot.lane.b32.xlu1 %v1878_v51, %s5199_s23  ;;  %v3394_v51 = vshll.u32 %v3169_v48, 16  ;;  %v3418_v26 = vshll.u32 %v3172_v49, 16  ;;  %v3414_v23 = vrot.slane %v3412_v20, 5  ;;  %v3859_v32 = vrot.slane %v3730_v59, 5 }
 0x1b3   : > { %2516 = vrot.lane.b32.xlu0 %v2305_v27, %s5200_s24  ;;  %v3422_v27 = vshrl.u32 %v3172_v49, 16  ;;  %v3392_v45 = vrot.slane %v3391_v18, 4  ;;  %v3733_v48 = vld [vmem:[#allocation2 + $0x88] sm:$0xf]  ;;  %v2082_v8 = vld [vmem:[#allocation2 + $0x84] sm:$0xf] }
 0x1b4   : > { %v2832_v39 = vpop.permute.xlu1 %2831  ;;  %v3396_v24 = vrot.slane %v3394_v51, 5  ;;  %v3420_v38 = vrot.slane %v3418_v26, 5  ;;  %v3415_v46 = vor.u32 %v3414_v23, %v3411_v31  ;;  %v3732_v10 = vld [vmem:[#allocation2 + $0x84] sm:$0xe]  ;;  %v3861_v2 = vrot.slane %v3859_v32, 4 }
 0x1b5   : > { %v2834_v40 = vpop.permute.xlu0 %2833  ;;  %2923 = vst.msk [vmem:[#allocation3 + $0x14] sm:$0xf] %vm2917_vm8, %v2832_v39  ;;  %v3424_v39 = vrot.slane %v3422_v27, 4  ;;  %v3734_v51 = vld [vmem:[#allocation2 + $0x8c] sm:$0x1]  ;;  %v3860_v49 = vsel %vm5666_vm14, %v4948_v7, %v3859_v32  ;;  %v4949_v16 = vrot.slane %v3732_v10, 9 }
 0x1b6   : > { %2924 = vst.msk [vmem:[#allocation3 + $0x18] sm:$0xf] %vm2917_vm8, %v2834_v40  ;;  %2518 = vrot.lane.b32.xlu1 %v2315_v34, %s5200_s24  ;;  %v888_v34 = vld [vmem:[#allocation2 + $0xc8] sm:$0x1]  ;;  %v3401_v36 = vor.u32 %v3400_v25, %v3396_v24  ;;  %v3397_v1 = vsel %vm5299_vm11, %v3392_v45, %v3396_v24  ;;  %v2085_v20 = vld [vmem:[#allocation2 + $0x90] sm:$0xf] }
 0x1b7   : > { %2520 = vrot.lane.b32.xlu0 %v2329_v43, %s5200_s24  ;;  %v889_v54 = vsel %vm5245_vm3, %v728_v33, %v888_v34  ;;  %v3425_v57 = vor.u32 %v3424_v39, %v3420_v38  ;;  %v2083_v12 = vld [vmem:[#allocation2 + $0x88] sm:$0xf]  ;;  %v3869_v24 = vrot.slane %v3734_v51, 5  ;;  %v2365_v18 = vshrl.u32 %v2085_v20, 16  ;;  %v2087_v32 = vld [vmem:[#allocation2 + $0x98] sm:$0x1] }
 0x1b8   : > { %v2836_v3 = vpop.permute.xlu1 %2835  ;;  %890 = vst [vmem:[#allocation2 + $0xc8] sm:$0x1] %v889_v54  ;;  %v3402_v55 = vrot.slane %v3401_v36, 4  ;;  %v2350_v25 = vshll.u32 %v2083_v12, 16  ;;  %v2368_v34 = vshll.u32 %v2085_v20, 16  ;;  %vm4429_vm3 = vcmask 31744  }
 0x1b9   : > { %v3024_v50 = vpop.permute.xlu0 %3023  ;;  %2925 = vst.msk [vmem:[#allocation3 + $0x1c] sm:$0xf] %vm2917_vm8, %v2836_v3  ;;  %v3426_v0 = vrot.slane %v3425_v57, 4  ;;  %v3430_v3 = vrot.slane %v3428_v58, 5  ;;  %v1879_v36 = vld [vmem:[#allocation2 + $0x84] sm:$0xf] }
 0x1ba   : > { %3116 = vst.msk [vmem:[#allocation3 + $0x10] sm:$0xf] %vm3111_vm12, %v3024_v50  ;;  %2522 = vrot.lane.b32.xlu1 %v2339_v42, %s5200_s24  ;;  %v3407_v63 = vsel %vm5299_vm11, %v3402_v55, %v3406_v56  ;;  %v3731_v50 = vld [vmem:[#allocation2 + $0x80] sm:$0x1]  ;;  %v2352_v37 = vrot.slane %v2350_v25, 5  ;;  %v2367_v54 = vrot.slane %v2365_v18, 4 }
 0x1bb   : > { %2853 = vrot.lane.b32.xlu0 %v2768_v61, %s5201_s25  ;;  %v3416_v61 = vrot.slane %v3415_v46, 4  ;;  %v3862_v11 = vrot.slane %v3731_v50, 5  ;;  %v1880_v55 = vld [vmem:[#allocation2 + $0x88] sm:$0xf]  ;;  %v2643_v10 = vld [vmem:[#allocation2 + $0x84] sm:$0xe] }
 0x1bc   : > { %v3026_v13 = vpop.permute.xlu1 %3025  ;;  %v2645_v51 = vld [vmem:[#allocation2 + $0x8c] sm:$0x1]  ;;  %v3175_v18 = vld [vmem:[#allocation2 + $0x94] sm:$0xf] }
 0x1bd   : > { %v3028_v41 = vpop.permute.xlu0 %3027  ;;  %3117 = vst.msk [vmem:[#allocation3 + $0x14] sm:$0xf] %vm3111_vm12, %v3026_v13  ;;  %v3421_v6 = vsel %vm5299_vm11, %v3416_v61, %v3420_v38  ;;  %v2341_v13 = vshrl.u32 %v2082_v8, 16  ;;  %v2084_v38 = vld [vmem:[#allocation2 + $0x8c] sm:$0x1] }
 0x1be   : > { %3118 = vst.msk [vmem:[#allocation3 + $0x18] sm:$0xf] %vm3111_vm12, %v3028_v41  ;;  %2855 = vrot.lane.b32.xlu1 %v2771_v9, %s5201_s25  ;;  %v3866_v9 = vrot.slane %v3733_v48, 5  ;;  %v2344_v41 = vshll.u32 %v2082_v8, 16  ;;  %v2360_v57 = vshll.u32 %v2084_v38, 16  ;;  %v2384_v48 = vshll.u32 %v2087_v32, 16 }
 0x1bf   : > { %2857 = vrot.lane.b32.xlu0 %v2775_v47, %s5201_s25  ;;  %v3431_v47 = vsel %vm5299_vm11, %v3426_v0, %v3430_v3  ;;  %v2343_v26 = vrot.slane %v2341_v13, 4  ;;  %v3446_v38 = vshrl.u32 %v3175_v18, 16 }
 0x1c0   : > { %v3030_v28 = vpop.permute.xlu1 %3029  ;;  %v2346_v27 = vrot.slane %v2344_v41, 5  ;;  %v3867_v33 = vsel %vm5666_vm14, %v4949_v16, %v3866_v9  ;;  %v2362_v3 = vrot.slane %v2360_v57, 5  ;;  %v3174_v16 = vld [vmem:[#allocation2 + $0x90] sm:$0xf] }
 0x1c1   : > { %v3585_v29 = vpop.permute.xlu0 %3584  ;;  %3119 = vst.msk [vmem:[#allocation3 + $0x1c] sm:$0xf] %vm3111_vm12, %v3030_v28  ;;  %v2354_v28 = vshrl.u32 %v2083_v12, 16  ;;  %v2647_v12 = vld [vmem:[#allocation2 + $0x94] sm:$0xf]  ;;  %v3448_v57 = vrot.slane %v3446_v38, 4 }
 0x1c2   : > { %3677 = vst.msk [vmem:[#allocation3 + $0x10] sm:$0xf] %vm3672_vm13, %v3585_v29  ;;  %2859 = vrot.lane.b32.xlu1 %v2778_v21, %s5201_s25  ;;  %v3863_v21 = vsel %vm5666_vm14, %v3861_v2, %v3862_v11  ;;  %v2086_v29 = vld [vmem:[#allocation2 + $0x94] sm:$0xf]  ;;  %v2347_v53 = vor.u32 %v2346_v27, %v2343_v26 }
 0x1c3   : > { %3047 = vrot.lane.b32.xlu0 %v2967_v22, %s5202_s26  ;;  %v3868_v22 = vrot.slane %v3866_v9, 4  ;;  %v2356_v39 = vrot.slane %v2354_v28, 4 }
 0x1c4   : > { %v3587_v40 = vpop.permute.xlu1 %3586  ;;  %v2348_v61 = vrot.slane %v2347_v53, 4 }
 0x1c5   : > { %v3589_v43 = vpop.permute.xlu0 %3588  ;;  %3678 = vst.msk [vmem:[#allocation3 + $0x14] sm:$0xf] %vm3672_vm13, %v3587_v40  ;;  %v2374_v40 = vshll.u32 %v2086_v29, 16  ;;  %v2357_v56 = vor.u32 %v2356_v39, %v2352_v37  ;;  %v3178_v39 = vld [vmem:[#allocation2 + $0xa0] sm:$0xf] }
 0x1c6   : > { %3679 = vst.msk [vmem:[#allocation3 + $0x18] sm:$0xf] %vm3672_vm13, %v3589_v43  ;;  %3049 = vrot.lane.b32.xlu1 %v2968_v35, %s5202_s26  ;;  %v3870_v35 = vsel %vm5666_vm14, %v3868_v22, %v3869_v24  ;;  %v2378_v43 = vshrl.u32 %v2086_v29, 16  ;;  %v2353_v7 = vsel %vm5299_vm11, %v2348_v61, %v2352_v37  ;;  %v2788_v22 = vrot.slane %v2647_v12, 5  ;;  %v2648_v29 = vld [vmem:[#allocation2 + $0x98] sm:$0x1] }
 0x1c7   : > { %3051 = vrot.lane.b32.xlu0 %v2969_v44, %s5202_s26  ;;  %v2376_v58 = vrot.slane %v2374_v40, 5  ;;  %v2358_v0 = vrot.slane %v2357_v56, 4  ;;  %v3442_v37 = vshll.u32 %v3175_v18, 16 }
 0x1c8   : > { %v3591_v60 = vpop.permute.xlu1 %3590  ;;  %v2380_v59 = vrot.slane %v2378_v43, 4 }
 0x1c9   : > { %v3922_v42 = vpop.permute.xlu0 %3921  ;;  %3680 = vst.msk [vmem:[#allocation3 + $0x1c] sm:$0xf] %vm3672_vm13, %v3591_v60  ;;  %v2363_v11 = vsel %vm5299_vm11, %v2358_v0, %v2362_v3  ;;  %v3444_v56 = vrot.slane %v3442_v37, 5  ;;  %v2972_v0 = vld [vmem:[#allocation2 + $0x94] sm:$0xf] }
 0x1ca   : > { %4014 = vst.msk [vmem:[#allocation3 + $0x10] sm:$0xf] %vm4009_vm15, %v3922_v42  ;;  %3053 = vrot.lane.b32.xlu1 %v2970_v19, %s5202_s26  ;;  %v2370_v19 = vrot.slane %v2368_v34, 5  ;;  %v2381_v50 = vor.u32 %v2380_v59, %v2376_v58  ;;  %v2790_v34 = vrot.slane %v2788_v22, 4  ;;  %v2089_v37 = vld [vmem:[#allocation2 + $0xa0] sm:$0xf] }
 0x1cb   : > { %3608 = vrot.lane.b32.xlu0 %v3397_v1, %s5204_s9  ;;  %v1881_v1 = vld [vmem:[#allocation2 + $0x90] sm:$0xf]  ;;  %v3449_v3 = vor.u32 %v3448_v57, %v3444_v56  ;;  %v2402_v57 = vshrl.u32 %v2089_v37, 16 }
 0x1cc   : > { %v3924_v4 = vpop.permute.xlu1 %3923  ;;  %v2371_v62 = vor.u32 %v2370_v19, %v2367_v54  ;;  %v2382_v9 = vrot.slane %v2381_v50, 4  ;;  %v3466_v54 = vshll.u32 %v3178_v39, 16  ;;  %v3470_v19 = vshrl.u32 %v3178_v39, 16 }
 0x1cd   : > { %v3926_v5 = vpop.permute.xlu0 %3925  ;;  %4015 = vst.msk [vmem:[#allocation3 + $0x14] sm:$0xf] %vm4009_vm15, %v3924_v4  ;;  %v2644_v4 = vld [vmem:[#allocation2 + $0x88] sm:$0xf] }
 0x1ce   : > { %4016 = vst.msk [vmem:[#allocation3 + $0x18] sm:$0xf] %vm4009_vm15, %v3926_v5  ;;  %3610 = vrot.lane.b32.xlu1 %v3407_v63, %s5204_s9  ;;  %v1882_v63 = vld [vmem:[#allocation2 + $0x94] sm:$0xf]  ;;  %v2372_v8 = vrot.slane %v2371_v62, 4  ;;  %v2781_v2 = vrot.slane %v2644_v4, 5 }
 0x1cf   : > { %3612 = vrot.lane.b32.xlu0 %v3421_v6, %s5204_s9  ;;  %v3468_v32 = vrot.slane %v3466_v54, 5 }
 0x1d0   : > { %v3928_v14 = vpop.permute.xlu1 %3927  ;;  %v2783_v20 = vrot.slane %v2781_v2, 4 }
 0x1d1   : > { %v2501_v15 = vpop.permute.xlu0 %2500  ;;  %4017 = vst.msk [vmem:[#allocation3 + $0x1c] sm:$0xf] %vm4009_vm15, %v3928_v14  ;;  %v2377_v14 = vsel %vm5299_vm11, %v2372_v8, %v2376_v58 }
 0x1d2   : > { %2589 = vst.msk [vmem:[#allocation3 + $0x20] sm:$0xf] %vm2580_vm6, %v2501_v15  ;;  %3614 = vrot.lane.b32.xlu1 %v3431_v47, %s5204_s9  ;;  %v2386_v47 = vrot.slane %v2384_v48, 5  ;;  %v4934_v15 = vrot.slane %v2643_v10, 9  ;;  %v3179_v48 = vld [vmem:[#allocation2 + $0xa4] sm:$0x1] }
 0x1d3   : > { %3945 = vrot.lane.b32.xlu0 %v3860_v49, %s5205_s27  ;;  %v2646_v49 = vld [vmem:[#allocation2 + $0x90] sm:$0xe] }
 0x1d4   : > { %v2503_v30 = vpop.permute.xlu1 %2502  ;;  %v5174_v31 = vld [vmem:[#allocation3 + $0x10] sm:$0xff]   ;;  %v2387_v24 = vsel %vm5299_vm11, %v2382_v9, %v2386_v47  ;;  %v4935_v25 = vrot.slane %v2646_v49, 9  ;;  %v2782_v28 = vsel %vm5666_vm14, %v4934_v15, %v2781_v2  ;;  %v3476_v2 = vshll.u32 %v3179_v48, 16  ;;  %v3735_v15 = vld [vmem:[#allocation2 + $0x90] sm:$0xe] }
 0x1d5   : > { %v2505_v23 = vpop.permute.xlu0 %2504  ;;  %2590 = vst.msk [vmem:[#allocation3 + $0x24] sm:$0xf] %vm2580_vm6, %v2503_v30  ;;  %5118 = vmatprep.mubr.msk.bf16.mxu0 %vm4215_vm2, %v5174_v31  ;;  %v3433_v30 = vshrl.u32 %v3174_v16, 16  ;;  %v3436_v31 = vshll.u32 %v3174_v16, 16  ;;  %v3450_v9 = vrot.slane %v3449_v3, 4  ;;  %v4950_v18 = vrot.slane %v3735_v15, 9 }
 0x1d6   : > { %2591 = vst.msk [vmem:[#allocation3 + $0x28] sm:$0xf] %vm2580_vm6, %v2505_v23  ;;  %3947 = vrot.lane.b32.xlu1 %v3863_v21, %s5205_s27  ;;  %v2784_v21 = vrot.slane %v2645_v51, 5  ;;  %v3177_v23 = vld [vmem:[#allocation2 + $0x9c] sm:$0xf]  ;;  %v3478_v16 = vrot.slane %v3476_v2, 5 }
 0x1d7   : > { %3949 = vrot.lane.b32.xlu0 %v3867_v33, %s5205_s27  ;;  %v3460_v53 = vshll.u32 %v3177_v23, 16  ;;  %v3736_v51 = vld [vmem:[#allocation2 + $0x94] sm:$0xf]  ;;  %v1884_v2 = vld [vmem:[#allocation2 + $0xa0] sm:$0xf] }
 0x1d8   : > { %v2507_v44 = vpop.permute.xlu1 %2506  ;;  %v5175_v45 = vld [vmem:[#allocation3 + $0x18] sm:$0xff]   ;;  %v2785_v33 = vsel %vm5666_vm14, %v2783_v20, %v2784_v21  ;;  %v3873_v20 = vrot.slane %v3736_v51, 5 }
 0x1d9   : > { %v2838_v46 = vpop.permute.xlu0 %2837  ;;  %2592 = vst.msk [vmem:[#allocation3 + $0x2c] sm:$0xf] %vm2580_vm6, %v2507_v44  ;;  %5119 = vmatmul.mubr.msk.bf16.gmra.mxu0 %vm4215_vm2, %v5175_v45  ;;  %v3435_v44 = vrot.slane %v3433_v30, 4  ;;  %v3438_v45 = vrot.slane %v3436_v31, 5  ;;  %v3462_v62 = vrot.slane %v3460_v53, 5 }
 0x1da   : > { %2926 = vst.msk [vmem:[#allocation3 + $0x20] sm:$0xf] %vm2917_vm8, %v2838_v46  ;;  %3951 = vrot.lane.b32.xlu1 %v3870_v35, %s5205_s27  ;;  %v2789_v35 = vsel %vm5666_vm14, %v4935_v25, %v2788_v22  ;;  %v3457_v46 = vshrl.u32 %v3177_v23, 16  ;;  %v3737_v22 = vld [vmem:[#allocation2 + $0x98] sm:$0x1]  ;;  %v3875_v31 = vrot.slane %v3873_v20, 4 }
 0x1db   : > { %1963 = vrot.lane.b32.xlu0 %v1879_v36, %s5199_s23  ;;  %v2791_v36 = vrot.slane %v2648_v29, 5  ;;  %v3739_v25 = vld [vmem:[#allocation2 + $0xa0] sm:$0xf]  ;;  %v2088_v30 = vld [vmem:[#allocation2 + $0x9c] sm:$0xf] }
 0x1dc   : > { %v2840_v60 = vpop.permute.xlu1 %2839  ;;  %v3459_v61 = vrot.slane %v3457_v46, 4  ;;  %v3880_v23 = vrot.slane %v3739_v25, 5  ;;  %v2091_v46 = vld [vmem:[#allocation2 + $0xa8] sm:$0xf] }
 0x1dd   : > { %v2842_v42 = vpop.permute.xlu0 %2841  ;;  %2927 = vst.msk [vmem:[#allocation3 + $0x24] sm:$0xf] %vm2917_vm8, %v2840_v60  ;;  %v2971_v60 = vld [vmem:[#allocation2 + $0x90] sm:$0xf] }
 0x1de   : > { %2928 = vst.msk [vmem:[#allocation3 + $0x28] sm:$0xf] %vm2917_vm8, %v2842_v42  ;;  %1965 = vrot.lane.b32.xlu1 %v1880_v55, %s5199_s23  ;;  %v2792_v55 = vsel %vm5666_vm14, %v2790_v34, %v2791_v36  ;;  %v3439_v42 = vor.u32 %v3438_v45, %v3435_v44  ;;  %v3463_v8 = vor.u32 %v3462_v62, %v3459_v61  ;;  %v3876_v34 = vrot.slane %v3737_v22, 5  ;;  %v3740_v36 = vld [vmem:[#allocation2 + $0xa4] sm:$0x1] }
 0x1df   : > { %1967 = vrot.lane.b32.xlu0 %v1881_v1, %s5199_s23  ;;  %v3176_v1 = vld [vmem:[#allocation2 + $0x98] sm:$0x1]  ;;  %v2389_v44 = vshrl.u32 %v2088_v30, 16  ;;  %v2392_v45 = vshll.u32 %v2088_v30, 16  ;;  %v3882_v53 = vrot.slane %v3880_v23, 4  ;;  %v3883_v54 = vrot.slane %v3740_v36, 5 }
 0x1e0   : > { %v2844_v5 = vpop.permute.xlu1 %2843  ;;  %v3452_v50 = vshll.u32 %v3176_v1, 16  ;;  %v2092_v1 = vld [vmem:[#allocation2 + $0xac] sm:$0xf]  ;;  %v2413_v61 = vshrl.u32 %v2091_v46, 16  ;;  %v2416_v62 = vshll.u32 %v2091_v46, 16 }
 0x1e1   : > { %v3032_v6 = vpop.permute.xlu0 %3031  ;;  %2929 = vst.msk [vmem:[#allocation3 + $0x2c] sm:$0xf] %vm2917_vm8, %v2844_v5  ;;  %v2422_v3 = vshll.u32 %v2092_v1, 16 }
 0x1e2   : > { %3120 = vst.msk [vmem:[#allocation3 + $0x20] sm:$0xf] %vm3111_vm12, %v3032_v6  ;;  %1969 = vrot.lane.b32.xlu1 %v1882_v63, %s5199_s23  ;;  %v3472_v63 = vrot.slane %v3470_v19, 4  ;;  %v2973_v6 = vld [vmem:[#allocation2 + $0x9c] sm:$0xf]  ;;  %v3454_v47 = vrot.slane %v3452_v50, 5  ;;  %v3877_v19 = vsel %vm5666_vm14, %v3875_v31, %v3876_v34 }
 0x1e3   : > { %2524 = vrot.lane.b32.xlu0 %v2353_v7, %s5200_s24  ;;  %v3440_v7 = vrot.slane %v3439_v42, 4  ;;  %v2394_v42 = vrot.slane %v2392_v45, 5  ;;  %v2426_v50 = vshrl.u32 %v2092_v1, 16  ;;  %v2653_v34 = vld [vmem:[#allocation2 + $0xac] sm:$0xf] }
 0x1e4   : > { %v3034_v13 = vpop.permute.xlu1 %3033  ;;  %v3473_v10 = vor.u32 %v3472_v63, %v3468_v32  ;;  %v3455_v21 = vsel %vm5299_vm11, %v3450_v9, %v3454_v47  ;;  %v2424_v47 = vrot.slane %v2422_v3, 5 }
 0x1e5   : > { %v3036_v41 = vpop.permute.xlu0 %3035  ;;  %3121 = vst.msk [vmem:[#allocation3 + $0x24] sm:$0xf] %vm3111_vm12, %v3034_v13  ;;  %v2428_v51 = vrot.slane %v2426_v50, 4 }
 0x1e6   : > { %3122 = vst.msk [vmem:[#allocation3 + $0x28] sm:$0xf] %vm3111_vm12, %v3036_v41  ;;  %2526 = vrot.lane.b32.xlu1 %v2363_v11, %s5200_s24  ;;  %v2974_v11 = vld [vmem:[#allocation2 + $0xa0] sm:$0xf]  ;;  %v3445_v41 = vsel %vm5299_vm11, %v3440_v7, %v3444_v56  ;;  %v3474_v49 = vrot.slane %v3473_v10, 4  ;;  %v2398_v56 = vshll.u32 %v2089_v37, 16 }
 0x1e7   : > { %2528 = vrot.lane.b32.xlu0 %v2377_v14, %s5200_s24  ;;  %v3464_v14 = vrot.slane %v3463_v8, 4  ;;  %v2090_v7 = vld [vmem:[#allocation2 + $0xa4] sm:$0x1]  ;;  %v2415_v8 = vrot.slane %v2413_v61, 4  ;;  %v2418_v10 = vrot.slane %v2416_v62, 5  ;;  %v2429_v22 = vor.u32 %v2428_v51, %v2424_v47 }
 0x1e8   : > { %v3038_v26 = vpop.permute.xlu1 %3037  ;;  %v2400_v63 = vrot.slane %v2398_v56, 5  ;;  %v2408_v9 = vshll.u32 %v2090_v7, 16 }
 0x1e9   : > { %v3593_v27 = vpop.permute.xlu0 %3592  ;;  %3123 = vst.msk [vmem:[#allocation3 + $0x2c] sm:$0xf] %vm3111_vm12, %v3038_v26  ;;  %v3469_v29 = vsel %vm5299_vm11, %v3464_v14, %v3468_v32  ;;  %v3884_v32 = vsel %vm5666_vm14, %v3882_v53, %v3883_v54  ;;  %v2419_v15 = vor.u32 %v2418_v10, %v2415_v8  ;;  %v2430_v31 = vrot.slane %v2429_v22, 4  ;;  %v2975_v10 = vld [vmem:[#allocation2 + $0xa8] sm:$0xf] }
 0x1ea   : > { %3681 = vst.msk [vmem:[#allocation3 + $0x20] sm:$0xf] %vm3672_vm13, %v3593_v27  ;;  %2530 = vrot.lane.b32.xlu1 %v2387_v24, %s5200_s24  ;;  %v3738_v24 = vld [vmem:[#allocation2 + $0x9c] sm:$0xe] }
 0x1eb   : > { %2861 = vrot.lane.b32.xlu0 %v2782_v28, %s5201_s25 }
 0x1ec   : > { %v3595_v40 = vpop.permute.xlu1 %3594 }
 0x1ed   : > { %v3597_v43 = vpop.permute.xlu0 %3596  ;;  %3682 = vst.msk [vmem:[#allocation3 + $0x24] sm:$0xf] %vm3672_vm13, %v3595_v40 }
 0x1ee   : > { %3683 = vst.msk [vmem:[#allocation3 + $0x28] sm:$0xf] %vm3672_vm13, %v3597_v43  ;;  %2863 = vrot.lane.b32.xlu1 %v2785_v33, %s5201_s25  ;;  %v3479_v33 = vsel %vm5299_vm11, %v3474_v49, %v3478_v16  ;;  %v3874_v43 = vsel %vm5666_vm14, %v4950_v18, %v3873_v20  ;;  %v2093_v49 = vld [vmem:[#allocation2 + $0xb0] sm:$0x1]  ;;  %v1886_v16 = vld [vmem:[#allocation2 + $0xac] sm:$0xf] }
 0x1ef   : > { %2865 = vrot.lane.b32.xlu0 %v2789_v35, %s5201_s25  ;;  %v4951_v35 = vrot.slane %v3738_v24, 9  ;;  %v2432_v24 = vshll.u32 %v2093_v49, 16  ;;  %v2649_v18 = vld [vmem:[#allocation2 + $0x9c] sm:$0xe]  ;;  %v2976_v49 = vld [vmem:[#allocation2 + $0xac] sm:$0xf] }
 0x1f0   : > { %v3599_v58 = vpop.permute.xlu1 %3598 }
 0x1f1   : > { %v3930_v59 = vpop.permute.xlu0 %3929  ;;  %3684 = vst.msk [vmem:[#allocation3 + $0x2c] sm:$0xf] %vm3672_vm13, %v3599_v58 }
 0x1f2   : > { %4018 = vst.msk [vmem:[#allocation3 + $0x20] sm:$0xf] %vm4009_vm15, %v3930_v59  ;;  %2867 = vrot.lane.b32.xlu1 %v2792_v55, %s5201_s25  ;;  %v3881_v55 = vsel %vm5666_vm14, %v4951_v35, %v3880_v23  ;;  %v2434_v23 = vrot.slane %v2432_v24, 5  ;;  %v3185_v24 = vld [vmem:[#allocation2 + $0xbc] sm:$0x1] }
 0x1f3   : > { %3055 = vrot.lane.b32.xlu0 %v2971_v60, %s5202_s26  ;;  %v2391_v60 = vrot.slane %v2389_v44, 4  ;;  %v2802_v44 = vrot.slane %v2653_v34, 5  ;;  %v3524_v34 = vshll.u32 %v3185_v24, 16 }
 0x1f4   : > { %v3932_v4 = vpop.permute.xlu1 %3931  ;;  %v2435_v45 = vsel %vm5299_vm11, %v2430_v31, %v2434_v23 }
 0x1f5   : > { %v3934_v5 = vpop.permute.xlu0 %3933  ;;  %4019 = vst.msk [vmem:[#allocation3 + $0x24] sm:$0xf] %vm4009_vm15, %v3932_v4  ;;  %v2804_v1 = vrot.slane %v2802_v44, 4 }
 0x1f6   : > { %4020 = vst.msk [vmem:[#allocation3 + $0x28] sm:$0xf] %vm4009_vm15, %v3934_v5  ;;  %3057 = vrot.lane.b32.xlu1 %v2972_v0, %s5202_s26  ;;  %v2404_v0 = vrot.slane %v2402_v57, 4  ;;  %v1883_v5 = vld [vmem:[#allocation2 + $0x9c] sm:$0xf] }
 0x1f7   : > { %3059 = vrot.lane.b32.xlu0 %v2973_v6, %s5202_s26  ;;  %v2395_v6 = vor.u32 %v2394_v42, %v2391_v60  ;;  %v3183_v42 = vld [vmem:[#allocation2 + $0xb4] sm:$0xf] }
 0x1f8   : > { %v3936_v12 = vpop.permute.xlu1 %3935  ;;  %v3508_v7 = vshll.u32 %v3183_v42, 16 }
 0x1f9   : > { %v2509_v13 = vpop.permute.xlu0 %2508  ;;  %4021 = vst.msk [vmem:[#allocation3 + $0x2c] sm:$0xf] %vm4009_vm15, %v3936_v12  ;;  %v2396_v14 = vrot.slane %v2395_v6, 4  ;;  %v3505_v6 = vshrl.u32 %v3183_v42, 16 }
 0x1fa   : > { %2593 = vst.msk [vmem:[#allocation3 + $0x30] sm:$0xf] %vm2580_vm6, %v2509_v13  ;;  %3061 = vrot.lane.b32.xlu1 %v2974_v11, %s5202_s26  ;;  %v2405_v11 = vor.u32 %v2404_v0, %v2400_v63 }
 0x1fb   : > { %3616 = vrot.lane.b32.xlu0 %v3445_v41, %s5204_s9  ;;  %v1885_v41 = vld [vmem:[#allocation2 + $0xa8] sm:$0xf] }
 0x1fc   : > { %v2511_v26 = vpop.permute.xlu1 %2510  ;;  %v5176_v27 = vld [vmem:[#allocation3 + $0x20] sm:$0xff]   ;;  %v2406_v20 = vrot.slane %v2405_v11, 4 }
 0x1fd   : > { %v2513_v28 = vpop.permute.xlu0 %2512  ;;  %2594 = vst.msk [vmem:[#allocation3 + $0x34] sm:$0xf] %vm2580_vm6, %v2511_v26  ;;  %5122 = vmatprep.mubr.msk.bf16.mxu0 %vm4215_vm2, %v5176_v27  ;;  %v2401_v27 = vsel %vm5299_vm11, %v2396_v14, %v2400_v63  ;;  %v3510_v14 = vrot.slane %v3508_v7, 5 }
 0x1fe   : > { %2595 = vst.msk [vmem:[#allocation3 + $0x38] sm:$0xf] %vm2580_vm6, %v2513_v28  ;;  %3618 = vrot.lane.b32.xlu1 %v3455_v21, %s5204_s9  ;;  %v2410_v21 = vrot.slane %v2408_v9, 5  ;;  %v2420_v28 = vrot.slane %v2419_v15, 4 }
 0x1ff   : > { %3620 = vrot.lane.b32.xlu0 %v3469_v29, %s5204_s9  ;;  %v2650_v29 = vld [vmem:[#allocation2 + $0xa0] sm:$0xf] }
 0x200   : > { %v2515_v38 = vpop.permute.xlu1 %2514  ;;  %v5177_v39 = vld [vmem:[#allocation3 + $0x28] sm:$0xff]   ;;  %v2411_v30 = vsel %vm5299_vm11, %v2406_v20, %v2410_v21  ;;  %v2425_v37 = vsel %vm5299_vm11, %v2420_v28, %v2424_v47 }
 0x201   : > { %v2846_v40 = vpop.permute.xlu0 %2845  ;;  %2596 = vst.msk [vmem:[#allocation3 + $0x3c] sm:$0xf] %vm2580_vm6, %v2515_v38  ;;  %5123 = vmatmul.mubr.msk.bf16.gmra.mxu0 %vm4215_vm2, %v5177_v39  ;;  %v4936_v38 = vrot.slane %v2649_v18, 9  ;;  %v2651_v39 = vld [vmem:[#allocation2 + $0xa4] sm:$0x1] }
 0x202   : > { %2930 = vst.msk [vmem:[#allocation3 + $0x30] sm:$0xf] %vm2917_vm8, %v2846_v40  ;;  %3622 = vrot.lane.b32.xlu1 %v3479_v33, %s5204_s9  ;;  %v2795_v33 = vrot.slane %v2650_v29, 5  ;;  %v2652_v40 = vld [vmem:[#allocation2 + $0xa8] sm:$0xe]  ;;  %v2798_v53 = vrot.slane %v2651_v39, 5 }
 0x203   : > { %3953 = vrot.lane.b32.xlu0 %v3874_v43, %s5205_s27  ;;  %v3180_v43 = vld [vmem:[#allocation2 + $0xa8] sm:$0xf]  ;;  %v4937_v54 = vrot.slane %v2652_v40, 9  ;;  %v3742_v39 = vld [vmem:[#allocation2 + $0xac] sm:$0xf] }
 0x204   : > { %v2848_v58 = vpop.permute.xlu1 %2847  ;;  %v2797_v46 = vrot.slane %v2795_v33, 4  ;;  %v2796_v57 = vsel %vm5666_vm14, %v4936_v38, %v2795_v33  ;;  %v3484_v60 = vshll.u32 %v3180_v43, 16 }
 0x205   : > { %v2850_v59 = vpop.permute.xlu0 %2849  ;;  %2931 = vst.msk [vmem:[#allocation3 + $0x34] sm:$0xf] %vm2917_vm8, %v2848_v58  ;;  %v3181_v58 = vld [vmem:[#allocation2 + $0xac] sm:$0xf] }
 0x206   : > { %2932 = vst.msk [vmem:[#allocation3 + $0x38] sm:$0xf] %vm2917_vm8, %v2850_v59  ;;  %3955 = vrot.lane.b32.xlu1 %v3877_v19, %s5205_s27  ;;  %v2654_v19 = vld [vmem:[#allocation2 + $0xb0] sm:$0x1]  ;;  %v3481_v59 = vshrl.u32 %v3180_v43, 16  ;;  %v2799_v62 = vsel %vm5666_vm14, %v2797_v46, %v2798_v53  ;;  %v3490_v63 = vshll.u32 %v3181_v58, 16 }
 0x207   : > { %3957 = vrot.lane.b32.xlu0 %v3881_v55, %s5205_s27  ;;  %v2805_v61 = vrot.slane %v2654_v19, 5  ;;  %v3494_v0 = vshrl.u32 %v3181_v58, 16  ;;  %v3741_v43 = vld [vmem:[#allocation2 + $0xa8] sm:$0xe]  ;;  %v3526_v46 = vrot.slane %v3524_v34, 5  ;;  %v3887_v53 = vrot.slane %v3742_v39, 5 }
 0x208   : > { %v2852_v48 = vpop.permute.xlu1 %2851  ;;  %v3744_v58 = vld [vmem:[#allocation2 + $0xb4] sm:$0xe]  ;;  %v2099_v39 = vld [vmem:[#allocation2 + $0xc8] sm:$0x1] }
 0x209   : > { %v3040_v4 = vpop.permute.xlu0 %3039  ;;  %2933 = vst.msk [vmem:[#allocation3 + $0x3c] sm:$0xf] %vm2917_vm8, %v2852_v48  ;;  %v3483_v48 = vrot.slane %v3481_v59, 4  ;;  %v2806_v8 = vsel %vm5666_vm14, %v2804_v1, %v2805_v61  ;;  %v3496_v11 = vrot.slane %v3494_v0, 4  ;;  %v3889_v61 = vrot.slane %v3887_v53, 4 }
 0x20a   : > { %3124 = vst.msk [vmem:[#allocation3 + $0x30] sm:$0xf] %vm3111_vm12, %v3040_v4  ;;  %3959 = vrot.lane.b32.xlu1 %v3884_v32, %s5205_s27  ;;  %v2803_v32 = vsel %vm5666_vm14, %v4937_v54, %v2802_v44  ;;  %v3486_v4 = vrot.slane %v3484_v60, 5  ;;  %v3745_v54 = vld [vmem:[#allocation2 + $0xb8] sm:$0xf] }
 0x20b   : > { %1971 = vrot.lane.b32.xlu0 %v1883_v5, %s5199_s23  ;;  %v3184_v5 = vld [vmem:[#allocation2 + $0xb8] sm:$0xf]  ;;  %v2094_v60 = vld [vmem:[#allocation2 + $0xb4] sm:$0xf]  ;;  %v3894_v42 = vrot.slane %v3745_v54, 5 }
 0x20c   : > { %v3042_v12 = vpop.permute.xlu1 %3041  ;;  %v3514_v9 = vshll.u32 %v3184_v5, 16  ;;  %v3518_v47 = vshrl.u32 %v3184_v5, 16 }
 0x20d   : > { %v3044_v13 = vpop.permute.xlu0 %3043  ;;  %3125 = vst.msk [vmem:[#allocation3 + $0x34] sm:$0xf] %vm3111_vm12, %v3042_v12  ;;  %v3487_v12 = vor.u32 %v3486_v4, %v3483_v48  ;;  %v2437_v48 = vshrl.u32 %v2094_v60, 16  ;;  %v2440_v4 = vshll.u32 %v2094_v60, 16  ;;  %v3896_v7 = vrot.slane %v3894_v42, 4 }
 0x20e   : > { %3126 = vst.msk [vmem:[#allocation3 + $0x38] sm:$0xf] %vm3111_vm12, %v3044_v13  ;;  %1973 = vrot.lane.b32.xlu1 %v1884_v2, %s5199_s23  ;;  %v3492_v2 = vrot.slane %v3490_v63, 5  ;;  %v3182_v13 = vld [vmem:[#allocation2 + $0xb0] sm:$0x1]  ;;  %v3516_v22 = vrot.slane %v3514_v9, 5 }
 0x20f   : > { %1975 = vrot.lane.b32.xlu0 %v1885_v41, %s5199_s23  ;;  %v3507_v41 = vrot.slane %v3505_v6, 4  ;;  %v3500_v21 = vshll.u32 %v3182_v13, 16  ;;  %v3488_v28 = vrot.slane %v3487_v12, 4  ;;  %v3746_v63 = vld [vmem:[#allocation2 + $0xbc] sm:$0x1]  ;;  %v2442_v12 = vrot.slane %v2440_v4, 5 }
 0x210   : > { %v3046_v25 = vpop.permute.xlu1 %3045  ;;  %v3497_v20 = vor.u32 %v3496_v11, %v3492_v2  ;;  %v2097_v6 = vld [vmem:[#allocation2 + $0xc0] sm:$0xf]  ;;  %v2098_v13 = vld [vmem:[#allocation2 + $0xc4] sm:$0xf] }
 0x211   : > { %v3601_v26 = vpop.permute.xlu0 %3600  ;;  %3127 = vst.msk [vmem:[#allocation3 + $0x3c] sm:$0xf] %vm3111_vm12, %v3046_v25  ;;  %v3520_v25 = vrot.slane %v3518_v47, 4  ;;  %v3511_v29 = vor.u32 %v3510_v14, %v3507_v41  ;;  %v3502_v23 = vrot.slane %v3500_v21, 5  ;;  %v2461_v41 = vshrl.u32 %v2097_v6, 16 }
 0x212   : > { %3685 = vst.msk [vmem:[#allocation3 + $0x30] sm:$0xf] %vm3672_vm13, %v3601_v26  ;;  %1977 = vrot.lane.b32.xlu1 %v1886_v16, %s5199_s23  ;;  %v2977_v16 = vld [vmem:[#allocation2 + $0xb4] sm:$0xf]  ;;  %v3498_v31 = vrot.slane %v3497_v20, 4  ;;  %v2464_v14 = vshll.u32 %v2097_v6, 16 }
 0x213   : > { %2532 = vrot.lane.b32.xlu0 %v2401_v27, %s5200_s24  ;;  %v3521_v33 = vor.u32 %v3520_v25, %v3516_v22  ;;  %v3512_v38 = vrot.slane %v3511_v29, 4  ;;  %v2470_v21 = vshll.u32 %v2098_v13, 16  ;;  %v1887_v25 = vld [vmem:[#allocation2 + $0xb4] sm:$0xf] }
 0x214   : > { %v3603_v35 = vpop.permute.xlu1 %3602  ;;  %v3503_v44 = vsel %vm5299_vm11, %v3498_v31, %v3502_v23  ;;  %v2466_v29 = vrot.slane %v2464_v14, 5 }
 0x215   : > { %v3605_v36 = vpop.permute.xlu0 %3604  ;;  %3686 = vst.msk [vmem:[#allocation3 + $0x34] sm:$0xf] %vm3672_vm13, %v3603_v35 }
 0x216   : > { %3687 = vst.msk [vmem:[#allocation3 + $0x38] sm:$0xf] %vm3672_vm13, %v3605_v36  ;;  %2534 = vrot.lane.b32.xlu1 %v2411_v30, %s5200_s24  ;;  %v2978_v30 = vld [vmem:[#allocation2 + $0xb8] sm:$0xf] }
 0x217   : > { %2536 = vrot.lane.b32.xlu0 %v2425_v37, %s5200_s24  ;;  %v3493_v37 = vsel %vm5299_vm11, %v3488_v28, %v3492_v2  ;;  %v2463_v28 = vrot.slane %v2461_v41, 4 }
 0x218   : > { %v3607_v55 = vpop.permute.xlu1 %3606 }
 0x219   : > { %v3938_v56 = vpop.permute.xlu0 %3937  ;;  %3688 = vst.msk [vmem:[#allocation3 + $0x3c] sm:$0xf] %vm3672_vm13, %v3607_v55  ;;  %v3517_v55 = vsel %vm5299_vm11, %v3512_v38, %v3516_v22  ;;  %v2474_v22 = vshrl.u32 %v2098_v13, 16  ;;  %v2467_v38 = vor.u32 %v2466_v29, %v2463_v28  ;;  %v3189_v13 = vld [vmem:[#allocation2 + $0xcc] sm:$0xf] }
 0x21a   : > { %4022 = vst.msk [vmem:[#allocation3 + $0x30] sm:$0xf] %vm4009_vm15, %v3938_v56  ;;  %2538 = vrot.lane.b32.xlu1 %v2435_v45, %s5200_s24  ;;  %v3522_v45 = vrot.slane %v3521_v33, 4  ;;  %v4952_v56 = vrot.slane %v3741_v43, 9  ;;  %v2472_v33 = vrot.slane %v2470_v21, 5 }
 0x21b   : > { %2869 = vrot.lane.b32.xlu0 %v2796_v57, %s5201_s25  ;;  %v3743_v57 = vld [vmem:[#allocation2 + $0xb0] sm:$0x1]  ;;  %v2476_v34 = vrot.slane %v2474_v22, 4  ;;  %v1890_v43 = vld [vmem:[#allocation2 + $0xc4] sm:$0xf] }
 0x21c   : > { %v3940_v3 = vpop.permute.xlu1 %3939  ;;  %v3527_v1 = vsel %vm5299_vm11, %v3522_v45, %v3526_v46 }
 0x21d   : > { %v3942_v50 = vpop.permute.xlu0 %3941  ;;  %4023 = vst.msk [vmem:[#allocation3 + $0x34] sm:$0xf] %vm4009_vm15, %v3940_v3  ;;  %v3888_v3 = vsel %vm5666_vm14, %v4952_v56, %v3887_v53  ;;  %v2477_v46 = vor.u32 %v2476_v34, %v2472_v33  ;;  %v2480_v53 = vshll.u32 %v2099_v39, 16  ;;  %v2656_v56 = vld [vmem:[#allocation2 + $0xb8] sm:$0xf] }
 0x21e   : > { %4024 = vst.msk [vmem:[#allocation3 + $0x38] sm:$0xf] %vm4009_vm15, %v3942_v50  ;;  %2871 = vrot.lane.b32.xlu1 %v2799_v62, %s5201_s25  ;;  %v3890_v62 = vrot.slane %v3743_v57, 5  ;;  %v2095_v50 = vld [vmem:[#allocation2 + $0xb8] sm:$0xf] }
 0x21f   : > { %2873 = vrot.lane.b32.xlu0 %v2803_v32, %s5201_s25  ;;  %v4953_v32 = vrot.slane %v3744_v58, 9  ;;  %v2446_v11 = vshll.u32 %v2095_v50, 16  ;;  %v2450_v9 = vshrl.u32 %v2095_v50, 16  ;;  %v2655_v58 = vld [vmem:[#allocation2 + $0xb4] sm:$0xe]  ;;  %v2478_v60 = vrot.slane %v2477_v46, 4 }
 0x220   : > { %v3944_v51 = vpop.permute.xlu1 %3943 }
 0x221   : > { %4025 = vst.msk [vmem:[#allocation3 + $0x3c] sm:$0xf] %vm4009_vm15, %v3944_v51  ;;  %v1960_v15 = vpop.permute.xlu0 %1959  ;;  %v3895_v2 = vsel %vm5666_vm14, %v4953_v32, %v3894_v42  ;;  %v2439_v51 = vrot.slane %v2437_v48, 4  ;;  %v2452_v20 = vrot.slane %v2450_v9, 4  ;;  %v2482_v42 = vrot.slane %v2480_v53, 5 }
 0x222   : > { %2875 = vrot.lane.b32.xlu1 %v2806_v8, %s5201_s25  ;;  %2038 = vst.msk [vmem:[#allocation3 + $0x48] sm:$0xf] %vm2019_vm5, %v1960_v15  ;;  %v3897_v8 = vrot.slane %v3746_v63, 5  ;;  %v4938_v63 = vrot.slane %v2655_v58, 9  ;;  %v3186_v48 = vld [vmem:[#allocation2 + $0xc0] sm:$0xf] }
 0x223   : > { %3063 = vrot.lane.b32.xlu0 %v2975_v10, %s5202_s26  ;;  %v3891_v10 = vsel %vm5666_vm14, %v3889_v61, %v3890_v62  ;;  %v2659_v61 = vld [vmem:[#allocation2 + $0xc4] sm:$0xf]  ;;  %v3191_v58 = vld [vmem:[#allocation2 + $0xd4] sm:$0x1] }
 0x224   : > { %v1962_v26 = vpop.permute.xlu1 %1961  ;;  %v5178_v27 = vld [vmem:[#allocation3 + $0x30] sm:$0xff]   ;;  %v2816_v4 = vrot.slane %v2659_v61, 5  ;;  %v3187_v9 = vld [vmem:[#allocation2 + $0xc4] sm:$0xf] }
 0x225   : > { %2039 = vst.msk [vmem:[#allocation3 + $0x4c] sm:$0xf] %vm2019_vm5, %v1962_v26  ;;  %v2517_v18 = vpop.permute.xlu0 %2516  ;;  %5126 = vmatprep.mubr.msk.bf16.mxu0 %vm4215_vm2, %v5178_v27  ;;  %v2443_v26 = vor.u32 %v2442_v12, %v2439_v51  ;;  %v2096_v27 = vld [vmem:[#allocation2 + $0xbc] sm:$0x1]  ;;  %v3532_v51 = vshll.u32 %v3186_v48, 16 }
 0x226   : > { %3065 = vrot.lane.b32.xlu1 %v2976_v49, %s5202_s26  ;;  %2597 = vst.msk [vmem:[#allocation3 + $0x40] sm:$0xf] %vm2580_vm6, %v2517_v18  ;;  %v3898_v49 = vsel %vm5666_vm14, %v3896_v7, %v3897_v8  ;;  %v2456_v23 = vshll.u32 %v2096_v27, 16  ;;  %v2818_v41 = vrot.slane %v2816_v4, 4  ;;  %v3556_v27 = vshll.u32 %v3189_v13, 16 }
 0x227   : > { %3067 = vrot.lane.b32.xlu0 %v2977_v16, %s5202_s26  ;;  %v2448_v16 = vrot.slane %v2446_v11, 5 }
 0x228   : > { %v2519_v35 = vpop.permute.xlu1 %2518  ;;  %v5179_v36 = vld [vmem:[#allocation3 + $0x38] sm:$0xff]   ;;  %v2458_v45 = vrot.slane %v2456_v23, 5  ;;  %v3558_v39 = vrot.slane %v3556_v27, 5 }
 0x229   : > { %2598 = vst.msk [vmem:[#allocation3 + $0x44] sm:$0xf] %vm2580_vm6, %v2519_v35  ;;  %v2521_v40 = vpop.permute.xlu0 %2520  ;;  %5127 = vmatmul.mubr.msk.bf16.gmra.mxu0 %vm4215_vm2, %v5179_v36  ;;  %v2453_v31 = vor.u32 %v2452_v20, %v2448_v16  ;;  %v1889_v36 = vld [vmem:[#allocation2 + $0xc0] sm:$0xf]  ;;  %v3542_v20 = vshrl.u32 %v3187_v9, 16 }
 0x22a   : > { %3069 = vrot.lane.b32.xlu1 %v2978_v30, %s5202_s26  ;;  %2599 = vst.msk [vmem:[#allocation3 + $0x48] sm:$0xf] %vm2580_vm6, %v2521_v40  ;;  %v1888_v30 = vld [vmem:[#allocation2 + $0xb8] sm:$0xf] }
 0x22b   : > { %3624 = vrot.lane.b32.xlu0 %v3493_v37, %s5204_s9  ;;  %v2444_v37 = vrot.slane %v2443_v26, 4  ;;  %v3553_v26 = vshrl.u32 %v3189_v13, 16  ;;  %v3544_v23 = vrot.slane %v3542_v20, 4  ;;  %v3752_v20 = vld [vmem:[#allocation2 + $0xd4] sm:$0x1] }
 0x22c   : > { %v2523_v19 = vpop.permute.xlu1 %2522 }
 0x22d   : > { %2600 = vst.msk [vmem:[#allocation3 + $0x4c] sm:$0xf] %vm2580_vm6, %v2523_v19  ;;  %v2854_v59 = vpop.permute.xlu0 %2853  ;;  %v2449_v19 = vsel %vm5299_vm11, %v2444_v37, %v2448_v16  ;;  %v3538_v16 = vshll.u32 %v3187_v9, 16  ;;  %v3751_v9 = vld [vmem:[#allocation2 + $0xd0] sm:$0xf] }
 0x22e   : > { %3626 = vrot.lane.b32.xlu1 %v3503_v44, %s5204_s9  ;;  %2934 = vst.msk [vmem:[#allocation3 + $0x40] sm:$0xf] %vm2917_vm8, %v2854_v59  ;;  %v2454_v44 = vrot.slane %v2453_v31, 4  ;;  %v3188_v31 = vld [vmem:[#allocation2 + $0xc8] sm:$0x1] }
 0x22f   : > { %3628 = vrot.lane.b32.xlu0 %v3517_v55, %s5204_s9  ;;  %v2468_v55 = vrot.slane %v2467_v38, 4  ;;  %v3555_v38 = vrot.slane %v3553_v26, 4  ;;  %v3548_v46 = vshll.u32 %v3188_v31, 16 }
 0x230   : > { %v2856_v0 = vpop.permute.xlu1 %2855  ;;  %v2459_v59 = vsel %vm5299_vm11, %v2454_v44, %v2458_v45  ;;  %v2981_v44 = vld [vmem:[#allocation2 + $0xcc] sm:$0xf] }
 0x231   : > { %2935 = vst.msk [vmem:[#allocation3 + $0x44] sm:$0xf] %vm2917_vm8, %v2856_v0  ;;  %v2858_v5 = vpop.permute.xlu0 %2857  ;;  %v2473_v32 = vsel %vm5299_vm11, %v2468_v55, %v2472_v33  ;;  %v2657_v0 = vld [vmem:[#allocation2 + $0xbc] sm:$0x1] }
 0x232   : > { %3630 = vrot.lane.b32.xlu1 %v3527_v1, %s5204_s9  ;;  %2936 = vst.msk [vmem:[#allocation3 + $0x48] sm:$0xf] %vm2917_vm8, %v2858_v5  ;;  %v2809_v1 = vrot.slane %v2656_v56, 5  ;;  %v2483_v5 = vsel %vm5299_vm11, %v2478_v60, %v2482_v42  ;;  %v2812_v7 = vrot.slane %v2657_v0, 5  ;;  %v2982_v60 = vld [vmem:[#allocation2 + $0xd0] sm:$0xf] }
 0x233   : > { %3961 = vrot.lane.b32.xlu0 %v3888_v3, %s5205_s27  ;;  %v2658_v3 = vld [vmem:[#allocation2 + $0xc0] sm:$0xe] }
 0x234   : > { %v2860_v47 = vpop.permute.xlu1 %2859  ;;  %v2811_v6 = vrot.slane %v2809_v1, 4  ;;  %v4939_v8 = vrot.slane %v2658_v3, 9  ;;  %v2810_v11 = vsel %vm5666_vm14, %v4938_v63, %v2809_v1  ;;  %v3550_v1 = vrot.slane %v3548_v46, 5  ;;  %v3748_v3 = vld [vmem:[#allocation2 + $0xc4] sm:$0xf] }
 0x235   : > { %2937 = vst.msk [vmem:[#allocation3 + $0x4c] sm:$0xf] %vm2917_vm8, %v2860_v47  ;;  %v3048_v15 = vpop.permute.xlu0 %3047  ;;  %v3529_v47 = vshrl.u32 %v3186_v48, 16  ;;  %v3747_v48 = vld [vmem:[#allocation2 + $0xc0] sm:$0xe] }
 0x236   : > { %3963 = vrot.lane.b32.xlu1 %v3891_v10, %s5205_s27  ;;  %3128 = vst.msk [vmem:[#allocation3 + $0x40] sm:$0xf] %vm3111_vm12, %v3048_v15  ;;  %v2660_v10 = vld [vmem:[#allocation2 + $0xc8] sm:$0x1]  ;;  %v2813_v15 = vsel %vm5666_vm14, %v2811_v6, %v2812_v7  ;;  %v3901_v7 = vrot.slane %v3748_v3, 5 }
 0x237   : > { %3965 = vrot.lane.b32.xlu0 %v3895_v2, %s5205_s27  ;;  %v2819_v14 = vrot.slane %v2660_v10, 5  ;;  %v3531_v22 = vrot.slane %v3529_v47, 4 }
 0x238   : > { %v3050_v24 = vpop.permute.xlu1 %3049  ;;  %v3903_v13 = vrot.slane %v3901_v7, 4 }
 0x239   : > { %3129 = vst.msk [vmem:[#allocation3 + $0x44] sm:$0xf] %vm3111_vm12, %v3050_v24  ;;  %v3052_v18 = vpop.permute.xlu0 %3051  ;;  %v3534_v24 = vrot.slane %v3532_v51, 5  ;;  %v2820_v29 = vsel %vm5666_vm14, %v2818_v41, %v2819_v14  ;;  %v3750_v51 = vld [vmem:[#allocation2 + $0xcc] sm:$0xe]  ;;  %v3908_v14 = vrot.slane %v3751_v9, 5 }
 0x23a   : > { %3967 = vrot.lane.b32.xlu1 %v3898_v49, %s5205_s27  ;;  %3130 = vst.msk [vmem:[#allocation3 + $0x48] sm:$0xf] %vm3111_vm12, %v3052_v18  ;;  %v2817_v49 = vsel %vm5666_vm14, %v4939_v8, %v2816_v4  ;;  %v2979_v18 = vld [vmem:[#allocation2 + $0xc0] sm:$0xf] }
 0x23b   : > { %1979 = vrot.lane.b32.xlu0 %v1887_v25, %s5199_s23  ;;  %v3190_v25 = vld [vmem:[#allocation2 + $0xd0] sm:$0xf]  ;;  %v3535_v37 = vor.u32 %v3534_v24, %v3531_v22  ;;  %v3910_v22 = vrot.slane %v3908_v14, 4  ;;  %v3911_v24 = vrot.slane %v3752_v20, 5 }
 0x23c   : > { %v3054_v35 = vpop.permute.xlu1 %3053  ;;  %v3562_v33 = vshll.u32 %v3190_v25, 16  ;;  %v3566_v34 = vshrl.u32 %v3190_v25, 16 }
 0x23d   : > { %3131 = vst.msk [vmem:[#allocation3 + $0x4c] sm:$0xf] %vm3111_vm12, %v3054_v35  ;;  %v3609_v40 = vpop.permute.xlu0 %3608  ;;  %v3536_v56 = vrot.slane %v3535_v37, 4 }
 0x23e   : > { %1981 = vrot.lane.b32.xlu1 %v1888_v30, %s5199_s23  ;;  %3689 = vst.msk [vmem:[#allocation3 + $0x40] sm:$0xf] %vm3672_vm13, %v3609_v40  ;;  %v3540_v30 = vrot.slane %v3538_v16, 5  ;;  %v3564_v53 = vrot.slane %v3562_v33, 5  ;;  %v4955_v16 = vrot.slane %v3750_v51, 9 }
 0x23f   : > { %1983 = vrot.lane.b32.xlu0 %v1889_v36, %s5199_s23 }
 0x240   : > { %v3611_v54 = vpop.permute.xlu1 %3610  ;;  %v3545_v45 = vor.u32 %v3544_v23, %v3540_v30  ;;  %v3541_v63 = vsel %vm5299_vm11, %v3536_v56, %v3540_v30  ;;  %v3909_v26 = vsel %vm5666_vm14, %v4955_v16, %v3908_v14 }
 0x241   : > { %3690 = vst.msk [vmem:[#allocation3 + $0x44] sm:$0xf] %vm3672_vm13, %v3611_v54  ;;  %v3613_v57 = vpop.permute.xlu0 %3612  ;;  %v3568_v54 = vrot.slane %v3566_v34, 4 }
 0x242   : > { %1985 = vrot.lane.b32.xlu1 %v1890_v43, %s5199_s23  ;;  %3691 = vst.msk [vmem:[#allocation3 + $0x48] sm:$0xf] %vm3672_vm13, %v3613_v57  ;;  %v2980_v43 = vld [vmem:[#allocation2 + $0xc4] sm:$0xf]  ;;  %v3559_v57 = vor.u32 %v3558_v39, %v3555_v38  ;;  %v3546_v42 = vrot.slane %v3545_v45, 4 }
 0x243   : > { %2540 = vrot.lane.b32.xlu0 %v2449_v19, %s5200_s24  ;;  %v3569_v61 = vor.u32 %v3568_v54, %v3564_v53 }
 0x244   : > { %v3615_v62 = vpop.permute.xlu1 %3614  ;;  %v3560_v0 = vrot.slane %v3559_v57, 4  ;;  %v3551_v4 = vsel %vm5299_vm11, %v3546_v42, %v3550_v1 }
 0x245   : > { %3692 = vst.msk [vmem:[#allocation3 + $0x4c] sm:$0xf] %vm3672_vm13, %v3615_v62  ;;  %v3946_v50 = vpop.permute.xlu0 %3945  ;;  %v3572_v62 = vshll.u32 %v3191_v58, 16 }
 0x246   : > { %2542 = vrot.lane.b32.xlu1 %v2459_v59, %s5200_s24  ;;  %4026 = vst.msk [vmem:[#allocation3 + $0x40] sm:$0xf] %vm4009_vm15, %v3946_v50  ;;  %v3565_v10 = vsel %vm5299_vm11, %v3560_v0, %v3564_v53 }
 0x247   : > { %2544 = vrot.lane.b32.xlu0 %v2473_v32, %s5200_s24  ;;  %v3574_v6 = vrot.slane %v3572_v62, 5 }
 0x248   : > { %v3948_v2 = vpop.permute.xlu1 %3947 }
 0x249   : > { %4027 = vst.msk [vmem:[#allocation3 + $0x44] sm:$0xf] %vm4009_vm15, %v3948_v2  ;;  %v3950_v12 = vpop.permute.xlu0 %3949  ;;  %v4954_v2 = vrot.slane %v3747_v48, 9 }
 0x24a   : > { %2546 = vrot.lane.b32.xlu1 %v2483_v5, %s5200_s24  ;;  %4028 = vst.msk [vmem:[#allocation3 + $0x48] sm:$0xf] %vm4009_vm15, %v3950_v12  ;;  %v3570_v5 = vrot.slane %v3569_v61, 4 }
 0x24b   : > { %2877 = vrot.lane.b32.xlu0 %v2810_v11, %s5201_s25  ;;  %v3749_v11 = vld [vmem:[#allocation2 + $0xc8] sm:$0x1] }
 0x24c   : > { %v3952_v21 = vpop.permute.xlu1 %3951  ;;  %v3575_v12 = vsel %vm5299_vm11, %v3570_v5, %v3574_v6  ;;  %v3904_v41 = vrot.slane %v3749_v11, 5 }
 0x24d   : > { %4029 = vst.msk [vmem:[#allocation3 + $0x4c] sm:$0xf] %vm4009_vm15, %v3952_v21  ;;  %v1964_v28 = vpop.permute.xlu0 %1963 }
 0x24e   : > { %2879 = vrot.lane.b32.xlu1 %v2813_v15, %s5201_s25  ;;  %2040 = vst.msk [vmem:[#allocation3 + $0x50] sm:$0xf] %vm2019_vm5, %v1964_v28  ;;  %v3905_v52 = vsel %vm5666_vm14, %v3903_v13, %v3904_v41  ;;  %v3912_v28 = vsel %vm5666_vm14, %v3910_v22, %v3911_v24 }
 0x24f   : > { %2881 = vrot.lane.b32.xlu0 %v2817_v49, %s5201_s25  ;;  %v3902_v49 = vsel %vm5666_vm14, %v4954_v2, %v3901_v7 }
 0x250   : > { %v1966_v35 = vpop.permute.xlu1 %1965  ;;  %v5180_v36 = vld [vmem:[#allocation3 + $0x40] sm:$0xff]  }
 0x251   : > { %2041 = vst.msk [vmem:[#allocation3 + $0x54] sm:$0xf] %vm2019_vm5, %v1966_v35  ;;  %v1968_v40 = vpop.permute.xlu0 %1967  ;;  %5130 = vmatprep.mubr.msk.bf16.mxu1 %vm4215_vm2, %v5180_v36 }
 0x252   : > { %2883 = vrot.lane.b32.xlu1 %v2820_v29, %s5201_s25  ;;  %2042 = vst.msk [vmem:[#allocation3 + $0x58] sm:$0xf] %vm2019_vm5, %v1968_v40  ;;  %s6549_s25 = scalar_lea.vmem %s6754_s2, %s5024_s20 }
 0x253   : > { %3071 = vrot.lane.b32.xlu0 %v2979_v18, %s5202_s26 }
 0x254   : > { %v1970_v19 = vpop.permute.xlu1 %1969  ;;  %v5181_v55 = vld [vmem:[#allocation3 + $0x48] sm:$0xff]  }
 0x255   : > { %2043 = vst.msk [vmem:[#allocation3 + $0x5c] sm:$0xf] %vm2019_vm5, %v1970_v19  ;;  %v2525_v59 = vpop.permute.xlu0 %2524  ;;  %5131 = vmatmul.mubr.msk.bf16.vlgmr.msra.gmra.mxu1 %vm4215_vm2, %v5181_v55 }
 0x256   : > { %3073 = vrot.lane.b32.xlu1 %v2980_v43, %s5202_s26  ;;  %2601 = vst.msk [vmem:[#allocation3 + $0x50] sm:$0xf] %vm2580_vm6, %v2525_v59 }
 0x257   : > { %3075 = vrot.lane.b32.xlu0 %v2981_v44, %s5202_s26 }
 0x258   : > { %v2527_v32 = vpop.permute.xlu1 %2526 }
 0x259   : > { %2602 = vst.msk [vmem:[#allocation3 + $0x54] sm:$0xf] %vm2580_vm6, %v2527_v32  ;;  %v2529_v50 = vpop.permute.xlu0 %2528 }
 0x25a   : > { %3077 = vrot.lane.b32.xlu1 %v2982_v60, %s5202_s26  ;;  %2603 = vst.msk [vmem:[#allocation3 + $0x58] sm:$0xf] %vm2580_vm6, %v2529_v50 }
 0x25b   : > { %3632 = vrot.lane.b32.xlu0 %v3541_v63, %s5204_s9 }
 0x25c   : > { %v2531_v8 = vpop.permute.xlu1 %2530 }
 0x25d   : > { %2604 = vst.msk [vmem:[#allocation3 + $0x5c] sm:$0xf] %vm2580_vm6, %v2531_v8  ;;  %v2862_v47 = vpop.permute.xlu0 %2861 }
 0x25e   : > { %3634 = vrot.lane.b32.xlu1 %v3551_v4, %s5204_s9  ;;  %2938 = vst.msk [vmem:[#allocation3 + $0x50] sm:$0xf] %vm2917_vm8, %v2862_v47 }
 0x25f   : > { %3636 = vrot.lane.b32.xlu0 %v3565_v10, %s5204_s9 }
 0x260   : > { %v2864_v15 = vpop.permute.xlu1 %2863 }
 0x261   : > { %2939 = vst.msk [vmem:[#allocation3 + $0x54] sm:$0xf] %vm2917_vm8, %v2864_v15  ;;  %v2866_v21 = vpop.permute.xlu0 %2865 }
 0x262   : > { %3638 = vrot.lane.b32.xlu1 %v3575_v12, %s5204_s9  ;;  %2940 = vst.msk [vmem:[#allocation3 + $0x58] sm:$0xf] %vm2917_vm8, %v2866_v21 }
 0x263   : > { %3969 = vrot.lane.b32.xlu0 %v3902_v49, %s5205_s27 }
 0x264   : > { %v2868_v25 = vpop.permute.xlu1 %2867 }
 0x265   : > { %2941 = vst.msk [vmem:[#allocation3 + $0x5c] sm:$0xf] %vm2917_vm8, %v2868_v25  ;;  %v3056_v27 = vpop.permute.xlu0 %3055 }
 0x266   : > { %3971 = vrot.lane.b32.xlu1 %v3905_v52, %s5205_s27  ;;  %3132 = vst.msk [vmem:[#allocation3 + $0x50] sm:$0xf] %vm3111_vm12, %v3056_v27 }
 0x267   : > { %3973 = vrot.lane.b32.xlu0 %v3909_v26, %s5205_s27 }
 0x268   : > { %v3058_v29 = vpop.permute.xlu1 %3057 }
 0x269   : > { %3133 = vst.msk [vmem:[#allocation3 + $0x54] sm:$0xf] %vm3111_vm12, %v3058_v29  ;;  %v3060_v18 = vpop.permute.xlu0 %3059 }
 0x26a   : > { %3975 = vrot.lane.b32.xlu1 %v3912_v28, %s5205_s27  ;;  %3134 = vst.msk [vmem:[#allocation3 + $0x58] sm:$0xf] %vm3111_vm12, %v3060_v18 }
 0x26c   : > { %v3062_v30 = vpop.permute.xlu1 %3061 }
 0x26d   : > { %3135 = vst.msk [vmem:[#allocation3 + $0x5c] sm:$0xf] %vm3111_vm12, %v3062_v30  ;;  %v3617_v31 = vpop.permute.xlu0 %3616 }
 0x26e   : > { %3693 = vst.msk [vmem:[#allocation3 + $0x50] sm:$0xf] %vm3672_vm13, %v3617_v31 }
 0x270   : > { %v3619_v23 = vpop.permute.xlu1 %3618 }
 0x271   : > { %3694 = vst.msk [vmem:[#allocation3 + $0x54] sm:$0xf] %vm3672_vm13, %v3619_v23  ;;  %v3621_v17 = vpop.permute.xlu0 %3620  ;;  %v5116_v33 = vpop.f32.mrf.mxu0 }
 0x272   : > { %3695 = vst.msk [vmem:[#allocation3 + $0x58] sm:$0xf] %vm3672_vm13, %v3621_v17  ;;  %v5059_v34 = vpack.c.bf16 %v5116_v33, %v5116_v33  ;;  %v4502_v44 = vmul.f32 %v5116_v33, %v5116_v33  ;;  %v4433_v58 = vsel %vm4429_vm3, %v5116_v33, 0.0 }
 0x273   : > { %v4302_v36 = vpop.f32.mrf.mxu0 }
 0x274   : > { %v3623_v35 = vpop.permute.xlu1 %3622  ;;  %4732 = vst.msk [vmem:[%s6549_s25 + $0x8] sm:$0xf] %vm264_vm0, %v5059_v34  ;;  %v5057_v37 = vpack.c.bf16 %v4302_v36, %v4302_v36  ;;  %v4500_v40 = vmul.f32 %v4302_v36, %v4302_v36  ;;  %v4430_v53 = vsel %vm4429_vm3, %v4302_v36, 0.0  ;;  %v4535_v32 = vsel %vm4429_vm3, %v4502_v44, 0.0 }
 0x275   : > { %3696 = vst.msk [vmem:[#allocation3 + $0x5c] sm:$0xf] %vm3672_vm13, %v3623_v35  ;;  %v3954_v38 = vpop.permute.xlu0 %3953  ;;  %v5117_v39 = vpop.f32.mrf.mxu0 }
 0x276   : > { %4030 = vst.msk [vmem:[#allocation3 + $0x50] sm:$0xf] %vm4009_vm15, %v3954_v38  ;;  %v5060_v43 = vpack.c.bf16 %v5117_v39, %v5117_v39  ;;  %v4532_v59 = vsel %vm4429_vm3, %v4500_v40, 0.0  ;;  %v4503_v60 = vmul.f32 %v5117_v39, %v5117_v39  ;;  %v4435_v63 = vsel %vm4429_vm3, %v5117_v39, 0.0 }
 0x277   : > { %4730 = vst.msk [vmem:[%s6549_s25] sm:$0xf] %vm264_vm0, %v5057_v37  ;;  %v4305_v46 = vpop.f32.mrf.mxu0 }
 0x278   : > { %v3956_v45 = vpop.permute.xlu1 %3955  ;;  %4733 = vst.msk [vmem:[%s6549_s25 + $0xc] sm:$0xf] %vm264_vm0, %v5060_v43  ;;  %v4431_v54 = vsel %vm4429_vm3, %v4305_v46, 0.0  ;;  %v4501_v19 = vmul.f32 %v4305_v46, %v4305_v46  ;;  %v5058_v55 = vpack.c.bf16 %v4305_v46, %v4305_v46  ;;  %v4537_v48 = vsel %vm4429_vm3, %v4503_v60, 0.0 }
 0x279   : > { %4031 = vst.msk [vmem:[#allocation3 + $0x54] sm:$0xf] %vm4009_vm15, %v3956_v45  ;;  %v3958_v56 = vpop.permute.xlu0 %3957  ;;  %v4432_v57 = vadd.f32 %v4431_v54, %v4430_v53 }
 0x27a   : > { %4032 = vst.msk [vmem:[#allocation3 + $0x58] sm:$0xf] %vm4009_vm15, %v3958_v56  ;;  %v4533_v42 = vsel %vm4429_vm3, %v4501_v19, 0.0 }
 0x27b   : > { %4731 = vst.msk [vmem:[%s6549_s25 + $0x4] sm:$0xf] %vm264_vm0, %v5058_v55  ;;  %v4434_v1 = vadd.f32 %v4433_v58, %v4432_v57  ;;  %v4534_v61 = vadd.f32 %v4533_v42, %v4532_v59 }
 0x27c   : > { %v3960_v62 = vpop.permute.xlu1 %3959 }
 0x27d   : > { %4033 = vst.msk [vmem:[#allocation3 + $0x5c] sm:$0xf] %vm4009_vm15, %v3960_v62  ;;  %v1972_v0 = vpop.permute.xlu0 %1971  ;;  %v4536_v3 = vadd.f32 %v4535_v32, %v4534_v61  ;;  %v4436_v50 = vadd.f32 %v4435_v63, %v4434_v1 }
 0x27e   : > { %2044 = vst.msk [vmem:[#allocation3 + $0x60] sm:$0xf] %vm2019_vm5, %v1972_v0 }
 0x27f   : > { %v4538_v6 = vadd.f32 %v4537_v48, %v4536_v3 }
 0x280   : > { %v1974_v4 = vpop.permute.xlu1 %1973  ;;  %v5182_v5 = vld [vmem:[#allocation3 + $0x50] sm:$0xff]  }
 0x281   : > { %2045 = vst.msk [vmem:[#allocation3 + $0x64] sm:$0xf] %vm2019_vm5, %v1974_v4  ;;  %v1976_v7 = vpop.permute.xlu0 %1975  ;;  %5134 = vmatprep.mubr.msk.bf16.mxu1 %vm4215_vm2, %v5182_v5 }
 0x282   : > { %2046 = vst.msk [vmem:[#allocation3 + $0x68] sm:$0xf] %vm2019_vm5, %v1976_v7 }
 0x284   : > { %v1978_v8 = vpop.permute.xlu1 %1977  ;;  %v5183_v10 = vld [vmem:[#allocation3 + $0x58] sm:$0xff]  }
 0x285   : > { %2047 = vst.msk [vmem:[#allocation3 + $0x6c] sm:$0xf] %vm2019_vm5, %v1978_v8  ;;  %v2533_v2 = vpop.permute.xlu0 %2532  ;;  %5135 = vmatmul.mubr.msk.bf16.gmra.mxu1 %vm4215_vm2, %v5183_v10 }
 0x286   : > { %2605 = vst.msk [vmem:[#allocation3 + $0x60] sm:$0xf] %vm2580_vm6, %v2533_v2 }
 0x288   : > { %v2535_v11 = vpop.permute.xlu1 %2534 }
 0x289   : > { %2606 = vst.msk [vmem:[#allocation3 + $0x64] sm:$0xf] %vm2580_vm6, %v2535_v11  ;;  %v2537_v9 = vpop.permute.xlu0 %2536 }
 0x28a   : > { %2607 = vst.msk [vmem:[#allocation3 + $0x68] sm:$0xf] %vm2580_vm6, %v2537_v9 }
 0x28c   : > { %v2539_v47 = vpop.permute.xlu1 %2538 }
 0x28d   : > { %2608 = vst.msk [vmem:[#allocation3 + $0x6c] sm:$0xf] %vm2580_vm6, %v2539_v47  ;;  %v2870_v51 = vpop.permute.xlu0 %2869 }
 0x28e   : > { %2942 = vst.msk [vmem:[#allocation3 + $0x60] sm:$0xf] %vm2917_vm8, %v2870_v51 }
 0x290   : > { %v2872_v12 = vpop.permute.xlu1 %2871 }
 0x291   : > { %2943 = vst.msk [vmem:[#allocation3 + $0x64] sm:$0xf] %vm2917_vm8, %v2872_v12  ;;  %v2874_v13 = vpop.permute.xlu0 %2873 }
 0x292   : > { %2944 = vst.msk [vmem:[#allocation3 + $0x68] sm:$0xf] %vm2917_vm8, %v2874_v13 }
 0x294   : > { %v2876_v41 = vpop.permute.xlu1 %2875 }
 0x295   : > { %2945 = vst.msk [vmem:[#allocation3 + $0x6c] sm:$0xf] %vm2917_vm8, %v2876_v41  ;;  %v3064_v14 = vpop.permute.xlu0 %3063 }
 0x296   : > { %3136 = vst.msk [vmem:[#allocation3 + $0x60] sm:$0xf] %vm3111_vm12, %v3064_v14 }
 0x298   : > { %v3066_v15 = vpop.permute.xlu1 %3065 }
 0x299   : > { %3137 = vst.msk [vmem:[#allocation3 + $0x64] sm:$0xf] %vm3111_vm12, %v3066_v15  ;;  %v3068_v49 = vpop.permute.xlu0 %3067  ;;  %v5120_v16 = vpop.f32.mrf.mxu0 }
 0x29a   : > { %3138 = vst.msk [vmem:[#allocation3 + $0x68] sm:$0xf] %vm3111_vm12, %v3068_v49  ;;  %v5063_v20 = vpack.c.bf16 %v5120_v16, %v5120_v16  ;;  %v4506_v17 = vmul.f32 %v5120_v16, %v5120_v16  ;;  %v4441_v38 = vsel %vm4429_vm3, %v5120_v16, 0.0 }
 0x29b   : > { %v4318_v52 = vpop.f32.mrf.mxu0 }
 0x29c   : > { %v3070_v21 = vpop.permute.xlu1 %3069  ;;  %4736 = vst.msk [vmem:[%s6549_s25 + $0x18] sm:$0xf] %vm264_vm0, %v5063_v20  ;;  %v4437_v22 = vsel %vm4429_vm3, %v4318_v52, 0.0  ;;  %v4504_v24 = vmul.f32 %v4318_v52, %v4318_v52  ;;  %v5061_v25 = vpack.c.bf16 %v4318_v52, %v4318_v52  ;;  %v4543_v46 = vsel %vm4429_vm3, %v4506_v17, 0.0 }
 0x29d   : > { %3139 = vst.msk [vmem:[#allocation3 + $0x6c] sm:$0xf] %vm3111_vm12, %v3070_v21  ;;  %v3625_v26 = vpop.permute.xlu0 %3624  ;;  %v4438_v27 = vadd.f32 %v4437_v22, %v4436_v50  ;;  %v5121_v28 = vpop.f32.mrf.mxu0 }
 0x29e   : > { %3697 = vst.msk [vmem:[#allocation3 + $0x60] sm:$0xf] %vm3672_vm13, %v3625_v26  ;;  %v4539_v29 = vsel %vm4429_vm3, %v4504_v24, 0.0  ;;  %v5064_v18 = vpack.c.bf16 %v5121_v28, %v5121_v28  ;;  %v4507_v39 = vmul.f32 %v5121_v28, %v5121_v28  ;;  %v4443_v53 = vsel %vm4429_vm3, %v5121_v28, 0.0 }
 0x29f   : > { %4734 = vst.msk [vmem:[%s6549_s25 + $0x10] sm:$0xf] %vm264_vm0, %v5061_v25  ;;  %v4540_v30 = vadd.f32 %v4539_v29, %v4538_v6  ;;  %v4321_v23 = vpop.f32.mrf.mxu0 }
 0x2a0   : > { %v3627_v31 = vpop.permute.xlu1 %3626  ;;  %4737 = vst.msk [vmem:[%s6549_s25 + $0x1c] sm:$0xf] %vm264_vm0, %v5064_v18  ;;  %v4439_v33 = vsel %vm4429_vm3, %v4321_v23, 0.0  ;;  %v4505_v34 = vmul.f32 %v4321_v23, %v4321_v23  ;;  %v5062_v35 = vpack.c.bf16 %v4321_v23, %v4321_v23  ;;  %v4545_v56 = vsel %vm4429_vm3, %v4507_v39, 0.0 }
 0x2a1   : > { %3698 = vst.msk [vmem:[#allocation3 + $0x64] sm:$0xf] %vm3672_vm13, %v3627_v31  ;;  %v3629_v36 = vpop.permute.xlu0 %3628  ;;  %v4440_v37 = vadd.f32 %v4439_v33, %v4438_v27 }
 0x2a2   : > { %3699 = vst.msk [vmem:[#allocation3 + $0x68] sm:$0xf] %vm3672_vm13, %v3629_v36  ;;  %v4541_v40 = vsel %vm4429_vm3, %v4505_v34, 0.0 }
 0x2a3   : > { %4735 = vst.msk [vmem:[%s6549_s25 + $0x14] sm:$0xf] %vm264_vm0, %v5062_v35  ;;  %v4442_v43 = vadd.f32 %v4441_v38, %v4440_v37  ;;  %v4542_v44 = vadd.f32 %v4541_v40, %v4540_v30 }
 0x2a4   : > { %v3631_v45 = vpop.permute.xlu1 %3630 }
 0x2a5   : > { %3700 = vst.msk [vmem:[#allocation3 + $0x6c] sm:$0xf] %vm3672_vm13, %v3631_v45  ;;  %v3962_v54 = vpop.permute.xlu0 %3961  ;;  %v4544_v19 = vadd.f32 %v4543_v46, %v4542_v44  ;;  %v4444_v55 = vadd.f32 %v4443_v53, %v4442_v43 }
 0x2a6   : > { %4034 = vst.msk [vmem:[#allocation3 + $0x60] sm:$0xf] %vm4009_vm15, %v3962_v54 }
 0x2a7   : > { %v4546_v58 = vadd.f32 %v4545_v56, %v4544_v19 }
 0x2a8   : > { %v3964_v57 = vpop.permute.xlu1 %3963 }
 0x2a9   : > { %4035 = vst.msk [vmem:[#allocation3 + $0x64] sm:$0xf] %vm4009_vm15, %v3964_v57  ;;  %v3966_v59 = vpop.permute.xlu0 %3965 }
 0x2aa   : > { %4036 = vst.msk [vmem:[#allocation3 + $0x68] sm:$0xf] %vm4009_vm15, %v3966_v59 }
 0x2ac   : > { %v3968_v60 = vpop.permute.xlu1 %3967 }
 0x2ad   : > { %4037 = vst.msk [vmem:[#allocation3 + $0x6c] sm:$0xf] %vm4009_vm15, %v3968_v60  ;;  %v1980_v42 = vpop.permute.xlu0 %1979 }
 0x2ae   : > { %2048 = vst.msk [vmem:[#allocation3 + $0x70] sm:$0xf] %vm2019_vm5, %v1980_v42 }
 0x2b0   : > { %v1982_v1 = vpop.permute.xlu1 %1981  ;;  %v5184_v61 = vld [vmem:[#allocation3 + $0x60] sm:$0xff]  }
 0x2b1   : > { %2049 = vst.msk [vmem:[#allocation3 + $0x74] sm:$0xf] %vm2019_vm5, %v1982_v1  ;;  %v1984_v62 = vpop.permute.xlu0 %1983  ;;  %5138 = vmatprep.mubr.msk.bf16.mxu1 %vm4215_vm2, %v5184_v61 }
 0x2b2   : > { %2050 = vst.msk [vmem:[#allocation3 + $0x78] sm:$0xf] %vm2019_vm5, %v1984_v62 }
 0x2b4   : > { %v1986_v32 = vpop.permute.xlu1 %1985  ;;  %v5185_v63 = vld [vmem:[#allocation3 + $0x68] sm:$0xff]  }
 0x2b5   : > { %2051 = vst.msk [vmem:[#allocation3 + $0x7c] sm:$0xf] %vm2019_vm5, %v1986_v32  ;;  %v2541_v0 = vpop.permute.xlu0 %2540  ;;  %5139 = vmatmul.mubr.msk.bf16.gmra.mxu1 %vm4215_vm2, %v5185_v63 }
 0x2b6   : > { %2609 = vst.msk [vmem:[#allocation3 + $0x70] sm:$0xf] %vm2580_vm6, %v2541_v0 }
 0x2b8   : > { %v2543_v3 = vpop.permute.xlu1 %2542 }
 0x2b9   : > { %2610 = vst.msk [vmem:[#allocation3 + $0x74] sm:$0xf] %vm2580_vm6, %v2543_v3  ;;  %v2545_v50 = vpop.permute.xlu0 %2544 }
 0x2ba   : > { %2611 = vst.msk [vmem:[#allocation3 + $0x78] sm:$0xf] %vm2580_vm6, %v2545_v50 }
 0x2bc   : > { %v2547_v48 = vpop.permute.xlu1 %2546 }
 0x2bd   : > { %2612 = vst.msk [vmem:[#allocation3 + $0x7c] sm:$0xf] %vm2580_vm6, %v2547_v48  ;;  %v2878_v4 = vpop.permute.xlu0 %2877 }
 0x2be   : > { %2946 = vst.msk [vmem:[#allocation3 + $0x70] sm:$0xf] %vm2917_vm8, %v2878_v4 }
 0x2c0   : > { %v2880_v5 = vpop.permute.xlu1 %2879 }
 0x2c1   : > { %2947 = vst.msk [vmem:[#allocation3 + $0x74] sm:$0xf] %vm2917_vm8, %v2880_v5  ;;  %v2882_v6 = vpop.permute.xlu0 %2881  ;;  %v5124_v7 = vpop.f32.mrf.mxu0 }
 0x2c2   : > { %2948 = vst.msk [vmem:[#allocation3 + $0x78] sm:$0xf] %vm2917_vm8, %v2882_v6  ;;  %v5067_v8 = vpack.c.bf16 %v5124_v7, %v5124_v7  ;;  %v4510_v20 = vmul.f32 %v5124_v7, %v5124_v7  ;;  %v4449_v26 = vsel %vm4429_vm3, %v5124_v7, 0.0 }
 0x2c3   : > { %v4334_v2 = vpop.f32.mrf.mxu0 }
 0x2c4   : > { %v2884_v10 = vpop.permute.xlu1 %2883  ;;  %4740 = vst.msk [vmem:[%s6549_s25 + $0x28] sm:$0xf] %vm264_vm0, %v5067_v8  ;;  %v4445_v11 = vsel %vm4429_vm3, %v4334_v2, 0.0  ;;  %v4508_v9 = vmul.f32 %v4334_v2, %v4334_v2  ;;  %v5065_v47 = vpack.c.bf16 %v4334_v2, %v4334_v2  ;;  %v4551_v31 = vsel %vm4429_vm3, %v4510_v20, 0.0 }
 0x2c5   : > { %2949 = vst.msk [vmem:[#allocation3 + $0x7c] sm:$0xf] %vm2917_vm8, %v2884_v10  ;;  %v3072_v51 = vpop.permute.xlu0 %3071  ;;  %v4446_v12 = vadd.f32 %v4445_v11, %v4444_v55  ;;  %v5125_v13 = vpop.f32.mrf.mxu0 }
 0x2c6   : > { %3140 = vst.msk [vmem:[#allocation3 + $0x70] sm:$0xf] %vm3111_vm12, %v3072_v51  ;;  %v4547_v41 = vsel %vm4429_vm3, %v4508_v9, 0.0  ;;  %v5068_v14 = vpack.c.bf16 %v5125_v13, %v5125_v13  ;;  %v4511_v27 = vmul.f32 %v5125_v13, %v5125_v13  ;;  %v4451_v23 = vsel %vm4429_vm3, %v5125_v13, 0.0 }
 0x2c7   : > { %4738 = vst.msk [vmem:[%s6549_s25 + $0x20] sm:$0xf] %vm264_vm0, %v5065_v47  ;;  %v4548_v15 = vadd.f32 %v4547_v41, %v4546_v58  ;;  %v4337_v16 = vpop.f32.mrf.mxu0 }
 0x2c8   : > { %v3074_v49 = vpop.permute.xlu1 %3073  ;;  %4741 = vst.msk [vmem:[%s6549_s25 + $0x2c] sm:$0xf] %vm264_vm0, %v5068_v14  ;;  %v4447_v21 = vsel %vm4429_vm3, %v4337_v16, 0.0  ;;  %v4509_v52 = vmul.f32 %v4337_v16, %v4337_v16  ;;  %v5066_v22 = vpack.c.bf16 %v4337_v16, %v4337_v16  ;;  %v4553_v35 = vsel %vm4429_vm3, %v4511_v27, 0.0 }
 0x2c9   : > { %3141 = vst.msk [vmem:[#allocation3 + $0x74] sm:$0xf] %vm3111_vm12, %v3074_v49  ;;  %v3076_v24 = vpop.permute.xlu0 %3075  ;;  %v4448_v25 = vadd.f32 %v4447_v21, %v4446_v12 }
 0x2ca   : > { %3142 = vst.msk [vmem:[#allocation3 + $0x78] sm:$0xf] %vm3111_vm12, %v3076_v24  ;;  %v4549_v28 = vsel %vm4429_vm3, %v4509_v52, 0.0 }
 0x2cb   : > { %4739 = vst.msk [vmem:[%s6549_s25 + $0x24] sm:$0xf] %vm264_vm0, %v5066_v22  ;;  %v4450_v29 = vadd.f32 %v4449_v26, %v4448_v25  ;;  %v4550_v18 = vadd.f32 %v4549_v28, %v4548_v15 }
 0x2cc   : > { %v3078_v30 = vpop.permute.xlu1 %3077 }
 0x2cd   : > { %3143 = vst.msk [vmem:[#allocation3 + $0x7c] sm:$0xf] %vm3111_vm12, %v3078_v30  ;;  %v3633_v17 = vpop.permute.xlu0 %3632  ;;  %v4552_v33 = vadd.f32 %v4551_v31, %v4550_v18  ;;  %v4452_v34 = vadd.f32 %v4451_v23, %v4450_v29 }
 0x2ce   : > { %3701 = vst.msk [vmem:[#allocation3 + $0x70] sm:$0xf] %vm3672_vm13, %v3633_v17 }
 0x2cf   : > { %v4554_v37 = vadd.f32 %v4553_v35, %v4552_v33 }
 0x2d0   : > { %v3635_v36 = vpop.permute.xlu1 %3634 }
 0x2d1   : > { %3702 = vst.msk [vmem:[#allocation3 + $0x74] sm:$0xf] %vm3672_vm13, %v3635_v36  ;;  %v3637_v38 = vpop.permute.xlu0 %3636 }
 0x2d2   : > { %3703 = vst.msk [vmem:[#allocation3 + $0x78] sm:$0xf] %vm3672_vm13, %v3637_v38 }
 0x2d4   : > { %v3639_v39 = vpop.permute.xlu1 %3638 }
 0x2d5   : > { %3704 = vst.msk [vmem:[#allocation3 + $0x7c] sm:$0xf] %vm3672_vm13, %v3639_v39  ;;  %v3970_v40 = vpop.permute.xlu0 %3969 }
 0x2d6   : > { %4038 = vst.msk [vmem:[#allocation3 + $0x70] sm:$0xf] %vm4009_vm15, %v3970_v40 }
 0x2d8   : > { %v3972_v43 = vpop.permute.xlu1 %3971 }
 0x2d9   : > { %4039 = vst.msk [vmem:[#allocation3 + $0x74] sm:$0xf] %vm4009_vm15, %v3972_v43  ;;  %v3974_v44 = vpop.permute.xlu0 %3973 }
 0x2da   : > { %4040 = vst.msk [vmem:[#allocation3 + $0x78] sm:$0xf] %vm4009_vm15, %v3974_v44 }
 0x2dc   : > { %v3976_v45 = vpop.permute.xlu1 %3975 }
 0x2dd   : > { %4041 = vst.msk [vmem:[#allocation3 + $0x7c] sm:$0xf] %vm4009_vm15, %v3976_v45 }
 0x2e0   : > { %v5186_v46 = vld [vmem:[#allocation3 + $0x70] sm:$0xff]  }
 0x2e1   : > { %5142 = vmatprep.mubr.msk.bf16.mxu1 %vm4215_vm2, %v5186_v46 }
 0x2e4   : > { %v5187_v53 = vld [vmem:[#allocation3 + $0x78] sm:$0xff]  }
 0x2e5   : > { %5143 = vmatmul.mubr.msk.bf16.gmra.mxu1 %vm4215_vm2, %v5187_v53 }
 0x2e9   : > { %v5128_v54 = vpop.f32.mrf.mxu0 }
 0x2ea   : > { %v5071_v19 = vpack.c.bf16 %v5128_v54, %v5128_v54  ;;  %v4514_v32 = vmul.f32 %v5128_v54, %v5128_v54  ;;  %v4457_v48 = vsel %vm4429_vm3, %v5128_v54, 0.0 }
 0x2eb   : > { %v4350_v55 = vpop.f32.mrf.mxu0 }
 0x2ec   : > { %4744 = vst.msk [vmem:[%s6549_s25 + $0x38] sm:$0xf] %vm264_vm0, %v5071_v19  ;;  %v4453_v56 = vsel %vm4429_vm3, %v4350_v55, 0.0  ;;  %v4512_v57 = vmul.f32 %v4350_v55, %v4350_v55  ;;  %v5069_v58 = vpack.c.bf16 %v4350_v55, %v4350_v55  ;;  %v4559_v8 = vsel %vm4429_vm3, %v4514_v32, 0.0 }
 0x2ed   : > { %v4454_v59 = vadd.f32 %v4453_v56, %v4452_v34  ;;  %v5129_v60 = vpop.f32.mrf.mxu0 }
 0x2ee   : > { %v4555_v42 = vsel %vm4429_vm3, %v4512_v57, 0.0  ;;  %4742 = vst.msk [vmem:[%s6549_s25 + $0x30] sm:$0xf] %vm264_vm0, %v5069_v58  ;;  %v5072_v1 = vpack.c.bf16 %v5129_v60, %v5129_v60  ;;  %v4515_v4 = vmul.f32 %v5129_v60, %v5129_v60  ;;  %v4459_v10 = vsel %vm4429_vm3, %v5129_v60, 0.0 }
 0x2ef   : > { %v4556_v61 = vadd.f32 %v4555_v42, %v4554_v37  ;;  %v4353_v62 = vpop.f32.mrf.mxu0 }
 0x2f0   : > { %4745 = vst.msk [vmem:[%s6549_s25 + $0x3c] sm:$0xf] %vm264_vm0, %v5072_v1  ;;  %v4455_v63 = vsel %vm4429_vm3, %v4353_v62, 0.0  ;;  %v4513_v0 = vmul.f32 %v4353_v62, %v4353_v62  ;;  %v5070_v3 = vpack.c.bf16 %v4353_v62, %v4353_v62  ;;  %v4561_v9 = vsel %vm4429_vm3, %v4515_v4, 0.0 }
 0x2f1   : > { %v4456_v50 = vadd.f32 %v4455_v63, %v4454_v59 }
 0x2f2   : > { %v4557_v5 = vsel %vm4429_vm3, %v4513_v0, 0.0  ;;  %4743 = vst.msk [vmem:[%s6549_s25 + $0x34] sm:$0xf] %vm264_vm0, %v5070_v3 }
 0x2f3   : > { %v4458_v6 = vadd.f32 %v4457_v48, %v4456_v50  ;;  %v4558_v7 = vadd.f32 %v4557_v5, %v4556_v61 }
 0x2f5   : > { %v4560_v2 = vadd.f32 %v4559_v8, %v4558_v7  ;;  %v4460_v11 = vadd.f32 %v4459_v10, %v4458_v6 }
 0x2f7   : > { %v4562_v47 = vadd.f32 %v4561_v9, %v4560_v2 }
 0x315   : > { %v5132_v51 = vpop.f32.mrf.mxu1 }
 0x316   : > { %v5075_v12 = vpack.c.bf16 %v5132_v51, %v5132_v51  ;;  %v4518_v24 = vmul.f32 %v5132_v51, %v5132_v51  ;;  %v4465_v29 = vsel %vm4429_vm3, %v5132_v51, 0.0 }
 0x317   : > { %v4366_v13 = vpop.f32.mrf.mxu1 }
 0x318   : > { %4748 = vst.msk [vmem:[%s6549_s25 + $0x48] sm:$0xf] %vm264_vm0, %v5075_v12  ;;  %v4461_v41 = vsel %vm4429_vm3, %v4366_v13, 0.0  ;;  %v4516_v14 = vmul.f32 %v4366_v13, %v4366_v13  ;;  %v5073_v15 = vpack.c.bf16 %v4366_v13, %v4366_v13  ;;  %v4567_v17 = vsel %vm4429_vm3, %v4518_v24, 0.0 }
 0x319   : > { %v4462_v49 = vadd.f32 %v4461_v41, %v4460_v11  ;;  %v5133_v16 = vpop.f32.mrf.mxu1 }
 0x31a   : > { %v4563_v20 = vsel %vm4429_vm3, %v4516_v14, 0.0  ;;  %4746 = vst.msk [vmem:[%s6549_s25 + $0x40] sm:$0xf] %vm264_vm0, %v5073_v15  ;;  %v5076_v21 = vpack.c.bf16 %v5133_v16, %v5133_v16  ;;  %v4519_v18 = vmul.f32 %v5133_v16, %v5133_v16  ;;  %v4467_v33 = vsel %vm4429_vm3, %v5133_v16, 0.0 }
 0x31b   : > { %v4564_v52 = vadd.f32 %v4563_v20, %v4562_v47  ;;  %v4369_v22 = vpop.f32.mrf.mxu1 }
 0x31c   : > { %4749 = vst.msk [vmem:[%s6549_s25 + $0x4c] sm:$0xf] %vm264_vm0, %v5076_v21  ;;  %v4463_v25 = vsel %vm4429_vm3, %v4369_v22, 0.0  ;;  %v4517_v26 = vmul.f32 %v4369_v22, %v4369_v22  ;;  %v5074_v27 = vpack.c.bf16 %v4369_v22, %v4369_v22  ;;  %v4569_v36 = vsel %vm4429_vm3, %v4519_v18, 0.0 }
 0x31d   : > { %v4464_v28 = vadd.f32 %v4463_v25, %v4462_v49 }
 0x31e   : > { %v4565_v30 = vsel %vm4429_vm3, %v4517_v26, 0.0  ;;  %4747 = vst.msk [vmem:[%s6549_s25 + $0x44] sm:$0xf] %vm264_vm0, %v5074_v27 }
 0x31f   : > { %v4466_v31 = vadd.f32 %v4465_v29, %v4464_v28  ;;  %v4566_v23 = vadd.f32 %v4565_v30, %v4564_v52 }
 0x321   : > { %v4568_v34 = vadd.f32 %v4567_v17, %v4566_v23  ;;  %v4468_v35 = vadd.f32 %v4467_v33, %v4466_v31 }
 0x323   : > { %v4570_v37 = vadd.f32 %v4569_v36, %v4568_v34 }
 0x345   : > { %v5136_v38 = vpop.f32.mrf.mxu1 }
 0x346   : > { %v5079_v39 = vpack.c.bf16 %v5136_v38, %v5136_v38  ;;  %v4522_v57 = vmul.f32 %v5136_v38, %v5136_v38  ;;  %v4473_v1 = vsel %vm4429_vm3, %v5136_v38, 0.0 }
 0x347   : > { %v4382_v40 = vpop.f32.mrf.mxu1 }
 0x348   : > { %4752 = vst.msk [vmem:[%s6549_s25 + $0x58] sm:$0xf] %vm264_vm0, %v5079_v39  ;;  %v4469_v43 = vsel %vm4429_vm3, %v4382_v40, 0.0  ;;  %v4520_v44 = vmul.f32 %v4382_v40, %v4382_v40  ;;  %v5077_v45 = vpack.c.bf16 %v4382_v40, %v4382_v40  ;;  %v4575_v0 = vsel %vm4429_vm3, %v4522_v57, 0.0 }
 0x349   : > { %v4470_v46 = vadd.f32 %v4469_v43, %v4468_v35  ;;  %v5137_v53 = vpop.f32.mrf.mxu1 }
 0x34a   : > { %v4571_v54 = vsel %vm4429_vm3, %v4520_v44, 0.0  ;;  %4750 = vst.msk [vmem:[%s6549_s25 + $0x50] sm:$0xf] %vm264_vm0, %v5077_v45  ;;  %v5080_v19 = vpack.c.bf16 %v5137_v53, %v5137_v53  ;;  %v4523_v61 = vmul.f32 %v5137_v53, %v5137_v53  ;;  %v4475_v3 = vsel %vm4429_vm3, %v5137_v53, 0.0 }
 0x34b   : > { %v4572_v55 = vadd.f32 %v4571_v54, %v4570_v37  ;;  %v4385_v56 = vpop.f32.mrf.mxu1 }
 0x34c   : > { %4753 = vst.msk [vmem:[%s6549_s25 + $0x5c] sm:$0xf] %vm264_vm0, %v5080_v19  ;;  %v4471_v58 = vsel %vm4429_vm3, %v4385_v56, 0.0  ;;  %v4521_v59 = vmul.f32 %v4385_v56, %v4385_v56  ;;  %v5078_v60 = vpack.c.bf16 %v4385_v56, %v4385_v56  ;;  %v4577_v4 = vsel %vm4429_vm3, %v4523_v61, 0.0 }
 0x34d   : > { %v4472_v42 = vadd.f32 %v4471_v58, %v4470_v46 }
 0x34e   : > { %v4573_v62 = vsel %vm4429_vm3, %v4521_v59, 0.0  ;;  %4751 = vst.msk [vmem:[%s6549_s25 + $0x54] sm:$0xf] %vm264_vm0, %v5078_v60 }
 0x34f   : > { %v4474_v32 = vadd.f32 %v4473_v1, %v4472_v42  ;;  %v4574_v63 = vadd.f32 %v4573_v62, %v4572_v55 }
 0x351   : > { %v4576_v50 = vadd.f32 %v4575_v0, %v4574_v63  ;;  %v4476_v48 = vadd.f32 %v4475_v3, %v4474_v32 }
 0x353   : > { %v4578_v5 = vadd.f32 %v4577_v4, %v4576_v50 }
 0x375   : > { %v5140_v6 = vpop.f32.mrf.mxu1 }
 0x376   : > { %v5083_v7 = vpack.c.bf16 %v5140_v6, %v5140_v6  ;;  %v4526_v21 = vmul.f32 %v5140_v6, %v5140_v6  ;;  %v4481_v22 = vsel %vm4429_vm3, %v5140_v6, 0.0 }
 0x377   : > { %v4398_v8 = vpop.f32.mrf.mxu1 }
 0x378   : > { %4756 = vst.msk [vmem:[%s6549_s25 + $0x68] sm:$0xf] %vm264_vm0, %v5083_v7  ;;  %v5081_v10 = vpack.c.bf16 %v4398_v8, %v4398_v8  ;;  %v4524_v51 = vmul.f32 %v4398_v8, %v4398_v8  ;;  %v4477_v12 = vsel %vm4429_vm3, %v4398_v8, 0.0  ;;  %v4583_v26 = vsel %vm4429_vm3, %v4526_v21, 0.0 }
 0x379   : > { %v5141_v2 = vpop.f32.mrf.mxu1  ;;  %v4478_v15 = vadd.f32 %v4477_v12, %v4476_v48 }
 0x37a   : > { %4754 = vst.msk [vmem:[%s6549_s25 + $0x60] sm:$0xf] %vm264_vm0, %v5081_v10  ;;  %v5084_v11 = vpack.c.bf16 %v5141_v2, %v5141_v2  ;;  %v4579_v41 = vsel %vm4429_vm3, %v4524_v51, 0.0  ;;  %v4527_v27 = vmul.f32 %v5141_v2, %v5141_v2  ;;  %v4483_v30 = vsel %vm4429_vm3, %v5141_v2, 0.0 }
 0x37b   : > { %v4401_v9 = vpop.f32.mrf.mxu1  ;;  %v4580_v16 = vadd.f32 %v4579_v41, %v4578_v5 }
 0x37c   : > { %4757 = vst.msk [vmem:[%s6549_s25 + $0x6c] sm:$0xf] %vm264_vm0, %v5084_v11  ;;  %v5082_v47 = vpack.c.bf16 %v4401_v9, %v4401_v9  ;;  %v4525_v13 = vmul.f32 %v4401_v9, %v4401_v9  ;;  %v4479_v14 = vsel %vm4429_vm3, %v4401_v9, 0.0  ;;  %v4585_v35 = vsel %vm4429_vm3, %v4527_v27, 0.0 }
 0x37d   : > { %v4480_v20 = vadd.f32 %v4479_v14, %v4478_v15 }
 0x37e   : > { %4755 = vst.msk [vmem:[%s6549_s25 + $0x64] sm:$0xf] %vm264_vm0, %v5082_v47  ;;  %v4581_v49 = vsel %vm4429_vm3, %v4525_v13, 0.0 }
 0x37f   : > { %v4582_v52 = vadd.f32 %v4581_v49, %v4580_v16  ;;  %v4482_v24 = vadd.f32 %v4481_v22, %v4480_v20 }
 0x381   : > { %v4584_v29 = vadd.f32 %v4583_v26, %v4582_v52  ;;  %v4484_v33 = vadd.f32 %v4483_v30, %v4482_v24 }
 0x383   : > { %v4586_v39 = vadd.f32 %v4585_v35, %v4584_v29 }
 0x3a5   : > { %v5144_v25 = vpop.f32.mrf.mxu1 }
 0x3a6   : > { %v5087_v28 = vpack.c.bf16 %v5144_v25, %v5144_v25  ;;  %v4530_v43 = vmul.f32 %v5144_v25, %v5144_v25  ;;  %v4489_v19 = vsel %vm4429_vm3, %v5144_v25, 0.0 }
 0x3a7   : > { %v4414_v18 = vpop.f32.mrf.mxu1 }
 0x3a8   : > { %4760 = vst.msk [vmem:[%s6549_s25 + $0x78] sm:$0xf] %vm264_vm0, %v5087_v28  ;;  %v4485_v31 = vsel %vm4429_vm3, %v4414_v18, 0.0  ;;  %v4528_v23 = vmul.f32 %v4414_v18, %v4414_v18  ;;  %v5085_v17 = vpack.c.bf16 %v4414_v18, %v4414_v18  ;;  %v4591_v59 = vsel %vm4429_vm3, %v4530_v43, 0.0 }
 0x3a9   : > { %v5145_v34 = vpop.f32.mrf.mxu1  ;;  %v4486_v38 = vadd.f32 %v4485_v31, %v4484_v33 }
 0x3aa   : > { %v4587_v36 = vsel %vm4429_vm3, %v4528_v23, 0.0  ;;  %4758 = vst.msk [vmem:[%s6549_s25 + $0x70] sm:$0xf] %vm264_vm0, %v5085_v17  ;;  %v5088_v37 = vpack.c.bf16 %v5145_v34, %v5145_v34  ;;  %v4531_v55 = vmul.f32 %v5145_v34, %v5145_v34  ;;  %v4491_v60 = vsel %vm4429_vm3, %v5145_v34, 0.0 }
 0x3ab   : > { %v4417_v40 = vpop.f32.mrf.mxu1  ;;  %v4588_v53 = vadd.f32 %v4587_v36, %v4586_v39 }
 0x3ac   : > { %4761 = vst.msk [vmem:[%s6549_s25 + $0x7c] sm:$0xf] %vm264_vm0, %v5088_v37  ;;  %v4487_v44 = vsel %vm4429_vm3, %v4417_v40, 0.0  ;;  %v4529_v45 = vmul.f32 %v4417_v40, %v4417_v40  ;;  %v5086_v46 = vpack.c.bf16 %v4417_v40, %v4417_v40  ;;  %v4593_v61 = vsel %vm4429_vm3, %v4531_v55, 0.0 }
 0x3ad   : > { %v4488_v54 = vadd.f32 %v4487_v44, %v4486_v38 }
 0x3ae   : > { %v4589_v56 = vsel %vm4429_vm3, %v4529_v45, 0.0  ;;  %4759 = vst.msk [vmem:[%s6549_s25 + $0x74] sm:$0xf] %vm264_vm0, %v5086_v46 }
 0x3af   : > { %v4490_v57 = vadd.f32 %v4489_v19, %v4488_v54  ;;  %v4590_v58 = vadd.f32 %v4589_v56, %v4588_v53 }
 0x3b1   : > { %v4492_v42 = vadd.f32 %v4491_v60, %v4490_v57  ;;  %v4592_v1 = vadd.f32 %v4591_v59, %v4590_v58 }
 0x3b3   : > { %v4493_v62 = vrot.slane %v4492_v42, 4  ;;  %v4594_v32 = vadd.f32 %v4593_v61, %v4592_v1 }
 0x3b5   : > { %v4494_v63 = vadd.f32 %v4493_v62, %v4492_v42  ;;  %v4595_v0 = vrot.slane %v4594_v32, 4 }
 0x3b7   : > { %v4495_v3 = vrot.slane %v4494_v63, 2  ;;  %v4596_v50 = vadd.f32 %v4595_v0, %v4594_v32 }
 0x3b9   : > { %v4496_v48 = vadd.f32 %v4495_v3, %v4494_v63  ;;  %v4597_v4 = vrot.slane %v4596_v50, 2 }
 0x3bb   : > { %v4497_v5 = vrot.slane %v4496_v48, 1  ;;  %v4598_v6 = vadd.f32 %v4597_v4, %v4596_v50 }
 0x3bd   : > { %v4498_v7 = vadd.f32 %v4497_v5, %v4496_v48  ;;  %v4599_v8 = vrot.slane %v4598_v6, 1 }
 0x3bf   : > { %4499 = vst.msk [vmem:[%s211_s29] sm:$0x1] %vm267_vm1, %v4498_v7  ;;  %v4600_v10 = vadd.f32 %v4599_v8, %v4598_v6 }
 0x3c1   : > { %4601 = vst.msk [vmem:[%s214_s6] sm:$0x1] %vm267_vm1, %v4600_v10 }
 0x3c2 PF: > { %s15_s15 = sadd.s32 1, %s5194_s15  }
 0x3c3   : > { %p12_p4 = scmp.ge.s32.totalorder %s15_s15, 4  }
 0x3c5   :  { %14 = sbr.rel (!%p12_p4) target bundleno = 1 (0x1), region = 85 }

// kernel: residual_block_pallas.4
= control target key start
LH: loop header
LB: loop body
LE: loop exit
PB: predicated region body
PF: predicated region fallthrough
CT: control target
= control target key end

     0   :  { %s5522_s21 = smov 0   ;;  %s7109_s0 = inlined_call_operand.vmem [shape: bf16[2,16,16,4], index: 0, kind: input, shape index: {}]   ;;  %s7110_s1 = inlined_call_operand.vmem [shape: f32[1,4], index: 1, kind: input, shape index: {}]   ;;  %s7111_s2 = inlined_call_operand.vmem [shape: f32[1,4], index: 2, kind: input, shape index: {}]   ;;  %s7112_s3 = inlined_call_operand.vmem [shape: bf16[9,4,4], index: 3, kind: input, shape index: {}]   ;;  %s7113_s4 = inlined_call_operand.vmem [shape: bf16[2,16,16,4], index: 4, kind: output, shape index: {0}]   ;;  %s7114_s5 = inlined_call_operand.vmem [shape: f32[2,1,4], index: 5, kind: output, shape index: {1}]   ;;  %s7115_s6 = inlined_call_operand.vmem [shape: f32[2,1,4], index: 6, kind: output, shape index: {2}]  }
   0x1 LB: > { %s5063_s22 = sadd.s32 4294967295, %s5475_s21   ;;  %p5067_p0 = scmp.ge.s32.totalorder %s5475_s21, 1  ;;  %s5475_s21 = sphi %s5522_s21, %s17_s21  }
   0x2   : > { %p217_p1 = scmp.lt.s32.totalorder %s5475_s21, 3 }
   0x4   : > { %p218_p2 = pnand %p5067_p0, %p217_p1 }
   0x5   : > { %p253_p3 = scmp.lt.s32.totalorder (!%p218_p2), %s5063_s22, 1  ;;  %s5478_s7 = smov (!%p218_p2), 4  }
   0x6   : > { %221 = sbr.rel (%p218_p2) target bundleno = 986 (0x3da), region = 36  ;;  %s5479_s12 = smov (!%p218_p2), 8  }
   0x7   : > { %s5480_s13 = smov (!%p218_p2), 12   ;;  %s5481_s14 = smov (!%p218_p2), 16  }
   0x8   : > { %s5482_s15 = smov (!%p218_p2), 20   ;;  %s5483_s16 = smov (!%p218_p2), 24  }
   0x9   : > { %s5486_s20 = smov (!%p218_p2), 32  }
   0xb   : > { %vm460_vm0 = vcmask 27648   ;;  %v5477_v0 = vmov 0   ;;  %vm463_vm1 = vcmask 24576   ;;  %vm467_vm2 = vsmask.f32 256  ;;  %s7129_s22 = smov (!%p253_p3, %s5063_s22), 1 }
   0xc   : > { %461 = vst.msk [vmem:[#allocation2] sm:$0xf] %vm460_vm0, %v5477_v0  ;;  %462 = vst.msk [vmem:[#allocation2 + $0x4] sm:$0xf] %vm460_vm0, %v5477_v0  ;;  %v469_v1 = vld [vmem:[#allocation2 + $0xc] sm:$0x1]  ;;  %s265_s28 = scalar_lea.vmem %s7114_s5, %s7129_s22 }
   0xd   : > { %518 = vst.msk [vmem:[#allocation2 + $0xcc] sm:$0xf] %vm460_vm0, %v5477_v0  ;;  %519 = vst.msk [vmem:[#allocation2 + $0xd0] sm:$0xf] %vm460_vm0, %v5477_v0  ;;  %vm1199_vm3 = vsmask.f32 3328 }
   0xe   : > { %vm1200_vm4 = vsmask.f32 7440  ;;  %vm5538_vm5 = vmand %vm463_vm1, %vm467_vm2  ;;  %vm521_vm6 = vsmask.f32 7938  ;;  %464 = vst.msk [vmem:[#allocation2 + $0x8] sm:$0x1] %vm463_vm1, %v5477_v0 }
   0xf   : > { %520 = vst.msk [vmem:[#allocation2 + $0xd4] sm:$0x1] %vm463_vm1, %v5477_v0  ;;  %v470_v3 = vsel %vm5538_vm5, 0, %v469_v1  ;;  %v523_v4 = vld [vmem:[#allocation2 + $0x14] sm:$0x1]  ;;  %s5221_s23 = sshll.u32 %s7129_s22, 7  ;;  %vm5563_vm7 = vmand %vm463_vm1, %vm521_vm6 }
  0x10   : > { %v472_v5 = vld [vmem:[#allocation2 + $0x18] sm:$0x1]  ;;  %471 = vst [vmem:[#allocation2 + $0xc] sm:$0x1] %v470_v3  ;;  %v526_v7 = vld [vmem:[#allocation2 + $0x20] sm:$0x1]  ;;  %s5554_s26 = scalar_lea.vmem %s7109_s0, %s5221_s23  ;;  %vm5593_vm9 = vmor %vm1199_vm3, %vm1200_vm4 }
  0x11   : > { %v473_v6 = vsel %vm5538_vm5, 0, %v472_v5  ;;  %v475_v8 = vld [vmem:[#allocation2 + $0x24] sm:$0x1]  ;;  %v5559_v9 = vld [vmem:[%s7110_s1] ss:$0 sm:$0xff]  ;;  %v524_v14 = vsel %vm5563_vm7, 0, %v523_v4  ;;  %vm5615_vm11 = vmand %vm460_vm0, %vm521_vm6 }
  0x12   : > { %474 = vst [vmem:[#allocation2 + $0x18] sm:$0x1] %v473_v6  ;;  %v476_v11 = vsel %vm5538_vm5, 0, %v475_v8  ;;  %v529_v12 = vld [vmem:[#allocation2 + $0x2c] sm:$0x1]  ;;  %v5288_v13 = vld [vmem:[%s5554_s26] sm:$0xff]  }
  0x13   : > { %v5351_v15 = vld [vmem:[%s5554_s26 + $0x8] sm:$0xff]   ;;  %v527_v16 = vsel %vm5563_vm7, 0, %v526_v7  ;;  %477 = vst [vmem:[#allocation2 + $0x24] sm:$0x1] %v476_v11  ;;  %v530_v17 = vsel %vm5563_vm7, 0, %v529_v12  ;;  %v5289_v20 = vunpack.c.l.bf16 %v5288_v13  ;;  %v5290_v21 = vunpack.c.h.bf16 %v5288_v13  ;;  %v5352_v34 = vld [vmem:[%s5554_s26 + $0x10] sm:$0xff]  }
  0x14   : > { %v1151_v18 = vld [vmem:[#allocation2] sm:$0xf]  ;;  %v1152_v19 = vld [vmem:[#allocation2 + $0x4] sm:$0xf]  ;;  %525 = vst [vmem:[#allocation2 + $0x14] sm:$0x1] %v524_v14  ;;  %v5293_v22 = vunpack.c.l.bf16 %v5351_v15  ;;  %v5294_v23 = vunpack.c.h.bf16 %v5351_v15  ;;  %v5297_v46 = vunpack.c.l.bf16 %v5352_v34  ;;  %v5298_v55 = vunpack.c.h.bf16 %v5352_v34 }
  0x15   : > { %528 = vst [vmem:[#allocation2 + $0x20] sm:$0x1] %v527_v16  ;;  %531 = vst [vmem:[#allocation2 + $0x2c] sm:$0x1] %v530_v17  ;;  %v1203_v24 = vshrl.u32 %v1151_v18, 16  ;;  %v1206_v25 = vshll.u32 %v1151_v18, 16  ;;  %v342_v29 = vmul.f32 %v5289_v20, %v5559_v9  ;;  %v343_v30 = vmul.f32 %v5290_v21, %v5559_v9 }
  0x16   : > { %v1212_v26 = vshll.u32 %v1152_v19, 16  ;;  %v1216_v27 = vshrl.u32 %v1152_v19, 16  ;;  %v5580_v28 = vld [vmem:[%s7111_s2] ss:$0 sm:$0xff]  ;;  %vm651_vm8 = vsmask.f32 4368  ;;  %v344_v32 = vmul.f32 %v5293_v22, %v5559_v9 }
  0x17   : > { %v1153_v31 = vld [vmem:[#allocation2 + $0x8] sm:$0x1]  ;;  %v345_v33 = vmul.f32 %v5294_v23, %v5559_v9  ;;  %v1205_v35 = vrot.slane %v1203_v24, 4  ;;  %v1208_v36 = vrot.slane %v1206_v25, 5  ;;  %v380_v39 = vadd.f32 %v5580_v28, %v342_v29  ;;  %v5353_v5 = vld [vmem:[%s5554_s26 + $0x18] sm:$0xff]   ;;  %vm5607_vm10 = vmor %vm467_vm2, %vm651_vm8 }
  0x18   : > { %v1214_v37 = vrot.slane %v1212_v26, 5  ;;  %v1218_v38 = vrot.slane %v1216_v27, 4  ;;  %v381_v40 = vadd.f32 %v5580_v28, %v343_v30  ;;  %v1222_v41 = vshll.u32 %v1153_v31, 16  ;;  %v975_v18 = vld [vmem:[#allocation2 + $0xc] sm:$0xf] }
  0x19   : > { %v382_v42 = vadd.f32 %v5580_v28, %v344_v32  ;;  %v1209_v43 = vor.u32 %v1208_v36, %v1205_v35  ;;  %v383_v45 = vadd.f32 %v5580_v28, %v345_v33  ;;  %v412_v48 = vmax.f32 %v380_v39, 0.0  ;;  %v982_v29 = vld [vmem:[#allocation2 + $0x18] sm:$0xf]  ;;  %v478_v35 = vld [vmem:[#allocation2 + $0x30] sm:$0x1] }
  0x1a   : > { %v1219_v44 = vor.u32 %v1218_v38, %v1214_v37  ;;  %v413_v49 = vmax.f32 %v381_v40, 0.0  ;;  %v1224_v50 = vrot.slane %v1222_v41, 5  ;;  %v346_v59 = vmul.f32 %v5297_v46, %v5559_v9  ;;  %v532_v40 = vld [vmem:[#allocation2 + $0x38] sm:$0x1]  ;;  %v5354_v41 = vld [vmem:[%s5554_s26 + $0x20] sm:$0xff]  }
  0x1b   : > { %v414_v51 = vmax.f32 %v382_v42, 0.0  ;;  %v1210_v52 = vrot.slane %v1209_v43, 4  ;;  %v415_v54 = vmax.f32 %v383_v45, 0.0  ;;  %v5223_v56 = vpack.c.bf16 %v412_v48, %v412_v48  ;;  %v979_v19 = vld [vmem:[#allocation2 + $0x14] sm:$0x1] }
  0x1c   : > { %v1220_v53 = vrot.slane %v1219_v44, 4  ;;  %v5224_v57 = vpack.c.bf16 %v413_v49, %v413_v49  ;;  %v347_v63 = vmul.f32 %v5298_v55, %v5559_v9  ;;  %v384_v15 = vadd.f32 %v5580_v28, %v346_v59  ;;  %v986_v30 = vld [vmem:[#allocation2 + $0x20] sm:$0x1]  ;;  %v481_v55 = vld [vmem:[#allocation2 + $0x3c] sm:$0x1] }
  0x1d   : > { %v5225_v58 = vpack.c.bf16 %v414_v51, %v414_v51  ;;  %v1215_v60 = vsel %vm5593_vm9, %v1210_v52, %v1214_v37  ;;  %v5226_v62 = vpack.c.bf16 %v415_v54, %v415_v54  ;;  %v654_v0 = vshrl.u32 %v5223_v56, 16 }
  0x1e   : > { %v1225_v61 = vsel %vm5593_vm9, %v1220_v53, %v1224_v50  ;;  %1586 = vrot.lane.b32.xlu0 %v1215_v60, %s5478_s7  ;;  %v657_v1 = vshll.u32 %v5223_v56, 16  ;;  %v662_v3 = vshrl.u32 %v5224_v57, 16  ;;  %v665_v4 = vshll.u32 %v5224_v57, 16  ;;  %v535_v60 = vld [vmem:[#allocation2 + $0x44] sm:$0x1] }
  0x1f   : > { %v671_v6 = vshrl.u32 %v5225_v58, 16  ;;  %v674_v7 = vshll.u32 %v5225_v58, 16  ;;  %v679_v8 = vshrl.u32 %v5226_v62, 16  ;;  %v682_v11 = vshll.u32 %v5226_v62, 16 }
  0x20   : > { %v656_v13 = vrot.slane %v654_v0, 7  ;;  %v664_v14 = vrot.slane %v662_v3, 7  ;;  %v385_v16 = vadd.f32 %v5580_v28, %v347_v63  ;;  %v5301_v22 = vunpack.c.l.bf16 %v5353_v5 }
  0x21   : > { %v673_v20 = vrot.slane %v671_v6, 7  ;;  %v681_v21 = vrot.slane %v679_v8, 7  ;;  %v5302_v23 = vunpack.c.h.bf16 %v5353_v5  ;;  %v416_v39 = vmax.f32 %v384_v15, 0.0 }
  0x22   : > { %v659_v24 = vor.u32 %v657_v1, %v656_v13  ;;  %v660_v25 = vrot.slane %v656_v13, 4  ;;  %v667_v26 = vor.u32 %v665_v4, %v664_v14  ;;  %1588 = vrot.lane.b32.xlu0 %v1225_v61, %s5478_s7  ;;  %v669_v27 = vrot.slane %v664_v14, 4  ;;  %v5646_v1 = vld [vmem:[%s5554_s26 + $0x28] sm:$0xff]  }
  0x23   : > { %v676_v31 = vor.u32 %v674_v7, %v673_v20  ;;  %v677_v32 = vrot.slane %v673_v20, 4  ;;  %v684_v33 = vor.u32 %v682_v11, %v681_v21  ;;  %v686_v34 = vrot.slane %v681_v21, 4 }
  0x24   : > { %v668_v36 = vsel %vm5607_vm10, %v660_v25, %v667_v26  ;;  %v976_v37 = vsel %vm5615_vm11, %v659_v24, %v975_v18  ;;  %v980_v38 = vsel %vm5538_vm5, %v669_v27, %v979_v19  ;;  %v417_v45 = vmax.f32 %v385_v16, 0.0  ;;  %v989_v27 = vld [vmem:[#allocation2 + $0x24] sm:$0xf] }
  0x25   : > { %977 = vst [vmem:[#allocation2 + $0xc] sm:$0xf] %v976_v37  ;;  %978 = vst.msk [vmem:[#allocation2 + $0x10] sm:$0xf] %vm460_vm0, %v668_v36  ;;  %v685_v42 = vsel %vm5607_vm10, %v677_v32, %v684_v33  ;;  %v983_v43 = vsel %vm5615_vm11, %v676_v31, %v982_v29  ;;  %v987_v44 = vsel %vm5538_vm5, %v686_v34, %v986_v30  ;;  %v479_v50 = vsel %vm5538_vm5, 0, %v478_v35 }
  0x26   : > { %981 = vst [vmem:[#allocation2 + $0x14] sm:$0x1] %v980_v38  ;;  %984 = vst [vmem:[#allocation2 + $0x18] sm:$0xf] %v983_v43  ;;  %v5227_v46 = vpack.c.bf16 %v416_v39, %v416_v39  ;;  %v348_v48 = vmul.f32 %v5301_v22, %v5559_v9  ;;  %v349_v49 = vmul.f32 %v5302_v23, %v5559_v9  ;;  %v533_v52 = vsel %vm5563_vm7, 0, %v532_v40 }
  0x27   : > { %985 = vst.msk [vmem:[#allocation2 + $0x1c] sm:$0xf] %vm460_vm0, %v685_v42  ;;  %988 = vst [vmem:[#allocation2 + $0x20] sm:$0x1] %v987_v44  ;;  %v5228_v51 = vpack.c.bf16 %v417_v45, %v417_v45  ;;  %v5305_v53 = vunpack.c.l.bf16 %v5354_v41  ;;  %v5306_v54 = vunpack.c.h.bf16 %v5354_v41  ;;  %v482_v6 = vsel %vm5538_vm5, 0, %v481_v55 }
  0x28   : > { %480 = vst [vmem:[#allocation2 + $0x30] sm:$0x1] %v479_v50  ;;  %v688_v56 = vshrl.u32 %v5227_v46, 16  ;;  %v691_v57 = vshll.u32 %v5227_v46, 16  ;;  %v386_v58 = vadd.f32 %v5580_v28, %v348_v48  ;;  %v387_v59 = vadd.f32 %v5580_v28, %v349_v49  ;;  %534 = vst [vmem:[#allocation2 + $0x38] sm:$0x1] %v533_v52 }
  0x29   : > { %v696_v61 = vshrl.u32 %v5228_v51, 16  ;;  %v699_v62 = vshll.u32 %v5228_v51, 16  ;;  %v350_v63 = vmul.f32 %v5305_v53, %v5559_v9  ;;  %v351_v0 = vmul.f32 %v5306_v54, %v5559_v9  ;;  %483 = vst [vmem:[#allocation2 + $0x3c] sm:$0x1] %v482_v6 }
  0x2a   : > { %v690_v3 = vrot.slane %v688_v56, 7  ;;  %v418_v4 = vmax.f32 %v386_v58, 0.0  ;;  %v419_v5 = vmax.f32 %v387_v59, 0.0  ;;  %v536_v13 = vsel %vm5563_vm7, 0, %v535_v60  ;;  %v993_v56 = vld [vmem:[#allocation2 + $0x2c] sm:$0x1] }
  0x2b   : > { %v698_v7 = vrot.slane %v696_v61, 7  ;;  %v5651_v8 = vadd.f32 %v5580_v28, %v350_v63  ;;  %v5654_v11 = vadd.f32 %v5580_v28, %v351_v0  ;;  %537 = vst [vmem:[#allocation2 + $0x44] sm:$0x1] %v536_v13  ;;  %v5309_v21 = vunpack.c.l.bf16 %v5646_v1 }
  0x2c   : > { %v1154_v14 = vld [vmem:[#allocation2 + $0xc] sm:$0xf]  ;;  %v1155_v15 = vld [vmem:[#allocation2 + $0x10] sm:$0xf]  ;;  %v693_v18 = vor.u32 %v691_v57, %v690_v3  ;;  %v5229_v19 = vpack.c.bf16 %v418_v4, %v418_v4  ;;  %v5658_v20 = vpack.c.bf16 %v419_v5, %v419_v5  ;;  %v694_v33 = vrot.slane %v690_v3, 4 }
  0x2d   : > { %v1156_v16 = vld [vmem:[#allocation2 + $0x14] sm:$0x1]  ;;  %v1227_v22 = vshrl.u32 %v1154_v14, 16  ;;  %v1230_v23 = vshll.u32 %v1154_v14, 16  ;;  %v1236_v24 = vshll.u32 %v1155_v15, 16  ;;  %v1240_v25 = vshrl.u32 %v1155_v15, 16 }
  0x2e   : > { %v1157_v26 = vld [vmem:[#allocation2 + $0x18] sm:$0xf]  ;;  %v1246_v29 = vshll.u32 %v1156_v16, 16  ;;  %v1158_v30 = vld [vmem:[#allocation2 + $0x1c] sm:$0xf]  ;;  %v701_v50 = vor.u32 %v699_v62, %v698_v7  ;;  %v990_v51 = vsel %vm5615_vm11, %v693_v18, %v989_v27  ;;  %v703_v59 = vrot.slane %v698_v7, 4 }
  0x2f   : > { %v1251_v31 = vshrl.u32 %v1157_v26, 16  ;;  %v1254_v32 = vshll.u32 %v1157_v26, 16  ;;  %v1229_v34 = vrot.slane %v1227_v22, 4  ;;  %v1232_v35 = vrot.slane %v1230_v23, 5  ;;  %v1159_v38 = vld [vmem:[#allocation2 + $0x20] sm:$0x1] }
  0x30   : > { %v1238_v36 = vrot.slane %v1236_v24, 5  ;;  %v1242_v37 = vrot.slane %v1240_v25, 4  ;;  %v1248_v39 = vrot.slane %v1246_v29, 5  ;;  %v1260_v42 = vshll.u32 %v1158_v30, 16  ;;  %991 = vst [vmem:[#allocation2 + $0x24] sm:$0xf] %v990_v51 }
  0x31   : > { %v1253_v40 = vrot.slane %v1251_v31, 4  ;;  %v1256_v41 = vrot.slane %v1254_v32, 5  ;;  %v1233_v43 = vor.u32 %v1232_v35, %v1229_v34  ;;  %v1264_v45 = vshrl.u32 %v1158_v30, 16  ;;  %v996_v14 = vld [vmem:[#allocation2 + $0x30] sm:$0xf] }
  0x32   : > { %v1243_v44 = vor.u32 %v1242_v37, %v1238_v36  ;;  %v1270_v46 = vshll.u32 %v1159_v38, 16  ;;  %v1262_v49 = vrot.slane %v1260_v42, 5  ;;  %v702_v58 = vsel %vm5607_vm10, %v694_v33, %v701_v50  ;;  %v1000_v25 = vld [vmem:[#allocation2 + $0x38] sm:$0x1] }
  0x33   : > { %v1257_v48 = vor.u32 %v1256_v41, %v1253_v40  ;;  %v1234_v52 = vrot.slane %v1233_v43, 4  ;;  %v1266_v54 = vrot.slane %v1264_v45, 4  ;;  %v705_v60 = vshrl.u32 %v5229_v19, 16  ;;  %992 = vst.msk [vmem:[#allocation2 + $0x28] sm:$0xf] %vm460_vm0, %v702_v58 }
  0x34   : > { %v1244_v53 = vrot.slane %v1243_v44, 4  ;;  %v1272_v55 = vrot.slane %v1270_v46, 5  ;;  %v708_v0 = vshll.u32 %v5229_v19, 16  ;;  %v994_v4 = vsel %vm5538_vm5, %v703_v59, %v993_v56  ;;  %v1003_v46 = vld [vmem:[#allocation2 + $0x3c] sm:$0xf] }
  0x35   : > { %v1258_v57 = vrot.slane %v1257_v48, 4  ;;  %v1239_v61 = vsel %vm5593_vm9, %v1234_v52, %v1238_v36  ;;  %v1267_v63 = vor.u32 %v1266_v54, %v1262_v49  ;;  %v707_v5 = vrot.slane %v705_v60, 7  ;;  %995 = vst [vmem:[#allocation2 + $0x2c] sm:$0x1] %v994_v4  ;;  %v1007_v54 = vld [vmem:[#allocation2 + $0x44] sm:$0x1] }
  0x36   : > { %v1249_v62 = vsel %vm5593_vm9, %v1244_v53, %v1248_v39  ;;  %1590 = vrot.lane.b32.xlu1 %v1239_v61, %s5478_s7  ;;  %v713_v6 = vshrl.u32 %v5658_v20, 16  ;;  %v716_v13 = vshll.u32 %v5658_v20, 16  ;;  %v420_v15 = vmax.f32 %v5651_v8, 0.0  ;;  %v484_v59 = vld [vmem:[#allocation2 + $0x48] sm:$0x1] }
  0x37   : > { %v1263_v3 = vsel %vm5593_vm9, %v1258_v57, %v1262_v49  ;;  %v1268_v7 = vrot.slane %v1267_v63, 4  ;;  %v421_v16 = vmax.f32 %v5654_v11, 0.0  ;;  %v710_v18 = vor.u32 %v708_v0, %v707_v5  ;;  %v1160_v8 = vld [vmem:[#allocation2 + $0x24] sm:$0xf]  ;;  %v538_v0 = vld [vmem:[#allocation2 + $0x50] sm:$0x1] }
  0x38   : > { %1594 = vrot.lane.b32.xlu0 %v1263_v3, %s5478_s7  ;;  %v711_v19 = vrot.slane %v707_v5, 4  ;;  %v715_v22 = vrot.slane %v713_v6, 7  ;;  %v5310_v23 = vunpack.c.h.bf16 %v5646_v1  ;;  %v5231_v26 = vpack.c.bf16 %v420_v15, %v420_v15 }
  0x39   : > { %v1273_v24 = vsel %vm5593_vm9, %v1268_v7, %v1272_v55  ;;  %v5232_v27 = vpack.c.bf16 %v421_v16, %v421_v16  ;;  %v352_v20 = vmul.f32 %v5309_v21, %v5559_v9  ;;  %v997_v11 = vsel %vm5615_vm11, %v710_v18, %v996_v14 }
  0x3a   : > { %1592 = vrot.lane.b32.xlu1 %v1249_v62, %s5478_s7  ;;  %v718_v29 = vor.u32 %v716_v13, %v715_v22  ;;  %v720_v30 = vrot.slane %v715_v22, 4  ;;  %v353_v31 = vmul.f32 %v5310_v23, %v5559_v9  ;;  %v1275_v32 = vshrl.u32 %v1160_v8, 16  ;;  %998 = vst [vmem:[#allocation2 + $0x30] sm:$0xf] %v997_v11  ;;  %v1161_v36 = vld [vmem:[#allocation2 + $0x28] sm:$0xf] }
  0x3b   : > { %v1278_v33 = vshll.u32 %v1160_v8, 16  ;;  %v722_v34 = vshrl.u32 %v5231_v26, 16  ;;  %v725_v35 = vshll.u32 %v5231_v26, 16  ;;  %v730_v37 = vshrl.u32 %v5232_v27, 16 }
  0x3c   : > { %v719_v1 = vsel %vm5607_vm10, %v711_v19, %v718_v29  ;;  %v1001_v21 = vsel %vm5538_vm5, %v720_v30, %v1000_v25  ;;  %v733_v38 = vshll.u32 %v5232_v27, 16  ;;  %v1277_v39 = vrot.slane %v1275_v32, 4  ;;  %v1162_v43 = vld [vmem:[#allocation2 + $0x2c] sm:$0x1]  ;;  %v5356_v29 = vld [vmem:[%s5554_s26 + $0x30] sm:$0xff]  }
  0x3d   : > { %v1280_v40 = vrot.slane %v1278_v33, 5  ;;  %v1284_v41 = vshll.u32 %v1161_v36, 16  ;;  %v1288_v42 = vshrl.u32 %v1161_v36, 16  ;;  %999 = vst.msk [vmem:[#allocation2 + $0x34] sm:$0xf] %vm460_vm0, %v719_v1  ;;  %v724_v44 = vrot.slane %v722_v34, 7 }
  0x3e   : > { %1002 = vst [vmem:[#allocation2 + $0x38] sm:$0x1] %v1001_v21  ;;  %1596 = vrot.lane.b32.xlu1 %v1273_v24, %s5478_s7  ;;  %v732_v45 = vrot.slane %v730_v37, 7  ;;  %v390_v48 = vadd.f32 %v5580_v28, %v352_v20  ;;  %v391_v49 = vadd.f32 %v5580_v28, %v353_v31  ;;  %v1294_v53 = vshll.u32 %v1162_v43, 16  ;;  %v487_v33 = vld [vmem:[#allocation2 + $0x54] sm:$0x1] }
  0x3f   : > { %v1281_v50 = vor.u32 %v1280_v40, %v1277_v39  ;;  %v1286_v51 = vrot.slane %v1284_v41, 5  ;;  %v1290_v52 = vrot.slane %v1288_v42, 4  ;;  %v727_v55 = vor.u32 %v725_v35, %v724_v44  ;;  %v5357_v21 = vld [vmem:[%s5554_s26 + $0x38] sm:$0xff]  }
  0x40   : > { %v728_v56 = vrot.slane %v724_v44, 4  ;;  %v735_v57 = vor.u32 %v733_v38, %v732_v45  ;;  %v737_v58 = vrot.slane %v732_v45, 4  ;;  %v1296_v62 = vrot.slane %v1294_v53, 5 }
  0x41   : > { %v1282_v60 = vrot.slane %v1281_v50, 4  ;;  %v1291_v61 = vor.u32 %v1290_v52, %v1286_v51  ;;  %v422_v63 = vmax.f32 %v390_v48, 0.0  ;;  %v1163_v3 = vld [vmem:[#allocation2 + $0x30] sm:$0xf]  ;;  %v1004_v5 = vsel %vm5615_vm11, %v727_v55, %v1003_v46 }
  0x42   : > { %v736_v4 = vsel %vm5607_vm10, %v728_v56, %v735_v57  ;;  %v1008_v6 = vsel %vm5538_vm5, %v737_v58, %v1007_v54  ;;  %v423_v7 = vmax.f32 %v391_v49, 0.0  ;;  %v1299_v15 = vshrl.u32 %v1163_v3, 16  ;;  %1005 = vst [vmem:[#allocation2 + $0x3c] sm:$0xf] %v1004_v5 }
  0x43   : > { %v1287_v13 = vsel %vm5593_vm9, %v1282_v60, %v1286_v51  ;;  %v1292_v14 = vrot.slane %v1291_v61, 4  ;;  %v1302_v16 = vshll.u32 %v1163_v3, 16  ;;  %1006 = vst.msk [vmem:[#allocation2 + $0x40] sm:$0xf] %vm460_vm0, %v736_v4  ;;  %1009 = vst [vmem:[#allocation2 + $0x44] sm:$0x1] %v1008_v6  ;;  %v5233_v23 = vpack.c.bf16 %v422_v63, %v422_v63 }
  0x44   : > { %1598 = vrot.lane.b32.xlu0 %v1287_v13, %s5478_s7  ;;  %v1164_v18 = vld [vmem:[#allocation2 + $0x34] sm:$0xf]  ;;  %v485_v22 = vsel %vm5538_vm5, 0, %v484_v59  ;;  %v5234_v24 = vpack.c.bf16 %v423_v7, %v423_v7  ;;  %v539_v25 = vsel %vm5563_vm7, 0, %v538_v0  ;;  %v1301_v27 = vrot.slane %v1299_v15, 4 }
  0x45   : > { %v1165_v19 = vld [vmem:[#allocation2 + $0x38] sm:$0x1]  ;;  %v1297_v26 = vsel %vm5593_vm9, %v1292_v14, %v1296_v62  ;;  %v1304_v20 = vrot.slane %v1302_v16, 5  ;;  %v1308_v8 = vshll.u32 %v1164_v18, 16  ;;  %486 = vst [vmem:[#allocation2 + $0x48] sm:$0x1] %v485_v22  ;;  %v5313_v40 = vunpack.c.l.bf16 %v5356_v29 }
  0x46   : > { %540 = vst [vmem:[#allocation2 + $0x50] sm:$0x1] %v539_v25  ;;  %1600 = vrot.lane.b32.xlu1 %v1297_v26, %s5478_s7  ;;  %v1312_v11 = vshrl.u32 %v1164_v18, 16  ;;  %v1318_v30 = vshll.u32 %v1165_v19, 16  ;;  %v739_v31 = vshrl.u32 %v5233_v23, 16  ;;  %v742_v32 = vshll.u32 %v5233_v23, 16 }
  0x47   : > { %v1305_v34 = vor.u32 %v1304_v20, %v1301_v27  ;;  %v1310_v35 = vrot.slane %v1308_v8, 5  ;;  %v747_v36 = vshrl.u32 %v5234_v24, 16  ;;  %v750_v1 = vshll.u32 %v5234_v24, 16  ;;  %v541_v4 = vld [vmem:[#allocation2 + $0x5c] sm:$0x1] }
  0x48   : > { %v1314_v37 = vrot.slane %v1312_v11, 4  ;;  %v1320_v38 = vrot.slane %v1318_v30, 5  ;;  %v741_v39 = vrot.slane %v739_v31, 7  ;;  %v5314_v43 = vunpack.c.h.bf16 %v5356_v29  ;;  %v490_v22 = vld [vmem:[#allocation2 + $0x60] sm:$0x1] }
  0x49   : > { %v1306_v41 = vrot.slane %v1305_v34, 4  ;;  %v749_v42 = vrot.slane %v747_v36, 7  ;;  %v488_v44 = vsel %vm5538_vm5, 0, %v487_v33  ;;  %v1166_v46 = vld [vmem:[#allocation2 + $0x3c] sm:$0xf]  ;;  %v354_v51 = vmul.f32 %v5313_v40, %v5559_v9  ;;  %v5740_v30 = vld [vmem:[%s5554_s26 + $0x40] sm:$0xff]  }
  0x4a   : > { %v1315_v45 = vor.u32 %v1314_v37, %v1310_v35  ;;  %v1167_v48 = vld [vmem:[#allocation2 + $0x40] sm:$0xf]  ;;  %v1168_v49 = vld [vmem:[#allocation2 + $0x44] sm:$0x1]  ;;  %v744_v50 = vor.u32 %v742_v32, %v741_v39  ;;  %489 = vst [vmem:[#allocation2 + $0x54] sm:$0x1] %v488_v44  ;;  %v5317_v52 = vunpack.c.l.bf16 %v5357_v21  ;;  %v355_v19 = vmul.f32 %v5314_v43, %v5559_v9 }
  0x4b   : > { %v1311_v53 = vsel %vm5593_vm9, %v1306_v41, %v1310_v35  ;;  %v1323_v54 = vshrl.u32 %v1166_v46, 16  ;;  %v1326_v55 = vshll.u32 %v1166_v46, 16  ;;  %v1332_v56 = vshll.u32 %v1167_v48, 16  ;;  %v544_v27 = vld [vmem:[#allocation2 + $0x68] sm:$0x1] }
  0x4c   : > { %1602 = vrot.lane.b32.xlu0 %v1311_v53, %s5478_s7  ;;  %v1316_v57 = vrot.slane %v1315_v45, 4  ;;  %v1336_v58 = vshrl.u32 %v1167_v48, 16  ;;  %v1342_v59 = vshll.u32 %v1168_v49, 16  ;;  %v745_v60 = vrot.slane %v741_v39, 4  ;;  %v1010_v61 = vld [vmem:[#allocation2 + $0x48] sm:$0xf] }
  0x4d   : > { %v1325_v62 = vrot.slane %v1323_v54, 4  ;;  %v1328_v63 = vrot.slane %v1326_v55, 5  ;;  %v1334_v0 = vrot.slane %v1332_v56, 5  ;;  %v752_v3 = vor.u32 %v750_v1, %v749_v42  ;;  %v1014_v14 = vld [vmem:[#allocation2 + $0x50] sm:$0x1] }
  0x4e   : > { %v1321_v5 = vsel %vm5593_vm9, %v1316_v57, %v1320_v38  ;;  %v1338_v6 = vrot.slane %v1336_v58, 4  ;;  %v1344_v7 = vrot.slane %v1342_v59, 5  ;;  %v1011_v13 = vsel %vm5615_vm11, %v744_v50, %v1010_v61  ;;  %v493_v35 = vld [vmem:[#allocation2 + $0x6c] sm:$0x1] }
  0x4f   : > { %1604 = vrot.lane.b32.xlu1 %v1321_v5, %s5478_s7  ;;  %v1329_v15 = vor.u32 %v1328_v63, %v1325_v62  ;;  %v753_v16 = vsel %vm5607_vm10, %v745_v60, %v752_v3  ;;  %1012 = vst [vmem:[#allocation2 + $0x48] sm:$0xf] %v1011_v13  ;;  %v754_v18 = vrot.slane %v749_v42, 4  ;;  %v392_v24 = vadd.f32 %v5580_v28, %v354_v51 }
  0x50   : > { %v1339_v23 = vor.u32 %v1338_v6, %v1334_v0  ;;  %1013 = vst.msk [vmem:[#allocation2 + $0x4c] sm:$0xf] %vm460_vm0, %v753_v16  ;;  %v542_v25 = vsel %vm5563_vm7, 0, %v541_v4  ;;  %v5318_v26 = vunpack.c.h.bf16 %v5357_v21  ;;  %v393_v29 = vadd.f32 %v5580_v28, %v355_v19 }
  0x51   : > { %v1330_v20 = vrot.slane %v1329_v15, 4  ;;  %v1015_v8 = vsel %vm5538_vm5, %v754_v18, %v1014_v14  ;;  %543 = vst [vmem:[#allocation2 + $0x5c] sm:$0x1] %v542_v25  ;;  %v356_v11 = vmul.f32 %v5317_v52, %v5559_v9  ;;  %v424_v32 = vmax.f32 %v392_v24, 0.0  ;;  %v1017_v60 = vld [vmem:[#allocation2 + $0x54] sm:$0xf] }
  0x52   : > { %v1340_v31 = vrot.slane %v1339_v23, 4  ;;  %1016 = vst [vmem:[#allocation2 + $0x50] sm:$0x1] %v1015_v8  ;;  %v357_v33 = vmul.f32 %v5318_v26, %v5559_v9  ;;  %v491_v34 = vsel %vm5538_vm5, 0, %v490_v22  ;;  %v425_v1 = vmax.f32 %v393_v29, 0.0 }
  0x53   : > { %v1335_v36 = vsel %vm5593_vm9, %v1330_v20, %v1334_v0  ;;  %v394_v21 = vadd.f32 %v5580_v28, %v356_v11  ;;  %492 = vst [vmem:[#allocation2 + $0x60] sm:$0x1] %v491_v34  ;;  %v545_v37 = vsel %vm5563_vm7, 0, %v544_v27  ;;  %v5235_v39 = vpack.c.bf16 %v424_v32, %v424_v32  ;;  %v547_v26 = vld [vmem:[#allocation2 + $0x74] sm:$0x1] }
  0x54   : > { %1606 = vrot.lane.b32.xlu0 %v1335_v36, %s5478_s7  ;;  %v1345_v38 = vsel %vm5593_vm9, %v1340_v31, %v1344_v7  ;;  %v395_v40 = vadd.f32 %v5580_v28, %v357_v33  ;;  %546 = vst [vmem:[#allocation2 + $0x68] sm:$0x1] %v545_v37  ;;  %v5321_v41 = vunpack.c.l.bf16 %v5740_v30  ;;  %v5236_v42 = vpack.c.bf16 %v425_v1, %v425_v1  ;;  %v5359_v33 = vld [vmem:[%s5554_s26 + $0x48] sm:$0xff]   ;;  %v496_v37 = vld [vmem:[#allocation2 + $0x78] sm:$0x1] }
  0x55   : > { %1608 = vrot.lane.b32.xlu1 %v1345_v38, %s5478_s7  ;;  %v426_v43 = vmax.f32 %v394_v21, 0.0  ;;  %v5322_v44 = vunpack.c.h.bf16 %v5740_v30  ;;  %v494_v45 = vsel %vm5538_vm5, 0, %v493_v35  ;;  %v756_v48 = vshrl.u32 %v5235_v39, 16 }
  0x56   : > { %v1169_v46 = vld [vmem:[#allocation2 + $0x48] sm:$0xf]  ;;  %v759_v49 = vshll.u32 %v5235_v39, 16  ;;  %v427_v50 = vmax.f32 %v395_v40, 0.0  ;;  %v358_v51 = vmul.f32 %v5321_v41, %v5559_v9  ;;  %495 = vst [vmem:[#allocation2 + $0x6c] sm:$0x1] %v494_v45  ;;  %v5325_v45 = vunpack.c.l.bf16 %v5359_v33 }
  0x57   : > { %v1170_v52 = vld [vmem:[#allocation2 + $0x4c] sm:$0xf]  ;;  %v1347_v53 = vshrl.u32 %v1169_v46, 16  ;;  %v1350_v54 = vshll.u32 %v1169_v46, 16  ;;  %v764_v55 = vshrl.u32 %v5236_v42, 16  ;;  %v767_v56 = vshll.u32 %v5236_v42, 16 }
  0x58   : > { %v1356_v57 = vshll.u32 %v1170_v52, 16  ;;  %v1360_v58 = vshrl.u32 %v1170_v52, 16  ;;  %v758_v59 = vrot.slane %v756_v48, 7  ;;  %v5237_v61 = vpack.c.bf16 %v426_v43, %v426_v43  ;;  %v1021_v14 = vld [vmem:[#allocation2 + $0x5c] sm:$0x1] }
  0x59   : > { %v1349_v62 = vrot.slane %v1347_v53, 4  ;;  %v1352_v63 = vrot.slane %v1350_v54, 5  ;;  %v1171_v0 = vld [vmem:[#allocation2 + $0x50] sm:$0x1]  ;;  %v766_v3 = vrot.slane %v764_v55, 7  ;;  %v5238_v4 = vpack.c.bf16 %v427_v50, %v427_v50 }
  0x5a   : > { %v1358_v5 = vrot.slane %v1356_v57, 5  ;;  %v1362_v6 = vrot.slane %v1360_v58, 4  ;;  %v1366_v7 = vshll.u32 %v1171_v0, 16  ;;  %v761_v13 = vor.u32 %v759_v49, %v758_v59  ;;  %v1024_v35 = vld [vmem:[#allocation2 + $0x60] sm:$0xf]  ;;  %v5780_v49 = vld [vmem:[%s5554_s26 + $0x50] sm:$0xff]  }
  0x5b   : > { %v1353_v15 = vor.u32 %v1352_v63, %v1349_v62  ;;  %v762_v16 = vrot.slane %v758_v59, 4  ;;  %v769_v18 = vor.u32 %v767_v56, %v766_v3  ;;  %v771_v19 = vrot.slane %v766_v3, 4  ;;  %v1028_v42 = vld [vmem:[#allocation2 + $0x68] sm:$0x1]  ;;  %v550_v48 = vld [vmem:[#allocation2 + $0x80] sm:$0x1] }
  0x5c   : > { %v1363_v22 = vor.u32 %v1362_v6, %v1358_v5  ;;  %v1368_v23 = vrot.slane %v1366_v7, 5  ;;  %v1018_v24 = vsel %vm5615_vm11, %v761_v13, %v1017_v60  ;;  %v773_v25 = vshrl.u32 %v5237_v61, 16 }
  0x5d   : > { %v1354_v27 = vrot.slane %v1353_v15, 4  ;;  %v770_v20 = vsel %vm5607_vm10, %v762_v16, %v769_v18  ;;  %1019 = vst [vmem:[#allocation2 + $0x54] sm:$0xf] %v1018_v24  ;;  %v1022_v8 = vsel %vm5538_vm5, %v771_v19, %v1021_v14  ;;  %v776_v29 = vshll.u32 %v5237_v61, 16 }
  0x5e   : > { %v1364_v11 = vrot.slane %v1363_v22, 4  ;;  %1020 = vst.msk [vmem:[#allocation2 + $0x58] sm:$0xf] %vm460_vm0, %v770_v20  ;;  %1023 = vst [vmem:[#allocation2 + $0x5c] sm:$0x1] %v1022_v8  ;;  %v775_v30 = vrot.slane %v773_v25, 7  ;;  %v359_v36 = vmul.f32 %v5322_v44, %v5559_v9  ;;  %v396_v1 = vadd.f32 %v5580_v28, %v358_v51 }
  0x5f   : > { %v781_v31 = vshrl.u32 %v5238_v4, 16  ;;  %v784_v32 = vshll.u32 %v5238_v4, 16  ;;  %v1359_v34 = vsel %vm5593_vm9, %v1354_v27, %v1358_v5  ;;  %v548_v21 = vsel %vm5563_vm7, 0, %v547_v26  ;;  %v1031_v8 = vld [vmem:[#allocation2 + $0x6c] sm:$0xf] }
  0x60   : > { %1610 = vrot.lane.b32.xlu0 %v1359_v34, %s5478_s7  ;;  %v1369_v38 = vsel %vm5593_vm9, %v1364_v11, %v1368_v23  ;;  %v778_v39 = vor.u32 %v776_v29, %v775_v30  ;;  %v779_v40 = vrot.slane %v775_v30, 4  ;;  %549 = vst [vmem:[#allocation2 + $0x74] sm:$0x1] %v548_v21  ;;  %v397_v43 = vadd.f32 %v5580_v28, %v359_v36 }
  0x61   : > { %v783_v41 = vrot.slane %v781_v31, 7  ;;  %1612 = vrot.lane.b32.xlu1 %v1369_v38, %s5478_s7  ;;  %v428_v44 = vmax.f32 %v396_v1, 0.0  ;;  %v5326_v46 = vunpack.c.h.bf16 %v5359_v33  ;;  %v497_v53 = vsel %vm5538_vm5, 0, %v496_v37 }
  0x62   : > { %v1025_v51 = vsel %vm5615_vm11, %v778_v39, %v1024_v35  ;;  %v429_v54 = vmax.f32 %v397_v43, 0.0  ;;  %v360_v56 = vmul.f32 %v5325_v45, %v5559_v9  ;;  %498 = vst [vmem:[#allocation2 + $0x78] sm:$0x1] %v497_v53  ;;  %v551_v61 = vsel %vm5563_vm7, 0, %v550_v48 }
  0x63   : > { %v786_v50 = vor.u32 %v784_v32, %v783_v41  ;;  %v788_v52 = vrot.slane %v783_v41, 4  ;;  %1026 = vst [vmem:[#allocation2 + $0x60] sm:$0xf] %v1025_v51  ;;  %v5239_v55 = vpack.c.bf16 %v428_v44, %v428_v44  ;;  %v361_v57 = vmul.f32 %v5326_v46, %v5559_v9  ;;  %552 = vst [vmem:[#allocation2 + $0x80] sm:$0x1] %v551_v61 }
  0x64   : > { %v1172_v58 = vld [vmem:[#allocation2 + $0x54] sm:$0xf]  ;;  %v5329_v62 = vunpack.c.l.bf16 %v5780_v49  ;;  %v5240_v9 = vpack.c.bf16 %v429_v54, %v429_v54  ;;  %v398_v5 = vadd.f32 %v5580_v28, %v360_v56  ;;  %v499_v56 = vld [vmem:[#allocation2 + $0x84] sm:$0x1]  ;;  %vm1811_vm12 = vcmask 1042432  }
  0x65   : > { %v787_v59 = vsel %vm5607_vm10, %v779_v40, %v786_v50  ;;  %v1029_v60 = vsel %vm5538_vm5, %v788_v52, %v1028_v42  ;;  %v1173_v63 = vld [vmem:[#allocation2 + $0x58] sm:$0xf]  ;;  %v1371_v0 = vshrl.u32 %v1172_v58, 16  ;;  %v1374_v3 = vshll.u32 %v1172_v58, 16  ;;  %v1174_v4 = vld [vmem:[#allocation2 + $0x5c] sm:$0x1] }
  0x66   : > { %1027 = vst.msk [vmem:[#allocation2 + $0x64] sm:$0xf] %vm460_vm0, %v787_v59  ;;  %1030 = vst [vmem:[#allocation2 + $0x68] sm:$0x1] %v1029_v60  ;;  %v1380_v6 = vshll.u32 %v1173_v63, 16  ;;  %v1384_v7 = vshrl.u32 %v1173_v63, 16  ;;  %v399_v29 = vadd.f32 %v5580_v28, %v361_v57 }
  0x67   : > { %v1390_v13 = vshll.u32 %v1174_v4, 16  ;;  %v790_v14 = vshrl.u32 %v5239_v55, 16  ;;  %v1373_v15 = vrot.slane %v1371_v0, 4  ;;  %v1376_v16 = vrot.slane %v1374_v3, 5  ;;  %v1035_v21 = vld [vmem:[#allocation2 + $0x74] sm:$0x1] }
  0x68   : > { %v793_v18 = vshll.u32 %v5239_v55, 16  ;;  %v798_v19 = vshrl.u32 %v5240_v9, 16  ;;  %v1382_v22 = vrot.slane %v1380_v6, 5  ;;  %v1386_v23 = vrot.slane %v1384_v7, 4  ;;  %v553_v57 = vld [vmem:[#allocation2 + $0x8c] sm:$0x1] }
  0x69   : > { %v1392_v24 = vrot.slane %v1390_v13, 5  ;;  %v792_v25 = vrot.slane %v790_v14, 7  ;;  %v1377_v26 = vor.u32 %v1376_v16, %v1373_v15  ;;  %v801_v20 = vshll.u32 %v5240_v9, 16  ;;  %v5815_v4 = vld [vmem:[%s7110_s1] ss:$0 sm:$0xff]  ;;  %v5825_v14 = vld [vmem:[%s5554_s26 + $0x58] sm:$0xff]  }
  0x6a   : > { %v800_v27 = vrot.slane %v798_v19, 7  ;;  %v1387_v11 = vor.u32 %v1386_v23, %v1382_v22  ;;  %v1175_v30 = vld [vmem:[#allocation2 + $0x60] sm:$0xf]  ;;  %v430_v33 = vmax.f32 %v398_v5, 0.0  ;;  %v431_v55 = vmax.f32 %v399_v29, 0.0 }
  0x6b   : > { %v795_v31 = vor.u32 %v793_v18, %v792_v25  ;;  %v796_v32 = vrot.slane %v792_v25, 4  ;;  %v1378_v34 = vrot.slane %v1377_v26, 4  ;;  %v1395_v35 = vshrl.u32 %v1175_v30, 16  ;;  %v1087_v15 = vld [vmem:[#allocation2] sm:$0xf] }
  0x6c   : > { %v1398_v36 = vshll.u32 %v1175_v30, 16  ;;  %v803_v1 = vor.u32 %v801_v20, %v800_v27  ;;  %v1388_v37 = vrot.slane %v1387_v11, 4  ;;  %v805_v41 = vrot.slane %v800_v27, 4  ;;  %1119 = vst.msk [vmem:[#allocation3] sm:$0xf] %vm460_vm0, %v1087_v15 }
  0x6d   : > { %v1176_v38 = vld [vmem:[#allocation2 + $0x64] sm:$0xf]  ;;  %v1177_v39 = vld [vmem:[#allocation2 + $0x68] sm:$0x1]  ;;  %v1032_v40 = vsel %vm5615_vm11, %v795_v31, %v1031_v8  ;;  %v5241_v42 = vpack.c.bf16 %v430_v33, %v430_v33  ;;  %v1383_v28 = vsel %vm5593_vm9, %v1378_v34, %v1382_v22  ;;  %v1397_v43 = vrot.slane %v1395_v35, 4 }
  0x6e   : > { %v1400_v44 = vrot.slane %v1398_v36, 5  ;;  %v1404_v45 = vshll.u32 %v1176_v38, 16  ;;  %1033 = vst [vmem:[#allocation2 + $0x6c] sm:$0xf] %v1032_v40  ;;  %1614 = vrot.lane.b32.xlu0 %v1383_v28, %s5478_s7  ;;  %v1393_v46 = vsel %vm5593_vm9, %v1388_v37, %v1392_v24  ;;  %v1408_v48 = vshrl.u32 %v1176_v38, 16 }
  0x6f   : > { %v1414_v50 = vshll.u32 %v1177_v39, 16  ;;  %v804_v51 = vsel %vm5607_vm10, %v796_v32, %v803_v1  ;;  %1616 = vrot.lane.b32.xlu1 %v1393_v46, %s5478_s7  ;;  %v1036_v54 = vsel %vm5538_vm5, %v805_v41, %v1035_v21  ;;  %v807_v60 = vshrl.u32 %v5241_v42, 16  ;;  %v1038_v22 = vld [vmem:[#allocation2 + $0x78] sm:$0xf]  ;;  %v5835_v27 = vld [vmem:[%s7111_s2] ss:$0 sm:$0xff] }
  0x70   : > { %v1401_v52 = vor.u32 %v1400_v44, %v1397_v43  ;;  %v1406_v53 = vrot.slane %v1404_v45, 5  ;;  %1034 = vst.msk [vmem:[#allocation2 + $0x70] sm:$0xf] %vm460_vm0, %v804_v51  ;;  %v1410_v58 = vrot.slane %v1408_v48, 4  ;;  %1037 = vst [vmem:[#allocation2 + $0x74] sm:$0x1] %v1036_v54  ;;  %v5242_v0 = vpack.c.bf16 %v431_v55, %v431_v55 }
  0x71   : > { %v1416_v59 = vrot.slane %v1414_v50, 5  ;;  %v810_v61 = vshll.u32 %v5241_v42, 16  ;;  %v5330_v3 = vunpack.c.h.bf16 %v5780_v49  ;;  %v362_v9 = vmul.f32 %v5815_v4, %v5329_v62  ;;  %v1089_v62 = vld [vmem:[#allocation2 + $0xc] sm:$0xf]  ;;  %v1042_v34 = vld [vmem:[#allocation2 + $0x80] sm:$0x1] }
  0x72   : > { %v1402_v63 = vrot.slane %v1401_v52, 4  ;;  %v1411_v5 = vor.u32 %v1410_v58, %v1406_v53  ;;  %v809_v6 = vrot.slane %v807_v60, 7  ;;  %v500_v7 = vsel %vm5538_vm5, 0, %v499_v56  ;;  %1121 = vst.msk [vmem:[#allocation3 + $0x8] sm:$0xf] %vm460_vm0, %v1089_v62 }
  0x73   : > { %v554_v13 = vsel %vm5563_vm7, 0, %v553_v57  ;;  %v815_v18 = vshrl.u32 %v5242_v0, 16  ;;  %v818_v19 = vshll.u32 %v5242_v0, 16  ;;  %v363_v49 = vmul.f32 %v5815_v4, %v5330_v3  ;;  %501 = vst [vmem:[#allocation2 + $0x84] sm:$0x1] %v500_v7 }
  0x74   : > { %v1407_v16 = vsel %vm5593_vm9, %v1402_v63, %v1406_v53  ;;  %555 = vst [vmem:[#allocation2 + $0x8c] sm:$0x1] %v554_v13  ;;  %v1412_v23 = vrot.slane %v1411_v5, 4  ;;  %v812_v25 = vor.u32 %v810_v61, %v809_v6  ;;  %v813_v26 = vrot.slane %v809_v6, 4  ;;  %v1088_v48 = vld [vmem:[#allocation2 + $0x4] sm:$0xf] }
  0x75   : > { %1618 = vrot.lane.b32.xlu0 %v1407_v16, %s5478_s7  ;;  %v1178_v24 = vld [vmem:[#allocation2 + $0x6c] sm:$0xf]  ;;  %v400_v20 = vadd.f32 %v5835_v27, %v362_v9  ;;  %v817_v11 = vrot.slane %v815_v18, 7  ;;  %v401_v30 = vadd.f32 %v5835_v27, %v363_v49  ;;  %v5333_v36 = vunpack.c.l.bf16 %v5825_v14  ;;  %v1090_v50 = vld [vmem:[#allocation2 + $0x10] sm:$0xf]  ;;  %v5861_v18 = vld [vmem:[%s5554_s26 + $0x60] sm:$0xff]  }
  0x76   : > { %v1419_v8 = vshrl.u32 %v1178_v24, 16  ;;  %v1422_v29 = vshll.u32 %v1178_v24, 16  ;;  %v1417_v31 = vsel %vm5593_vm9, %v1412_v23, %v1416_v59  ;;  %v1039_v33 = vsel %vm5615_vm11, %v812_v25, %v1038_v22  ;;  %v502_v55 = vld [vmem:[#allocation2 + $0x90] sm:$0x1]  ;;  %v556_v56 = vld [vmem:[#allocation2 + $0x98] sm:$0x1] }
  0x77   : > { %v1179_v32 = vld [vmem:[#allocation2 + $0x70] sm:$0xf]  ;;  %v432_v35 = vmax.f32 %v400_v20, 0.0  ;;  %1620 = vrot.lane.b32.xlu1 %v1417_v31, %s5478_s7  ;;  %v1180_v39 = vld [vmem:[#allocation2 + $0x74] sm:$0x1]  ;;  %v820_v41 = vor.u32 %v818_v19, %v817_v11  ;;  %v822_v42 = vrot.slane %v817_v11, 4  ;;  %v5334_v3 = vunpack.c.h.bf16 %v5825_v14 }
  0x78   : > { %v1421_v1 = vrot.slane %v1419_v8, 4  ;;  %v1424_v21 = vrot.slane %v1422_v29, 5  ;;  %v1428_v37 = vshll.u32 %v1179_v32, 16  ;;  %v1432_v38 = vshrl.u32 %v1179_v32, 16  ;;  %1040 = vst [vmem:[#allocation2 + $0x78] sm:$0xf] %v1039_v33 }
  0x79   : > { %v1438_v40 = vshll.u32 %v1180_v39, 16  ;;  %v433_v28 = vmax.f32 %v401_v30, 0.0  ;;  %v5243_v46 = vpack.c.bf16 %v432_v35, %v432_v35  ;;  %v821_v52 = vsel %vm5607_vm10, %v813_v26, %v820_v41  ;;  %1120 = vst.msk [vmem:[#allocation3 + $0x4] sm:$0xf] %vm460_vm0, %v1088_v48  ;;  %1122 = vst.msk [vmem:[#allocation3 + $0xc] sm:$0xf] %vm460_vm0, %v1090_v50 }
  0x7a   : > { %v1425_v43 = vor.u32 %v1424_v21, %v1421_v1  ;;  %v1430_v44 = vrot.slane %v1428_v37, 5  ;;  %v1434_v45 = vrot.slane %v1432_v38, 4  ;;  %v1043_v53 = vsel %vm5538_vm5, %v822_v42, %v1042_v34  ;;  %1041 = vst.msk [vmem:[#allocation2 + $0x7c] sm:$0xf] %vm460_vm0, %v821_v52  ;;  %v1091_v61 = vld [vmem:[#allocation2 + $0x18] sm:$0xf] }
  0x7b   : > { %v1440_v51 = vrot.slane %v1438_v40, 5  ;;  %v5244_v54 = vpack.c.bf16 %v433_v28, %v433_v28  ;;  %1044 = vst [vmem:[#allocation2 + $0x80] sm:$0x1] %v1043_v53  ;;  %v824_v59 = vshrl.u32 %v5243_v46, 16  ;;  %v827_v60 = vshll.u32 %v5243_v46, 16 }
  0x7c   : > { %v1426_v57 = vrot.slane %v1425_v43, 4  ;;  %v1435_v58 = vor.u32 %v1434_v45, %v1430_v44  ;;  %v364_v9 = vmul.f32 %v5815_v4, %v5333_v36  ;;  %1123 = vst.msk [vmem:[#allocation3 + $0x10] sm:$0xf] %vm460_vm0, %v1091_v61  ;;  %v1092_v5 = vld [vmem:[#allocation2 + $0x1c] sm:$0xf]  ;;  %v503_v16 = vsel %vm5538_vm5, 0, %v502_v55 }
  0x7d   : > { %v832_v63 = vshrl.u32 %v5244_v54, 16  ;;  %v835_v0 = vshll.u32 %v5244_v54, 16  ;;  %v826_v13 = vrot.slane %v824_v59, 7  ;;  %v1045_v15 = vld [vmem:[#allocation2 + $0x84] sm:$0xf]  ;;  %v365_v49 = vmul.f32 %v5815_v4, %v5334_v3 }
  0x7e   : > { %v1431_v6 = vsel %vm5593_vm9, %v1426_v57, %v1430_v44  ;;  %v1436_v7 = vrot.slane %v1435_v58, 4  ;;  %1124 = vst.msk [vmem:[#allocation3 + $0x14] sm:$0xf] %vm460_vm0, %v1092_v5  ;;  %v1049_v22 = vld [vmem:[#allocation2 + $0x8c] sm:$0x1]  ;;  %v402_v62 = vadd.f32 %v5835_v27, %v364_v9  ;;  %v557_v23 = vsel %vm5563_vm7, 0, %v556_v56 }
  0x7f   : > { %1622 = vrot.lane.b32.xlu0 %v1431_v6, %s5478_s7  ;;  %v1181_v14 = vld [vmem:[#allocation2 + $0x78] sm:$0xf]  ;;  %v834_v19 = vrot.slane %v832_v63, 7  ;;  %504 = vst [vmem:[#allocation2 + $0x90] sm:$0x1] %v503_v16  ;;  %v829_v20 = vor.u32 %v827_v60, %v826_v13  ;;  %v830_v11 = vrot.slane %v826_v13, 4  ;;  %v403_v32 = vadd.f32 %v5835_v27, %v365_v49 }
  0x80   : > { %v1441_v24 = vsel %vm5593_vm9, %v1436_v7, %v1440_v51  ;;  %v1443_v25 = vshrl.u32 %v1181_v14, 16  ;;  %v1446_v26 = vshll.u32 %v1181_v14, 16  ;;  %558 = vst [vmem:[#allocation2 + $0x98] sm:$0x1] %v557_v23  ;;  %v1093_v8 = vld [vmem:[#allocation2 + $0x24] sm:$0xf]  ;;  %v5337_v40 = vunpack.c.l.bf16 %v5861_v18 }
  0x81   : > { %v1094_v29 = vld [vmem:[#allocation2 + $0x28] sm:$0xf]  ;;  %1624 = vrot.lane.b32.xlu1 %v1441_v24, %s5478_s7  ;;  %v837_v30 = vor.u32 %v835_v0, %v834_v19  ;;  %v839_v31 = vrot.slane %v834_v19, 4  ;;  %1125 = vst.msk [vmem:[#allocation3 + $0x18] sm:$0xf] %vm460_vm0, %v1093_v8  ;;  %v1046_v35 = vsel %vm5615_vm11, %v829_v20, %v1045_v15  ;;  %v434_v36 = vmax.f32 %v402_v62, 0.0 }
  0x82   : > { %1126 = vst.msk [vmem:[#allocation3 + $0x1c] sm:$0xf] %vm460_vm0, %v1094_v29  ;;  %v1445_v33 = vrot.slane %v1443_v25, 4  ;;  %v1448_v34 = vrot.slane %v1446_v26, 5  ;;  %v1182_v1 = vld [vmem:[#allocation2 + $0x7c] sm:$0xf]  ;;  %v5338_v46 = vunpack.c.h.bf16 %v5861_v18  ;;  %v366_v48 = vmul.f32 %v5815_v4, %v5337_v40 }
  0x83   : > { %v1183_v21 = vld [vmem:[#allocation2 + $0x80] sm:$0x1]  ;;  %v838_v37 = vsel %vm5607_vm10, %v830_v11, %v837_v30  ;;  %1047 = vst [vmem:[#allocation2 + $0x84] sm:$0xf] %v1046_v35  ;;  %v1050_v38 = vsel %vm5538_vm5, %v839_v31, %v1049_v22  ;;  %v435_v39 = vmax.f32 %v403_v32, 0.0  ;;  %v1452_v42 = vshll.u32 %v1182_v1, 16 }
  0x84   : > { %v1449_v41 = vor.u32 %v1448_v34, %v1445_v33  ;;  %v1456_v28 = vshrl.u32 %v1182_v1, 16  ;;  %v1462_v43 = vshll.u32 %v1183_v21, 16  ;;  %1048 = vst.msk [vmem:[#allocation2 + $0x88] sm:$0xf] %vm460_vm0, %v838_v37  ;;  %1051 = vst [vmem:[#allocation2 + $0x8c] sm:$0x1] %v1050_v38  ;;  %v5245_v44 = vpack.c.bf16 %v434_v36, %v434_v36 }
  0x85   : > { %v5246_v45 = vpack.c.bf16 %v435_v39, %v435_v39  ;;  %v505_v50 = vld [vmem:[#allocation2 + $0x9c] sm:$0x1]  ;;  %v1095_v51 = vld [vmem:[#allocation2 + $0x30] sm:$0xf]  ;;  %v1096_v52 = vld [vmem:[#allocation2 + $0x34] sm:$0xf]  ;;  %v367_v9 = vmul.f32 %v5815_v4, %v5338_v46  ;;  %v404_v5 = vadd.f32 %v5835_v27, %v366_v48 }
  0x86   : > { %v1450_v53 = vrot.slane %v1449_v41, 4  ;;  %v1454_v54 = vrot.slane %v1452_v42, 5  ;;  %v1458_v55 = vrot.slane %v1456_v28, 4  ;;  %v1464_v56 = vrot.slane %v1462_v43, 5  ;;  %v559_v57 = vld [vmem:[#allocation2 + $0xa4] sm:$0x1] }
  0x87   : > { %1127 = vst.msk [vmem:[#allocation3 + $0x20] sm:$0xf] %vm460_vm0, %v1095_v51  ;;  %1128 = vst.msk [vmem:[#allocation3 + $0x24] sm:$0xf] %vm460_vm0, %v1096_v52  ;;  %v841_v58 = vshrl.u32 %v5245_v44, 16  ;;  %v844_v59 = vshll.u32 %v5245_v44, 16  ;;  %v405_v49 = vadd.f32 %v5835_v27, %v367_v9 }
  0x88   : > { %v849_v60 = vshrl.u32 %v5246_v45, 16  ;;  %v852_v61 = vshll.u32 %v5246_v45, 16  ;;  %v5888_v63 = vld [vmem:[%s5554_s26 + $0x68] sm:$0xff]   ;;  %v1455_v0 = vsel %vm5593_vm9, %v1450_v53, %v1454_v54  ;;  %v1459_v3 = vor.u32 %v1458_v55, %v1454_v54  ;;  %v1097_v6 = vld [vmem:[#allocation2 + $0x3c] sm:$0xf] }
  0x89   : > { %1626 = vrot.lane.b32.xlu0 %v1455_v0, %s5478_s7  ;;  %v843_v7 = vrot.slane %v841_v58, 7  ;;  %v506_v15 = vsel %vm5538_vm5, 0, %v505_v50  ;;  %v560_v16 = vsel %vm5563_vm7, 0, %v559_v57  ;;  %1129 = vst.msk [vmem:[#allocation3 + $0x28] sm:$0xf] %vm460_vm0, %v1097_v6  ;;  %v436_v62 = vmax.f32 %v404_v5, 0.0 }
  0x8a   : > { %v851_v13 = vrot.slane %v849_v60, 7  ;;  %v1098_v18 = vld [vmem:[#allocation2 + $0x40] sm:$0xf]  ;;  %v1460_v14 = vrot.slane %v1459_v3, 4  ;;  %v1184_v19 = vld [vmem:[#allocation2 + $0x84] sm:$0xf]  ;;  %v5341_v23 = vunpack.c.l.bf16 %v5888_v63  ;;  %v5342_v48 = vunpack.c.h.bf16 %v5888_v63 }
  0x8b   : > { %v1052_v22 = vld [vmem:[#allocation2 + $0x90] sm:$0xf]  ;;  %507 = vst [vmem:[#allocation2 + $0x9c] sm:$0x1] %v506_v15  ;;  %561 = vst [vmem:[#allocation2 + $0xa4] sm:$0x1] %v560_v16  ;;  %v846_v8 = vor.u32 %v844_v59, %v843_v7  ;;  %v5247_v28 = vpack.c.bf16 %v436_v62, %v436_v62 }
  0x8c   : > { %1130 = vst.msk [vmem:[#allocation3 + $0x2c] sm:$0xf] %vm460_vm0, %v1098_v18  ;;  %v1185_v24 = vld [vmem:[#allocation2 + $0x88] sm:$0xf]  ;;  %v1467_v25 = vshrl.u32 %v1184_v19, 16  ;;  %v1470_v26 = vshll.u32 %v1184_v19, 16  ;;  %v854_v29 = vor.u32 %v852_v61, %v851_v13  ;;  %v1465_v11 = vsel %vm5593_vm9, %v1460_v14, %v1464_v56 }
  0x8d   : > { %v1186_v20 = vld [vmem:[#allocation2 + $0x8c] sm:$0x1]  ;;  %v1476_v30 = vshll.u32 %v1185_v24, 16  ;;  %v1480_v31 = vshrl.u32 %v1185_v24, 16  ;;  %1628 = vrot.lane.b32.xlu1 %v1465_v11, %s5478_s7  ;;  %v847_v35 = vrot.slane %v843_v7, 4  ;;  %v1053_v36 = vsel %vm5615_vm11, %v846_v8, %v1052_v22  ;;  %v5922_v61 = vld [vmem:[%s5554_s26 + $0x70] sm:$0xff]  }
  0x8e   : > { %v1486_v32 = vshll.u32 %v1186_v20, 16  ;;  %v1469_v33 = vrot.slane %v1467_v25, 4  ;;  %v1472_v34 = vrot.slane %v1470_v26, 5  ;;  %v1056_v1 = vld [vmem:[#allocation2 + $0x98] sm:$0x1]  ;;  %v856_v39 = vrot.slane %v851_v13, 4 }
  0x8f   : > { %v1478_v21 = vrot.slane %v1476_v30, 5  ;;  %v1482_v37 = vrot.slane %v1480_v31, 4  ;;  %1054 = vst [vmem:[#allocation2 + $0x90] sm:$0xf] %v1053_v36  ;;  %v855_v41 = vsel %vm5607_vm10, %v847_v35, %v854_v29  ;;  %v437_v42 = vmax.f32 %v405_v49, 0.0 }
  0x90   : > { %v1488_v38 = vrot.slane %v1486_v32, 5  ;;  %v1473_v40 = vor.u32 %v1472_v34, %v1469_v33  ;;  %v508_v43 = vld [vmem:[#allocation2 + $0xa8] sm:$0x1]  ;;  %1055 = vst.msk [vmem:[#allocation2 + $0x94] sm:$0xf] %vm460_vm0, %v855_v41  ;;  %v1057_v46 = vsel %vm5538_vm5, %v856_v39, %v1056_v1  ;;  %v368_v50 = vmul.f32 %v5815_v4, %v5341_v23 }
  0x91   : > { %v1099_v44 = vld [vmem:[#allocation2 + $0x48] sm:$0xf]  ;;  %v1483_v45 = vor.u32 %v1482_v37, %v1478_v21  ;;  %v1100_v51 = vld [vmem:[#allocation2 + $0x4c] sm:$0xf]  ;;  %1058 = vst [vmem:[#allocation2 + $0x98] sm:$0x1] %v1057_v46  ;;  %v5248_v53 = vpack.c.bf16 %v437_v42, %v437_v42  ;;  %v369_v58 = vmul.f32 %v5815_v4, %v5342_v48  ;;  %v5345_v23 = vunpack.c.l.bf16 %v5922_v61 }
  0x92   : > { %1131 = vst.msk [vmem:[#allocation3 + $0x30] sm:$0xf] %vm460_vm0, %v1099_v44  ;;  %v1474_v52 = vrot.slane %v1473_v40, 4  ;;  %v858_v54 = vshrl.u32 %v5247_v28, 16  ;;  %v861_v55 = vshll.u32 %v5247_v28, 16  ;;  %v406_v59 = vadd.f32 %v5835_v27, %v368_v50 }
  0x93   : > { %v562_v56 = vld [vmem:[#allocation2 + $0xb0] sm:$0x1]  ;;  %1132 = vst.msk [vmem:[#allocation3 + $0x34] sm:$0xf] %vm460_vm0, %v1100_v51  ;;  %v1484_v57 = vrot.slane %v1483_v45, 4  ;;  %v509_v60 = vsel %vm5538_vm5, 0, %v508_v43  ;;  %v407_v15 = vadd.f32 %v5835_v27, %v369_v58  ;;  %v5346_v32 = vunpack.c.h.bf16 %v5922_v61 }
  0x94   : > { %v1101_v63 = vld [vmem:[#allocation2 + $0x54] sm:$0xf]  ;;  %v1479_v0 = vsel %vm5593_vm9, %v1474_v52, %v1478_v21  ;;  %v860_v3 = vrot.slane %v858_v54, 7  ;;  %v866_v9 = vshrl.u32 %v5248_v53, 16  ;;  %v869_v5 = vshll.u32 %v5248_v53, 16 }
  0x95   : > { %510 = vst [vmem:[#allocation2 + $0xa8] sm:$0x1] %v509_v60  ;;  %1133 = vst.msk [vmem:[#allocation3 + $0x38] sm:$0xf] %vm460_vm0, %v1101_v63  ;;  %v1102_v6 = vld [vmem:[#allocation2 + $0x58] sm:$0xf]  ;;  %1630 = vrot.lane.b32.xlu0 %v1479_v0, %s5478_s7  ;;  %v1489_v7 = vsel %vm5593_vm9, %v1484_v57, %v1488_v38  ;;  %v371_v58 = vmul.f32 %v5815_v4, %v5346_v32 }
  0x96   : > { %v1059_v13 = vld [vmem:[#allocation2 + $0x9c] sm:$0xf]  ;;  %v438_v16 = vmax.f32 %v406_v59, 0.0  ;;  %v563_v18 = vsel %vm5563_vm7, 0, %v562_v56  ;;  %1134 = vst.msk [vmem:[#allocation3 + $0x3c] sm:$0xf] %vm460_vm0, %v1102_v6  ;;  %1632 = vrot.lane.b32.xlu1 %v1489_v7, %s5478_s7  ;;  %v863_v19 = vor.u32 %v861_v55, %v860_v3  ;;  %v370_v56 = vmul.f32 %v5815_v4, %v5345_v23 }
  0x97   : > { %v1187_v14 = vld [vmem:[#allocation2 + $0x90] sm:$0xf]  ;;  %v864_v22 = vrot.slane %v860_v3, 4  ;;  %v868_v49 = vrot.slane %v866_v9, 7  ;;  %v1063_v62 = vld [vmem:[#allocation2 + $0xa4] sm:$0x1] }
  0x98   : > { %564 = vst [vmem:[#allocation2 + $0xb0] sm:$0x1] %v563_v18  ;;  %v1491_v24 = vshrl.u32 %v1187_v14, 16  ;;  %v1494_v25 = vshll.u32 %v1187_v14, 16  ;;  %v439_v26 = vmax.f32 %v407_v15, 0.0  ;;  %v5249_v20 = vpack.c.bf16 %v438_v16, %v438_v16 }
  0x99   : > { %v1103_v8 = vld [vmem:[#allocation2 + $0x60] sm:$0xf]  ;;  %v1188_v29 = vld [vmem:[#allocation2 + $0x94] sm:$0xf]  ;;  %v871_v11 = vor.u32 %v869_v5, %v868_v49  ;;  %v1060_v30 = vsel %vm5615_vm11, %v863_v19, %v1059_v13  ;;  %v873_v31 = vrot.slane %v868_v49, 4  ;;  %v408_v15 = vadd.f32 %v5835_v27, %v370_v56 }
  0x9a   : > { %1135 = vst.msk [vmem:[#allocation3 + $0x40] sm:$0xf] %vm460_vm0, %v1103_v8  ;;  %v1493_v33 = vrot.slane %v1491_v24, 4  ;;  %v1496_v34 = vrot.slane %v1494_v25, 5  ;;  %v1500_v35 = vshll.u32 %v1188_v29, 16  ;;  %v1504_v36 = vshrl.u32 %v1188_v29, 16 }
  0x9b   : > { %v1189_v1 = vld [vmem:[#allocation2 + $0x98] sm:$0x1]  ;;  %1061 = vst [vmem:[#allocation2 + $0x9c] sm:$0xf] %v1060_v30  ;;  %v872_v37 = vsel %vm5607_vm10, %v864_v22, %v871_v11  ;;  %v1064_v38 = vsel %vm5538_vm5, %v873_v31, %v1063_v62  ;;  %v5250_v39 = vpack.c.bf16 %v439_v26, %v439_v26  ;;  %v511_v40 = vld [vmem:[#allocation2 + $0xb4] sm:$0x1]  ;;  %v409_v16 = vadd.f32 %v5835_v27, %v371_v58 }
  0x9c   : > { %v1510_v21 = vshll.u32 %v1189_v1, 16  ;;  %v1104_v41 = vld [vmem:[#allocation2 + $0x64] sm:$0xf]  ;;  %v1497_v42 = vor.u32 %v1496_v34, %v1493_v33  ;;  %v1502_v28 = vrot.slane %v1500_v35, 5  ;;  %v1506_v43 = vrot.slane %v1504_v36, 4 }
  0x9d   : > { %1062 = vst.msk [vmem:[#allocation2 + $0xa0] sm:$0xf] %vm460_vm0, %v872_v37  ;;  %1065 = vst [vmem:[#allocation2 + $0xa4] sm:$0x1] %v1064_v38  ;;  %v875_v44 = vshrl.u32 %v5249_v20, 16  ;;  %v878_v48 = vshll.u32 %v5249_v20, 16 }
  0x9e   : > { %v565_v45 = vld [vmem:[#allocation2 + $0xbc] sm:$0x1]  ;;  %1136 = vst.msk [vmem:[#allocation3 + $0x44] sm:$0xf] %vm460_vm0, %v1104_v41  ;;  %v1512_v46 = vrot.slane %v1510_v21, 5  ;;  %v883_v50 = vshrl.u32 %v5250_v39, 16  ;;  %v1507_v53 = vor.u32 %v1506_v43, %v1502_v28 }
  0x9f   : > { %v886_v51 = vshll.u32 %v5250_v39, 16  ;;  %v1498_v52 = vrot.slane %v1497_v42, 4  ;;  %v877_v54 = vrot.slane %v875_v44, 7  ;;  %v1066_v55 = vld [vmem:[#allocation2 + $0xa8] sm:$0xf]  ;;  %v512_v59 = vsel %vm5538_vm5, 0, %v511_v40 }
  0xa0   : > { %v885_v57 = vrot.slane %v883_v50, 7  ;;  %v566_v60 = vsel %vm5563_vm7, 0, %v565_v45  ;;  %v1105_v61 = vld [vmem:[#allocation2 + $0x6c] sm:$0xf]  ;;  %v1508_v0 = vrot.slane %v1507_v53, 4  ;;  %v440_v25 = vmax.f32 %v408_v15, 0.0 }
  0xa1   : > { %v1503_v63 = vsel %vm5593_vm9, %v1498_v52, %v1502_v28  ;;  %v880_v3 = vor.u32 %v878_v48, %v877_v54  ;;  %v881_v9 = vrot.slane %v877_v54, 4  ;;  %v1070_v5 = vld [vmem:[#allocation2 + $0xb0] sm:$0x1]  ;;  %513 = vst [vmem:[#allocation2 + $0xb4] sm:$0x1] %v512_v59  ;;  %v441_v26 = vmax.f32 %v409_v16, 0.0 }
  0xa2   : > { %567 = vst [vmem:[#allocation2 + $0xbc] sm:$0x1] %v566_v60  ;;  %1137 = vst.msk [vmem:[#allocation3 + $0x48] sm:$0xf] %vm460_vm0, %v1105_v61  ;;  %v1106_v6 = vld [vmem:[#allocation2 + $0x70] sm:$0xf]  ;;  %1634 = vrot.lane.b32.xlu0 %v1503_v63, %s5478_s7  ;;  %v888_v7 = vor.u32 %v886_v51, %v885_v57  ;;  %v1513_v18 = vsel %vm5593_vm9, %v1508_v0, %v1512_v46  ;;  %v5251_v31 = vpack.c.bf16 %v440_v25, %v440_v25 }
  0xa3   : > { %v1190_v4 = vld [vmem:[#allocation2 + $0x9c] sm:$0xf]  ;;  %v890_v13 = vrot.slane %v885_v57, 4  ;;  %1138 = vst.msk [vmem:[#allocation3 + $0x4c] sm:$0xf] %vm460_vm0, %v1106_v6  ;;  %v1067_v22 = vsel %vm5615_vm11, %v880_v3, %v1066_v55  ;;  %1636 = vrot.lane.b32.xlu1 %v1513_v18, %s5478_s7  ;;  %v5252_v32 = vpack.c.bf16 %v441_v26, %v441_v26  ;;  %v5974_v55 = vpop.permute.xlu0 %1586  ;;  %vm1812_vm13 = vcmask 1046532  }
  0xa4   : > { %v1515_v14 = vshrl.u32 %v1190_v4, 16  ;;  %v1518_v19 = vshll.u32 %v1190_v4, 16  ;;  %v1107_v49 = vld [vmem:[#allocation2 + $0x78] sm:$0xf]  ;;  %v1191_v62 = vld [vmem:[#allocation2 + $0xa0] sm:$0xf]  ;;  %v889_v24 = vsel %vm5607_vm10, %v881_v9, %v888_v7  ;;  %vm6009_vm14 = vmor %vm1811_vm12, %vm1812_vm13 }
  0xa5   : > { %v1192_v23 = vld [vmem:[#allocation2 + $0xa4] sm:$0x1]  ;;  %1068 = vst [vmem:[#allocation2 + $0xa8] sm:$0xf] %v1067_v22  ;;  %v1071_v27 = vsel %vm5538_vm5, %v890_v13, %v1070_v5  ;;  %1139 = vst.msk [vmem:[#allocation3 + $0x50] sm:$0xf] %vm460_vm0, %v1107_v49 }
  0xa6   : > { %v1517_v20 = vrot.slane %v1515_v14, 4  ;;  %v1520_v8 = vrot.slane %v1518_v19, 5  ;;  %v1524_v29 = vshll.u32 %v1191_v62, 16  ;;  %v1528_v11 = vshrl.u32 %v1191_v62, 16  ;;  %1069 = vst.msk [vmem:[#allocation2 + $0xac] sm:$0xf] %vm460_vm0, %v889_v24 }
  0xa7   : > { %1072 = vst [vmem:[#allocation2 + $0xb0] sm:$0x1] %v1071_v27  ;;  %v1534_v30 = vshll.u32 %v1192_v23, 16  ;;  %v1108_v33 = vld [vmem:[#allocation2 + $0x7c] sm:$0xf]  ;;  %v892_v1 = vshrl.u32 %v5251_v31, 16  ;;  %v5990_v49 = vpop.permute.xlu0 %1588 }
  0xa8   : > { %v1521_v34 = vor.u32 %v1520_v8, %v1517_v20  ;;  %v1526_v35 = vrot.slane %v1524_v29, 5  ;;  %v1530_v36 = vrot.slane %v1528_v11, 4  ;;  %1140 = vst.msk [vmem:[#allocation3 + $0x54] sm:$0xf] %vm460_vm0, %v1108_v33  ;;  %v895_v21 = vshll.u32 %v5251_v31, 16  ;;  %v5978_v60 = vpop.permute.xlu1 %1590 }
  0xa9   : > { %v900_v37 = vshrl.u32 %v5252_v32, 16  ;;  %v1536_v40 = vrot.slane %v1534_v30, 5  ;;  %v903_v41 = vshll.u32 %v5252_v32, 16  ;;  %v894_v42 = vrot.slane %v892_v1, 7  ;;  %v1073_v46 = vld [vmem:[#allocation2 + $0xb4] sm:$0xf] }
  0xaa   : > { %v1522_v38 = vrot.slane %v1521_v34, 4  ;;  %v1531_v39 = vor.u32 %v1530_v36, %v1526_v35  ;;  %v1077_v9 = vld [vmem:[#allocation2 + $0xbc] sm:$0x1]  ;;  %v1109_v15 = vld [vmem:[#allocation2 + $0x84] sm:$0xf]  ;;  %vm1682_vm15 = vcmask 60448  }
  0xab   : > { %v902_v28 = vrot.slane %v900_v37, 7  ;;  %v897_v53 = vor.u32 %v895_v21, %v894_v42  ;;  %v898_v0 = vrot.slane %v894_v42, 4  ;;  %v1110_v16 = vld [vmem:[#allocation2 + $0x88] sm:$0xf]  ;;  %1141 = vst.msk [vmem:[#allocation3 + $0x58] sm:$0xf] %vm460_vm0, %v1109_v15  ;;  %v6003_v33 = vpop.permute.xlu0 %1594 }
  0xac   : > { %v1527_v43 = vsel %vm5593_vm9, %v1522_v38, %v1526_v35  ;;  %v1532_v44 = vrot.slane %v1531_v39, 4  ;;  %v1193_v45 = vld [vmem:[#allocation2 + $0xa8] sm:$0xf]  ;;  %1142 = vst.msk [vmem:[#allocation3 + $0x5c] sm:$0xf] %vm460_vm0, %v1110_v16  ;;  %v5992_v24 = vpop.permute.xlu1 %1592  ;;  %vm2022_vm2 = vcmask 93248  }
  0xad   : > { %1638 = vrot.lane.b32.xlu0 %v1527_v43, %s5478_s7  ;;  %v1194_v48 = vld [vmem:[#allocation2 + $0xac] sm:$0xf]  ;;  %v1539_v50 = vshrl.u32 %v1193_v45, 16  ;;  %v1542_v51 = vshll.u32 %v1193_v45, 16  ;;  %v905_v54 = vor.u32 %v903_v41, %v902_v28  ;;  %v1074_v3 = vsel %vm5615_vm11, %v897_v53, %v1073_v46  ;;  %v1111_v62 = vld [vmem:[#allocation2 + $0x90] sm:$0xf] }
  0xae   : > { %v1195_v52 = vld [vmem:[#allocation2 + $0xb0] sm:$0x1]  ;;  %v1537_v56 = vsel %vm5593_vm9, %v1532_v44, %v1536_v40  ;;  %v1548_v57 = vshll.u32 %v1194_v48, 16  ;;  %v1552_v58 = vshrl.u32 %v1194_v48, 16  ;;  %1075 = vst [vmem:[#allocation2 + $0xb4] sm:$0xf] %v1074_v3 }
  0xaf   : > { %v1558_v59 = vshll.u32 %v1195_v52, 16  ;;  %1640 = vrot.lane.b32.xlu1 %v1537_v56, %s5478_s7  ;;  %v1541_v61 = vrot.slane %v1539_v50, 4  ;;  %v1544_v63 = vrot.slane %v1542_v51, 5  ;;  %v907_v4 = vrot.slane %v902_v28, 4  ;;  %1143 = vst.msk [vmem:[#allocation3 + $0x60] sm:$0xf] %vm460_vm0, %v1111_v62 }
  0xb0   : > { %v1550_v5 = vrot.slane %v1548_v57, 5  ;;  %v1554_v6 = vrot.slane %v1552_v58, 4  ;;  %v906_v13 = vsel %vm5607_vm10, %v898_v0, %v905_v54  ;;  %v1112_v27 = vld [vmem:[#allocation2 + $0x94] sm:$0xf]  ;;  %v1113_v20 = vld [vmem:[#allocation2 + $0x9c] sm:$0xf]  ;;  %v6005_v37 = vpop.permute.xlu1 %1596 }
  0xb1   : > { %v1545_v7 = vor.u32 %v1544_v63, %v1541_v61  ;;  %v1560_v14 = vrot.slane %v1558_v59, 5  ;;  %1076 = vst.msk [vmem:[#allocation2 + $0xb8] sm:$0xf] %vm460_vm0, %v906_v13  ;;  %v1078_v19 = vsel %vm5538_vm5, %v907_v4, %v1077_v9  ;;  %1144 = vst.msk [vmem:[#allocation3 + $0x64] sm:$0xf] %vm460_vm0, %v1112_v27  ;;  %vm4460_vm3 = vcmask 1041408  }
  0xb2   : > { %v1555_v18 = vor.u32 %v1554_v6, %v1550_v5  ;;  %1079 = vst [vmem:[#allocation2 + $0xbc] sm:$0x1] %v1078_v19  ;;  %1145 = vst.msk [vmem:[#allocation3 + $0x68] sm:$0xf] %vm460_vm0, %v1113_v20  ;;  %v1715_v31 = vld [vmem:[#allocation2] sm:$0xe] }
  0xb3   : > { %v1546_v22 = vrot.slane %v1545_v7, 4  ;;  %v1716_v32 = vld [vmem:[#allocation2 + $0x4] sm:$0xf]  ;;  %v1114_v39 = vld [vmem:[#allocation2 + $0xa0] sm:$0xf]  ;;  %v5106_v50 = vrot.slane %v1715_v31, 9 }
  0xb4   : > { %v1556_v23 = vrot.slane %v1555_v18, 4  ;;  %v1816_v28 = vrot.slane %v1716_v32, 5  ;;  %v1717_v43 = vld [vmem:[#allocation2 + $0x8] sm:$0x1]  ;;  %1146 = vst.msk [vmem:[#allocation3 + $0x6c] sm:$0xf] %vm460_vm0, %v1114_v39 }
  0xb5   : > { %v1551_v25 = vsel %vm5593_vm9, %v1546_v22, %v1550_v5  ;;  %v1196_v8 = vld [vmem:[#allocation2 + $0xb4] sm:$0xf]  ;;  %v1719_v44 = vld [vmem:[#allocation2 + $0x10] sm:$0xf]  ;;  %v1115_v51 = vld [vmem:[#allocation2 + $0xa8] sm:$0xf] }
  0xb6   : > { %1642 = vrot.lane.b32.xlu0 %v1551_v25, %s5478_s7  ;;  %v1561_v26 = vsel %vm5593_vm9, %v1556_v23, %v1560_v14  ;;  %v1563_v29 = vshrl.u32 %v1196_v8, 16  ;;  %v1566_v11 = vshll.u32 %v1196_v8, 16  ;;  %v1819_v53 = vrot.slane %v1717_v43, 5  ;;  %v1718_v54 = vld [vmem:[#allocation2 + $0xc] sm:$0xe]  ;;  %v1599_v56 = vpop.permute.xlu0 %1598 }
  0xb7   : > { %1644 = vrot.lane.b32.xlu1 %v1561_v26, %s5478_s7  ;;  %1147 = vst.msk [vmem:[#allocation3 + $0x70] sm:$0xf] %vm460_vm0, %v1115_v51  ;;  %v1116_v57 = vld [vmem:[#allocation2 + $0xac] sm:$0xf]  ;;  %v1818_v61 = vrot.slane %v1816_v28, 4  ;;  %v1823_v63 = vrot.slane %v1719_v44, 5  ;;  %v1817_v6 = vsel %vm6009_vm14, %v5106_v50, %v1816_v28 }
  0xb8   : > { %v1197_v30 = vld [vmem:[#allocation2 + $0xb8] sm:$0xf]  ;;  %v1565_v34 = vrot.slane %v1563_v29, 4  ;;  %v1568_v35 = vrot.slane %v1566_v11, 5  ;;  %v1601_v0 = vpop.permute.xlu1 %1600  ;;  %1148 = vst.msk [vmem:[#allocation3 + $0x74] sm:$0xf] %vm460_vm0, %v1116_v57 }
  0xb9   : > { %v1572_v36 = vshll.u32 %v1197_v30, 16  ;;  %v1576_v1 = vshrl.u32 %v1197_v30, 16  ;;  %v1198_v21 = vld [vmem:[#allocation2 + $0xbc] sm:$0x1]  ;;  %v1720_v3 = vld [vmem:[#allocation2 + $0x14] sm:$0x1]  ;;  %v1820_v16 = vsel %vm6009_vm14, %v1818_v61, %v1819_v53 }
  0xba   : > { %v1582_v38 = vshll.u32 %v1198_v21, 16  ;;  %v1569_v40 = vor.u32 %v1568_v35, %v1565_v34  ;;  %v1722_v9 = vld [vmem:[#allocation2 + $0x1c] sm:$0xf]  ;;  %v5107_v4 = vrot.slane %v1718_v54, 9  ;;  %v1117_v7 = vld [vmem:[#allocation2 + $0xb4] sm:$0xf] }
  0xbb   : > { %v1574_v41 = vrot.slane %v1572_v36, 5  ;;  %v1578_v42 = vrot.slane %v1576_v1, 4  ;;  %v1118_v13 = vld [vmem:[#allocation2 + $0xb8] sm:$0xf]  ;;  %1149 = vst.msk [vmem:[#allocation3 + $0x78] sm:$0xf] %vm460_vm0, %v1117_v7 }
  0xbc   : > { %v1570_v45 = vrot.slane %v1569_v40, 4  ;;  %v1584_v48 = vrot.slane %v1582_v38, 5  ;;  %v1721_v15 = vld [vmem:[#allocation2 + $0x18] sm:$0xe]  ;;  %1150 = vst.msk [vmem:[#allocation3 + $0x7c] sm:$0xf] %vm460_vm0, %v1118_v13  ;;  %v1824_v27 = vsel %vm6009_vm14, %v5107_v4, %v1823_v63 }
  0xbd   : > { %v1579_v46 = vor.u32 %v1578_v42, %v1574_v41  ;;  %v1825_v18 = vrot.slane %v1823_v63, 4  ;;  %v1826_v14 = vrot.slane %v1720_v3, 5  ;;  %v1830_v19 = vrot.slane %v1722_v9, 5  ;;  %v1723_v22 = vld [vmem:[#allocation2 + $0x20] sm:$0x1] }
  0xbe   : > { %v1575_v58 = vsel %vm5593_vm9, %v1570_v45, %v1574_v41  ;;  %v1725_v62 = vld [vmem:[#allocation2 + $0x28] sm:$0xf]  ;;  %v1603_v23 = vpop.permute.xlu0 %1602  ;;  %v5108_v25 = vrot.slane %v1721_v15, 9  ;;  %v1833_v20 = vrot.slane %v1723_v22, 5  ;;  %v1724_v8 = vld [vmem:[#allocation2 + $0x24] sm:$0xe] }
  0xbf   : > { %v1580_v59 = vrot.slane %v1579_v46, 4  ;;  %1646 = vrot.lane.b32.xlu0 %v1575_v58, %s5478_s7  ;;  %v1827_v29 = vsel %vm6009_vm14, %v1825_v18, %v1826_v14  ;;  %v1832_v11 = vrot.slane %v1830_v19, 4  ;;  %v1837_v30 = vrot.slane %v1725_v62, 5  ;;  %v1726_v31 = vld [vmem:[#allocation2 + $0x2c] sm:$0x1] }
  0xc0   : > { %v1728_v32 = vld [vmem:[#allocation2 + $0x34] sm:$0xf]  ;;  %1683 = vst.msk [vmem:[#allocation3] sm:$0xf] %vm1682_vm15, %v5974_v55  ;;  %1685 = vst.msk [vmem:[#allocation3 + $0x8] sm:$0xf] %vm1682_vm15, %v5978_v60  ;;  %v1831_v55 = vsel %vm6009_vm14, %v5108_v25, %v1830_v19 }
  0xc1   : > { %v1585_v5 = vsel %vm5593_vm9, %v1580_v59, %v1584_v48  ;;  %v1605_v26 = vpop.permute.xlu1 %1604  ;;  %1684 = vst.msk [vmem:[#allocation3 + $0x4] sm:$0xf] %vm1682_vm15, %v5990_v49  ;;  %1686 = vst.msk [vmem:[#allocation3 + $0xc] sm:$0xf] %vm1682_vm15, %v5992_v24  ;;  %v5109_v60 = vrot.slane %v1724_v8, 9  ;;  %v1839_v34 = vrot.slane %v1837_v30, 4 }
  0xc2   : > { %1648 = vrot.lane.b32.xlu1 %v1585_v5, %s5478_s7  ;;  %1687 = vst.msk [vmem:[#allocation3 + $0x10] sm:$0xf] %vm1682_vm15, %v6003_v33  ;;  %1688 = vst.msk [vmem:[#allocation3 + $0x14] sm:$0xf] %vm1682_vm15, %v6005_v37  ;;  %v1727_v49 = vld [vmem:[#allocation2 + $0x30] sm:$0xe]  ;;  %v1834_v33 = vsel %vm6009_vm14, %v1832_v11, %v1833_v20 }
  0xc3   : > { %1926 = vrot.lane.b32.xlu0 %v1817_v6, %s5479_s12  ;;  %1689 = vst.msk [vmem:[#allocation3 + $0x18] sm:$0xf] %vm1682_vm15, %v1599_v56  ;;  %1690 = vst.msk [vmem:[#allocation3 + $0x1c] sm:$0xf] %vm1682_vm15, %v1601_v0  ;;  %v1840_v35 = vrot.slane %v1726_v31, 5  ;;  %v1844_v36 = vrot.slane %v1728_v32, 5  ;;  %v1838_v38 = vsel %vm6009_vm14, %v5109_v60, %v1837_v30 }
  0xc4   : > { %1691 = vst.msk [vmem:[#allocation3 + $0x20] sm:$0xf] %vm1682_vm15, %v1603_v23  ;;  %1692 = vst.msk [vmem:[#allocation3 + $0x24] sm:$0xf] %vm1682_vm15, %v1605_v26  ;;  %v1729_v21 = vld [vmem:[#allocation2 + $0x38] sm:$0x1] }
  0xc5   : > { %v1731_v37 = vld [vmem:[#allocation2 + $0x40] sm:$0xf]  ;;  %v5110_v39 = vrot.slane %v1727_v49, 9  ;;  %v1730_v40 = vld [vmem:[#allocation2 + $0x3c] sm:$0xe]  ;;  %v1841_v41 = vsel %vm6009_vm14, %v1839_v34, %v1840_v35  ;;  %v1846_v42 = vrot.slane %v1844_v36, 4 }
  0xc6   : > { %1928 = vrot.lane.b32.xlu1 %v1820_v16, %s5479_s12  ;;  %v1607_v24 = vpop.permute.xlu0 %1606  ;;  %v1847_v28 = vrot.slane %v1729_v21, 5  ;;  %v1851_v43 = vrot.slane %v1731_v37, 5  ;;  %v1732_v44 = vld [vmem:[#allocation2 + $0x44] sm:$0x1]  ;;  %v1734_v45 = vld [vmem:[#allocation2 + $0x4c] sm:$0xf] }
  0xc7   : > { %1930 = vrot.lane.b32.xlu0 %v1824_v27, %s5479_s12  ;;  %1693 = vst.msk [vmem:[#allocation3 + $0x28] sm:$0xf] %vm1682_vm15, %v1607_v24  ;;  %v1609_v1 = vpop.permute.xlu1 %1608  ;;  %v1845_v46 = vsel %vm6009_vm14, %v5110_v39, %v1844_v36  ;;  %v5111_v48 = vrot.slane %v1730_v40, 9  ;;  %v1733_v50 = vld [vmem:[#allocation2 + $0x48] sm:$0xe]  ;;  %v1854_v54 = vrot.slane %v1732_v44, 5 }
  0xc8   : > { %1694 = vst.msk [vmem:[#allocation3 + $0x2c] sm:$0xf] %vm1682_vm15, %v1609_v1  ;;  %v1848_v51 = vsel %vm6009_vm14, %v1846_v42, %v1847_v28  ;;  %v1853_v53 = vrot.slane %v1851_v43, 4  ;;  %v1858_v56 = vrot.slane %v1734_v45, 5  ;;  %v1735_v57 = vld [vmem:[#allocation2 + $0x50] sm:$0x1] }
  0xc9   : > { %v1737_v58 = vld [vmem:[#allocation2 + $0x58] sm:$0xf]  ;;  %v1852_v59 = vsel %vm6009_vm14, %v5111_v48, %v1851_v43  ;;  %v5112_v61 = vrot.slane %v1733_v50, 9  ;;  %v1736_v63 = vld [vmem:[#allocation2 + $0x54] sm:$0xe]  ;;  %v1861_v5 = vrot.slane %v1735_v57, 5 }
  0xca   : > { %1932 = vrot.lane.b32.xlu1 %v1827_v29, %s5479_s12  ;;  %v1855_v3 = vsel %vm6009_vm14, %v1853_v53, %v1854_v54  ;;  %v1860_v9 = vrot.slane %v1858_v56, 4  ;;  %v1865_v6 = vrot.slane %v1737_v58, 5  ;;  %v1738_v7 = vld [vmem:[#allocation2 + $0x5c] sm:$0x1]  ;;  %v1740_v13 = vld [vmem:[#allocation2 + $0x64] sm:$0xf] }
  0xcb   : > { %1934 = vrot.lane.b32.xlu0 %v1831_v55, %s5479_s12  ;;  %v1859_v15 = vsel %vm6009_vm14, %v5112_v61, %v1858_v56  ;;  %v5113_v16 = vrot.slane %v1736_v63, 9  ;;  %v1739_v18 = vld [vmem:[#allocation2 + $0x60] sm:$0xe]  ;;  %v1868_v22 = vrot.slane %v1738_v7, 5  ;;  %v1872_v62 = vrot.slane %v1740_v13, 5  ;;  %s5485_s7 = smov 28  }
  0xcc   : > { %v1862_v14 = vsel %vm6009_vm14, %v1860_v9, %v1861_v5  ;;  %v1867_v19 = vrot.slane %v1865_v6, 4  ;;  %v1741_v23 = vld [vmem:[#allocation2 + $0x68] sm:$0x1]  ;;  %v1743_v27 = vld [vmem:[#allocation2 + $0x70] sm:$0xf]  ;;  %v5114_v26 = vrot.slane %v1739_v18, 9 }
  0xcd   : > { %v1866_v25 = vsel %vm6009_vm14, %v5113_v16, %v1865_v6  ;;  %v1742_v20 = vld [vmem:[#allocation2 + $0x6c] sm:$0xe]  ;;  %v1874_v29 = vrot.slane %v1872_v62, 4  ;;  %v1875_v11 = vrot.slane %v1741_v23, 5  ;;  %v1879_v30 = vrot.slane %v1743_v27, 5 }
  0xce   : > { %1936 = vrot.lane.b32.xlu1 %v1834_v33, %s5479_s12  ;;  %v1869_v8 = vsel %vm6009_vm14, %v1867_v19, %v1868_v22  ;;  %v1744_v31 = vld [vmem:[#allocation2 + $0x74] sm:$0x1]  ;;  %v1746_v32 = vld [vmem:[#allocation2 + $0x7c] sm:$0xf]  ;;  %v1873_v55 = vsel %vm6009_vm14, %v5114_v26, %v1872_v62  ;;  %v5115_v60 = vrot.slane %v1742_v20, 9  ;;  %vm2215_vm4 = vcmask 126048  }
  0xcf   : > { %1938 = vrot.lane.b32.xlu0 %v1838_v38, %s5479_s12  ;;  %v1745_v49 = vld [vmem:[#allocation2 + $0x78] sm:$0xe]  ;;  %v1876_v24 = vsel %vm6009_vm14, %v1874_v29, %v1875_v11  ;;  %v1881_v33 = vrot.slane %v1879_v30, 4  ;;  %v1882_v34 = vrot.slane %v1744_v31, 5  ;;  %v1886_v35 = vrot.slane %v1746_v32, 5 }
  0xd0   : > { %v1747_v36 = vld [vmem:[#allocation2 + $0x80] sm:$0x1]  ;;  %v1749_v1 = vld [vmem:[#allocation2 + $0x88] sm:$0xf]  ;;  %v1880_v37 = vsel %vm6009_vm14, %v5115_v60, %v1879_v30  ;;  %v5116_v38 = vrot.slane %v1745_v49, 9  ;;  %vm2776_vm6 = vcmask 158848  }
  0xd1   : > { %v1748_v40 = vld [vmem:[#allocation2 + $0x84] sm:$0xe]  ;;  %v1888_v42 = vrot.slane %v1886_v35, 4  ;;  %v1889_v28 = vrot.slane %v1747_v36, 5  ;;  %v1893_v43 = vrot.slane %v1749_v1, 5  ;;  %vm3113_vm8 = vcmask 191648  }
  0xd2   : > { %1940 = vrot.lane.b32.xlu1 %v1841_v41, %s5479_s12  ;;  %v1611_v0 = vpop.permute.xlu0 %1610  ;;  %v1883_v41 = vsel %vm6009_vm14, %v1881_v33, %v1882_v34  ;;  %v1750_v44 = vld [vmem:[#allocation2 + $0x8c] sm:$0x1]  ;;  %v1752_v45 = vld [vmem:[#allocation2 + $0x94] sm:$0xf]  ;;  %v5117_v48 = vrot.slane %v1748_v40, 9  ;;  %vm3307_vm12 = vcmask 224448  }
  0xd3   : > { %1942 = vrot.lane.b32.xlu0 %v1845_v46, %s5479_s12  ;;  %1695 = vst.msk [vmem:[#allocation3 + $0x30] sm:$0xf] %vm1682_vm15, %v1611_v0  ;;  %v1613_v4 = vpop.permute.xlu1 %1612  ;;  %v1887_v46 = vsel %vm6009_vm14, %v5116_v38, %v1886_v35  ;;  %v1751_v50 = vld [vmem:[#allocation2 + $0x90] sm:$0xe]  ;;  %v1890_v53 = vsel %vm6009_vm14, %v1888_v42, %v1889_v28  ;;  %v1895_v54 = vrot.slane %v1893_v43, 4  ;;  %v1896_v56 = vrot.slane %v1750_v44, 5 }
  0xd4   : > { %1696 = vst.msk [vmem:[#allocation3 + $0x34] sm:$0xf] %vm1682_vm15, %v1613_v4  ;;  %v1900_v57 = vrot.slane %v1752_v45, 5  ;;  %v1753_v58 = vld [vmem:[#allocation2 + $0x98] sm:$0x1]  ;;  %v1894_v61 = vsel %vm6009_vm14, %v5117_v48, %v1893_v43  ;;  %v5118_v63 = vrot.slane %v1751_v50, 9 }
  0xd5   : > { %v1897_v9 = vsel %vm6009_vm14, %v1895_v54, %v1896_v56  ;;  %v1903_v6 = vrot.slane %v1753_v58, 5  ;;  %v1756_v7 = vld [vmem:[#allocation2 + $0xa4] sm:$0x1]  ;;  %v1758_v13 = vld [vmem:[#allocation2 + $0xac] sm:$0xf]  ;;  %vm3868_vm13 = vcmask 257248  }
  0xd6   : > { %1944 = vrot.lane.b32.xlu1 %v1848_v51, %s5479_s12  ;;  %v1902_v5 = vrot.slane %v1900_v57, 4  ;;  %v1757_v18 = vld [vmem:[#allocation2 + $0xa8] sm:$0xe]  ;;  %v1910_v22 = vrot.slane %v1756_v7, 5  ;;  %v1914_v62 = vrot.slane %v1758_v13, 5 }
  0xd7   : > { %1946 = vrot.lane.b32.xlu0 %v1852_v59, %s5479_s12  ;;  %v1755_v59 = vld [vmem:[#allocation2 + $0xa0] sm:$0xf]  ;;  %v1759_v23 = vld [vmem:[#allocation2 + $0xb0] sm:$0x1]  ;;  %v1761_v27 = vld [vmem:[#allocation2 + $0xb8] sm:$0xf] }
  0xd8   : > { %v1907_v4 = vrot.slane %v1755_v59, 5  ;;  %v5120_v20 = vrot.slane %v1757_v18, 9  ;;  %v1916_v30 = vrot.slane %v1914_v62, 4  ;;  %v1917_v31 = vrot.slane %v1759_v23, 5  ;;  %v2056_v38 = vld [vmem:[#allocation2 + $0x10] sm:$0xf] }
  0xd9   : > { %v1921_v32 = vrot.slane %v1761_v27, 5  ;;  %v2058_v40 = vld [vmem:[#allocation2 + $0x1c] sm:$0xf]  ;;  %v2060_v43 = vld [vmem:[#allocation2 + $0x28] sm:$0xf] }
  0xda   : > { %1948 = vrot.lane.b32.xlu1 %v1855_v3, %s5479_s12  ;;  %v1754_v3 = vld [vmem:[#allocation2 + $0x9c] sm:$0xe]  ;;  %v1909_v19 = vrot.slane %v1907_v4, 4  ;;  %v1915_v60 = vsel %vm6009_vm14, %v5120_v20, %v1914_v62  ;;  %v2061_v44 = vld [vmem:[#allocation2 + $0x30] sm:$0xf] }
  0xdb   : > { %1950 = vrot.lane.b32.xlu0 %v1859_v15, %s5479_s12  ;;  %v1901_v15 = vsel %vm6009_vm14, %v5118_v63, %v1900_v57  ;;  %v5119_v16 = vrot.slane %v1754_v3, 9  ;;  %v1923_v33 = vrot.slane %v1921_v32, 4  ;;  %v2062_v45 = vld [vmem:[#allocation2 + $0x34] sm:$0xf]  ;;  %v2248_v48 = vld [vmem:[#allocation2 + $0xc] sm:$0xf] }
  0xdc   : > { %v1911_v11 = vsel %vm6009_vm14, %v1909_v19, %v1910_v22  ;;  %v2064_v50 = vld [vmem:[#allocation2 + $0x40] sm:$0xf]  ;;  %v2065_v54 = vld [vmem:[#allocation2 + $0x48] sm:$0xf]  ;;  %v2297_v56 = vshrl.u32 %v2248_v48, 16  ;;  %v2300_v57 = vshll.u32 %v2248_v48, 16 }
  0xdd   : > { %v1908_v26 = vsel %vm6009_vm14, %v5119_v16, %v1907_v4  ;;  %v2251_v59 = vld [vmem:[#allocation2 + $0x18] sm:$0xf]  ;;  %v2252_v3 = vld [vmem:[#allocation2 + $0x1c] sm:$0xf]  ;;  %v2250_v19 = vld [vmem:[#allocation2 + $0x14] sm:$0x1] }
  0xde   : > { %1952 = vrot.lane.b32.xlu1 %v1862_v14, %s5479_s12  ;;  %v1904_v14 = vsel %vm6009_vm14, %v1902_v5, %v1903_v6  ;;  %v2299_v5 = vrot.slane %v2297_v56, 4  ;;  %v2302_v6 = vrot.slane %v2300_v57, 5  ;;  %v2321_v4 = vshrl.u32 %v2251_v59, 16  ;;  %v2068_v13 = vld [vmem:[#allocation2 + $0x58] sm:$0xf] }
  0xdf   : > { %1954 = vrot.lane.b32.xlu0 %v1866_v25, %s5479_s12  ;;  %v2324_v7 = vshll.u32 %v2251_v59, 16  ;;  %v2330_v18 = vshll.u32 %v2252_v3, 16  ;;  %v2069_v22 = vld [vmem:[#allocation2 + $0x60] sm:$0xf]  ;;  %v3340_v48 = vld [vmem:[#allocation2 + $0x18] sm:$0xf] }
  0xe0   : > { %v1615_v21 = vpop.permute.xlu0 %1614  ;;  %v2303_v62 = vor.u32 %v2302_v6, %v2299_v5  ;;  %v2323_v23 = vrot.slane %v2321_v4, 4  ;;  %v3341_v57 = vld [vmem:[#allocation2 + $0x1c] sm:$0xf]  ;;  %v3389_v59 = vshrl.u32 %v3340_v48, 16  ;;  %v3343_v5 = vld [vmem:[#allocation2 + $0x24] sm:$0xf] }
  0xe1   : > { %1697 = vst.msk [vmem:[#allocation3 + $0x38] sm:$0xf] %vm1682_vm15, %v1615_v21  ;;  %v1617_v39 = vpop.permute.xlu1 %1616  ;;  %v2055_v21 = vld [vmem:[#allocation2 + $0xc] sm:$0xf]  ;;  %v2326_v27 = vrot.slane %v2324_v7, 5 }
  0xe2   : > { %1956 = vrot.lane.b32.xlu1 %v1869_v8, %s5479_s12  ;;  %1698 = vst.msk [vmem:[#allocation3 + $0x3c] sm:$0xf] %vm1682_vm15, %v1617_v39  ;;  %v1760_v8 = vld [vmem:[#allocation2 + $0xb4] sm:$0xe]  ;;  %v2057_v39 = vld [vmem:[#allocation2 + $0x18] sm:$0xf] }
  0xe3   : > { %1958 = vrot.lane.b32.xlu0 %v1873_v55, %s5479_s12  ;;  %v1762_v55 = vld [vmem:[#allocation2 + $0xbc] sm:$0x1]  ;;  %v5121_v49 = vrot.slane %v1760_v8, 9  ;;  %v2316_v8 = vshll.u32 %v2250_v19, 16  ;;  %v3416_v19 = vshll.u32 %v3343_v5, 16 }
  0xe4   : > { %v1924_v34 = vrot.slane %v1762_v55, 5  ;;  %v2304_v55 = vrot.slane %v2303_v62, 4 }
  0xe5   : > { %v1922_v35 = vsel %vm6009_vm14, %v5121_v49, %v1921_v32  ;;  %v2071_v32 = vld [vmem:[#allocation2 + $0x6c] sm:$0xf]  ;;  %v2072_v49 = vld [vmem:[#allocation2 + $0x70] sm:$0xf] }
  0xe6   : > { %1960 = vrot.lane.b32.xlu1 %v1876_v24, %s5479_s12  ;;  %v1918_v24 = vsel %vm6009_vm14, %v1916_v30, %v1917_v31  ;;  %v1925_v1 = vsel %vm6009_vm14, %v1923_v33, %v1924_v34  ;;  %v2253_v31 = vld [vmem:[#allocation2 + $0x20] sm:$0x1]  ;;  %v2318_v33 = vrot.slane %v2316_v8, 5 }
  0xe7   : > { %1962 = vrot.lane.b32.xlu0 %v1880_v37, %s5479_s12  ;;  %v1619_v51 = vpop.permute.xlu0 %1618 }
  0xe8   : > { %1699 = vst.msk [vmem:[#allocation3 + $0x40] sm:$0xf] %vm1682_vm15, %v1619_v51 }
  0xe9   : > { %v1621_v0 = vpop.permute.xlu1 %1620 }
  0xea   : > { %1964 = vrot.lane.b32.xlu1 %v1883_v41, %s5479_s12  ;;  %1700 = vst.msk [vmem:[#allocation3 + $0x44] sm:$0xf] %vm1682_vm15, %v1621_v0  ;;  %v2059_v41 = vld [vmem:[#allocation2 + $0x24] sm:$0xf] }
  0xeb   : > { %1966 = vrot.lane.b32.xlu0 %v1887_v46, %s5479_s12  ;;  %v2063_v46 = vld [vmem:[#allocation2 + $0x3c] sm:$0xf] }
  0xee   : > { %1968 = vrot.lane.b32.xlu1 %v1890_v53, %s5479_s12  ;;  %v2249_v53 = vld [vmem:[#allocation2 + $0x10] sm:$0xf] }
  0xef   : > { %1970 = vrot.lane.b32.xlu0 %v1894_v61, %s5479_s12  ;;  %v2066_v61 = vld [vmem:[#allocation2 + $0x4c] sm:$0xf]  ;;  %v2306_v63 = vshll.u32 %v2249_v53, 16  ;;  %v2310_v0 = vshrl.u32 %v2249_v53, 16 }
  0xf1   : > { %v1623_v25 = vpop.permute.xlu0 %1622  ;;  %v2312_v16 = vrot.slane %v2310_v0, 4 }
  0xf2   : > { %1972 = vrot.lane.b32.xlu1 %v1897_v9, %s5479_s12  ;;  %1701 = vst.msk [vmem:[#allocation3 + $0x48] sm:$0xf] %vm1682_vm15, %v1623_v25  ;;  %v2067_v9 = vld [vmem:[#allocation2 + $0x54] sm:$0xf] }
  0xf3   : > { %1974 = vrot.lane.b32.xlu0 %v1901_v15, %s5479_s12  ;;  %v1625_v29 = vpop.permute.xlu1 %1624  ;;  %v2308_v15 = vrot.slane %v2306_v63, 5 }
  0xf4   : > { %1702 = vst.msk [vmem:[#allocation3 + $0x4c] sm:$0xf] %vm1682_vm15, %v1625_v29  ;;  %v2332_v29 = vrot.slane %v2330_v18, 5 }
  0xf5   : > { %v2313_v20 = vor.u32 %v2312_v16, %v2308_v15 }
  0xf6   : > { %1976 = vrot.lane.b32.xlu1 %v1904_v14, %s5479_s12  ;;  %v2334_v14 = vshrl.u32 %v2252_v3, 16  ;;  %v3398_v3 = vshll.u32 %v3341_v57, 16 }
  0xf7   : > { %1978 = vrot.lane.b32.xlu0 %v1908_v26, %s5479_s12  ;;  %v2070_v26 = vld [vmem:[#allocation2 + $0x64] sm:$0xf] }
  0xf8   : > { %v6193_v62 = vrot.slane %v3398_v3, 5 }
  0xfa   : > { %1980 = vrot.lane.b32.xlu1 %v1911_v11, %s5479_s12  ;;  %v2336_v11 = vrot.slane %v2334_v14, 4  ;;  %v3413_v14 = vshrl.u32 %v3343_v5, 16 }
  0xfb   : > { %1982 = vrot.lane.b32.xlu0 %v1915_v60, %s5479_s12  ;;  %v1627_v36 = vpop.permute.xlu0 %1626  ;;  %v2327_v60 = vor.u32 %v2326_v27, %v2323_v23 }
  0xfc   : > { %1703 = vst.msk [vmem:[#allocation3 + $0x50] sm:$0xf] %vm1682_vm15, %v1627_v36  ;;  %v2337_v34 = vor.u32 %v2336_v11, %v2332_v29  ;;  %v2810_v36 = vld [vmem:[#allocation2 + $0x10] sm:$0xf]  ;;  %v3345_v11 = vld [vmem:[#allocation2 + $0x2c] sm:$0x1] }
  0xfe   : > { %1984 = vrot.lane.b32.xlu1 %v1918_v24, %s5479_s12  ;;  %v2314_v24 = vrot.slane %v2313_v20, 4  ;;  %v3342_v20 = vld [vmem:[#allocation2 + $0x20] sm:$0x1] }
  0xff   : > { %1986 = vrot.lane.b32.xlu0 %v1922_v35, %s5479_s12  ;;  %v1629_v37 = vpop.permute.xlu1 %1628  ;;  %v2340_v35 = vshll.u32 %v2253_v31, 16  ;;  %v3415_v31 = vrot.slane %v3413_v14, 4 }
 0x100   : > { %1704 = vst.msk [vmem:[#allocation3 + $0x54] sm:$0xf] %vm1682_vm15, %v1629_v37  ;;  %v2809_v37 = vld [vmem:[#allocation2 + $0xc] sm:$0xe] }
 0x102   : > { %1988 = vrot.lane.b32.xlu1 %v1925_v1, %s5479_s12  ;;  %v2309_v1 = vsel %vm5593_vm9, %v2304_v55, %v2308_v15  ;;  %v3391_v15 = vrot.slane %v3389_v59, 4  ;;  %v6200_v55 = vld [vmem:[#allocation2 + $0x1c] sm:$0xf] }
 0x103   : > { %2119 = vrot.lane.b32.xlu0 %v2055_v21, %s5480_s13  ;;  %v2328_v21 = vrot.slane %v2327_v60, 4 }
 0x106   : > { %2121 = vrot.lane.b32.xlu1 %v2056_v38, %s5480_s13  ;;  %v2319_v38 = vsel %vm5593_vm9, %v2314_v24, %v2318_v33  ;;  %v3408_v24 = vshll.u32 %v3342_v20, 16  ;;  %v4277_v20 = vld [vmem:[%s7112_s3 + $0xe] sm:$0x3] }
 0x107   : > { %2123 = vrot.lane.b32.xlu0 %v2057_v39, %s5480_s13  ;;  %v1631_v42 = vpop.permute.xlu0 %1630  ;;  %v2338_v39 = vrot.slane %v2337_v34, 4 }
 0x108   : > { %1705 = vst.msk [vmem:[#allocation3 + $0x58] sm:$0xf] %vm1682_vm15, %v1631_v42  ;;  %v1633_v28 = vpop.permute.xlu1 %1632  ;;  %v2907_v42 = vrot.slane %v2810_v36, 5  ;;  %v3432_v36 = vshll.u32 %v3345_v11, 16 }
 0x109   : > { %1706 = vst.msk [vmem:[#allocation3 + $0x5c] sm:$0xf] %vm1682_vm15, %v1633_v28 }
 0x10a   : > { %2125 = vrot.lane.b32.xlu1 %v2058_v40, %s5480_s13  ;;  %v2342_v40 = vrot.slane %v2340_v35, 5  ;;  %v2909_v53 = vrot.slane %v2907_v42, 4  ;;  %v3148_v35 = vld [vmem:[#allocation2 + $0x1c] sm:$0xf] }
 0x10b   : > { %2127 = vrot.lane.b32.xlu0 %v2059_v41, %s5480_s13 }
 0x10e   : > { %2129 = vrot.lane.b32.xlu1 %v2060_v43, %s5480_s13  ;;  %v2811_v43 = vld [vmem:[#allocation2 + $0x14] sm:$0x1] }
 0x10f   : > { %2131 = vrot.lane.b32.xlu0 %v2061_v44, %s5480_s13  ;;  %v2813_v44 = vld [vmem:[#allocation2 + $0x1c] sm:$0xf] }
 0x110   : > { %v2914_v56 = vrot.slane %v2813_v44, 5 }
 0x112   : > { %2133 = vrot.lane.b32.xlu1 %v2062_v45, %s5480_s13  ;;  %v2333_v45 = vsel %vm5593_vm9, %v2328_v21, %v2332_v29  ;;  %v2916_v4 = vrot.slane %v2914_v56, 4 }
 0x113   : > { %2135 = vrot.lane.b32.xlu0 %v2063_v46, %s5480_s13  ;;  %v5122_v46 = vrot.slane %v2809_v37, 9  ;;  %v3149_v37 = vld [vmem:[#allocation2 + $0x24] sm:$0xf] }
 0x114   : > { %v1635_v51 = vpop.permute.xlu0 %1634 }
 0x115   : > { %1707 = vst.msk [vmem:[#allocation3 + $0x60] sm:$0xf] %vm1682_vm15, %v1635_v51  ;;  %v1637_v58 = vpop.permute.xlu1 %1636  ;;  %v2343_v51 = vsel %vm5593_vm9, %v2338_v39, %v2342_v40  ;;  %v2908_v63 = vsel %vm6009_vm14, %v5122_v46, %v2907_v42  ;;  %v3999_v39 = vrot.slane %v6200_v55, 5  ;;  %v4373_v40 = vlaneseq }
 0x116   : > { %2137 = vrot.lane.b32.xlu1 %v2064_v50, %s5480_s13  ;;  %1708 = vst.msk [vmem:[#allocation3 + $0x64] sm:$0xf] %vm1682_vm15, %v1637_v58  ;;  %v2812_v50 = vld [vmem:[#allocation2 + $0x18] sm:$0xe]  ;;  %v2814_v58 = vld [vmem:[#allocation2 + $0x20] sm:$0x1] }
 0x117   : > { %2139 = vrot.lane.b32.xlu0 %v2065_v54, %s5480_s13  ;;  %v2910_v54 = vrot.slane %v2811_v43, 5  ;;  %v5123_v0 = vrot.slane %v2812_v50, 9  ;;  %v2917_v7 = vrot.slane %v2814_v58, 5  ;;  %v2254_v43 = vld [vmem:[#allocation2 + $0x24] sm:$0xf]  ;;  %v3410_v46 = vrot.slane %v3408_v24, 5 }
 0x118   : > { %v5484_v58 = vmov 1983009808   ;;  %v6236_v3 = vrot.slane %v3999_v39, 4  ;;  %v2348_v5 = vshll.u32 %v2254_v43, 16 }
 0x119   : > { %v2911_v6 = vsel %vm6009_vm14, %v2909_v53, %v2910_v54  ;;  %v2915_v18 = vsel %vm6009_vm14, %v5123_v0, %v2914_v56  ;;  %v6219_v53 = vld [vmem:[#allocation2 + $0x28] sm:$0xf]  ;;  %v6222_v54 = vrot.slane %v3432_v36, 5  ;;  %v4371_v59 = vunpack.c.l.s4 %v5484_v58  ;;  %v4272_v36 = vld [vmem:[%s7112_s3 + $0x4] sm:$0x3] }
 0x11a   : > { %2141 = vrot.lane.b32.xlu1 %v2066_v61, %s5480_s13  ;;  %v3392_v61 = vshll.u32 %v3340_v48, 16  ;;  %v4274_v56 = vld [vmem:[%s7112_s3 + $0x8] sm:$0x3] }
 0x11b   : > { %2143 = vrot.lane.b32.xlu0 %v2067_v9, %s5480_s13  ;;  %v3402_v9 = vshrl.u32 %v3341_v57, 16  ;;  %v4275_v57 = vld [vmem:[%s7112_s3 + $0xa] sm:$0x3] }
 0x11c   : > { %v3394_v16 = vrot.slane %v3392_v61, 5  ;;  %v4374_v61 = vshrl.u32 %v4373_v40, 7 }
 0x11d   : > { %v3404_v23 = vrot.slane %v3402_v9, 4  ;;  %v2345_v9 = vshrl.u32 %v2254_v43, 16 }
 0x11e   : > { %2145 = vrot.lane.b32.xlu1 %v2068_v13, %s5480_s13  ;;  %v3344_v13 = vld [vmem:[#allocation2 + $0x28] sm:$0xf]  ;;  %v3395_v29 = vor.u32 %v3394_v16, %v3391_v15  ;;  %v4372_v15 = vunpack.c.0.s8 %v4371_v59  ;;  %v4385_v16 = vcombine.low %v4274_v56, %v4275_v57 }
 0x11f   : > { %v1639_v25 = vpop.permute.xlu0 %1638  ;;  %2147 = vrot.lane.b32.xlu0 %v2069_v22, %s5480_s13  ;;  %v3422_v27 = vshll.u32 %v3344_v13, 16  ;;  %v2347_v11 = vrot.slane %v2345_v9, 4 }
 0x120   : > { %1709 = vst.msk [vmem:[#allocation3 + $0x68] sm:$0xf] %vm1682_vm15, %v1639_v25  ;;  %v3426_v25 = vshrl.u32 %v3344_v13, 16 }
 0x121   : > { %v1641_v30 = vpop.permute.xlu1 %1640  ;;  %v6204_v33 = vrot.slane %v3422_v27, 5  ;;  %v5170_v13 = vld.sshfl [vmem:[%s7112_s3 + $0x10] sm:$0x3 pattern:$0x76325410] }
 0x122   : > { %1710 = vst.msk [vmem:[#allocation3 + $0x6c] sm:$0xf] %vm1682_vm15, %v1641_v30  ;;  %2149 = vrot.lane.b32.xlu1 %v2070_v26, %s5480_s13  ;;  %v2918_v26 = vsel %vm6009_vm14, %v2916_v4, %v2917_v7  ;;  %v3147_v30 = vld [vmem:[#allocation2 + $0x18] sm:$0xf]  ;;  %v3428_v34 = vrot.slane %v3426_v25, 4  ;;  %5429 = vmatprep.subr.msk.bf16.mxu0 %vm4460_vm3, %v5170_v13  ;;  %v2354_v25 = vshll.u32 %v6219_v53, 16 }
 0x123   : > { %2151 = vrot.lane.b32.xlu0 %v2071_v32, %s5480_s13  ;;  %v3418_v32 = vrot.slane %v3416_v19, 5  ;;  %v4276_v4 = vld [vmem:[%s7112_s3 + $0xc] sm:$0x3]  ;;  %5430 = vmatprep.subr.msk.bf16.mxu1 %vm4460_vm3, %v5170_v13 }
 0x124   : > { %v3429_v48 = vor.u32 %v3428_v34, %v6204_v33  ;;  %v6287_v43 = vrot.slane %v2354_v25, 5 }
 0x125   : > { %v3419_v42 = vor.u32 %v3418_v32, %v3415_v31  ;;  %v4386_v31 = vcombine.low %v4276_v4, %v4277_v20  ;;  %v4270_v32 = vld [vmem:[%s7112_s3] sm:$0x3] }
 0x126   : > { %2153 = vrot.lane.b32.xlu1 %v2072_v49, %s5480_s13  ;;  %v3405_v49 = vor.u32 %v3404_v23, %v6193_v62  ;;  %v3430_v19 = vrot.slane %v3429_v48, 4  ;;  %v4462_v23 = vsel %vm4460_vm3, %v5170_v13, 0 }
 0x127   : > { %2680 = vrot.lane.b32.xlu0 %v2309_v1, %s5481_s14  ;;  %v6207_v1 = vld [vmem:[#allocation2 + $0x18] sm:$0xe]  ;;  %v3420_v7 = vrot.slane %v3419_v42, 4  ;;  %5386 = vmatpush3.bf16.msra.mxu0 %v4462_v23 }
 0x128   : > { %v1643_v41 = vpop.permute.xlu0 %1642  ;;  %v5138_v50 = vrot.slane %v6207_v1, 9  ;;  %5426 = vmatpush3.bf16.msra.mxu1 %v4462_v23 }
 0x129   : > { %1711 = vst.msk [vmem:[#allocation3 + $0x70] sm:$0xf] %vm1682_vm15, %v1643_v41  ;;  %v1645_v28 = vpop.permute.xlu1 %1644  ;;  %v3150_v41 = vld [vmem:[#allocation2 + $0x28] sm:$0xf] }
 0x12a   : > { %1712 = vst.msk [vmem:[#allocation3 + $0x74] sm:$0xf] %vm1682_vm15, %v1645_v28  ;;  %2682 = vrot.lane.b32.xlu1 %v2319_v38, %s5481_s14  ;;  %v3396_v38 = vrot.slane %v3395_v29, 4  ;;  %v6212_v28 = vld [vmem:[#allocation2 + $0x20] sm:$0x1] }
 0x12b   : > { %2684 = vrot.lane.b32.xlu0 %v2333_v45, %s5481_s14  ;;  %v3406_v45 = vrot.slane %v3405_v49, 4  ;;  %v3425_v49 = vsel %vm5593_vm9, %v3420_v7, %v6204_v33  ;;  %v3435_v33 = vsel %vm5593_vm9, %v3430_v19, %v6222_v54  ;;  %v2256_v54 = vld [vmem:[#allocation2 + $0x2c] sm:$0x1] }
 0x12c   : > { %v3401_v0 = vsel %vm5593_vm9, %v3396_v38, %v6193_v62  ;;  %v6251_v62 = vld [vmem:[#allocation2 + $0x34] sm:$0xf]  ;;  %v3904_v38 = vld [vmem:[#allocation2 + $0x24] sm:$0xe] }
 0x12d   : > { %v3411_v14 = vsel %vm5593_vm9, %v3406_v45, %v3410_v46  ;;  %v2378_v45 = vshll.u32 %v6251_v62, 16  ;;  %v2382_v46 = vshrl.u32 %v6251_v62, 16  ;;  %v5139_v59 = vrot.slane %v3904_v38, 9 }
 0x12e   : > { %2686 = vrot.lane.b32.xlu1 %v2343_v51, %s5481_s14  ;;  %v6217_v51 = vld [vmem:[#allocation2 + $0x28] sm:$0xf] }
 0x12f   : > { %3017 = vrot.lane.b32.xlu0 %v2908_v63, %s5482_s15  ;;  %v4006_v27 = vrot.slane %v6217_v51, 5  ;;  %v2380_v4 = vrot.slane %v2378_v45, 5  ;;  %v2384_v7 = vrot.slane %v2382_v46, 4 }
 0x131   : > { %v1647_v22 = vpop.permute.xlu0 %1646  ;;  %v4008_v1 = vrot.slane %v4006_v27, 4  ;;  %v2385_v23 = vor.u32 %v2384_v7, %v2380_v4 }
 0x132   : > { %3019 = vrot.lane.b32.xlu1 %v2911_v6, %s5482_s15  ;;  %1713 = vst.msk [vmem:[#allocation3 + $0x78] sm:$0xf] %vm1682_vm15, %v1647_v22  ;;  %v6238_v6 = vld [vmem:[#allocation2 + $0x30] sm:$0xf]  ;;  %v4002_v22 = vrot.slane %v6212_v28, 5 }
 0x133   : > { %3021 = vrot.lane.b32.xlu0 %v2915_v18, %s5482_s15  ;;  %v2369_v24 = vshrl.u32 %v6238_v6, 16  ;;  %v2372_v34 = vshll.u32 %v6238_v6, 16  ;;  %v3906_v28 = vld [vmem:[#allocation2 + $0x2c] sm:$0x1]  ;;  %v2364_v6 = vshll.u32 %v2256_v54, 16 }
 0x134   : > { %v1649_v8 = vpop.permute.xlu1 %1648  ;;  %v4003_v55 = vsel %vm6009_vm14, %v6236_v3, %v4002_v22  ;;  %v2259_v3 = vld [vmem:[#allocation2 + $0x38] sm:$0x1] }
 0x135   : > { %1714 = vst.msk [vmem:[#allocation3 + $0x7c] sm:$0xf] %vm1682_vm15, %v1649_v8  ;;  %v1927_v60 = vpop.permute.xlu0 %1926  ;;  %v4375_v8 = vsub.s32 %v4372_v15, %v4374_v61  ;;  %v4007_v15 = vsel %vm6009_vm14, %v5139_v59, %v4006_v27  ;;  %v2366_v62 = vrot.slane %v2364_v6, 5  ;;  %v2388_v25 = vshll.u32 %v2259_v3, 16  ;;  %v2816_v27 = vld [vmem:[#allocation2 + $0x28] sm:$0xf] }
 0x136   : > { %3023 = vrot.lane.b32.xlu1 %v2918_v26, %s5482_s15  ;;  %2023 = vst.msk [vmem:[#allocation3] sm:$0xf] %vm2022_vm2, %v1927_v60  ;;  %v2358_v26 = vshrl.u32 %v6219_v53, 16  ;;  %v4271_v60 = vld [vmem:[%s7112_s3 + $0x2] sm:$0x3]  ;;  %v4000_v53 = vsel %vm6009_vm14, %v5138_v50, %v3999_v39  ;;  %v4009_v39 = vrot.slane %v3906_v28, 5 }
 0x137   : > { %3211 = vrot.lane.b32.xlu0 %v3147_v30, %s5483_s16  ;;  %v2350_v30 = vrot.slane %v2348_v5, 5  ;;  %v4400_v40 = vrot.slane %v4386_v31, %v4375_v8  ;;  %v2390_v31 = vrot.slane %v2388_v25, 5  ;;  %vm4205_vm15 = vcmask 290048  }
 0x138   : > { %v1929_v21 = vpop.permute.xlu1 %1928  ;;  %v4010_v19 = vsel %vm6009_vm14, %v4008_v1, %v4009_v39 }
 0x139   : > { %2024 = vst.msk [vmem:[#allocation3 + $0x4] sm:$0xf] %vm2022_vm2, %v1929_v21  ;;  %v1931_v44 = vpop.permute.xlu0 %1930  ;;  %v4273_v21 = vld [vmem:[%s7112_s3 + $0x6] sm:$0x3]  ;;  %v2351_v61 = vor.u32 %v2350_v30, %v2347_v11  ;;  %v2386_v30 = vrot.slane %v2385_v23, 4 }
 0x13a   : > { %3213 = vrot.lane.b32.xlu1 %v3148_v35, %s5483_s16  ;;  %2025 = vst.msk [vmem:[#allocation3 + $0x8] sm:$0xf] %vm2022_vm2, %v1931_v44  ;;  %v4393_v35 = vrot.slane %v4385_v16, %v4375_v8  ;;  %v4369_v42 = vcombine.low %v4272_v36, %v4273_v21  ;;  %v2360_v44 = vrot.slane %v2358_v26, 4  ;;  %v2818_v21 = vld [vmem:[#allocation2 + $0x30] sm:$0xe] }
 0x13b   : > { %3215 = vrot.lane.b32.xlu0 %v3149_v37, %s5483_s16  ;;  %v2352_v16 = vrot.slane %v2351_v61, 4  ;;  %v5125_v45 = vrot.slane %v2818_v21, 9 }
 0x13c   : > { %v1933_v63 = vpop.permute.xlu1 %1932  ;;  %v4401_v56 = vcombine.low %v4393_v35, %v4400_v40  ;;  %v4383_v58 = vrot.slane %v4369_v42, %v4375_v8  ;;  %v2361_v5 = vor.u32 %v2360_v44, %v6287_v43  ;;  %v2820_v42 = vld [vmem:[#allocation2 + $0x38] sm:$0x1] }
 0x13d   : > { %2026 = vst.msk [vmem:[#allocation3 + $0xc] sm:$0xf] %vm2022_vm2, %v1933_v63  ;;  %v1935_v18 = vpop.permute.xlu0 %1934  ;;  %v2371_v63 = vrot.slane %v2369_v24, 4  ;;  %v2357_v26 = vsel %vm5593_vm9, %v2352_v16, %v6287_v43  ;;  %v2819_v24 = vld [vmem:[#allocation2 + $0x34] sm:$0xf] }
 0x13e   : > { %3217 = vrot.lane.b32.xlu1 %v3150_v41, %s5483_s16  ;;  %2027 = vst.msk [vmem:[#allocation3 + $0x10] sm:$0xf] %vm2022_vm2, %v1935_v18  ;;  %v4368_v41 = vcombine.low %v4270_v32, %v4271_v60  ;;  %5387 = vmatprep.subr.bf16.mxu0 %v4401_v56  ;;  %v2362_v22 = vrot.slane %v2361_v5, 4  ;;  %v2921_v32 = vrot.slane %v2816_v27, 5  ;;  %v3347_v43 = vld [vmem:[#allocation2 + $0x34] sm:$0xf] }
 0x13f   : > { %3772 = vrot.lane.b32.xlu0 %v3401_v0, %s5485_s7  ;;  %v2374_v0 = vrot.slane %v2372_v34, 5  ;;  %5388 = vmatpush3.bf16.msra.mxu0 %v4401_v56  ;;  %v3446_v59 = vshll.u32 %v3347_v43, 16  ;;  %v3450_v61 = vshrl.u32 %v3347_v43, 16  ;;  %v3348_v16 = vld [vmem:[#allocation2 + $0x38] sm:$0x1] }
 0x140   : > { %v1937_v29 = vpop.permute.xlu1 %1936  ;;  %v4376_v57 = vrot.slane %v4368_v41, %v4375_v8  ;;  %5424 = vmatprep.subr.bf16.mxu1 %v4401_v56  ;;  %v2367_v11 = vsel %vm5593_vm9, %v2362_v22, %v2366_v62  ;;  %v2923_v38 = vrot.slane %v2921_v32, 4  ;;  %v2928_v41 = vrot.slane %v2819_v24, 5  ;;  %v3154_v24 = vld [vmem:[#allocation2 + $0x40] sm:$0xf] }
 0x141   : > { %2028 = vst.msk [vmem:[#allocation3 + $0x14] sm:$0xf] %vm2022_vm2, %v1937_v29  ;;  %v1939_v37 = vpop.permute.xlu0 %1938  ;;  %v2375_v18 = vor.u32 %v2374_v0, %v2371_v63  ;;  %5427 = vmatpush3.bf16.msra.mxu1 %v4401_v56  ;;  %v2815_v29 = vld [vmem:[#allocation2 + $0x24] sm:$0xe]  ;;  %v2931_v56 = vrot.slane %v2820_v42, 5  ;;  %v3452_v3 = vrot.slane %v3450_v61, 4 }
 0x142   : > { %3774 = vrot.lane.b32.xlu1 %v3411_v14, %s5485_s7  ;;  %2029 = vst.msk [vmem:[#allocation3 + $0x18] sm:$0xf] %vm2022_vm2, %v1939_v37  ;;  %v4384_v50 = vcombine.low %v4376_v57, %v4383_v58  ;;  %v5124_v35 = vrot.slane %v2815_v29, 9  ;;  %v3346_v37 = vld [vmem:[#allocation2 + $0x30] sm:$0xf]  ;;  %v2930_v58 = vrot.slane %v2928_v41, 4  ;;  %v2929_v1 = vsel %vm6009_vm14, %v5125_v45, %v2928_v41 }
 0x143   : > { %3776 = vrot.lane.b32.xlu0 %v3425_v49, %s5485_s7  ;;  %v2376_v20 = vrot.slane %v2375_v18, 4  ;;  %v2817_v49 = vld [vmem:[#allocation2 + $0x2c] sm:$0x1]  ;;  %v3437_v46 = vshrl.u32 %v3346_v37, 16  ;;  %v3350_v63 = vld [vmem:[#allocation2 + $0x40] sm:$0xf] }
 0x144   : > { %v1941_v48 = vpop.permute.xlu1 %1940  ;;  %5389 = vmatprep.subr.bf16.mxu0 %v4384_v50  ;;  %5425 = vmatprep.subr.bf16.mxu1 %v4384_v50  ;;  %v2924_v40 = vrot.slane %v2817_v49, 5  ;;  %v2922_v44 = vsel %vm6009_vm14, %v5124_v35, %v2921_v32  ;;  %v3470_v6 = vshll.u32 %v3350_v63, 16  ;;  %v2932_v7 = vsel %vm6009_vm14, %v2930_v58, %v2931_v56  ;;  %v2260_v49 = vld [vmem:[#allocation2 + $0x3c] sm:$0xf] }
 0x145   : > { %2030 = vst.msk [vmem:[#allocation3 + $0x1c] sm:$0xf] %vm2022_vm2, %v1941_v48  ;;  %v1943_v9 = vpop.permute.xlu0 %1942  ;;  %5390 = vmatpush3.bf16.msra.mxu0 %v4384_v50  ;;  %5428 = vmatpush3.bf16.msra.mxu1 %v4384_v50  ;;  %v2381_v34 = vsel %vm5593_vm9, %v2376_v20, %v2380_v4  ;;  %v3440_v48 = vshll.u32 %v3346_v37, 16  ;;  %v3439_v39 = vrot.slane %v3437_v46, 4  ;;  %v3474_v4 = vshrl.u32 %v3350_v63, 16 }
 0x146   : > { %3778 = vrot.lane.b32.xlu1 %v3435_v33, %s5485_s7  ;;  %2031 = vst.msk [vmem:[#allocation3 + $0x20] sm:$0xf] %vm2022_vm2, %v1943_v9  ;;  %v2391_v33 = vsel %vm5593_vm9, %v2386_v30, %v2390_v31  ;;  %v2925_v57 = vsel %vm6009_vm14, %v2923_v38, %v2924_v40  ;;  %v6353_v23 = vrot.slane %v3470_v6, 5  ;;  %v3351_v20 = vld [vmem:[#allocation2 + $0x44] sm:$0x1]  ;;  %v2393_v41 = vshrl.u32 %v2260_v49, 16 }
 0x147   : > { %4109 = vrot.lane.b32.xlu0 %v4000_v53, %s5486_s20  ;;  %v3349_v53 = vld [vmem:[#allocation2 + $0x3c] sm:$0xf]  ;;  %v3442_v50 = vrot.slane %v3440_v48, 5  ;;  %v3476_v25 = vrot.slane %v3474_v4, 4  ;;  %v3907_v40 = vld [vmem:[#allocation2 + $0x30] sm:$0xe] }
 0x148   : > { %v1945_v13 = vpop.permute.xlu1 %1944  ;;  %v3461_v9 = vshrl.u32 %v3349_v53, 16  ;;  %v2396_v42 = vshll.u32 %v2260_v49, 16  ;;  %v2263_v46 = vld [vmem:[#allocation2 + $0x48] sm:$0xf]  ;;  %v5140_v61 = vrot.slane %v3907_v40, 9 }
 0x149   : > { %2032 = vst.msk [vmem:[#allocation3 + $0x24] sm:$0xf] %vm2022_vm2, %v1945_v13  ;;  %v1947_v14 = vpop.permute.xlu0 %1946  ;;  %v3448_v13 = vrot.slane %v3446_v59, 5  ;;  %v3443_v22 = vor.u32 %v3442_v50, %v3439_v39  ;;  %v3477_v32 = vor.u32 %v3476_v25, %v6353_v23  ;;  %v2264_v63 = vld [vmem:[#allocation2 + $0x4c] sm:$0xf]  ;;  %v2420_v39 = vshll.u32 %v2263_v46, 16 }
 0x14a   : > { %4111 = vrot.lane.b32.xlu1 %v4003_v55, %s5486_s20  ;;  %2033 = vst.msk [vmem:[#allocation3 + $0x28] sm:$0xf] %vm2022_vm2, %v1947_v14  ;;  %v3464_v55 = vshll.u32 %v3349_v53, 16  ;;  %v3463_v18 = vrot.slane %v3461_v9, 4  ;;  %v3909_v53 = vld [vmem:[#allocation2 + $0x38] sm:$0x1] }
 0x14b   : > { %4113 = vrot.lane.b32.xlu0 %v4007_v15, %s5486_s20  ;;  %v3453_v27 = vor.u32 %v3452_v3, %v3448_v13  ;;  %v3444_v30 = vrot.slane %v3443_v22, 4  ;;  %v3478_v43 = vrot.slane %v3477_v32, 4  ;;  %v2395_v9 = vrot.slane %v2393_v41, 4  ;;  %v2262_v22 = vld [vmem:[#allocation2 + $0x44] sm:$0x1] }
 0x14c   : > { %v1949_v51 = vpop.permute.xlu1 %1948  ;;  %v3466_v14 = vrot.slane %v3464_v55, 5  ;;  %v2398_v55 = vrot.slane %v2396_v42, 5  ;;  %v4016_v4 = vrot.slane %v3909_v53, 5  ;;  %v2822_v40 = vld [vmem:[#allocation2 + $0x40] sm:$0xf] }
 0x14d   : > { %2034 = vst.msk [vmem:[#allocation3 + $0x2c] sm:$0xf] %vm2022_vm2, %v1949_v51  ;;  %v1951_v8 = vpop.permute.xlu0 %1950  ;;  %v3152_v51 = vld [vmem:[#allocation2 + $0x34] sm:$0xf]  ;;  %v3449_v38 = vsel %vm5593_vm9, %v3444_v30, %v3448_v13  ;;  %v3912_v13 = vld [vmem:[#allocation2 + $0x44] sm:$0x1] }
 0x14e   : > { %4115 = vrot.lane.b32.xlu1 %v4010_v19, %s5486_s20  ;;  %2035 = vst.msk [vmem:[#allocation3 + $0x30] sm:$0xf] %vm2022_vm2, %v1951_v8  ;;  %v3151_v19 = vld [vmem:[#allocation2 + $0x30] sm:$0xf]  ;;  %v3467_v29 = vor.u32 %v3466_v14, %v3463_v18  ;;  %v2430_v18 = vshrl.u32 %v2264_v63, 16 }
 0x14f   : > { %2688 = vrot.lane.b32.xlu0 %v2357_v26, %s5481_s14  ;;  %v3456_v26 = vshll.u32 %v3348_v16, 16  ;;  %v2426_v16 = vshll.u32 %v2264_v63, 16 }
 0x150   : > { %v1953_v60 = vpop.permute.xlu1 %1952  ;;  %v3468_v37 = vrot.slane %v3467_v29, 4 }
 0x151   : > { %2036 = vst.msk [vmem:[#allocation3 + $0x34] sm:$0xf] %vm2022_vm2, %v1953_v60  ;;  %v1955_v36 = vpop.permute.xlu0 %1954  ;;  %v3480_v60 = vshll.u32 %v3351_v20, 16  ;;  %v3458_v35 = vrot.slane %v3456_v26, 5  ;;  %v2428_v30 = vrot.slane %v2426_v16, 5 }
 0x152   : > { %2690 = vrot.lane.b32.xlu1 %v2367_v11, %s5481_s14  ;;  %2037 = vst.msk [vmem:[#allocation3 + $0x38] sm:$0xf] %vm2022_vm2, %v1955_v36  ;;  %v3153_v11 = vld [vmem:[#allocation2 + $0x3c] sm:$0xf]  ;;  %v3908_v36 = vld [vmem:[#allocation2 + $0x34] sm:$0xf]  ;;  %v3473_v59 = vsel %vm5593_vm9, %v3468_v37, %v6353_v23  ;;  %v2399_v23 = vor.u32 %v2398_v55, %v2395_v9 }
 0x153   : > { %2692 = vrot.lane.b32.xlu0 %v2381_v34, %s5481_s14  ;;  %v3454_v34 = vrot.slane %v3453_v27, 4  ;;  %v4013_v45 = vrot.slane %v3908_v36, 5  ;;  %v2824_v9 = vld [vmem:[#allocation2 + $0x48] sm:$0xe] }
 0x154   : > { %v1957_v28 = vpop.permute.xlu1 %1956  ;;  %v3352_v55 = vld [vmem:[#allocation2 + $0x48] sm:$0xf] }
 0x155   : > { %2038 = vst.msk [vmem:[#allocation3 + $0x3c] sm:$0xf] %vm2022_vm2, %v1957_v28  ;;  %v1959_v54 = vpop.permute.xlu0 %1958  ;;  %v3459_v48 = vsel %vm5593_vm9, %v3454_v34, %v3458_v35  ;;  %v4015_v6 = vrot.slane %v4013_v45, 4 }
 0x156   : > { %2694 = vrot.lane.b32.xlu1 %v2391_v33, %s5481_s14  ;;  %2039 = vst.msk [vmem:[#allocation3 + $0x40] sm:$0xf] %vm2022_vm2, %v1959_v54  ;;  %v2261_v33 = vld [vmem:[#allocation2 + $0x40] sm:$0xf] }
 0x157   : > { %3025 = vrot.lane.b32.xlu0 %v2922_v44, %s5482_s15  ;;  %v3482_v44 = vrot.slane %v3480_v60, 5  ;;  %v3911_v54 = vld [vmem:[#allocation2 + $0x40] sm:$0xf]  ;;  %v2402_v56 = vshll.u32 %v2261_v33, 16  ;;  %v4017_v26 = vsel %vm6009_vm14, %v4015_v6, %v4016_v4  ;;  %v2265_v60 = vld [vmem:[#allocation2 + $0x50] sm:$0x1] }
 0x158   : > { %v1961_v0 = vpop.permute.xlu1 %1960  ;;  %v3353_v6 = vld [vmem:[#allocation2 + $0x4c] sm:$0xf] }
 0x159   : > { %2040 = vst.msk [vmem:[#allocation3 + $0x44] sm:$0xf] %vm2022_vm2, %v1961_v0  ;;  %v1963_v5 = vpop.permute.xlu0 %1962  ;;  %v3910_v0 = vld [vmem:[#allocation2 + $0x3c] sm:$0xe]  ;;  %v2404_v3 = vrot.slane %v2402_v56, 5 }
 0x15a   : > { %3027 = vrot.lane.b32.xlu1 %v2925_v57, %s5482_s15  ;;  %2041 = vst.msk [vmem:[#allocation3 + $0x48] sm:$0xf] %vm2022_vm2, %v1963_v5  ;;  %v2406_v57 = vshrl.u32 %v2261_v33, 16  ;;  %v3483_v5 = vsel %vm5593_vm9, %v3478_v43, %v3482_v44  ;;  %v2821_v44 = vld [vmem:[#allocation2 + $0x3c] sm:$0xe] }
 0x15b   : > { %3029 = vrot.lane.b32.xlu0 %v2929_v1, %s5482_s15  ;;  %v2417_v1 = vshrl.u32 %v2263_v46, 16 }
 0x15c   : > { %v1965_v15 = vpop.permute.xlu1 %1964 }
 0x15d   : > { %2042 = vst.msk [vmem:[#allocation3 + $0x4c] sm:$0xf] %vm2022_vm2, %v1965_v15  ;;  %v1967_v62 = vpop.permute.xlu0 %1966  ;;  %v2408_v15 = vrot.slane %v2406_v57, 4  ;;  %v2419_v25 = vrot.slane %v2417_v1, 4  ;;  %v2825_v57 = vld [vmem:[#allocation2 + $0x4c] sm:$0xf] }
 0x15e   : > { %3031 = vrot.lane.b32.xlu1 %v2932_v7, %s5482_s15  ;;  %2043 = vst.msk [vmem:[#allocation3 + $0x50] sm:$0xf] %vm2022_vm2, %v1967_v62  ;;  %v4020_v7 = vrot.slane %v3911_v54, 5  ;;  %v4014_v62 = vsel %vm6009_vm14, %v5140_v61, %v4013_v45  ;;  %v2935_v45 = vrot.slane %v2822_v40, 5  ;;  %v2823_v54 = vld [vmem:[#allocation2 + $0x44] sm:$0x1] }
 0x15f   : > { %3219 = vrot.lane.b32.xlu0 %v3151_v19, %s5483_s16  ;;  %v5141_v19 = vrot.slane %v3910_v0, 9  ;;  %v2409_v29 = vor.u32 %v2408_v15, %v2404_v3  ;;  %v2938_v0 = vrot.slane %v2823_v54, 5  ;;  %v3355_v15 = vld [vmem:[#allocation2 + $0x54] sm:$0xf]  ;;  %v3156_v40 = vld [vmem:[#allocation2 + $0x4c] sm:$0xf] }
 0x160   : > { %v1969_v8 = vpop.permute.xlu1 %1968  ;;  %v4022_v20 = vrot.slane %v4020_v7, 4  ;;  %v2937_v63 = vrot.slane %v2935_v45, 4 }
 0x161   : > { %2044 = vst.msk [vmem:[#allocation3 + $0x54] sm:$0xf] %vm2022_vm2, %v1969_v8  ;;  %v1971_v31 = vpop.permute.xlu0 %1970  ;;  %v4023_v8 = vrot.slane %v3912_v13, 5  ;;  %v4021_v49 = vsel %vm6009_vm14, %v5141_v19, %v4020_v7  ;;  %v5127_v7 = vrot.slane %v2824_v9, 9  ;;  %v3485_v13 = vshrl.u32 %v3352_v55, 16 }
 0x162   : > { %3221 = vrot.lane.b32.xlu1 %v3152_v51, %s5483_s16  ;;  %2045 = vst.msk [vmem:[#allocation3 + $0x58] sm:$0xf] %vm2022_vm2, %v1971_v31  ;;  %v2422_v51 = vrot.slane %v2420_v39, 5  ;;  %v2432_v31 = vrot.slane %v2430_v18, 4  ;;  %v2942_v39 = vrot.slane %v2825_v57, 5  ;;  %v2939_v18 = vsel %vm6009_vm14, %v2937_v63, %v2938_v0 }
 0x163   : > { %3223 = vrot.lane.b32.xlu0 %v3153_v11, %s5483_s16  ;;  %v2412_v11 = vshll.u32 %v2262_v22, 16  ;;  %v4024_v36 = vsel %vm6009_vm14, %v4022_v20, %v4023_v8  ;;  %v3494_v22 = vshll.u32 %v3353_v6, 16  ;;  %v3487_v20 = vrot.slane %v3485_v13, 4  ;;  %v3158_v57 = vld [vmem:[#allocation2 + $0x58] sm:$0xf] }
 0x164   : > { %v1973_v21 = vpop.permute.xlu1 %1972  ;;  %v2423_v34 = vor.u32 %v2422_v51, %v2419_v25  ;;  %v2433_v33 = vor.u32 %v2432_v31, %v2428_v30  ;;  %v3509_v51 = vshrl.u32 %v3355_v15, 16  ;;  %v2267_v9 = vld [vmem:[#allocation2 + $0x58] sm:$0xf]  ;;  %v2269_v13 = vld [vmem:[#allocation2 + $0x60] sm:$0xf] }
 0x165   : > { %2046 = vst.msk [vmem:[#allocation3 + $0x5c] sm:$0xf] %vm2022_vm2, %v1973_v21  ;;  %v1975_v28 = vpop.permute.xlu0 %1974  ;;  %v2410_v21 = vrot.slane %v2409_v29, 4  ;;  %v2414_v37 = vrot.slane %v2412_v11, 5 }
 0x166   : > { %3225 = vrot.lane.b32.xlu1 %v3154_v24, %s5483_s16  ;;  %2047 = vst.msk [vmem:[#allocation3 + $0x60] sm:$0xf] %vm2022_vm2, %v1975_v28  ;;  %v2400_v24 = vrot.slane %v2399_v23, 4  ;;  %v2424_v28 = vrot.slane %v2423_v34, 4  ;;  %v3356_v23 = vld [vmem:[#allocation2 + $0x58] sm:$0xf] }
 0x167   : > { %3780 = vrot.lane.b32.xlu0 %v3449_v38, %s5485_s7  ;;  %v2436_v38 = vshll.u32 %v2265_v60, 16  ;;  %v2415_v46 = vsel %vm5593_vm9, %v2410_v21, %v2414_v37  ;;  %v3518_v11 = vshll.u32 %v3356_v23, 16  ;;  %v3511_v34 = vrot.slane %v3509_v51, 4 }
 0x168   : > { %v1977_v58 = vpop.permute.xlu1 %1976  ;;  %v2405_v42 = vsel %vm5593_vm9, %v2400_v24, %v2404_v3  ;;  %v3488_v3 = vshll.u32 %v3352_v55, 16  ;;  %v3354_v24 = vld [vmem:[#allocation2 + $0x50] sm:$0x1] }
 0x169   : > { %2048 = vst.msk [vmem:[#allocation3 + $0x64] sm:$0xf] %vm2022_vm2, %v1977_v58  ;;  %v1979_v50 = vpop.permute.xlu0 %1978  ;;  %v2438_v53 = vrot.slane %v2436_v38, 5  ;;  %v2429_v58 = vsel %vm5593_vm9, %v2424_v28, %v2428_v30  ;;  %v3522_v30 = vshrl.u32 %v3356_v23, 16  ;;  %v3357_v28 = vld [vmem:[#allocation2 + $0x5c] sm:$0x1] }
 0x16a   : > { %3782 = vrot.lane.b32.xlu1 %v3459_v48, %s5485_s7  ;;  %2049 = vst.msk [vmem:[#allocation3 + $0x68] sm:$0xf] %vm2022_vm2, %v1979_v50  ;;  %v2434_v48 = vrot.slane %v2433_v33, 4  ;;  %v3490_v8 = vrot.slane %v3488_v3, 5  ;;  %v6429_v33 = vrot.slane %v3518_v11, 5  ;;  %v3528_v54 = vshll.u32 %v3357_v28, 16 }
 0x16b   : > { %3784 = vrot.lane.b32.xlu0 %v3473_v59, %s5485_s7  ;;  %v5126_v59 = vrot.slane %v2821_v44, 9  ;;  %v3524_v38 = vrot.slane %v3522_v30, 4  ;;  %v2270_v23 = vld [vmem:[#allocation2 + $0x64] sm:$0xf]  ;;  %v3916_v30 = vld [vmem:[#allocation2 + $0x54] sm:$0xe] }
 0x16c   : > { %v1981_v14 = vpop.permute.xlu1 %1980  ;;  %v2439_v1 = vsel %vm5593_vm9, %v2434_v48, %v2438_v53  ;;  %v3491_v21 = vor.u32 %v3490_v8, %v3487_v20 }
 0x16d   : > { %2050 = vst.msk [vmem:[#allocation3 + $0x6c] sm:$0xf] %vm2022_vm2, %v1981_v14  ;;  %v1983_v27 = vpop.permute.xlu0 %1982  ;;  %v2936_v4 = vsel %vm6009_vm14, %v5126_v59, %v2935_v45  ;;  %v2944_v14 = vrot.slane %v2942_v39, 4  ;;  %v3157_v45 = vld [vmem:[#allocation2 + $0x54] sm:$0xf]  ;;  %v3525_v53 = vor.u32 %v3524_v38, %v6429_v33 }
 0x16e   : > { %3786 = vrot.lane.b32.xlu1 %v3483_v5, %s5485_s7  ;;  %2051 = vst.msk [vmem:[#allocation3 + $0x70] sm:$0xf] %vm2022_vm2, %v1983_v27  ;;  %v2826_v5 = vld [vmem:[#allocation2 + $0x50] sm:$0x1]  ;;  %v3512_v27 = vshll.u32 %v3355_v15, 16 }
 0x16f   : > { %4117 = vrot.lane.b32.xlu0 %v4014_v62, %s5486_s20  ;;  %v2945_v19 = vrot.slane %v2826_v5, 5  ;;  %v3498_v62 = vshrl.u32 %v3353_v6, 16  ;;  %v3526_v6 = vrot.slane %v3525_v53, 4  ;;  %v3915_v15 = vld [vmem:[#allocation2 + $0x50] sm:$0x1] }
 0x170   : > { %v1985_v32 = vpop.permute.xlu1 %1984  ;;  %v4030_v11 = vrot.slane %v3915_v15, 5 }
 0x171   : > { %2052 = vst.msk [vmem:[#allocation3 + $0x74] sm:$0xf] %vm2022_vm2, %v1985_v32  ;;  %v1987_v35 = vpop.permute.xlu0 %1986  ;;  %v2946_v31 = vsel %vm6009_vm14, %v2944_v14, %v2945_v19  ;;  %v3496_v32 = vrot.slane %v3494_v22, 5  ;;  %v3500_v60 = vrot.slane %v3498_v62, 4  ;;  %v2454_v14 = vshrl.u32 %v2267_v9, 16 }
 0x172   : > { %4119 = vrot.lane.b32.xlu1 %v4017_v26, %s5486_s20  ;;  %2053 = vst.msk [vmem:[#allocation3 + $0x78] sm:$0xf] %vm2022_vm2, %v1987_v35  ;;  %v2943_v26 = vsel %vm6009_vm14, %v5127_v7, %v2942_v39  ;;  %v3514_v35 = vrot.slane %v3512_v27, 5  ;;  %v2465_v27 = vshrl.u32 %v2269_v13, 16 }
 0x173   : > { %4121 = vrot.lane.b32.xlu0 %v4021_v49, %s5486_s20 }
 0x174   : > { %v1989_v41 = vpop.permute.xlu1 %1988  ;;  %v3515_v44 = vor.u32 %v3514_v35, %v3511_v34  ;;  %v2478_v34 = vshrl.u32 %v2270_v23, 16  ;;  %v2467_v38 = vrot.slane %v2465_v27, 4 }
 0x175   : > { %2054 = vst.msk [vmem:[#allocation3 + $0x7c] sm:$0xf] %vm2022_vm2, %v1989_v41  ;;  %v2120_v43 = vpop.permute.xlu0 %2119  ;;  %v3501_v41 = vor.u32 %v3500_v60, %v3496_v32  ;;  %vm4411_vm2 = vcmask 293888  }
 0x176   : > { %4123 = vrot.lane.b32.xlu1 %v4024_v36, %s5486_s20  ;;  %2216 = vst.msk [vmem:[#allocation3] sm:$0xf] %vm2215_vm4, %v2120_v43  ;;  %v3155_v36 = vld [vmem:[#allocation2 + $0x48] sm:$0xf]  ;;  %v3516_v0 = vrot.slane %v3515_v44, 4 }
 0x177   : > { %2696 = vrot.lane.b32.xlu0 %v2405_v42, %s5481_s14  ;;  %v3504_v42 = vshll.u32 %v3354_v24, 16  ;;  %v2474_v24 = vshll.u32 %v2270_v23, 16 }
 0x178   : > { %v2122_v56 = vpop.permute.xlu1 %2121  ;;  %v3521_v22 = vsel %vm5593_vm9, %v3516_v0, %v6429_v33 }
 0x179   : > { %2217 = vst.msk [vmem:[#allocation3 + $0x4] sm:$0xf] %vm2215_vm4, %v2122_v56  ;;  %v2124_v61 = vpop.permute.xlu0 %2123  ;;  %v2266_v56 = vld [vmem:[#allocation2 + $0x54] sm:$0xf]  ;;  %v3506_v59 = vrot.slane %v3504_v42, 5 }
 0x17a   : > { %2698 = vrot.lane.b32.xlu1 %v2415_v46, %s5481_s14  ;;  %2218 = vst.msk [vmem:[#allocation3 + $0x8] sm:$0xf] %vm2215_vm4, %v2124_v61  ;;  %v3492_v46 = vrot.slane %v3491_v21, 4  ;;  %v3914_v61 = vld [vmem:[#allocation2 + $0x4c] sm:$0xf]  ;;  %v2441_v39 = vshrl.u32 %v2266_v56, 16 }
 0x17b   : > { %2700 = vrot.lane.b32.xlu0 %v2429_v58, %s5481_s14  ;;  %v3502_v58 = vrot.slane %v3501_v41, 4  ;;  %v4027_v7 = vrot.slane %v3914_v61, 5  ;;  %v2268_v21 = vld [vmem:[#allocation2 + $0x5c] sm:$0x1] }
 0x17c   : > { %v2126_v50 = vpop.permute.xlu1 %2125  ;;  %v3497_v55 = vsel %vm5593_vm9, %v3492_v46, %v3496_v32  ;;  %v3918_v32 = vld [vmem:[#allocation2 + $0x5c] sm:$0x1]  ;;  %v2476_v46 = vrot.slane %v2474_v24, 5 }
 0x17d   : > { %2219 = vst.msk [vmem:[#allocation3 + $0xc] sm:$0xf] %vm2215_vm4, %v2126_v50  ;;  %v2128_v16 = vpop.permute.xlu0 %2127  ;;  %v2444_v50 = vshll.u32 %v2266_v56, 16  ;;  %v3507_v3 = vsel %vm5593_vm9, %v3502_v58, %v3506_v59 }
 0x17e   : > { %2702 = vrot.lane.b32.xlu1 %v2439_v1, %s5481_s14  ;;  %2220 = vst.msk [vmem:[#allocation3 + $0x10] sm:$0xf] %vm2215_vm4, %v2128_v16  ;;  %v3913_v1 = vld [vmem:[#allocation2 + $0x48] sm:$0xe]  ;;  %v3917_v16 = vld [vmem:[#allocation2 + $0x58] sm:$0xf] }
 0x17f   : > { %3033 = vrot.lane.b32.xlu0 %v2936_v4, %s5482_s15  ;;  %v3530_v4 = vrot.slane %v3528_v54, 5  ;;  %v5142_v62 = vrot.slane %v3913_v1, 9  ;;  %v2446_v51 = vrot.slane %v2444_v50, 5  ;;  %v2271_v54 = vld [vmem:[#allocation2 + $0x68] sm:$0x1] }
 0x180   : > { %v2130_v25 = vpop.permute.xlu1 %2129 }
 0x181   : > { %2221 = vst.msk [vmem:[#allocation3 + $0x14] sm:$0xf] %vm2215_vm4, %v2130_v25  ;;  %v2132_v29 = vpop.permute.xlu0 %2131  ;;  %v2443_v25 = vrot.slane %v2441_v39, 4  ;;  %v3531_v8 = vsel %vm5593_vm9, %v3526_v6, %v3530_v4  ;;  %v2828_v39 = vld [vmem:[#allocation2 + $0x58] sm:$0xf] }
 0x182   : > { %3035 = vrot.lane.b32.xlu1 %v2939_v18, %s5482_s15  ;;  %2222 = vst.msk [vmem:[#allocation3 + $0x18] sm:$0xf] %vm2215_vm4, %v2132_v29  ;;  %v2450_v18 = vshll.u32 %v2267_v9, 16  ;;  %v4029_v29 = vrot.slane %v4027_v7, 4  ;;  %v2827_v4 = vld [vmem:[#allocation2 + $0x54] sm:$0xe] }
 0x183   : > { %3037 = vrot.lane.b32.xlu0 %v2943_v26, %s5482_s15  ;;  %v2468_v26 = vshll.u32 %v2269_v13, 16  ;;  %v2447_v33 = vor.u32 %v2446_v51, %v2443_v25  ;;  %v2949_v15 = vrot.slane %v2828_v39, 5  ;;  %v3358_v51 = vld [vmem:[#allocation2 + $0x60] sm:$0xf] }
 0x184   : > { %v2134_v49 = vpop.permute.xlu1 %2133  ;;  %v2452_v60 = vrot.slane %v2450_v18, 5  ;;  %v4031_v42 = vsel %vm6009_vm14, %v4029_v29, %v4030_v11 }
 0x185   : > { %2223 = vst.msk [vmem:[#allocation3 + $0x1c] sm:$0xf] %vm2215_vm4, %v2134_v49  ;;  %v2136_v37 = vpop.permute.xlu0 %2135  ;;  %v2456_v49 = vrot.slane %v2454_v14, 4  ;;  %v2829_v14 = vld [vmem:[#allocation2 + $0x5c] sm:$0x1] }
 0x186   : > { %3039 = vrot.lane.b32.xlu1 %v2946_v31, %s5482_s15  ;;  %2224 = vst.msk [vmem:[#allocation3 + $0x20] sm:$0xf] %vm2215_vm4, %v2136_v37  ;;  %v4034_v31 = vrot.slane %v3917_v16, 5  ;;  %v5143_v37 = vrot.slane %v3916_v30, 9  ;;  %v2831_v16 = vld [vmem:[#allocation2 + $0x64] sm:$0xf] }
 0x187   : > { %3227 = vrot.lane.b32.xlu0 %v3155_v36, %s5483_s16  ;;  %v4028_v36 = vsel %vm6009_vm14, %v5142_v62, %v4027_v7  ;;  %v2457_v44 = vor.u32 %v2456_v49, %v2452_v60  ;;  %v2830_v62 = vld [vmem:[#allocation2 + $0x60] sm:$0xe]  ;;  %v2956_v25 = vrot.slane %v2831_v16, 5  ;;  %v3359_v30 = vld [vmem:[#allocation2 + $0x64] sm:$0xf] }
 0x188   : > { %v2138_v43 = vpop.permute.xlu1 %2137  ;;  %v4036_v28 = vrot.slane %v4034_v31, 4  ;;  %v4035_v56 = vsel %vm6009_vm14, %v5143_v37, %v4034_v31  ;;  %v5129_v11 = vrot.slane %v2830_v62, 9  ;;  %v3546_v37 = vshrl.u32 %v3359_v30, 16 }
 0x189   : > { %2225 = vst.msk [vmem:[#allocation3 + $0x24] sm:$0xf] %vm2215_vm4, %v2138_v43  ;;  %v2140_v48 = vpop.permute.xlu0 %2139  ;;  %v4037_v43 = vrot.slane %v3918_v32, 5  ;;  %v3533_v32 = vshrl.u32 %v3358_v51, 16  ;;  %v2958_v24 = vrot.slane %v2956_v25, 4 }
 0x18a   : > { %3229 = vrot.lane.b32.xlu1 %v3156_v40, %s5483_s16  ;;  %2226 = vst.msk [vmem:[#allocation3 + $0x28] sm:$0xf] %vm2215_vm4, %v2140_v48  ;;  %v2470_v40 = vrot.slane %v2468_v26, 5  ;;  %v2480_v48 = vrot.slane %v2478_v34, 4  ;;  %v2951_v26 = vrot.slane %v2949_v15, 4 }
 0x18b   : > { %3231 = vrot.lane.b32.xlu0 %v3157_v45, %s5483_s16  ;;  %v2460_v45 = vshll.u32 %v2268_v21, 16  ;;  %v4038_v61 = vsel %vm6009_vm14, %v4036_v28, %v4037_v43  ;;  %v3542_v21 = vshll.u32 %v3359_v30, 16  ;;  %v3921_v30 = vld [vmem:[#allocation2 + $0x68] sm:$0x1] }
 0x18c   : > { %v2142_v63 = vpop.permute.xlu1 %2141  ;;  %v2471_v58 = vor.u32 %v2470_v40, %v2467_v38  ;;  %v2481_v9 = vor.u32 %v2480_v48, %v2476_v46  ;;  %v2957_v38 = vsel %vm6009_vm14, %v5129_v11, %v2956_v25  ;;  %v3362_v40 = vld [vmem:[#allocation2 + $0x70] sm:$0xf]  ;;  %v3548_v48 = vrot.slane %v3546_v37, 4 }
 0x18d   : > { %2227 = vst.msk [vmem:[#allocation3 + $0x2c] sm:$0xf] %vm2215_vm4, %v2142_v63  ;;  %v2144_v5 = vpop.permute.xlu0 %2143  ;;  %v2458_v63 = vrot.slane %v2457_v44, 4  ;;  %v2462_v0 = vrot.slane %v2460_v45, 5  ;;  %v4044_v37 = vrot.slane %v3921_v30, 5 }
 0x18e   : > { %3233 = vrot.lane.b32.xlu1 %v3158_v57, %s5483_s16  ;;  %2228 = vst.msk [vmem:[#allocation3 + $0x30] sm:$0xf] %vm2215_vm4, %v2144_v5  ;;  %v2448_v57 = vrot.slane %v2447_v33, 4  ;;  %v2472_v5 = vrot.slane %v2471_v58, 4  ;;  %v2482_v13 = vrot.slane %v2481_v9, 4 }
 0x18f   : > { %3788 = vrot.lane.b32.xlu0 %v3497_v55, %s5485_s7  ;;  %v2484_v55 = vshll.u32 %v2271_v54, 16  ;;  %v2463_v7 = vsel %vm5593_vm9, %v2458_v63, %v2462_v0  ;;  %v3570_v54 = vshrl.u32 %v3362_v40, 16  ;;  %v3159_v58 = vld [vmem:[#allocation2 + $0x60] sm:$0xf]  ;;  %v3160_v9 = vld [vmem:[#allocation2 + $0x64] sm:$0xf] }
 0x190   : > { %v2146_v19 = vpop.permute.xlu1 %2145  ;;  %v2453_v50 = vsel %vm5593_vm9, %v2448_v57, %v2452_v60  ;;  %v3536_v60 = vshll.u32 %v3358_v51, 16  ;;  %v3360_v57 = vld [vmem:[#allocation2 + $0x68] sm:$0x1]  ;;  %v2272_v51 = vld [vmem:[#allocation2 + $0x6c] sm:$0xf] }
 0x191   : > { %2229 = vst.msk [vmem:[#allocation3 + $0x34] sm:$0xf] %vm2215_vm4, %v2146_v19  ;;  %v2148_v20 = vpop.permute.xlu0 %2147  ;;  %v2477_v19 = vsel %vm5593_vm9, %v2472_v5, %v2476_v46  ;;  %v3544_v46 = vrot.slane %v3542_v21, 5  ;;  %v2073_v30 = vld [vmem:[#allocation2 + $0x78] sm:$0xf] }
 0x192   : > { %3790 = vrot.lane.b32.xlu1 %v3507_v3, %s5485_s7  ;;  %2230 = vst.msk [vmem:[#allocation3 + $0x38] sm:$0xf] %vm2215_vm4, %v2148_v20  ;;  %v2486_v3 = vrot.slane %v2484_v55, 5  ;;  %v2952_v20 = vrot.slane %v2829_v14, 5 }
 0x193   : > { %3792 = vrot.lane.b32.xlu0 %v3521_v22, %s5485_s7  ;;  %v5128_v22 = vrot.slane %v2827_v4, 9  ;;  %v3549_v55 = vor.u32 %v3548_v48, %v3544_v46  ;;  %v3161_v4 = vld [vmem:[#allocation2 + $0x6c] sm:$0xf] }
 0x194   : > { %v2150_v35 = vpop.permute.xlu1 %2149  ;;  %v2487_v27 = vsel %vm5593_vm9, %v2482_v13, %v2486_v3 }
 0x195   : > { %2231 = vst.msk [vmem:[#allocation3 + $0x3c] sm:$0xf] %vm2215_vm4, %v2150_v35  ;;  %v2152_v41 = vpop.permute.xlu0 %2151  ;;  %v2950_v31 = vsel %vm6009_vm14, %v5128_v22, %v2949_v15  ;;  %v3361_v35 = vld [vmem:[#allocation2 + $0x6c] sm:$0xf]  ;;  %v3162_v15 = vld [vmem:[#allocation2 + $0x70] sm:$0xf] }
 0x196   : > { %3794 = vrot.lane.b32.xlu1 %v3531_v8, %s5485_s7  ;;  %2232 = vst.msk [vmem:[#allocation3 + $0x40] sm:$0xf] %vm2215_vm4, %v2152_v41  ;;  %v2832_v8 = vld [vmem:[#allocation2 + $0x68] sm:$0x1]  ;;  %v3535_v41 = vrot.slane %v3533_v32, 4  ;;  %v3557_v28 = vshrl.u32 %v3361_v35, 16 }
 0x197   : > { %4125 = vrot.lane.b32.xlu0 %v4028_v36, %s5486_s20  ;;  %v2959_v34 = vrot.slane %v2832_v8, 5  ;;  %v2953_v36 = vsel %vm6009_vm14, %v2951_v26, %v2952_v20  ;;  %v3560_v43 = vshll.u32 %v3361_v35, 16  ;;  %v3550_v16 = vrot.slane %v3549_v55, 4  ;;  %v3920_v22 = vld [vmem:[#allocation2 + $0x64] sm:$0xf] }
 0x198   : > { %v2154_v53 = vpop.permute.xlu1 %2153  ;;  %v3919_v26 = vld [vmem:[#allocation2 + $0x60] sm:$0xe]  ;;  %v4041_v20 = vrot.slane %v3920_v22, 5  ;;  %v3923_v32 = vld [vmem:[#allocation2 + $0x70] sm:$0xf] }
 0x199   : > { %2233 = vst.msk [vmem:[#allocation3 + $0x44] sm:$0xf] %vm2215_vm4, %v2154_v53  ;;  %v2681_v59 = vpop.permute.xlu0 %2680  ;;  %v2960_v45 = vsel %vm6009_vm14, %v2958_v24, %v2959_v34  ;;  %v3566_v53 = vshll.u32 %v3362_v40, 16  ;;  %v3562_v63 = vrot.slane %v3560_v43, 5  ;;  %v2492_v24 = vshll.u32 %v2272_v51, 16 }
 0x19a   : > { %4127 = vrot.lane.b32.xlu1 %v4031_v42, %s5486_s20  ;;  %2777 = vst.msk [vmem:[#allocation3] sm:$0xf] %vm2776_vm6, %v2681_v59  ;;  %v3538_v42 = vrot.slane %v3536_v60, 5  ;;  %v2273_v60 = vld [vmem:[#allocation2 + $0x70] sm:$0xf]  ;;  %v5144_v35 = vrot.slane %v3919_v26, 9 }
 0x19b   : > { %4129 = vrot.lane.b32.xlu0 %v4035_v56, %s5486_s20  ;;  %v3568_v39 = vrot.slane %v3566_v53, 5  ;;  %v4043_v21 = vrot.slane %v4041_v20, 4  ;;  %v2276_v43 = vld [vmem:[#allocation2 + $0x7c] sm:$0xf]  ;;  %v2494_v48 = vrot.slane %v2492_v24, 5 }
 0x19c   : > { %v2683_v1 = vpop.permute.xlu1 %2682  ;;  %v3539_v59 = vor.u32 %v3538_v42, %v3535_v41  ;;  %v4048_v41 = vrot.slane %v3923_v32, 5  ;;  %v2498_v42 = vshll.u32 %v2273_v60, 16  ;;  %v4042_v53 = vsel %vm6009_vm14, %v5144_v35, %v4041_v20 }
 0x19d   : > { %2778 = vst.msk [vmem:[#allocation3 + $0x4] sm:$0xf] %vm2776_vm6, %v2683_v1  ;;  %v2685_v6 = vpop.permute.xlu0 %2684  ;;  %v3552_v1 = vshll.u32 %v3360_v57, 16 }
 0x19e   : > { %4131 = vrot.lane.b32.xlu1 %v4038_v61, %s5486_s20  ;;  %2779 = vst.msk [vmem:[#allocation3 + $0x8] sm:$0xf] %vm2776_vm6, %v2685_v6  ;;  %v3559_v61 = vrot.slane %v3557_v28, 4  ;;  %v3363_v6 = vld [vmem:[#allocation2 + $0x74] sm:$0x1]  ;;  %v2502_v28 = vshrl.u32 %v2273_v60, 16 }
 0x19f   : > { %2704 = vrot.lane.b32.xlu0 %v2453_v50, %s5481_s14  ;;  %v3572_v50 = vrot.slane %v3570_v54, 4 }
 0x1a0   : > { %v2687_v18 = vpop.permute.xlu1 %2686  ;;  %v3563_v13 = vor.u32 %v3562_v63, %v3559_v61  ;;  %v2274_v61 = vld [vmem:[#allocation2 + $0x74] sm:$0x1]  ;;  %v2522_v63 = vshll.u32 %v2276_v43, 16 }
 0x1a1   : > { %2780 = vst.msk [vmem:[#allocation3 + $0xc] sm:$0xf] %vm2776_vm6, %v2687_v18  ;;  %v3018_v23 = vpop.permute.xlu0 %3017  ;;  %v3554_v18 = vrot.slane %v3552_v1, 5  ;;  %v3573_v14 = vor.u32 %v3572_v50, %v3568_v39  ;;  %v6534_v1 = vrot.slane %v2498_v42, 5  ;;  %v5365_v50 = vld [vmem:[%s5554_s26 + $0x78] sm:$0xff]  }
 0x1a2   : > { %2706 = vrot.lane.b32.xlu1 %v2463_v7, %s5481_s14  ;;  %3114 = vst.msk [vmem:[#allocation3] sm:$0xf] %vm3113_vm8, %v3018_v23  ;;  %v3540_v7 = vrot.slane %v3539_v59, 4  ;;  %v3564_v25 = vrot.slane %v3563_v13, 4  ;;  %v4045_v59 = vsel %vm6009_vm14, %v4043_v21, %v4044_v37  ;;  %v2834_v37 = vld [vmem:[#allocation2 + $0x70] sm:$0xf] }
 0x1a3   : > { %2708 = vrot.lane.b32.xlu0 %v2477_v19, %s5481_s14  ;;  %v3576_v19 = vshll.u32 %v3363_v6, 16  ;;  %v3555_v8 = vsel %vm5593_vm9, %v3550_v16, %v3554_v18 }
 0x1a4   : > { %v3020_v29 = vpop.permute.xlu1 %3019  ;;  %v3545_v23 = vsel %vm5593_vm9, %v3540_v7, %v3544_v46  ;;  %v3569_v34 = vsel %vm5593_vm9, %v3564_v25, %v3568_v39  ;;  %v2504_v39 = vrot.slane %v2502_v28, 4  ;;  %v5350_v7 = vunpack.c.h.bf16 %v5365_v50 }
 0x1a5   : > { %3115 = vst.msk [vmem:[#allocation3 + $0x4] sm:$0xf] %vm3113_vm8, %v3020_v29  ;;  %v3022_v49 = vpop.permute.xlu0 %3021  ;;  %v3574_v29 = vrot.slane %v3573_v14, 4  ;;  %v3578_v11 = vrot.slane %v3576_v19, 5  ;;  %v6542_v14 = vrot.slane %v2522_v63, 5 }
 0x1a6   : > { %2710 = vrot.lane.b32.xlu1 %v2487_v27, %s5481_s14  ;;  %3116 = vst.msk [vmem:[#allocation3 + $0x8] sm:$0xf] %vm3113_vm8, %v3022_v49  ;;  %v2489_v49 = vshrl.u32 %v2272_v51, 16  ;;  %v2277_v19 = vld [vmem:[#allocation2 + $0x80] sm:$0x1] }
 0x1a7   : > { %3041 = vrot.lane.b32.xlu0 %v2950_v31, %s5482_s15  ;;  %v3579_v40 = vsel %vm5593_vm9, %v3574_v29, %v3578_v11  ;;  %v5468_v29 = vld [vmem:[%s7111_s2] ss:$0 sm:$0xff]  ;;  %v2532_v60 = vshll.u32 %v2277_v19, 16 }
 0x1a8   : > { %v3024_v33 = vpop.permute.xlu1 %3023  ;;  %v2491_v46 = vrot.slane %v2489_v49, 4 }
 0x1a9   : > { %3117 = vst.msk [vmem:[#allocation3 + $0xc] sm:$0xf] %vm3113_vm8, %v3024_v33  ;;  %v3212_v44 = vpop.permute.xlu0 %3211  ;;  %v3922_v33 = vld [vmem:[#allocation2 + $0x6c] sm:$0xe] }
 0x1aa   : > { %3043 = vrot.lane.b32.xlu1 %v2953_v36, %s5482_s15  ;;  %3308 = vst.msk [vmem:[#allocation3] sm:$0xf] %vm3307_vm12, %v3212_v44  ;;  %v5145_v54 = vrot.slane %v3922_v33, 9  ;;  %v2495_v6 = vor.u32 %v2494_v48, %v2491_v46 }
 0x1ab   : > { %3045 = vrot.lane.b32.xlu0 %v2957_v38, %s5482_s15  ;;  %v2275_v38 = vld [vmem:[#allocation2 + $0x78] sm:$0xf] }
 0x1ac   : > { %v3214_v56 = vpop.permute.xlu1 %3213  ;;  %v2516_v57 = vshll.u32 %v2275_v38, 16  ;;  %v4049_v13 = vsel %vm6009_vm14, %v5145_v54, %v4048_v41  ;;  %v2833_v54 = vld [vmem:[#allocation2 + $0x6c] sm:$0xe] }
 0x1ad   : > { %3309 = vst.msk [vmem:[#allocation3 + $0x4] sm:$0xf] %vm3307_vm12, %v3214_v56  ;;  %v3216_v0 = vpop.permute.xlu0 %3215  ;;  %v2513_v56 = vshrl.u32 %v2275_v38, 16 }
 0x1ae   : > { %3047 = vrot.lane.b32.xlu1 %v2960_v45, %s5482_s15  ;;  %3310 = vst.msk [vmem:[#allocation3 + $0x8] sm:$0xf] %vm3307_vm12, %v3216_v0  ;;  %v3924_v45 = vld [vmem:[#allocation2 + $0x74] sm:$0x1]  ;;  %v2526_v0 = vshrl.u32 %v2276_v43, 16  ;;  %v2518_v16 = vrot.slane %v2516_v57, 5 }
 0x1af   : > { %3235 = vrot.lane.b32.xlu0 %v3159_v58, %s5483_s16  ;;  %v4051_v55 = vrot.slane %v3924_v45, 5  ;;  %v2835_v57 = vld [vmem:[#allocation2 + $0x74] sm:$0x1] }
 0x1b0   : > { %v3218_v5 = vpop.permute.xlu1 %3217  ;;  %v2528_v22 = vrot.slane %v2526_v0, 4  ;;  %v568_v0 = vld [vmem:[#allocation2 + $0xc8] sm:$0x1] }
 0x1b1   : > { %3311 = vst.msk [vmem:[#allocation3 + $0xc] sm:$0xf] %vm3307_vm12, %v3218_v5  ;;  %v3773_v3 = vpop.permute.xlu0 %3772 }
 0x1b2   : > { %3237 = vrot.lane.b32.xlu1 %v3160_v9, %s5483_s16  ;;  %3869 = vst.msk [vmem:[#allocation3] sm:$0xf] %vm3868_vm13, %v3773_v3  ;;  %v4050_v9 = vrot.slane %v4048_v41, 4  ;;  %v2508_v3 = vshll.u32 %v2274_v61, 16  ;;  %v2529_v35 = vor.u32 %v2528_v22, %v6542_v14  ;;  %v3365_v22 = vld [vmem:[#allocation2 + $0x7c] sm:$0xf] }
 0x1b3   : > { %3239 = vrot.lane.b32.xlu0 %v3161_v4, %s5483_s16  ;;  %v5349_v4 = vunpack.c.l.bf16 %v5365_v50  ;;  %v5130_v50 = vrot.slane %v2833_v54, 9  ;;  %v3163_v54 = vld [vmem:[#allocation2 + $0x78] sm:$0xf] }
 0x1b4   : > { %v3775_v62 = vpop.permute.xlu1 %3774  ;;  %v4052_v51 = vsel %vm6009_vm14, %v4050_v9, %v4051_v55 }
 0x1b5   : > { %3870 = vst.msk [vmem:[#allocation3 + $0x4] sm:$0xf] %vm3868_vm13, %v3775_v62  ;;  %v3777_v27 = vpop.permute.xlu0 %3776  ;;  %v5467_v62 = vld [vmem:[%s7110_s1] ss:$0 sm:$0xff] }
 0x1b6   : > { %3241 = vrot.lane.b32.xlu1 %v3162_v15, %s5483_s16  ;;  %3871 = vst.msk [vmem:[#allocation3 + $0x8] sm:$0xf] %vm3868_vm13, %v3777_v27  ;;  %v2515_v15 = vrot.slane %v2513_v56, 4  ;;  %v373_v25 = vmul.f32 %v5467_v62, %v5350_v7  ;;  %v2505_v27 = vor.u32 %v2504_v39, %v6534_v1  ;;  %v2963_v56 = vrot.slane %v2834_v37, 5 }
 0x1b7   : > { %3796 = vrot.lane.b32.xlu0 %v3545_v23, %s5485_s7  ;;  %v372_v23 = vmul.f32 %v5467_v62, %v5349_v4 }
 0x1b8   : > { %v3779_v31 = vpop.permute.xlu1 %3778  ;;  %v2519_v32 = vor.u32 %v2518_v16, %v2515_v15  ;;  %v411_v49 = vadd.f32 %v5468_v29, %v373_v25  ;;  %v2506_v21 = vrot.slane %v2505_v27, 4  ;;  %v3364_v16 = vld [vmem:[#allocation2 + $0x78] sm:$0xf]  ;;  %v2964_v10 = vsel %vm6009_vm14, %v5130_v50, %v2963_v56 }
 0x1b9   : > { %3872 = vst.msk [vmem:[#allocation3 + $0xc] sm:$0xf] %vm3868_vm13, %v3779_v31  ;;  %v4110_v36 = vpop.permute.xlu0 %4109  ;;  %v410_v11 = vadd.f32 %v5468_v29, %v372_v23  ;;  %v2074_v31 = vld [vmem:[#allocation2 + $0x7c] sm:$0xf] }
 0x1ba   : > { %3798 = vrot.lane.b32.xlu1 %v3555_v8, %s5485_s7  ;;  %4206 = vst.msk [vmem:[#allocation3] sm:$0xf] %vm4205_vm15, %v4110_v36  ;;  %v2496_v8 = vrot.slane %v2495_v6, 4  ;;  %v514_v36 = vld [vmem:[#allocation2 + $0xc0] sm:$0x1]  ;;  %v2520_v43 = vrot.slane %v2519_v32, 4 }
 0x1bb   : > { %3800 = vrot.lane.b32.xlu0 %v3569_v34, %s5485_s7  ;;  %v2510_v34 = vrot.slane %v2508_v3, 5  ;;  %v442_v33 = vmax.f32 %v410_v11, 0.0  ;;  %v515_v38 = vsel %vm5538_vm5, 0, %v514_v36  ;;  %v2966_v3 = vrot.slane %v2835_v57, 5 }
 0x1bc   : > { %v4112_v44 = vpop.permute.xlu1 %4111  ;;  %v2501_v28 = vsel %vm5593_vm9, %v2496_v8, %v6534_v1  ;;  %516 = vst [vmem:[#allocation2 + $0xc0] sm:$0x1] %v515_v38  ;;  %v2525_v39 = vsel %vm5593_vm9, %v2520_v43, %v6542_v14  ;;  %v2838_v14 = vld [vmem:[#allocation2 + $0x80] sm:$0x1]  ;;  %v3584_v8 = vshll.u32 %v3364_v16, 16  ;;  %v3590_v32 = vshll.u32 %v3365_v22, 16 }
 0x1bd   : > { %4207 = vst.msk [vmem:[#allocation3 + $0x4] sm:$0xf] %vm4205_vm15, %v4112_v44  ;;  %v4114_v58 = vpop.permute.xlu0 %4113  ;;  %v2534_v44 = vrot.slane %v2532_v60, 5  ;;  %v5253_v45 = vpack.c.bf16 %v442_v33, %v442_v33  ;;  %v3367_v60 = vld [vmem:[#allocation2 + $0x84] sm:$0xf] }
 0x1be   : > { %3802 = vrot.lane.b32.xlu1 %v3579_v40, %s5485_s7  ;;  %4208 = vst.msk [vmem:[#allocation3 + $0x8] sm:$0xf] %vm4205_vm15, %v4114_v58  ;;  %v443_v40 = vmax.f32 %v411_v49, 0.0  ;;  %v2511_v58 = vsel %vm5593_vm9, %v2506_v21, %v2510_v34  ;;  %v3594_v34 = vshrl.u32 %v3365_v22, 16  ;;  %v3368_v21 = vld [vmem:[#allocation2 + $0x88] sm:$0xf] }
 0x1bf   : > { %4133 = vrot.lane.b32.xlu0 %v4042_v53, %s5486_s20  ;;  %v2530_v53 = vrot.slane %v2529_v35, 4  ;;  %v909_v61 = vshrl.u32 %v5253_v45, 16  ;;  %v912_v55 = vshll.u32 %v5253_v45, 16  ;;  %v3586_v37 = vrot.slane %v3584_v8, 5 }
 0x1c0   : > { %v4116_v5 = vpop.permute.xlu1 %4115  ;;  %v5254_v46 = vpack.c.bf16 %v443_v40, %v443_v40  ;;  %v3605_v33 = vshrl.u32 %v3367_v60, 16  ;;  %v3608_v38 = vshll.u32 %v3367_v60, 16  ;;  %v3596_v43 = vrot.slane %v3594_v34, 4  ;;  %v3930_v34 = vld [vmem:[#allocation2 + $0x8c] sm:$0x1] }
 0x1c1   : > { %4209 = vst.msk [vmem:[#allocation3 + $0xc] sm:$0xf] %vm4205_vm15, %v4116_v5  ;;  %v2689_v18 = vpop.permute.xlu0 %2688  ;;  %v2836_v5 = vld [vmem:[#allocation2 + $0x78] sm:$0xe]  ;;  %v911_v6 = vrot.slane %v909_v61, 7  ;;  %v2535_v19 = vsel %vm5593_vm9, %v2530_v53, %v2534_v44  ;;  %v3614_v44 = vshll.u32 %v3368_v21, 16 }
 0x1c2   : > { %4135 = vrot.lane.b32.xlu1 %v4045_v59, %s5486_s20  ;;  %2781 = vst.msk [vmem:[#allocation3 + $0x10] sm:$0xf] %vm2776_vm6, %v2689_v18  ;;  %v2837_v59 = vld [vmem:[#allocation2 + $0x7c] sm:$0xf]  ;;  %v917_v63 = vshrl.u32 %v5254_v46, 16  ;;  %v920_v1 = vshll.u32 %v5254_v46, 16 }
 0x1c3   : > { %4137 = vrot.lane.b32.xlu0 %v4049_v13, %s5486_s20  ;;  %v2965_v13 = vrot.slane %v2963_v56, 4  ;;  %v2970_v15 = vrot.slane %v2837_v59, 5  ;;  %v569_v18 = vsel %vm5563_vm7, 0, %v568_v0  ;;  %v914_v62 = vor.u32 %v912_v55, %v911_v6  ;;  %v1080_v23 = vld [vmem:[#allocation2 + $0xc0] sm:$0xf] }
 0x1c4   : > { %v2691_v26 = vpop.permute.xlu1 %2690  ;;  %v5449_v20 = vld [vmem:[#allocation3] sm:$0xff]   ;;  %v919_v4 = vrot.slane %v917_v63, 7  ;;  %570 = vst [vmem:[#allocation2 + $0xc8] sm:$0x1] %v569_v18  ;;  %v915_v27 = vrot.slane %v911_v6, 4  ;;  %v3618_v45 = vshrl.u32 %v3368_v21, 16 }
 0x1c5   : > { %2782 = vst.msk [vmem:[#allocation3 + $0x14] sm:$0xf] %vm2776_vm6, %v2691_v26  ;;  %5391 = vmatprep.mubr.msk.bf16.mxu0 %vm4411_vm2, %v5449_v20  ;;  %v2693_v24 = vpop.permute.xlu0 %2692  ;;  %v3581_v20 = vshrl.u32 %v3364_v16, 16  ;;  %v1081_v29 = vsel %vm5615_vm11, %v914_v62, %v1080_v23  ;;  %v3366_v53 = vld [vmem:[#allocation2 + $0x80] sm:$0x1]  ;;  %v3607_v57 = vrot.slane %v3605_v33, 4 }
 0x1c6   : > { %4139 = vrot.lane.b32.xlu1 %v4052_v51, %s5486_s20  ;;  %2783 = vst.msk [vmem:[#allocation3 + $0x18] sm:$0xf] %vm2776_vm6, %v2693_v24  ;;  %v5131_v51 = vrot.slane %v2836_v5, 9  ;;  %v922_v26 = vor.u32 %v920_v1, %v919_v4  ;;  %1082 = vst [vmem:[#allocation2 + $0xc0] sm:$0xf] %v1081_v29  ;;  %v2967_v24 = vsel %vm6009_vm14, %v2965_v13, %v2966_v3  ;;  %v924_v35 = vrot.slane %v919_v4, 4 }
 0x1c7   : > { %2155 = vrot.lane.b32.xlu0 %v2073_v30, %s5480_s13  ;;  %v2972_v30 = vrot.slane %v2970_v15, 4  ;;  %v3583_v12 = vrot.slane %v3581_v20, 4  ;;  %v3164_v61 = vld [vmem:[#allocation2 + $0x7c] sm:$0xf]  ;;  %v3600_v2 = vshll.u32 %v3366_v53, 16  ;;  %v3616_v0 = vrot.slane %v3614_v44, 5 }
 0x1c8   : > { %v2695_v41 = vpop.permute.xlu1 %2694  ;;  %v5450_v42 = vld [vmem:[#allocation3 + $0x8] sm:$0xff]   ;;  %v923_v49 = vsel %vm5607_vm10, %v915_v27, %v922_v26  ;;  %v2971_v36 = vsel %vm6009_vm14, %v5131_v51, %v2970_v15  ;;  %v3369_v1 = vld [vmem:[#allocation2 + $0x8c] sm:$0x1]  ;;  %v3166_v4 = vld [vmem:[#allocation2 + $0x88] sm:$0xf] }
 0x1c9   : > { %2784 = vst.msk [vmem:[#allocation3 + $0x1c] sm:$0xf] %vm2776_vm6, %v2695_v41  ;;  %5392 = vmatmul.mubr.msk.bf16.vlgmr.msra.gmra.mxu0 %vm4411_vm2, %v5450_v42  ;;  %v3026_v48 = vpop.permute.xlu0 %3025  ;;  %v3592_v42 = vrot.slane %v3590_v32, 5  ;;  %v3587_v56 = vor.u32 %v3586_v37, %v3583_v12  ;;  %v3602_v13 = vrot.slane %v3600_v2, 5  ;;  %v3624_v15 = vshll.u32 %v3369_v1, 16 }
 0x1ca   : > { %2157 = vrot.lane.b32.xlu1 %v2074_v31, %s5480_s13  ;;  %3118 = vst.msk [vmem:[#allocation3 + $0x10] sm:$0xf] %vm3113_vm8, %v3026_v48  ;;  %v2973_v31 = vrot.slane %v2838_v14, 5  ;;  %v3926_v18 = vld [vmem:[#allocation2 + $0x7c] sm:$0xf] }
 0x1cb   : > { %2712 = vrot.lane.b32.xlu0 %v2501_v28, %s5481_s14  ;;  %1083 = vst.msk [vmem:[#allocation2 + $0xc4] sm:$0xf] %vm460_vm0, %v923_v49  ;;  %v1084_v28 = vld [vmem:[#allocation2 + $0xc8] sm:$0x1]  ;;  %v3597_v63 = vor.u32 %v3596_v43, %v3592_v42  ;;  %v3588_v50 = vrot.slane %v3587_v56, 4  ;;  %v3626_v51 = vrot.slane %v3624_v15, 5 }
 0x1cc   : > { %v3028_v9 = vpop.permute.xlu1 %3027  ;;  %v2974_v41 = vsel %vm6009_vm14, %v2972_v30, %v2973_v31  ;;  %v1085_v46 = vsel %vm5538_vm5, %v924_v35, %v1084_v28  ;;  %v3925_v62 = vld [vmem:[#allocation2 + $0x78] sm:$0xe]  ;;  %v4055_v27 = vrot.slane %v3926_v18, 5  ;;  %v3929_v26 = vld [vmem:[#allocation2 + $0x88] sm:$0xf]  ;;  %vm4625_vm5 = vcmask 31744  }
 0x1cd   : > { %3119 = vst.msk [vmem:[#allocation3 + $0x14] sm:$0xf] %vm3113_vm8, %v3028_v9  ;;  %v3030_v7 = vpop.permute.xlu0 %3029  ;;  %1086 = vst [vmem:[#allocation2 + $0xc8] sm:$0x1] %v1085_v46  ;;  %v3620_v9 = vrot.slane %v3618_v45, 4  ;;  %v5146_v29 = vrot.slane %v3925_v62, 9 }
 0x1ce   : > { %2714 = vrot.lane.b32.xlu1 %v2511_v58, %s5481_s14  ;;  %3120 = vst.msk [vmem:[#allocation3 + $0x18] sm:$0xf] %vm3113_vm8, %v3030_v7  ;;  %v3610_v58 = vrot.slane %v3608_v38, 5  ;;  %v3598_v7 = vrot.slane %v3597_v63, 4  ;;  %v3927_v20 = vld [vmem:[#allocation2 + $0x80] sm:$0x1] }
 0x1cf   : > { %2716 = vrot.lane.b32.xlu0 %v2525_v39, %s5481_s14  ;;  %v3165_v39 = vld [vmem:[#allocation2 + $0x84] sm:$0xf]  ;;  %v3621_v3 = vor.u32 %v3620_v9, %v3616_v0  ;;  %v4062_v31 = vrot.slane %v3929_v26, 5  ;;  %v4057_v49 = vrot.slane %v4055_v27, 4  ;;  %v4056_v21 = vsel %vm6009_vm14, %v5146_v29, %v4055_v27  ;;  %v2280_v1 = vld [vmem:[#allocation2 + $0x8c] sm:$0x1] }
 0x1d0   : > { %v3032_v25 = vpop.permute.xlu1 %3031  ;;  %v3611_v5 = vor.u32 %v3610_v58, %v3607_v57  ;;  %v3603_v23 = vsel %vm5593_vm9, %v3598_v7, %v3602_v13  ;;  %v2278_v32 = vld [vmem:[#allocation2 + $0x84] sm:$0xf]  ;;  %v2076_v7 = vld [vmem:[#allocation2 + $0x88] sm:$0xf] }
 0x1d1   : > { %3121 = vst.msk [vmem:[#allocation3 + $0x1c] sm:$0xf] %vm3113_vm8, %v3032_v25  ;;  %v3220_v11 = vpop.permute.xlu0 %3219  ;;  %v3622_v25 = vrot.slane %v3621_v3, 4  ;;  %v2537_v12 = vshrl.u32 %v2278_v32, 16  ;;  %v2540_v37 = vshll.u32 %v2278_v32, 16  ;;  %v4064_v38 = vrot.slane %v4062_v31, 4 }
 0x1d2   : > { %2718 = vrot.lane.b32.xlu1 %v2535_v19, %s5481_s14  ;;  %3312 = vst.msk [vmem:[#allocation3 + $0x10] sm:$0xf] %vm3307_vm12, %v3220_v11  ;;  %v3593_v19 = vsel %vm5593_vm9, %v3588_v50, %v3592_v42  ;;  %v3612_v14 = vrot.slane %v3611_v5, 4  ;;  %v3928_v11 = vld [vmem:[#allocation2 + $0x84] sm:$0xe]  ;;  %v2556_v3 = vshll.u32 %v2280_v1, 16 }
 0x1d3   : > { %3049 = vrot.lane.b32.xlu0 %v2964_v10, %s5482_s15  ;;  %v3627_v60 = vsel %vm5593_vm9, %v3622_v25, %v3626_v51  ;;  %v2539_v53 = vrot.slane %v2537_v12, 4  ;;  %v2078_v25 = vld [vmem:[#allocation2 + $0x94] sm:$0xf]  ;;  %v2842_v12 = vld [vmem:[#allocation2 + $0x90] sm:$0xe] }
 0x1d4   : > { %v3222_v17 = vpop.permute.xlu1 %3221  ;;  %v3617_v8 = vsel %vm5593_vm9, %v3612_v14, %v3616_v0  ;;  %v2077_v14 = vld [vmem:[#allocation2 + $0x90] sm:$0xf]  ;;  %v2558_v27 = vrot.slane %v2556_v3, 5 }
 0x1d5   : > { %3313 = vst.msk [vmem:[#allocation3 + $0x14] sm:$0xf] %vm3307_vm12, %v3222_v17  ;;  %v3224_v40 = vpop.permute.xlu0 %3223  ;;  %v5147_v17 = vrot.slane %v3928_v11, 9 }
 0x1d6   : > { %3051 = vrot.lane.b32.xlu1 %v2967_v24, %s5482_s15  ;;  %3314 = vst.msk [vmem:[#allocation3 + $0x18] sm:$0xf] %vm3307_vm12, %v3224_v40  ;;  %v4058_v24 = vrot.slane %v3927_v20, 5  ;;  %v4065_v40 = vrot.slane %v3930_v34, 5  ;;  %v2843_v34 = vld [vmem:[#allocation2 + $0x94] sm:$0xf] }
 0x1d7   : > { %3053 = vrot.lane.b32.xlu0 %v2971_v36, %s5482_s15  ;;  %v2279_v36 = vld [vmem:[#allocation2 + $0x88] sm:$0xf]  ;;  %v4063_v46 = vsel %vm6009_vm14, %v5147_v17, %v4062_v31  ;;  %v2839_v31 = vld [vmem:[#allocation2 + $0x84] sm:$0xe]  ;;  %v2841_v17 = vld [vmem:[#allocation2 + $0x8c] sm:$0x1] }
 0x1d8   : > { %v3226_v48 = vpop.permute.xlu1 %3225  ;;  %v4059_v42 = vsel %vm6009_vm14, %v4057_v49, %v4058_v24  ;;  %v2546_v28 = vshll.u32 %v2279_v36, 16  ;;  %v2550_v43 = vshrl.u32 %v2279_v36, 16 }
 0x1d9   : > { %3315 = vst.msk [vmem:[#allocation3 + $0x1c] sm:$0xf] %vm3307_vm12, %v3226_v48  ;;  %v3781_v59 = vpop.permute.xlu0 %3780  ;;  %v2282_v48 = vld [vmem:[#allocation2 + $0x94] sm:$0xf] }
 0x1da   : > { %3055 = vrot.lane.b32.xlu1 %v2974_v41, %s5482_s15  ;;  %3873 = vst.msk [vmem:[#allocation3 + $0x10] sm:$0xf] %vm3868_vm13, %v3781_v59  ;;  %v2281_v41 = vld [vmem:[#allocation2 + $0x90] sm:$0xf]  ;;  %v4066_v59 = vsel %vm6009_vm14, %v4064_v38, %v4065_v40  ;;  %v2552_v63 = vrot.slane %v2550_v43, 4  ;;  %v2570_v2 = vshll.u32 %v2282_v48, 16 }
 0x1db   : > { %3243 = vrot.lane.b32.xlu0 %v3163_v54, %s5483_s16  ;;  %v2542_v54 = vrot.slane %v2540_v37, 5  ;;  %v2561_v56 = vshrl.u32 %v2281_v41, 16  ;;  %v2564_v57 = vshll.u32 %v2281_v41, 16  ;;  %v2574_v0 = vshrl.u32 %v2282_v48, 16  ;;  %v3370_v38 = vld [vmem:[#allocation2 + $0x90] sm:$0xf] }
 0x1dc   : > { %v3783_v55 = vpop.permute.xlu1 %3782  ;;  %v2572_v15 = vrot.slane %v2570_v2, 5  ;;  %v3629_v48 = vshrl.u32 %v3370_v38, 16 }
 0x1dd   : > { %3874 = vst.msk [vmem:[#allocation3 + $0x14] sm:$0xf] %vm3868_vm13, %v3783_v55  ;;  %v3785_v6 = vpop.permute.xlu0 %3784  ;;  %v2543_v50 = vor.u32 %v2542_v54, %v2539_v53  ;;  %v2563_v5 = vrot.slane %v2561_v56, 4  ;;  %v3632_v53 = vshll.u32 %v3370_v38, 16 }
 0x1de   : > { %3245 = vrot.lane.b32.xlu1 %v3164_v61, %s5483_s16  ;;  %3875 = vst.msk [vmem:[#allocation3 + $0x18] sm:$0xf] %vm3868_vm13, %v3785_v6  ;;  %v2548_v61 = vrot.slane %v2546_v28, 5  ;;  %v2566_v6 = vrot.slane %v2564_v57, 5  ;;  %v2844_v28 = vld [vmem:[#allocation2 + $0x98] sm:$0x1] }
 0x1df   : > { %3247 = vrot.lane.b32.xlu0 %v3165_v39, %s5483_s16  ;;  %v2075_v39 = vld [vmem:[#allocation2 + $0x84] sm:$0xf]  ;;  %v2987_v57 = vrot.slane %v2844_v28, 5  ;;  %v3634_v1 = vrot.slane %v3632_v53, 5 }
 0x1e0   : > { %v3787_v16 = vpop.permute.xlu1 %3786  ;;  %v2553_v13 = vor.u32 %v2552_v63, %v2548_v61  ;;  %v2567_v62 = vor.u32 %v2566_v6, %v2563_v5 }
 0x1e1   : > { %3876 = vst.msk [vmem:[#allocation3 + $0x1c] sm:$0xf] %vm3868_vm13, %v3787_v16  ;;  %v4118_v22 = vpop.permute.xlu0 %4117  ;;  %v2576_v16 = vrot.slane %v2574_v0, 4 }
 0x1e2   : > { %3249 = vrot.lane.b32.xlu1 %v3166_v4, %s5483_s16  ;;  %4210 = vst.msk [vmem:[#allocation3 + $0x10] sm:$0xf] %vm4205_vm15, %v4118_v22  ;;  %v2544_v22 = vrot.slane %v2543_v50, 4  ;;  %v2554_v51 = vrot.slane %v2553_v13, 4  ;;  %v2568_v11 = vrot.slane %v2567_v62, 4 }
 0x1e3   : > { %3804 = vrot.lane.b32.xlu0 %v3593_v19, %s5485_s7  ;;  %v2283_v19 = vld [vmem:[#allocation2 + $0x98] sm:$0x1]  ;;  %v2577_v26 = vor.u32 %v2576_v16, %v2572_v15 }
 0x1e4   : > { %v4120_v10 = vpop.permute.xlu1 %4119  ;;  %v2549_v29 = vsel %vm5593_vm9, %v2544_v22, %v2548_v61  ;;  %v2559_v32 = vsel %vm5593_vm9, %v2554_v51, %v2558_v27  ;;  %v2573_v36 = vsel %vm5593_vm9, %v2568_v11, %v2572_v15  ;;  %v3372_v16 = vld [vmem:[#allocation2 + $0x98] sm:$0x1] }
 0x1e5   : > { %4211 = vst.msk [vmem:[#allocation3 + $0x14] sm:$0xf] %vm4205_vm15, %v4120_v10  ;;  %v4122_v30 = vpop.permute.xlu0 %4121  ;;  %v2580_v10 = vshll.u32 %v2283_v19, 16  ;;  %v3648_v51 = vshll.u32 %v3372_v16, 16  ;;  %v2288_v16 = vld [vmem:[#allocation2 + $0xac] sm:$0xf] }
 0x1e6   : > { %3806 = vrot.lane.b32.xlu1 %v3603_v23, %s5485_s7  ;;  %4212 = vst.msk [vmem:[#allocation3 + $0x18] sm:$0xf] %vm4205_vm15, %v4122_v30 }
 0x1e7   : > { %3808 = vrot.lane.b32.xlu0 %v3617_v8, %s5485_s7  ;;  %v2840_v8 = vld [vmem:[#allocation2 + $0x88] sm:$0xf]  ;;  %v2582_v49 = vrot.slane %v2580_v10, 5 }
 0x1e8   : > { %v4124_v35 = vpop.permute.xlu1 %4123  ;;  %v2977_v24 = vrot.slane %v2840_v8, 5  ;;  %v3169_v8 = vld [vmem:[#allocation2 + $0x9c] sm:$0xf] }
 0x1e9   : > { %4213 = vst.msk [vmem:[#allocation3 + $0x1c] sm:$0xf] %vm4205_vm15, %v4124_v35  ;;  %v2697_v33 = vpop.permute.xlu0 %2696 }
 0x1ea   : > { %3810 = vrot.lane.b32.xlu1 %v3627_v60, %s5485_s7  ;;  %2785 = vst.msk [vmem:[#allocation3 + $0x20] sm:$0xf] %vm2776_vm6, %v2697_v33  ;;  %v2578_v60 = vrot.slane %v2577_v26, 4  ;;  %v2984_v33 = vrot.slane %v2843_v34, 5  ;;  %v2979_v41 = vrot.slane %v2977_v24, 4 }
 0x1eb   : > { %4141 = vrot.lane.b32.xlu0 %v4056_v21, %s5486_s20  ;;  %v5132_v21 = vrot.slane %v2839_v31, 9  ;;  %v3170_v31 = vld [vmem:[#allocation2 + $0xa0] sm:$0xf] }
 0x1ec   : > { %v2699_v44 = vpop.permute.xlu1 %2698  ;;  %v5451_v45 = vld [vmem:[#allocation3 + $0x10] sm:$0xff]   ;;  %v2583_v40 = vsel %vm5593_vm9, %v2578_v60, %v2582_v49  ;;  %v2986_v56 = vrot.slane %v2984_v33, 4  ;;  %v3650_v60 = vrot.slane %v3648_v51, 5 }
 0x1ed   : > { %2786 = vst.msk [vmem:[#allocation3 + $0x24] sm:$0xf] %vm2776_vm6, %v2699_v44  ;;  %5395 = vmatprep.mubr.msk.bf16.mxu0 %vm4411_vm2, %v5451_v45  ;;  %v2701_v58 = vpop.permute.xlu0 %2700  ;;  %v5133_v44 = vrot.slane %v2842_v12, 9  ;;  %v3371_v45 = vld [vmem:[#allocation2 + $0x94] sm:$0xf] }
 0x1ee   : > { %4143 = vrot.lane.b32.xlu1 %v4059_v42, %s5486_s20  ;;  %2787 = vst.msk [vmem:[#allocation3 + $0x28] sm:$0xf] %vm2776_vm6, %v2701_v58  ;;  %v2980_v42 = vrot.slane %v2841_v17, 5  ;;  %v3373_v58 = vld [vmem:[#allocation2 + $0x9c] sm:$0xf]  ;;  %v3638_v61 = vshll.u32 %v3371_v45, 16  ;;  %v2988_v6 = vsel %vm6009_vm14, %v2986_v56, %v2987_v57 }
 0x1ef   : > { %4145 = vrot.lane.b32.xlu0 %v4063_v46, %s5486_s20  ;;  %v2978_v46 = vsel %vm6009_vm14, %v5132_v21, %v2977_v24  ;;  %v3642_v63 = vshrl.u32 %v3371_v45, 16  ;;  %v2985_v0 = vsel %vm6009_vm14, %v5133_v44, %v2984_v33  ;;  %v3656_v50 = vshll.u32 %v3373_v58, 16  ;;  %v3931_v12 = vld [vmem:[#allocation2 + $0x90] sm:$0xe] }
 0x1f0   : > { %v2703_v9 = vpop.permute.xlu1 %2702  ;;  %v5452_v55 = vld [vmem:[#allocation3 + $0x18] sm:$0xff]   ;;  %v5148_v45 = vrot.slane %v3931_v12, 9 }
 0x1f1   : > { %2788 = vst.msk [vmem:[#allocation3 + $0x2c] sm:$0xf] %vm2776_vm6, %v2703_v9  ;;  %5396 = vmatmul.mubr.msk.bf16.gmra.mxu0 %vm4411_vm2, %v5452_v55  ;;  %v3034_v4 = vpop.permute.xlu0 %3033  ;;  %v3374_v9 = vld [vmem:[#allocation2 + $0xa0] sm:$0xf]  ;;  %v3631_v55 = vrot.slane %v3629_v48, 4  ;;  %v3658_v22 = vrot.slane %v3656_v50, 5 }
 0x1f2   : > { %4147 = vrot.lane.b32.xlu1 %v4066_v59, %s5486_s20  ;;  %3122 = vst.msk [vmem:[#allocation3 + $0x20] sm:$0xf] %vm3113_vm8, %v3034_v4  ;;  %v2981_v59 = vsel %vm6009_vm14, %v2979_v41, %v2980_v42  ;;  %v3640_v4 = vrot.slane %v3638_v61, 5  ;;  %v3662_v13 = vshll.u32 %v3374_v9, 16  ;;  %v3666_v3 = vshrl.u32 %v3374_v9, 16 }
 0x1f3   : > { %2159 = vrot.lane.b32.xlu0 %v2075_v39, %s5480_s13  ;;  %v3653_v39 = vshrl.u32 %v3373_v58, 16  ;;  %v3635_v19 = vor.u32 %v3634_v1, %v3631_v55  ;;  %v3935_v41 = vld [vmem:[#allocation2 + $0xa0] sm:$0xf] }
 0x1f4   : > { %v3036_v18 = vpop.permute.xlu1 %3035  ;;  %v3664_v27 = vrot.slane %v3662_v13, 5  ;;  %v3668_v26 = vrot.slane %v3666_v3, 4  ;;  %v4076_v53 = vrot.slane %v3935_v41, 5 }
 0x1f5   : > { %3123 = vst.msk [vmem:[#allocation3 + $0x24] sm:$0xf] %vm3113_vm8, %v3036_v18  ;;  %v3038_v23 = vpop.permute.xlu0 %3037  ;;  %v3167_v18 = vld [vmem:[#allocation2 + $0x90] sm:$0xf] }
 0x1f6   : > { %2161 = vrot.lane.b32.xlu1 %v2076_v7, %s5480_s13  ;;  %3124 = vst.msk [vmem:[#allocation3 + $0x28] sm:$0xf] %vm3113_vm8, %v3038_v23  ;;  %v3644_v7 = vrot.slane %v3642_v63, 4  ;;  %v3168_v23 = vld [vmem:[#allocation2 + $0x94] sm:$0xf]  ;;  %v3669_v49 = vor.u32 %v3668_v26, %v3664_v27  ;;  %v4078_v50 = vrot.slane %v4076_v53, 4 }
 0x1f7   : > { %2163 = vrot.lane.b32.xlu0 %v2077_v14, %s5480_s13  ;;  %v3655_v14 = vrot.slane %v3653_v39, 4  ;;  %v2622_v26 = vshrl.u32 %v2288_v16, 16 }
 0x1f8   : > { %v3040_v20 = vpop.permute.xlu1 %3039  ;;  %v3670_v33 = vrot.slane %v3669_v49, 4 }
 0x1f9   : > { %3125 = vst.msk [vmem:[#allocation3 + $0x2c] sm:$0xf] %vm3113_vm8, %v3040_v20  ;;  %v3228_v30 = vpop.permute.xlu0 %3227  ;;  %v3375_v20 = vld [vmem:[#allocation2 + $0xa4] sm:$0x1]  ;;  %v3659_v11 = vor.u32 %v3658_v22, %v3655_v14 }
 0x1fa   : > { %2165 = vrot.lane.b32.xlu1 %v2078_v25, %s5480_s13  ;;  %3316 = vst.msk [vmem:[#allocation3 + $0x20] sm:$0xf] %vm3307_vm12, %v3228_v30  ;;  %v3645_v25 = vor.u32 %v3644_v7, %v3640_v4  ;;  %v3672_v24 = vshll.u32 %v3375_v20, 16  ;;  %v2286_v20 = vld [vmem:[#allocation2 + $0xa4] sm:$0x1] }
 0x1fb   : > { %2720 = vrot.lane.b32.xlu0 %v2549_v29, %s5481_s14  ;;  %v3636_v29 = vrot.slane %v3635_v19, 4  ;;  %v2604_v49 = vshll.u32 %v2286_v20, 16 }
 0x1fc   : > { %v3230_v35 = vpop.permute.xlu1 %3229  ;;  %v3674_v38 = vrot.slane %v3672_v24, 5 }
 0x1fd   : > { %3317 = vst.msk [vmem:[#allocation3 + $0x24] sm:$0xf] %vm3307_vm12, %v3230_v35  ;;  %v3232_v37 = vpop.permute.xlu0 %3231  ;;  %v3932_v35 = vld [vmem:[#allocation2 + $0x94] sm:$0xf]  ;;  %v3641_v17 = vsel %vm5593_vm9, %v3636_v29, %v3640_v4 }
 0x1fe   : > { %2722 = vrot.lane.b32.xlu1 %v2559_v32, %s5481_s14  ;;  %3318 = vst.msk [vmem:[#allocation3 + $0x28] sm:$0xf] %vm3307_vm12, %v3232_v37  ;;  %v3646_v32 = vrot.slane %v3645_v25, 4  ;;  %v3675_v56 = vsel %vm5593_vm9, %v3670_v33, %v3674_v38  ;;  %v2082_v33 = vld [vmem:[#allocation2 + $0xac] sm:$0xf] }
 0x1ff   : > { %2724 = vrot.lane.b32.xlu0 %v2573_v36, %s5481_s14  ;;  %v3660_v36 = vrot.slane %v3659_v11, 4 }
 0x200   : > { %v3234_v43 = vpop.permute.xlu1 %3233  ;;  %v3651_v37 = vsel %vm5593_vm9, %v3646_v32, %v3650_v60  ;;  %v2080_v32 = vld [vmem:[#allocation2 + $0xa0] sm:$0xf] }
 0x201   : > { %3319 = vst.msk [vmem:[#allocation3 + $0x2c] sm:$0xf] %vm3307_vm12, %v3234_v43  ;;  %v3789_v54 = vpop.permute.xlu0 %3788  ;;  %v3933_v43 = vld [vmem:[#allocation2 + $0x98] sm:$0x1]  ;;  %v3665_v44 = vsel %vm5593_vm9, %v3660_v36, %v3664_v27  ;;  %v2618_v27 = vshll.u32 %v2288_v16, 16 }
 0x202   : > { %2726 = vrot.lane.b32.xlu1 %v2583_v40, %s5481_s14  ;;  %3877 = vst.msk [vmem:[#allocation3 + $0x20] sm:$0xf] %vm3868_vm13, %v3789_v54  ;;  %v4069_v40 = vrot.slane %v3932_v35, 5  ;;  %v2284_v54 = vld [vmem:[#allocation2 + $0x9c] sm:$0xf]  ;;  %v4072_v58 = vrot.slane %v3933_v43, 5 }
 0x203   : > { %3057 = vrot.lane.b32.xlu0 %v2978_v46, %s5482_s15  ;;  %v3934_v46 = vld [vmem:[#allocation2 + $0x9c] sm:$0xe]  ;;  %v2585_v55 = vshrl.u32 %v2284_v54, 16  ;;  %v2588_v1 = vshll.u32 %v2284_v54, 16  ;;  %v2620_v24 = vrot.slane %v2618_v27, 5 }
 0x204   : > { %v3791_v2 = vpop.permute.xlu1 %3790  ;;  %v4071_v57 = vrot.slane %v4069_v40, 4  ;;  %v4070_v9 = vsel %vm6009_vm14, %v5148_v45, %v4069_v40  ;;  %v2081_v36 = vld [vmem:[#allocation2 + $0xa8] sm:$0xf]  ;;  %v2606_v40 = vrot.slane %v2604_v49, 5  ;;  %v2846_v43 = vld [vmem:[#allocation2 + $0xa0] sm:$0xf] }
 0x205   : > { %3878 = vst.msk [vmem:[#allocation3 + $0x24] sm:$0xf] %vm3868_vm13, %v3791_v2  ;;  %v3793_v5 = vpop.permute.xlu0 %3792  ;;  %v5149_v2 = vrot.slane %v3934_v46, 9  ;;  %v2590_v19 = vrot.slane %v2588_v1, 5  ;;  %v3376_v1 = vld [vmem:[#allocation2 + $0xa8] sm:$0xf] }
 0x206   : > { %3059 = vrot.lane.b32.xlu1 %v2981_v59, %s5482_s15  ;;  %3879 = vst.msk [vmem:[#allocation3 + $0x28] sm:$0xf] %vm3868_vm13, %v3793_v5  ;;  %v3936_v59 = vld [vmem:[#allocation2 + $0xa4] sm:$0x1]  ;;  %v4073_v4 = vsel %vm6009_vm14, %v4071_v57, %v4072_v58  ;;  %v2991_v57 = vrot.slane %v2846_v43, 5  ;;  %v3680_v16 = vshll.u32 %v3376_v1, 16 }
 0x207   : > { %3061 = vrot.lane.b32.xlu0 %v2985_v0, %s5482_s15  ;;  %v2285_v0 = vld [vmem:[#allocation2 + $0xa0] sm:$0xf]  ;;  %v4079_v5 = vrot.slane %v3936_v59, 5  ;;  %v2849_v58 = vld [vmem:[#allocation2 + $0xac] sm:$0xf] }
 0x208   : > { %v3795_v15 = vpop.permute.xlu1 %3794  ;;  %v2594_v7 = vshll.u32 %v2285_v0, 16  ;;  %v2598_v13 = vshrl.u32 %v2285_v0, 16  ;;  %v2848_v0 = vld [vmem:[#allocation2 + $0xa8] sm:$0xe]  ;;  %v3682_v20 = vrot.slane %v3680_v16, 5 }
 0x209   : > { %3880 = vst.msk [vmem:[#allocation3 + $0x2c] sm:$0xf] %vm3868_vm13, %v3795_v15  ;;  %v4126_v62 = vpop.permute.xlu0 %4125  ;;  %v4077_v15 = vsel %vm6009_vm14, %v5149_v2, %v4076_v53  ;;  %v3381_v43 = vld [vmem:[#allocation2 + $0xbc] sm:$0x1] }
 0x20a   : > { %3063 = vrot.lane.b32.xlu1 %v2988_v6, %s5482_s15  ;;  %4214 = vst.msk [vmem:[#allocation3 + $0x20] sm:$0xf] %vm4205_vm15, %v4126_v62  ;;  %v2287_v6 = vld [vmem:[#allocation2 + $0xa8] sm:$0xf]  ;;  %v2596_v25 = vrot.slane %v2594_v7, 5  ;;  %v2600_v51 = vrot.slane %v2598_v13, 4 }
 0x20b   : > { %3251 = vrot.lane.b32.xlu0 %v3167_v18, %s5483_s16  ;;  %v2587_v18 = vrot.slane %v2585_v55, 4  ;;  %v2609_v14 = vshrl.u32 %v2287_v6, 16  ;;  %v2612_v22 = vshll.u32 %v2287_v6, 16  ;;  %v2998_v55 = vrot.slane %v2849_v58, 5  ;;  %v2850_v6 = vld [vmem:[#allocation2 + $0xb0] sm:$0x1] }
 0x20c   : > { %v4128_v10 = vpop.permute.xlu1 %4127  ;;  %v2601_v60 = vor.u32 %v2600_v51, %v2596_v25  ;;  %v5135_v7 = vrot.slane %v2848_v0, 9  ;;  %v3377_v13 = vld [vmem:[#allocation2 + $0xac] sm:$0xf]  ;;  %v3720_v58 = vshll.u32 %v3381_v43, 16  ;;  %v2083_v43 = vld [vmem:[#allocation2 + $0xb4] sm:$0xf] }
 0x20d   : > { %4215 = vst.msk [vmem:[#allocation3 + $0x24] sm:$0xf] %vm4205_vm15, %v4128_v10  ;;  %v4130_v30 = vpop.permute.xlu0 %4129  ;;  %v2591_v29 = vor.u32 %v2590_v19, %v2587_v18  ;;  %v2611_v11 = vrot.slane %v2609_v14, 4  ;;  %v3000_v19 = vrot.slane %v2998_v55, 4  ;;  %v3001_v14 = vrot.slane %v2850_v6, 5 }
 0x20e   : > { %3253 = vrot.lane.b32.xlu1 %v3168_v23, %s5483_s16  ;;  %4216 = vst.msk [vmem:[#allocation3 + $0x28] sm:$0xf] %vm4205_vm15, %v4130_v30  ;;  %v4080_v23 = vsel %vm6009_vm14, %v4078_v50, %v4079_v5  ;;  %v2614_v30 = vrot.slane %v2612_v22, 5  ;;  %v2602_v38 = vrot.slane %v2601_v60, 4  ;;  %v2993_v50 = vrot.slane %v2991_v57, 4 }
 0x20f   : > { %3255 = vrot.lane.b32.xlu0 %v3169_v8, %s5483_s16  ;;  %v2079_v8 = vld [vmem:[#allocation2 + $0x9c] sm:$0xf]  ;;  %v3379_v22 = vld [vmem:[#allocation2 + $0xb4] sm:$0xf]  ;;  %v2999_v27 = vsel %vm6009_vm14, %v5135_v7, %v2998_v55  ;;  %v3937_v55 = vld [vmem:[#allocation2 + $0xa8] sm:$0xe] }
 0x210   : > { %v4132_v34 = vpop.permute.xlu1 %4131  ;;  %v2615_v12 = vor.u32 %v2614_v30, %v2611_v11  ;;  %v2607_v53 = vsel %vm5593_vm9, %v2602_v38, %v2606_v40  ;;  %v3002_v30 = vsel %vm6009_vm14, %v3000_v19, %v3001_v14  ;;  %v3941_v6 = vld [vmem:[#allocation2 + $0xb8] sm:$0xf]  ;;  %v3939_v7 = vld [vmem:[#allocation2 + $0xb0] sm:$0x1]  ;;  %v2290_v19 = vld [vmem:[#allocation2 + $0xb4] sm:$0xf] }
 0x211   : > { %4217 = vst.msk [vmem:[#allocation3 + $0x2c] sm:$0xf] %vm4205_vm15, %v4132_v34  ;;  %v2705_v21 = vpop.permute.xlu0 %2704  ;;  %v2624_v34 = vrot.slane %v2622_v26, 4  ;;  %v3380_v26 = vld [vmem:[#allocation2 + $0xb8] sm:$0xf] }
 0x212   : > { %3257 = vrot.lane.b32.xlu1 %v3170_v31, %s5483_s16  ;;  %2789 = vst.msk [vmem:[#allocation3 + $0x30] sm:$0xf] %vm2776_vm6, %v2705_v21  ;;  %v2592_v21 = vrot.slane %v2591_v29, 4  ;;  %v2616_v45 = vrot.slane %v2615_v12, 4  ;;  %v3704_v29 = vshll.u32 %v3379_v22, 16  ;;  %v3710_v60 = vshll.u32 %v3380_v26, 16 }
 0x213   : > { %3812 = vrot.lane.b32.xlu0 %v3641_v17, %s5485_s7  ;;  %v2289_v17 = vld [vmem:[#allocation2 + $0xb0] sm:$0x1]  ;;  %v2625_v41 = vor.u32 %v2624_v34, %v2620_v24  ;;  %v3714_v49 = vshrl.u32 %v3380_v26, 16 }
 0x214   : > { %v2707_v42 = vpop.permute.xlu1 %2706  ;;  %v5453_v28 = vld [vmem:[#allocation3 + $0x20] sm:$0xff]   ;;  %v3378_v34 = vld [vmem:[#allocation2 + $0xb0] sm:$0x1]  ;;  %v3712_v40 = vrot.slane %v3710_v60, 5 }
 0x215   : > { %2790 = vst.msk [vmem:[#allocation3 + $0x34] sm:$0xf] %vm2776_vm6, %v2707_v42  ;;  %5399 = vmatprep.mubr.msk.bf16.mxu0 %vm4411_vm2, %v5453_v28  ;;  %v2709_v48 = vpop.permute.xlu0 %2708  ;;  %v2628_v42 = vshll.u32 %v2289_v17, 16  ;;  %v2626_v54 = vrot.slane %v2625_v41, 4  ;;  %v3696_v38 = vshll.u32 %v3378_v34, 16  ;;  %v3716_v41 = vrot.slane %v3714_v49, 4 }
 0x216   : > { %3814 = vrot.lane.b32.xlu1 %v3651_v37, %s5485_s7  ;;  %2791 = vst.msk [vmem:[#allocation3 + $0x38] sm:$0xf] %vm2776_vm6, %v2709_v48  ;;  %v2845_v48 = vld [vmem:[#allocation2 + $0x9c] sm:$0xe]  ;;  %v2294_v34 = vld [vmem:[#allocation2 + $0xc4] sm:$0xf] }
 0x217   : > { %3816 = vrot.lane.b32.xlu0 %v3665_v44, %s5485_s7  ;;  %v2597_v44 = vsel %vm5593_vm9, %v2592_v21, %v2596_v25  ;;  %v5134_v2 = vrot.slane %v2845_v48, 9  ;;  %v3690_v25 = vshrl.u32 %v3377_v13, 16  ;;  %v3706_v21 = vrot.slane %v3704_v29, 5 }
 0x218   : > { %v2711_v61 = vpop.permute.xlu1 %2710  ;;  %v5454_v63 = vld [vmem:[#allocation3 + $0x28] sm:$0xff]  }
 0x219   : > { %2792 = vst.msk [vmem:[#allocation3 + $0x3c] sm:$0xf] %vm2776_vm6, %v2711_v61  ;;  %5400 = vmatmul.mubr.msk.bf16.gmra.mxu0 %vm4411_vm2, %v5454_v63  ;;  %v3042_v39 = vpop.permute.xlu0 %3041  ;;  %v2847_v61 = vld [vmem:[#allocation2 + $0xa4] sm:$0x1]  ;;  %v2621_v63 = vsel %vm5593_vm9, %v2616_v45, %v2620_v24 }
 0x21a   : > { %3818 = vrot.lane.b32.xlu1 %v3675_v56, %s5485_s7  ;;  %3126 = vst.msk [vmem:[#allocation3 + $0x30] sm:$0xf] %vm3113_vm8, %v3042_v39  ;;  %v2630_v56 = vrot.slane %v2628_v42, 5  ;;  %v2994_v5 = vrot.slane %v2847_v61, 5 }
 0x21b   : > { %4149 = vrot.lane.b32.xlu0 %v4070_v9, %s5486_s20 }
 0x21c   : > { %v3044_v3 = vpop.permute.xlu1 %3043  ;;  %v2631_v39 = vsel %vm5593_vm9, %v2626_v54, %v2630_v56  ;;  %v3698_v56 = vrot.slane %v3696_v38, 5 }
 0x21d   : > { %3127 = vst.msk [vmem:[#allocation3 + $0x34] sm:$0xf] %vm3113_vm8, %v3044_v3  ;;  %v3046_v62 = vpop.permute.xlu0 %3045  ;;  %v2992_v3 = vsel %vm6009_vm14, %v5134_v2, %v2991_v57  ;;  %v3717_v57 = vor.u32 %v3716_v41, %v3712_v40  ;;  %v2670_v41 = vshrl.u32 %v2294_v34, 16 }
 0x21e   : > { %4151 = vrot.lane.b32.xlu1 %v4073_v4, %s5486_s20  ;;  %3128 = vst.msk [vmem:[#allocation3 + $0x38] sm:$0xf] %vm3113_vm8, %v3046_v62  ;;  %v2995_v62 = vsel %vm6009_vm14, %v2993_v50, %v2994_v5  ;;  %v3722_v50 = vrot.slane %v3720_v58, 5 }
 0x21f   : > { %4153 = vrot.lane.b32.xlu0 %v4077_v15, %s5486_s20  ;;  %v3677_v15 = vshrl.u32 %v3376_v1, 16  ;;  %v2672_v58 = vrot.slane %v2670_v41, 4  ;;  %v3386_v41 = vld [vmem:[#allocation2 + $0xd0] sm:$0xf] }
 0x220   : > { %v3048_v10 = vpop.permute.xlu1 %3047 }
 0x221   : > { %3129 = vst.msk [vmem:[#allocation3 + $0x3c] sm:$0xf] %vm3113_vm8, %v3048_v10  ;;  %v3236_v31 = vpop.permute.xlu0 %3235  ;;  %v3679_v10 = vrot.slane %v3677_v15, 4  ;;  %v3940_v15 = vld [vmem:[#allocation2 + $0xb4] sm:$0xe] }
 0x222   : > { %4155 = vrot.lane.b32.xlu1 %v4080_v23, %s5486_s20  ;;  %3320 = vst.msk [vmem:[#allocation3 + $0x30] sm:$0xf] %vm3307_vm12, %v3236_v31  ;;  %v3686_v23 = vshll.u32 %v3377_v13, 16 }
 0x223   : > { %2167 = vrot.lane.b32.xlu0 %v2079_v8, %s5480_s13  ;;  %v3701_v8 = vshrl.u32 %v3379_v22, 16  ;;  %v3683_v17 = vor.u32 %v3682_v20, %v3679_v10  ;;  %v2633_v10 = vshrl.u32 %v2290_v19, 16  ;;  %v2636_v20 = vshll.u32 %v2290_v19, 16 }
 0x224   : > { %v3238_v35 = vpop.permute.xlu1 %3237  ;;  %v3688_v31 = vrot.slane %v3686_v23, 5  ;;  %v3942_v23 = vld [vmem:[#allocation2 + $0xbc] sm:$0x1] }
 0x225   : > { %3321 = vst.msk [vmem:[#allocation3 + $0x34] sm:$0xf] %vm3307_vm12, %v3238_v35  ;;  %v3240_v37 = vpop.permute.xlu0 %3239  ;;  %v3171_v35 = vld [vmem:[#allocation2 + $0xa8] sm:$0xf]  ;;  %v3684_v45 = vrot.slane %v3683_v17, 4  ;;  %v2638_v17 = vrot.slane %v2636_v20, 5 }
 0x226   : > { %2169 = vrot.lane.b32.xlu1 %v2080_v32, %s5480_s13  ;;  %3322 = vst.msk [vmem:[#allocation3 + $0x38] sm:$0xf] %vm3307_vm12, %v3240_v37  ;;  %v3692_v32 = vrot.slane %v3690_v25, 4  ;;  %v3172_v37 = vld [vmem:[#allocation2 + $0xac] sm:$0xf] }
 0x227   : > { %2171 = vrot.lane.b32.xlu0 %v2081_v36, %s5480_s13  ;;  %v3703_v36 = vrot.slane %v3701_v8, 4  ;;  %v3689_v2 = vsel %vm5593_vm9, %v3684_v45, %v3688_v31  ;;  %v3382_v20 = vld [vmem:[#allocation2 + $0xc0] sm:$0xf] }
 0x228   : > { %v3242_v28 = vpop.permute.xlu1 %3241 }
 0x229   : > { %3323 = vst.msk [vmem:[#allocation3 + $0x3c] sm:$0xf] %vm3307_vm12, %v3242_v28  ;;  %v3797_v46 = vpop.permute.xlu0 %3796 }
 0x22a   : > { %2173 = vrot.lane.b32.xlu1 %v2082_v33, %s5480_s13  ;;  %3881 = vst.msk [vmem:[#allocation3 + $0x30] sm:$0xf] %vm3868_vm13, %v3797_v46  ;;  %v3693_v33 = vor.u32 %v3692_v32, %v3688_v31  ;;  %v3707_v46 = vor.u32 %v3706_v21, %v3703_v36 }
 0x22b   : > { %2728 = vrot.lane.b32.xlu0 %v2597_v44, %s5481_s14  ;;  %v3173_v44 = vld [vmem:[#allocation2 + $0xb4] sm:$0xf] }
 0x22c   : > { %v3799_v59 = vpop.permute.xlu1 %3798  ;;  %v3694_v54 = vrot.slane %v3693_v33, 4  ;;  %v3708_v0 = vrot.slane %v3707_v46, 4 }
 0x22d   : > { %3882 = vst.msk [vmem:[#allocation3 + $0x34] sm:$0xf] %vm3868_vm13, %v3799_v59  ;;  %v3801_v9 = vpop.permute.xlu0 %3800 }
 0x22e   : > { %2730 = vrot.lane.b32.xlu1 %v2607_v53, %s5481_s14  ;;  %3883 = vst.msk [vmem:[#allocation3 + $0x38] sm:$0xf] %vm3868_vm13, %v3801_v9  ;;  %v3174_v53 = vld [vmem:[#allocation2 + $0xb8] sm:$0xf]  ;;  %v3699_v1 = vsel %vm5593_vm9, %v3694_v54, %v3698_v56  ;;  %v3713_v13 = vsel %vm5593_vm9, %v3708_v0, %v3712_v40  ;;  %v2666_v40 = vshll.u32 %v2294_v34, 16  ;;  %v3728_v34 = vshll.u32 %v3382_v20, 16 }
 0x22f   : > { %2732 = vrot.lane.b32.xlu0 %v2621_v63, %s5481_s14  ;;  %v3938_v63 = vld [vmem:[#allocation2 + $0xac] sm:$0xf] }
 0x230   : > { %v3803_v4 = vpop.permute.xlu1 %3802  ;;  %v4083_v5 = vrot.slane %v3938_v63, 5  ;;  %v2085_v63 = vld [vmem:[#allocation2 + $0xc0] sm:$0xf] }
 0x231   : > { %3884 = vst.msk [vmem:[#allocation3 + $0x3c] sm:$0xf] %vm3868_vm13, %v3803_v4  ;;  %v4134_v18 = vpop.permute.xlu0 %4133 }
 0x232   : > { %2734 = vrot.lane.b32.xlu1 %v2631_v39, %s5481_s14  ;;  %4218 = vst.msk [vmem:[#allocation3 + $0x30] sm:$0xf] %vm4205_vm15, %v4134_v18  ;;  %v3718_v39 = vrot.slane %v3717_v57, 4  ;;  %v4090_v18 = vrot.slane %v3941_v6, 5  ;;  %v4085_v22 = vrot.slane %v4083_v5, 4  ;;  %v2668_v57 = vrot.slane %v2666_v40, 5 }
 0x233   : > { %3065 = vrot.lane.b32.xlu0 %v2992_v3, %s5482_s15  ;;  %v5150_v3 = vrot.slane %v3937_v55, 9  ;;  %v2086_v55 = vld [vmem:[#allocation2 + $0xc4] sm:$0xf] }
 0x234   : > { %v4136_v51 = vpop.permute.xlu1 %4135  ;;  %v3723_v14 = vsel %vm5593_vm9, %v3718_v39, %v3722_v50  ;;  %v4092_v29 = vrot.slane %v4090_v18, 4  ;;  %v2673_v50 = vor.u32 %v2672_v58, %v2668_v57 }
 0x235   : > { %4219 = vst.msk [vmem:[#allocation3 + $0x34] sm:$0xf] %vm4205_vm15, %v4136_v51  ;;  %v4138_v11 = vpop.permute.xlu0 %4137  ;;  %v5151_v51 = vrot.slane %v3940_v15, 9  ;;  %v4084_v26 = vsel %vm6009_vm14, %v5150_v3, %v4083_v5  ;;  %v2851_v15 = vld [vmem:[#allocation2 + $0xb4] sm:$0xe] }
 0x236   : > { %3067 = vrot.lane.b32.xlu1 %v2995_v62, %s5482_s15  ;;  %4220 = vst.msk [vmem:[#allocation3 + $0x38] sm:$0xf] %vm4205_vm15, %v4138_v11  ;;  %v4086_v62 = vrot.slane %v3939_v7, 5  ;;  %v4093_v11 = vrot.slane %v3942_v23, 5  ;;  %v2853_v23 = vld [vmem:[#allocation2 + $0xbc] sm:$0x1] }
 0x237   : > { %3069 = vrot.lane.b32.xlu0 %v2999_v27, %s5482_s15  ;;  %v2291_v27 = vld [vmem:[#allocation2 + $0xb8] sm:$0xf] }
 0x238   : > { %v4140_v24 = vpop.permute.xlu1 %4139  ;;  %v4087_v31 = vsel %vm6009_vm14, %v4085_v22, %v4086_v62  ;;  %v2642_v32 = vshll.u32 %v2291_v27, 16  ;;  %v2646_v60 = vshrl.u32 %v2291_v27, 16  ;;  %v2855_v22 = vld [vmem:[#allocation2 + $0xc4] sm:$0xf]  ;;  %v2854_v27 = vld [vmem:[#allocation2 + $0xc0] sm:$0xe] }
 0x239   : > { %4221 = vst.msk [vmem:[#allocation3 + $0x3c] sm:$0xf] %vm4205_vm15, %v4140_v24  ;;  %v2156_v12 = vpop.permute.xlu0 %2155  ;;  %v4091_v24 = vsel %vm6009_vm14, %v5151_v51, %v4090_v18  ;;  %v2674_v18 = vrot.slane %v2673_v50, 4  ;;  %v5136_v51 = vrot.slane %v2851_v15, 9 }
 0x23a   : > { %3071 = vrot.lane.b32.xlu1 %v3002_v30, %s5482_s15  ;;  %2234 = vst.msk [vmem:[#allocation3 + $0x48] sm:$0xf] %vm2215_vm4, %v2156_v12  ;;  %v2293_v30 = vld [vmem:[#allocation2 + $0xc0] sm:$0xf]  ;;  %v2644_v33 = vrot.slane %v2642_v32, 5  ;;  %v2648_v38 = vrot.slane %v2646_v60, 4 }
 0x23b   : > { %3259 = vrot.lane.b32.xlu0 %v3171_v35, %s5483_s16  ;;  %v2635_v35 = vrot.slane %v2633_v10, 4  ;;  %v2657_v36 = vshrl.u32 %v2293_v30, 16  ;;  %v2660_v21 = vshll.u32 %v2293_v30, 16  ;;  %v3012_v10 = vrot.slane %v2855_v22, 5  ;;  %v2856_v30 = vld [vmem:[#allocation2 + $0xc8] sm:$0x1] }
 0x23c   : > { %v2158_v42 = vpop.permute.xlu1 %2157  ;;  %v5455_v28 = vld [vmem:[#allocation3 + $0x30] sm:$0xff]   ;;  %v2649_v54 = vor.u32 %v2648_v38, %v2644_v33  ;;  %v5137_v32 = vrot.slane %v2854_v27, 9  ;;  %v3383_v60 = vld [vmem:[#allocation2 + $0xc4] sm:$0xf] }
 0x23d   : > { %2235 = vst.msk [vmem:[#allocation3 + $0x4c] sm:$0xf] %vm2215_vm4, %v2158_v42  ;;  %5403 = vmatprep.mubr.msk.bf16.mxu0 %vm4411_vm2, %v5455_v28  ;;  %v2713_v48 = vpop.permute.xlu0 %2712  ;;  %v2292_v28 = vld [vmem:[#allocation2 + $0xbc] sm:$0x1]  ;;  %v2659_v45 = vrot.slane %v2657_v36, 4  ;;  %v2662_v46 = vrot.slane %v2660_v21, 5 }
 0x23e   : > { %3261 = vrot.lane.b32.xlu1 %v3172_v37, %s5483_s16  ;;  %2793 = vst.msk [vmem:[#allocation3 + $0x40] sm:$0xf] %vm2776_vm6, %v2713_v48  ;;  %v4094_v37 = vsel %vm6009_vm14, %v4092_v29, %v4093_v11  ;;  %v2652_v56 = vshll.u32 %v2292_v28, 16  ;;  %v3008_v11 = vrot.slane %v2853_v23, 5  ;;  %v3015_v36 = vrot.slane %v2856_v30, 5 }
 0x23f   : > { %3263 = vrot.lane.b32.xlu0 %v3173_v44, %s5483_s16  ;;  %v2639_v44 = vor.u32 %v2638_v17, %v2635_v35  ;;  %v2663_v0 = vor.u32 %v2662_v46, %v2659_v45  ;;  %v3014_v17 = vrot.slane %v3012_v10, 4  ;;  %v3385_v21 = vld [vmem:[#allocation2 + $0xcc] sm:$0xf]  ;;  %v3013_v40 = vsel %vm6009_vm14, %v5137_v32, %v3012_v10  ;;  %v3943_v10 = vld [vmem:[#allocation2 + $0xc0] sm:$0xe] }
 0x240   : > { %v2715_v59 = vpop.permute.xlu1 %2714  ;;  %v5456_v61 = vld [vmem:[#allocation3 + $0x38] sm:$0xff]   ;;  %v2654_v39 = vrot.slane %v2652_v56, 5  ;;  %v3730_v28 = vrot.slane %v3728_v34, 5  ;;  %v3762_v56 = vshrl.u32 %v3386_v41, 16  ;;  %v3946_v34 = vld [vmem:[#allocation2 + $0xcc] sm:$0xe] }
 0x241   : > { %2794 = vst.msk [vmem:[#allocation3 + $0x44] sm:$0xf] %vm2776_vm6, %v2715_v59  ;;  %5404 = vmatmul.mubr.msk.bf16.gmra.mxu0 %vm4411_vm2, %v5456_v61  ;;  %v2717_v9 = vpop.permute.xlu0 %2716  ;;  %v2295_v61 = vld [vmem:[#allocation2 + $0xc8] sm:$0x1]  ;;  %v3016_v46 = vsel %vm6009_vm14, %v3014_v17, %v3015_v36  ;;  %v3947_v32 = vld [vmem:[#allocation2 + $0xd0] sm:$0xf] }
 0x242   : > { %3265 = vrot.lane.b32.xlu1 %v3174_v53, %s5483_s16  ;;  %2795 = vst.msk [vmem:[#allocation3 + $0x48] sm:$0xf] %vm2776_vm6, %v2717_v9  ;;  %v2084_v53 = vld [vmem:[#allocation2 + $0xb8] sm:$0xf]  ;;  %v2676_v5 = vshll.u32 %v2295_v61, 16 }
 0x243   : > { %3820 = vrot.lane.b32.xlu0 %v3689_v2, %s5485_s7  ;;  %v2640_v2 = vrot.slane %v2639_v44, 4  ;;  %v3752_v44 = vshll.u32 %v3385_v21, 16  ;;  %v3175_v61 = vld [vmem:[#allocation2 + $0xc0] sm:$0xf] }
 0x244   : > { %v2719_v4 = vpop.permute.xlu1 %2718  ;;  %v2678_v19 = vrot.slane %v2676_v5, 5  ;;  %v3764_v5 = vrot.slane %v3762_v56, 4 }
 0x245   : > { %2796 = vst.msk [vmem:[#allocation3 + $0x4c] sm:$0xf] %vm2776_vm6, %v2719_v4  ;;  %v3050_v16 = vpop.permute.xlu0 %3049  ;;  %v2852_v4 = vld [vmem:[#allocation2 + $0xb8] sm:$0xf]  ;;  %v2645_v7 = vsel %vm5593_vm9, %v2640_v2, %v2644_v33  ;;  %v3738_v33 = vshrl.u32 %v3383_v60, 16 }
 0x246   : > { %3822 = vrot.lane.b32.xlu1 %v3699_v1, %s5485_s7  ;;  %3130 = vst.msk [vmem:[#allocation3 + $0x40] sm:$0xf] %vm3113_vm8, %v3050_v16  ;;  %v2650_v1 = vrot.slane %v2649_v54, 4  ;;  %v3758_v54 = vshll.u32 %v3386_v41, 16 }
 0x247   : > { %3824 = vrot.lane.b32.xlu0 %v3713_v13, %s5485_s7  ;;  %v2664_v13 = vrot.slane %v2663_v0, 4  ;;  %v3754_v0 = vrot.slane %v3752_v44, 5 }
 0x248   : > { %v3052_v25 = vpop.permute.xlu1 %3051  ;;  %v2655_v16 = vsel %vm5593_vm9, %v2650_v1, %v2654_v39  ;;  %v3760_v50 = vrot.slane %v3758_v54, 5 }
 0x249   : > { %3131 = vst.msk [vmem:[#allocation3 + $0x44] sm:$0xf] %vm3113_vm8, %v3052_v25  ;;  %v3054_v8 = vpop.permute.xlu0 %3053  ;;  %v2669_v25 = vsel %vm5593_vm9, %v2664_v13, %v2668_v57  ;;  %v3177_v13 = vld [vmem:[#allocation2 + $0xcc] sm:$0xf] }
 0x24a   : > { %3826 = vrot.lane.b32.xlu1 %v3723_v14, %s5485_s7  ;;  %3132 = vst.msk [vmem:[#allocation3 + $0x48] sm:$0xf] %vm3113_vm8, %v3054_v8  ;;  %v3005_v14 = vrot.slane %v2852_v4, 5  ;;  %v2679_v8 = vsel %vm5593_vm9, %v2674_v18, %v2678_v19  ;;  %v3178_v18 = vld [vmem:[#allocation2 + $0xd0] sm:$0xf]  ;;  %v3765_v22 = vor.u32 %v3764_v5, %v3760_v50 }
 0x24b   : > { %4157 = vrot.lane.b32.xlu0 %v4084_v26, %s5486_s20 }
 0x24c   : > { %v3056_v49 = vpop.permute.xlu1 %3055  ;;  %v3007_v29 = vrot.slane %v3005_v14, 4 }
 0x24d   : > { %3133 = vst.msk [vmem:[#allocation3 + $0x4c] sm:$0xf] %vm3113_vm8, %v3056_v49  ;;  %v3244_v12 = vpop.permute.xlu0 %3243  ;;  %v3006_v49 = vsel %vm6009_vm14, %v5136_v51, %v3005_v14 }
 0x24e   : > { %4159 = vrot.lane.b32.xlu1 %v4087_v31, %s5486_s20  ;;  %3324 = vst.msk [vmem:[#allocation3 + $0x40] sm:$0xf] %vm3307_vm12, %v3244_v12  ;;  %v3009_v12 = vsel %vm6009_vm14, %v3007_v29, %v3008_v11 }
 0x24f   : > { %4161 = vrot.lane.b32.xlu0 %v4091_v24, %s5486_s20  ;;  %v3725_v24 = vshrl.u32 %v3382_v20, 16 }
 0x250   : > { %v3246_v42 = vpop.permute.xlu1 %3245 }
 0x251   : > { %3325 = vst.msk [vmem:[#allocation3 + $0x44] sm:$0xf] %vm3307_vm12, %v3246_v42  ;;  %v3248_v48 = vpop.permute.xlu0 %3247  ;;  %v3727_v42 = vrot.slane %v3725_v24, 4 }
 0x252   : > { %4163 = vrot.lane.b32.xlu1 %v4094_v37, %s5486_s20  ;;  %3326 = vst.msk [vmem:[#allocation3 + $0x48] sm:$0xf] %vm3307_vm12, %v3248_v48  ;;  %v3734_v37 = vshll.u32 %v3383_v60, 16 }
 0x253   : > { %2175 = vrot.lane.b32.xlu0 %v2083_v43, %s5480_s13  ;;  %v3749_v43 = vshrl.u32 %v3385_v21, 16  ;;  %v4104_v21 = vrot.slane %v3947_v32, 5 }
 0x254   : > { %v3250_v59 = vpop.permute.xlu1 %3249  ;;  %v3736_v48 = vrot.slane %v3734_v37, 5  ;;  %v3948_v37 = vld [vmem:[#allocation2 + $0xd4] sm:$0x1] }
 0x255   : > { %3327 = vst.msk [vmem:[#allocation3 + $0x4c] sm:$0xf] %vm3307_vm12, %v3250_v59  ;;  %v3805_v9 = vpop.permute.xlu0 %3804  ;;  %v3384_v59 = vld [vmem:[#allocation2 + $0xc8] sm:$0x1]  ;;  %v3751_v2 = vrot.slane %v3749_v43, 4  ;;  %v4106_v41 = vrot.slane %v4104_v21, 4 }
 0x256   : > { %2177 = vrot.lane.b32.xlu1 %v2084_v53, %s5480_s13  ;;  %3885 = vst.msk [vmem:[#allocation3 + $0x40] sm:$0xf] %vm3868_vm13, %v3805_v9  ;;  %v3740_v53 = vrot.slane %v3738_v33, 4  ;;  %v3744_v39 = vshll.u32 %v3384_v59, 16 }
 0x257   : > { %2179 = vrot.lane.b32.xlu0 %v2085_v63, %s5480_s13  ;;  %v3731_v63 = vor.u32 %v3730_v28, %v3727_v42  ;;  %v3755_v15 = vor.u32 %v3754_v0, %v3751_v2  ;;  %v4107_v42 = vrot.slane %v3948_v37, 5 }
 0x258   : > { %v3807_v6 = vpop.permute.xlu1 %3806  ;;  %v3741_v1 = vor.u32 %v3740_v53, %v3736_v48  ;;  %v3746_v14 = vrot.slane %v3744_v39, 5 }
 0x259   : > { %3886 = vst.msk [vmem:[#allocation3 + $0x44] sm:$0xf] %vm3868_vm13, %v3807_v6  ;;  %v3809_v3 = vpop.permute.xlu0 %3808  ;;  %v3756_v27 = vrot.slane %v3755_v15, 4 }
 0x25a   : > { %2181 = vrot.lane.b32.xlu1 %v2086_v55, %s5480_s13  ;;  %3887 = vst.msk [vmem:[#allocation3 + $0x48] sm:$0xf] %vm3868_vm13, %v3809_v3  ;;  %v3176_v55 = vld [vmem:[#allocation2 + $0xc4] sm:$0xf]  ;;  %v3732_v3 = vrot.slane %v3731_v63, 4  ;;  %v3742_v19 = vrot.slane %v3741_v1, 4 }
 0x25b   : > { %2736 = vrot.lane.b32.xlu0 %v2645_v7, %s5481_s14  ;;  %v3387_v7 = vld [vmem:[#allocation2 + $0xd4] sm:$0x1]  ;;  %v3761_v60 = vsel %vm5593_vm9, %v3756_v27, %v3760_v50 }
 0x25c   : > { %v3811_v62 = vpop.permute.xlu1 %3810  ;;  %v3737_v51 = vsel %vm5593_vm9, %v3732_v3, %v3736_v48  ;;  %v3747_v20 = vsel %vm5593_vm9, %v3742_v19, %v3746_v14 }
 0x25d   : > { %3888 = vst.msk [vmem:[#allocation3 + $0x4c] sm:$0xf] %vm3868_vm13, %v3811_v62  ;;  %v4142_v26 = vpop.permute.xlu0 %4141  ;;  %v3768_v62 = vshll.u32 %v3387_v7, 16 }
 0x25e   : > { %2738 = vrot.lane.b32.xlu1 %v2655_v16, %s5481_s14  ;;  %4222 = vst.msk [vmem:[#allocation3 + $0x40] sm:$0xf] %vm4205_vm15, %v4142_v26 }
 0x25f   : > { %2740 = vrot.lane.b32.xlu0 %v2669_v25, %s5481_s14  ;;  %v3944_v25 = vld [vmem:[#allocation2 + $0xc4] sm:$0xf]  ;;  %v3770_v29 = vrot.slane %v3768_v62, 5 }
 0x260   : > { %v4144_v31 = vpop.permute.xlu1 %4143  ;;  %v4097_v11 = vrot.slane %v3944_v25, 5 }
 0x261   : > { %4223 = vst.msk [vmem:[#allocation3 + $0x44] sm:$0xf] %vm4205_vm15, %v4144_v31  ;;  %v4146_v35 = vpop.permute.xlu0 %4145  ;;  %v3945_v31 = vld [vmem:[#allocation2 + $0xc8] sm:$0x1] }
 0x262   : > { %2742 = vrot.lane.b32.xlu1 %v2679_v8, %s5481_s14  ;;  %4224 = vst.msk [vmem:[#allocation3 + $0x48] sm:$0xf] %vm4205_vm15, %v4146_v35  ;;  %v3766_v8 = vrot.slane %v3765_v22, 4  ;;  %v4099_v17 = vrot.slane %v4097_v11, 4  ;;  %v4100_v36 = vrot.slane %v3945_v31, 5 }
 0x263   : > { %3073 = vrot.lane.b32.xlu0 %v3006_v49, %s5482_s15  ;;  %v5152_v49 = vrot.slane %v3943_v10, 9 }
 0x264   : > { %v4148_v38 = vpop.permute.xlu1 %4147  ;;  %v3771_v35 = vsel %vm5593_vm9, %v3766_v8, %v3770_v29  ;;  %v4101_v47 = vsel %vm6009_vm14, %v4099_v17, %v4100_v36 }
 0x265   : > { %4225 = vst.msk [vmem:[#allocation3 + $0x4c] sm:$0xf] %vm4205_vm15, %v4148_v38  ;;  %v2160_v45 = vpop.permute.xlu0 %2159  ;;  %v4098_v33 = vsel %vm6009_vm14, %v5152_v49, %v4097_v11  ;;  %v5153_v38 = vrot.slane %v3946_v34, 9 }
 0x266   : > { %3075 = vrot.lane.b32.xlu1 %v3009_v12, %s5482_s15  ;;  %2236 = vst.msk [vmem:[#allocation3 + $0x50] sm:$0xf] %vm2215_vm4, %v2160_v45  ;;  %v4108_v45 = vsel %vm6009_vm14, %v4106_v41, %v4107_v42 }
 0x267   : > { %3077 = vrot.lane.b32.xlu0 %v3013_v40, %s5482_s15  ;;  %v4105_v43 = vsel %vm6009_vm14, %v5153_v38, %v4104_v21 }
 0x268   : > { %v2162_v57 = vpop.permute.xlu1 %2161  ;;  %v5457_v58 = vld [vmem:[#allocation3 + $0x40] sm:$0xff]  }
 0x269   : > { %2237 = vst.msk [vmem:[#allocation3 + $0x54] sm:$0xf] %vm2215_vm4, %v2162_v57  ;;  %5407 = vmatprep.mubr.msk.bf16.mxu1 %vm4411_vm2, %v5457_v58  ;;  %v2164_v9 = vpop.permute.xlu0 %2163 }
 0x26a   : > { %3079 = vrot.lane.b32.xlu1 %v3016_v46, %s5482_s15  ;;  %2238 = vst.msk [vmem:[#allocation3 + $0x58] sm:$0xf] %vm2215_vm4, %v2164_v9  ;;  %s6906_s15 = scalar_lea.vmem %s7113_s4, %s5221_s23 }
 0x26b   : > { %3267 = vrot.lane.b32.xlu0 %v3175_v61, %s5483_s16 }
 0x26c   : > { %v2166_v6 = vpop.permute.xlu1 %2165  ;;  %v5458_v4 = vld [vmem:[#allocation3 + $0x48] sm:$0xff]  }
 0x26d   : > { %2239 = vst.msk [vmem:[#allocation3 + $0x5c] sm:$0xf] %vm2215_vm4, %v2166_v6  ;;  %5408 = vmatmul.mubr.msk.bf16.vlgmr.msra.gmra.mxu1 %vm4411_vm2, %v5458_v4  ;;  %v2721_v16 = vpop.permute.xlu0 %2720 }
 0x26e   : > { %3269 = vrot.lane.b32.xlu1 %v3176_v55, %s5483_s16  ;;  %2797 = vst.msk [vmem:[#allocation3 + $0x50] sm:$0xf] %vm2776_vm6, %v2721_v16 }
 0x26f   : > { %3271 = vrot.lane.b32.xlu0 %v3177_v13, %s5483_s16 }
 0x270   : > { %v2723_v23 = vpop.permute.xlu1 %2722 }
 0x271   : > { %2798 = vst.msk [vmem:[#allocation3 + $0x54] sm:$0xf] %vm2776_vm6, %v2723_v23  ;;  %v2725_v26 = vpop.permute.xlu0 %2724 }
 0x272   : > { %3273 = vrot.lane.b32.xlu1 %v3178_v18, %s5483_s16  ;;  %2799 = vst.msk [vmem:[#allocation3 + $0x58] sm:$0xf] %vm2776_vm6, %v2725_v26 }
 0x273   : > { %3828 = vrot.lane.b32.xlu0 %v3737_v51, %s5485_s7 }
 0x274   : > { %v2727_v30 = vpop.permute.xlu1 %2726 }
 0x275   : > { %2800 = vst.msk [vmem:[#allocation3 + $0x5c] sm:$0xf] %vm2776_vm6, %v2727_v30  ;;  %v3058_v24 = vpop.permute.xlu0 %3057 }
 0x276   : > { %3830 = vrot.lane.b32.xlu1 %v3747_v20, %s5485_s7  ;;  %3134 = vst.msk [vmem:[#allocation3 + $0x50] sm:$0xf] %vm3113_vm8, %v3058_v24 }
 0x277   : > { %3832 = vrot.lane.b32.xlu0 %v3761_v60, %s5485_s7 }
 0x278   : > { %v3060_v12 = vpop.permute.xlu1 %3059 }
 0x279   : > { %3135 = vst.msk [vmem:[#allocation3 + $0x54] sm:$0xf] %vm3113_vm8, %v3060_v12  ;;  %v3062_v40 = vpop.permute.xlu0 %3061 }
 0x27a   : > { %3834 = vrot.lane.b32.xlu1 %v3771_v35, %s5485_s7  ;;  %3136 = vst.msk [vmem:[#allocation3 + $0x58] sm:$0xf] %vm3113_vm8, %v3062_v40  ;;  %s268_s7 = scalar_lea.vmem %s7115_s6, %s7129_s22 }
 0x27b   : > { %4165 = vrot.lane.b32.xlu0 %v4098_v33, %s5486_s20 }
 0x27c   : > { %v3064_v28 = vpop.permute.xlu1 %3063 }
 0x27d   : > { %3137 = vst.msk [vmem:[#allocation3 + $0x5c] sm:$0xf] %vm3113_vm8, %v3064_v28  ;;  %v3252_v44 = vpop.permute.xlu0 %3251 }
 0x27e   : > { %4167 = vrot.lane.b32.xlu1 %v4101_v47, %s5486_s20  ;;  %3328 = vst.msk [vmem:[#allocation3 + $0x50] sm:$0xf] %vm3307_vm12, %v3252_v44 }
 0x27f   : > { %4169 = vrot.lane.b32.xlu0 %v4105_v43, %s5486_s20 }
 0x280   : > { %v3254_v46 = vpop.permute.xlu1 %3253 }
 0x281   : > { %3329 = vst.msk [vmem:[#allocation3 + $0x54] sm:$0xf] %vm3307_vm12, %v3254_v46  ;;  %v3256_v48 = vpop.permute.xlu0 %3255 }
 0x282   : > { %4171 = vrot.lane.b32.xlu1 %v4108_v45, %s5486_s20  ;;  %3330 = vst.msk [vmem:[#allocation3 + $0x58] sm:$0xf] %vm3307_vm12, %v3256_v48 }
 0x284   : > { %v3258_v53 = vpop.permute.xlu1 %3257 }
 0x285   : > { %3331 = vst.msk [vmem:[#allocation3 + $0x5c] sm:$0xf] %vm3307_vm12, %v3258_v53  ;;  %v3813_v54 = vpop.permute.xlu0 %3812 }
 0x286   : > { %3889 = vst.msk [vmem:[#allocation3 + $0x50] sm:$0xf] %vm3868_vm13, %v3813_v54 }
 0x288   : > { %v3815_v56 = vpop.permute.xlu1 %3814 }
 0x289   : > { %3890 = vst.msk [vmem:[#allocation3 + $0x54] sm:$0xf] %vm3868_vm13, %v3815_v56  ;;  %v5393_v52 = vpop.f32.mrf.mxu0  ;;  %v3817_v57 = vpop.permute.xlu0 %3816 }
 0x28a   : > { %v5257_v58 = vpack.c.bf16 %v5393_v52, %v5393_v52  ;;  %3891 = vst.msk [vmem:[#allocation3 + $0x58] sm:$0xf] %vm3868_vm13, %v3817_v57  ;;  %v4698_v1 = vmul.f32 %v5393_v52, %v5393_v52  ;;  %v4629_v15 = vsel %vm4625_vm5, %v5393_v52, 0.0 }
 0x28b   : > { %v4498_v61 = vpop.f32.mrf.mxu0 }
 0x28c   : > { %v3819_v59 = vpop.permute.xlu1 %3818  ;;  %4928 = vst.msk [vmem:[%s6906_s15 + $0x8] sm:$0xf] %vm460_vm0, %v5257_v58  ;;  %v5255_v63 = vpack.c.bf16 %v4498_v61, %v4498_v61  ;;  %v4696_v9 = vmul.f32 %v4498_v61, %v4498_v61  ;;  %v4626_v5 = vsel %vm4625_vm5, %v4498_v61, 0.0  ;;  %v4731_v23 = vsel %vm4625_vm5, %v4698_v1, 0.0 }
 0x28d   : > { %3892 = vst.msk [vmem:[#allocation3 + $0x5c] sm:$0xf] %vm3868_vm13, %v3819_v59  ;;  %v5394_v2 = vpop.f32.mrf.mxu0  ;;  %v4150_v0 = vpop.permute.xlu0 %4149 }
 0x28e   : > { %4926 = vst.msk [vmem:[%s6906_s15] sm:$0xf] %vm460_vm0, %v5255_v63  ;;  %v5258_v55 = vpack.c.bf16 %v5394_v2, %v5394_v2  ;;  %v4728_v16 = vsel %vm4625_vm5, %v4696_v9, 0.0  ;;  %v4699_v18 = vmul.f32 %v5394_v2, %v5394_v2  ;;  %v4631_v25 = vsel %vm4625_vm5, %v5394_v2, 0.0 }
 0x28f   : > { %4226 = vst.msk [vmem:[#allocation3 + $0x50] sm:$0xf] %vm4205_vm15, %v4150_v0  ;;  %v4501_v50 = vpop.f32.mrf.mxu0 }
 0x290   : > { %v4152_v39 = vpop.permute.xlu1 %4151  ;;  %4929 = vst.msk [vmem:[%s6906_s15 + $0xc] sm:$0xf] %vm460_vm0, %v5258_v55  ;;  %v4627_v6 = vsel %vm4625_vm5, %v4501_v50, 0.0  ;;  %v4697_v4 = vmul.f32 %v4501_v50, %v4501_v50  ;;  %v5256_v7 = vpack.c.bf16 %v4501_v50, %v4501_v50  ;;  %v4733_v10 = vsel %vm4625_vm5, %v4699_v18, 0.0 }
 0x291   : > { %4227 = vst.msk [vmem:[#allocation3 + $0x54] sm:$0xf] %vm4205_vm15, %v4152_v39  ;;  %v4628_v13 = vadd.f32 %v4627_v6, %v4626_v5  ;;  %v4154_v3 = vpop.permute.xlu0 %4153 }
 0x292   : > { %v4729_v19 = vsel %vm4625_vm5, %v4697_v4, 0.0  ;;  %4927 = vst.msk [vmem:[%s6906_s15 + $0x4] sm:$0xf] %vm460_vm0, %v5256_v7 }
 0x293   : > { %4228 = vst.msk [vmem:[#allocation3 + $0x58] sm:$0xf] %vm4205_vm15, %v4154_v3  ;;  %v4630_v14 = vadd.f32 %v4629_v15, %v4628_v13  ;;  %v4730_v22 = vadd.f32 %v4729_v19, %v4728_v16 }
 0x294   : > { %v4156_v62 = vpop.permute.xlu1 %4155 }
 0x295   : > { %4229 = vst.msk [vmem:[#allocation3 + $0x5c] sm:$0xf] %vm4205_vm15, %v4156_v62  ;;  %v4732_v51 = vadd.f32 %v4731_v23, %v4730_v22  ;;  %v2168_v27 = vpop.permute.xlu0 %2167  ;;  %v4632_v26 = vadd.f32 %v4631_v25, %v4630_v14 }
 0x296   : > { %2240 = vst.msk [vmem:[#allocation3 + $0x60] sm:$0xf] %vm2215_vm4, %v2168_v27 }
 0x297   : > { %v4734_v29 = vadd.f32 %v4733_v10, %v4732_v51 }
 0x298   : > { %v2170_v20 = vpop.permute.xlu1 %2169  ;;  %v5459_v8 = vld [vmem:[#allocation3 + $0x50] sm:$0xff]  }
 0x299   : > { %2241 = vst.msk [vmem:[#allocation3 + $0x64] sm:$0xf] %vm2215_vm4, %v2170_v20  ;;  %5411 = vmatprep.mubr.msk.bf16.mxu1 %vm4411_vm2, %v5459_v8  ;;  %v2172_v11 = vpop.permute.xlu0 %2171 }
 0x29a   : > { %2242 = vst.msk [vmem:[#allocation3 + $0x68] sm:$0xf] %vm2215_vm4, %v2172_v11 }
 0x29c   : > { %v2174_v30 = vpop.permute.xlu1 %2173  ;;  %v5460_v31 = vld [vmem:[#allocation3 + $0x58] sm:$0xff]  }
 0x29d   : > { %2243 = vst.msk [vmem:[#allocation3 + $0x6c] sm:$0xf] %vm2215_vm4, %v2174_v30  ;;  %5412 = vmatmul.mubr.msk.bf16.gmra.mxu1 %vm4411_vm2, %v5460_v31  ;;  %v2729_v32 = vpop.permute.xlu0 %2728 }
 0x29e   : > { %2801 = vst.msk [vmem:[#allocation3 + $0x60] sm:$0xf] %vm2776_vm6, %v2729_v32 }
 0x2a0   : > { %v2731_v60 = vpop.permute.xlu1 %2730 }
 0x2a1   : > { %2802 = vst.msk [vmem:[#allocation3 + $0x64] sm:$0xf] %vm2776_vm6, %v2731_v60  ;;  %v2733_v49 = vpop.permute.xlu0 %2732 }
 0x2a2   : > { %2803 = vst.msk [vmem:[#allocation3 + $0x68] sm:$0xf] %vm2776_vm6, %v2733_v49 }
 0x2a4   : > { %v2735_v24 = vpop.permute.xlu1 %2734 }
 0x2a5   : > { %2804 = vst.msk [vmem:[#allocation3 + $0x6c] sm:$0xf] %vm2776_vm6, %v2735_v24  ;;  %v3066_v34 = vpop.permute.xlu0 %3065 }
 0x2a6   : > { %3138 = vst.msk [vmem:[#allocation3 + $0x60] sm:$0xf] %vm3113_vm8, %v3066_v34 }
 0x2a8   : > { %v3068_v35 = vpop.permute.xlu1 %3067 }
 0x2a9   : > { %3139 = vst.msk [vmem:[#allocation3 + $0x64] sm:$0xf] %vm3113_vm8, %v3068_v35  ;;  %v3070_v17 = vpop.permute.xlu0 %3069 }
 0x2aa   : > { %3140 = vst.msk [vmem:[#allocation3 + $0x68] sm:$0xf] %vm3113_vm8, %v3070_v17 }
 0x2ac   : > { %v3072_v36 = vpop.permute.xlu1 %3071 }
 0x2ad   : > { %3141 = vst.msk [vmem:[#allocation3 + $0x6c] sm:$0xf] %vm3113_vm8, %v3072_v36  ;;  %v3260_v21 = vpop.permute.xlu0 %3259 }
 0x2ae   : > { %3332 = vst.msk [vmem:[#allocation3 + $0x60] sm:$0xf] %vm3307_vm12, %v3260_v21 }
 0x2b0   : > { %v3262_v12 = vpop.permute.xlu1 %3261 }
 0x2b1   : > { %3333 = vst.msk [vmem:[#allocation3 + $0x64] sm:$0xf] %vm3307_vm12, %v3262_v12  ;;  %v5397_v37 = vpop.f32.mrf.mxu0  ;;  %v3264_v33 = vpop.permute.xlu0 %3263 }
 0x2b2   : > { %v5261_v38 = vpack.c.bf16 %v5397_v37, %v5397_v37  ;;  %3334 = vst.msk [vmem:[#allocation3 + $0x68] sm:$0xf] %vm3307_vm12, %v3264_v33  ;;  %v4702_v52 = vmul.f32 %v5397_v37, %v5397_v37  ;;  %v4637_v2 = vsel %vm4625_vm5, %v5397_v37, 0.0 }
 0x2b3   : > { %v4514_v47 = vpop.f32.mrf.mxu0 }
 0x2b4   : > { %v3266_v40 = vpop.permute.xlu1 %3265  ;;  %4932 = vst.msk [vmem:[%s6906_s15 + $0x18] sm:$0xf] %vm460_vm0, %v5261_v38  ;;  %v4633_v41 = vsel %vm4625_vm5, %v4514_v47, 0.0  ;;  %v4700_v42 = vmul.f32 %v4514_v47, %v4514_v47  ;;  %v5259_v28 = vpack.c.bf16 %v4514_v47, %v4514_v47  ;;  %v4739_v50 = vsel %vm4625_vm5, %v4702_v52, 0.0 }
 0x2b5   : > { %3335 = vst.msk [vmem:[#allocation3 + $0x6c] sm:$0xf] %vm3307_vm12, %v3266_v40  ;;  %v4634_v43 = vadd.f32 %v4633_v41, %v4632_v26  ;;  %v5398_v44 = vpop.f32.mrf.mxu0  ;;  %v3821_v45 = vpop.permute.xlu0 %3820 }
 0x2b6   : > { %v4735_v46 = vsel %vm4625_vm5, %v4700_v42, 0.0  ;;  %4930 = vst.msk [vmem:[%s6906_s15 + $0x10] sm:$0xf] %vm460_vm0, %v5259_v28  ;;  %v5262_v48 = vpack.c.bf16 %v5398_v44, %v5398_v44  ;;  %v4703_v0 = vmul.f32 %v5398_v44, %v5398_v44  ;;  %v4639_v5 = vsel %vm4625_vm5, %v5398_v44, 0.0 }
 0x2b7   : > { %3893 = vst.msk [vmem:[#allocation3 + $0x60] sm:$0xf] %vm3868_vm13, %v3821_v45  ;;  %v4736_v53 = vadd.f32 %v4735_v46, %v4734_v29  ;;  %v4517_v56 = vpop.f32.mrf.mxu0 }
 0x2b8   : > { %v3823_v54 = vpop.permute.xlu1 %3822  ;;  %4933 = vst.msk [vmem:[%s6906_s15 + $0x1c] sm:$0xf] %vm460_vm0, %v5262_v48  ;;  %v4635_v57 = vsel %vm4625_vm5, %v4517_v56, 0.0  ;;  %v4701_v58 = vmul.f32 %v4517_v56, %v4517_v56  ;;  %v5260_v59 = vpack.c.bf16 %v4517_v56, %v4517_v56  ;;  %v4741_v13 = vsel %vm4625_vm5, %v4703_v0, 0.0 }
 0x2b9   : > { %3894 = vst.msk [vmem:[#allocation3 + $0x64] sm:$0xf] %vm3868_vm13, %v3823_v54  ;;  %v4636_v61 = vadd.f32 %v4635_v57, %v4634_v43  ;;  %v3825_v63 = vpop.permute.xlu0 %3824 }
 0x2ba   : > { %v4737_v9 = vsel %vm4625_vm5, %v4701_v58, 0.0  ;;  %4931 = vst.msk [vmem:[%s6906_s15 + $0x14] sm:$0xf] %vm460_vm0, %v5260_v59 }
 0x2bb   : > { %3895 = vst.msk [vmem:[#allocation3 + $0x68] sm:$0xf] %vm3868_vm13, %v3825_v63  ;;  %v4638_v55 = vadd.f32 %v4637_v2, %v4636_v61  ;;  %v4738_v1 = vadd.f32 %v4737_v9, %v4736_v53 }
 0x2bc   : > { %v3827_v39 = vpop.permute.xlu1 %3826 }
 0x2bd   : > { %3896 = vst.msk [vmem:[#allocation3 + $0x6c] sm:$0xf] %vm3868_vm13, %v3827_v39  ;;  %v4740_v6 = vadd.f32 %v4739_v50, %v4738_v1  ;;  %v4158_v4 = vpop.permute.xlu0 %4157  ;;  %v4640_v7 = vadd.f32 %v4639_v5, %v4638_v55 }
 0x2be   : > { %4230 = vst.msk [vmem:[#allocation3 + $0x60] sm:$0xf] %vm4205_vm15, %v4158_v4 }
 0x2bf   : > { %v4742_v15 = vadd.f32 %v4741_v13, %v4740_v6 }
 0x2c0   : > { %v4160_v3 = vpop.permute.xlu1 %4159 }
 0x2c1   : > { %4231 = vst.msk [vmem:[#allocation3 + $0x64] sm:$0xf] %vm4205_vm15, %v4160_v3  ;;  %v4162_v16 = vpop.permute.xlu0 %4161 }
 0x2c2   : > { %4232 = vst.msk [vmem:[#allocation3 + $0x68] sm:$0xf] %vm4205_vm15, %v4162_v16 }
 0x2c4   : > { %v4164_v18 = vpop.permute.xlu1 %4163 }
 0x2c5   : > { %4233 = vst.msk [vmem:[#allocation3 + $0x6c] sm:$0xf] %vm4205_vm15, %v4164_v18  ;;  %v2176_v19 = vpop.permute.xlu0 %2175 }
 0x2c6   : > { %2244 = vst.msk [vmem:[#allocation3 + $0x70] sm:$0xf] %vm2215_vm4, %v2176_v19 }
 0x2c8   : > { %v2178_v14 = vpop.permute.xlu1 %2177  ;;  %v5461_v22 = vld [vmem:[#allocation3 + $0x60] sm:$0xff]  }
 0x2c9   : > { %2245 = vst.msk [vmem:[#allocation3 + $0x74] sm:$0xf] %vm2215_vm4, %v2178_v14  ;;  %5415 = vmatprep.mubr.msk.bf16.mxu1 %vm4411_vm2, %v5461_v22  ;;  %v2180_v62 = vpop.permute.xlu0 %2179 }
 0x2ca   : > { %2246 = vst.msk [vmem:[#allocation3 + $0x78] sm:$0xf] %vm2215_vm4, %v2180_v62 }
 0x2cc   : > { %v2182_v23 = vpop.permute.xlu1 %2181  ;;  %v5462_v25 = vld [vmem:[#allocation3 + $0x68] sm:$0xff]  }
 0x2cd   : > { %2247 = vst.msk [vmem:[#allocation3 + $0x7c] sm:$0xf] %vm2215_vm4, %v2182_v23  ;;  %5416 = vmatmul.mubr.msk.bf16.gmra.mxu1 %vm4411_vm2, %v5462_v25  ;;  %v2737_v51 = vpop.permute.xlu0 %2736 }
 0x2ce   : > { %2805 = vst.msk [vmem:[#allocation3 + $0x70] sm:$0xf] %vm2776_vm6, %v2737_v51 }
 0x2d0   : > { %v2739_v27 = vpop.permute.xlu1 %2738 }
 0x2d1   : > { %2806 = vst.msk [vmem:[#allocation3 + $0x74] sm:$0xf] %vm2776_vm6, %v2739_v27  ;;  %v2741_v26 = vpop.permute.xlu0 %2740 }
 0x2d2   : > { %2807 = vst.msk [vmem:[#allocation3 + $0x78] sm:$0xf] %vm2776_vm6, %v2741_v26 }
 0x2d4   : > { %v2743_v10 = vpop.permute.xlu1 %2742 }
 0x2d5   : > { %2808 = vst.msk [vmem:[#allocation3 + $0x7c] sm:$0xf] %vm2776_vm6, %v2743_v10  ;;  %v3074_v20 = vpop.permute.xlu0 %3073 }
 0x2d6   : > { %3142 = vst.msk [vmem:[#allocation3 + $0x70] sm:$0xf] %vm3113_vm8, %v3074_v20 }
 0x2d8   : > { %v3076_v8 = vpop.permute.xlu1 %3075 }
 0x2d9   : > { %3143 = vst.msk [vmem:[#allocation3 + $0x74] sm:$0xf] %vm3113_vm8, %v3076_v8  ;;  %v5401_v29 = vpop.f32.mrf.mxu0  ;;  %v3078_v11 = vpop.permute.xlu0 %3077 }
 0x2da   : > { %v5265_v30 = vpack.c.bf16 %v5401_v29, %v5401_v29  ;;  %3144 = vst.msk [vmem:[#allocation3 + $0x78] sm:$0xf] %vm3113_vm8, %v3078_v11  ;;  %v4706_v38 = vmul.f32 %v5401_v29, %v5401_v29  ;;  %v4645_v43 = vsel %vm4625_vm5, %v5401_v29, 0.0 }
 0x2db   : > { %v4530_v32 = vpop.f32.mrf.mxu0 }
 0x2dc   : > { %v3080_v31 = vpop.permute.xlu1 %3079  ;;  %4936 = vst.msk [vmem:[%s6906_s15 + $0x28] sm:$0xf] %vm460_vm0, %v5265_v30  ;;  %v4641_v60 = vsel %vm4625_vm5, %v4530_v32, 0.0  ;;  %v4704_v49 = vmul.f32 %v4530_v32, %v4530_v32  ;;  %v5263_v24 = vpack.c.bf16 %v4530_v32, %v4530_v32  ;;  %v4747_v54 = vsel %vm4625_vm5, %v4706_v38, 0.0 }
 0x2dd   : > { %3145 = vst.msk [vmem:[#allocation3 + $0x7c] sm:$0xf] %vm3113_vm8, %v3080_v31  ;;  %v4642_v34 = vadd.f32 %v4641_v60, %v4640_v7  ;;  %v5402_v35 = vpop.f32.mrf.mxu0  ;;  %v3268_v17 = vpop.permute.xlu0 %3267 }
 0x2de   : > { %v4743_v36 = vsel %vm4625_vm5, %v4704_v49, 0.0  ;;  %4934 = vst.msk [vmem:[%s6906_s15 + $0x20] sm:$0xf] %vm460_vm0, %v5263_v24  ;;  %v5266_v21 = vpack.c.bf16 %v5402_v35, %v5402_v35  ;;  %v4707_v44 = vmul.f32 %v5402_v35, %v5402_v35  ;;  %v4647_v56 = vsel %vm4625_vm5, %v5402_v35, 0.0 }
 0x2df   : > { %3336 = vst.msk [vmem:[#allocation3 + $0x70] sm:$0xf] %vm3307_vm12, %v3268_v17  ;;  %v4744_v12 = vadd.f32 %v4743_v36, %v4742_v15  ;;  %v4533_v33 = vpop.f32.mrf.mxu0 }
 0x2e0   : > { %v3270_v37 = vpop.permute.xlu1 %3269  ;;  %4937 = vst.msk [vmem:[%s6906_s15 + $0x2c] sm:$0xf] %vm460_vm0, %v5266_v21  ;;  %v4643_v40 = vsel %vm4625_vm5, %v4533_v33, 0.0  ;;  %v4705_v47 = vmul.f32 %v4533_v33, %v4533_v33  ;;  %v5264_v41 = vpack.c.bf16 %v4533_v33, %v4533_v33  ;;  %v4749_v59 = vsel %vm4625_vm5, %v4707_v44, 0.0 }
 0x2e1   : > { %3337 = vst.msk [vmem:[#allocation3 + $0x74] sm:$0xf] %vm3307_vm12, %v3270_v37  ;;  %v4644_v42 = vadd.f32 %v4643_v40, %v4642_v34  ;;  %v3272_v28 = vpop.permute.xlu0 %3271 }
 0x2e2   : > { %v4745_v45 = vsel %vm4625_vm5, %v4705_v47, 0.0  ;;  %4935 = vst.msk [vmem:[%s6906_s15 + $0x24] sm:$0xf] %vm460_vm0, %v5264_v41 }
 0x2e3   : > { %3338 = vst.msk [vmem:[#allocation3 + $0x78] sm:$0xf] %vm3307_vm12, %v3272_v28  ;;  %v4646_v46 = vadd.f32 %v4645_v43, %v4644_v42  ;;  %v4746_v48 = vadd.f32 %v4745_v45, %v4744_v12 }
 0x2e4   : > { %v3274_v53 = vpop.permute.xlu1 %3273 }
 0x2e5   : > { %3339 = vst.msk [vmem:[#allocation3 + $0x7c] sm:$0xf] %vm3307_vm12, %v3274_v53  ;;  %v4748_v52 = vadd.f32 %v4747_v54, %v4746_v48  ;;  %v3829_v57 = vpop.permute.xlu0 %3828  ;;  %v4648_v58 = vadd.f32 %v4647_v56, %v4646_v46 }
 0x2e6   : > { %3897 = vst.msk [vmem:[#allocation3 + $0x70] sm:$0xf] %vm3868_vm13, %v3829_v57 }
 0x2e7   : > { %v4750_v63 = vadd.f32 %v4749_v59, %v4748_v52 }
 0x2e8   : > { %v3831_v61 = vpop.permute.xlu1 %3830 }
 0x2e9   : > { %3898 = vst.msk [vmem:[#allocation3 + $0x74] sm:$0xf] %vm3868_vm13, %v3831_v61  ;;  %v3833_v2 = vpop.permute.xlu0 %3832 }
 0x2ea   : > { %3899 = vst.msk [vmem:[#allocation3 + $0x78] sm:$0xf] %vm3868_vm13, %v3833_v2 }
 0x2ec   : > { %v3835_v0 = vpop.permute.xlu1 %3834 }
 0x2ed   : > { %3900 = vst.msk [vmem:[#allocation3 + $0x7c] sm:$0xf] %vm3868_vm13, %v3835_v0  ;;  %v4166_v9 = vpop.permute.xlu0 %4165 }
 0x2ee   : > { %4234 = vst.msk [vmem:[#allocation3 + $0x70] sm:$0xf] %vm4205_vm15, %v4166_v9 }
 0x2f0   : > { %v4168_v55 = vpop.permute.xlu1 %4167 }
 0x2f1   : > { %4235 = vst.msk [vmem:[#allocation3 + $0x74] sm:$0xf] %vm4205_vm15, %v4168_v55  ;;  %v4170_v1 = vpop.permute.xlu0 %4169 }
 0x2f2   : > { %4236 = vst.msk [vmem:[#allocation3 + $0x78] sm:$0xf] %vm4205_vm15, %v4170_v1 }
 0x2f4   : > { %v4172_v39 = vpop.permute.xlu1 %4171 }
 0x2f5   : > { %4237 = vst.msk [vmem:[#allocation3 + $0x7c] sm:$0xf] %vm4205_vm15, %v4172_v39 }
 0x2f8   : > { %v5463_v50 = vld [vmem:[#allocation3 + $0x70] sm:$0xff]  }
 0x2f9   : > { %5419 = vmatprep.mubr.msk.bf16.mxu1 %vm4411_vm2, %v5463_v50 }
 0x2fc   : > { %v5464_v5 = vld [vmem:[#allocation3 + $0x78] sm:$0xff]  }
 0x2fd   : > { %5420 = vmatmul.mubr.msk.bf16.gmra.mxu1 %vm4411_vm2, %v5464_v5 }
 0x301   : > { %v5405_v6 = vpop.f32.mrf.mxu0 }
 0x302   : > { %v5269_v4 = vpack.c.bf16 %v5405_v6, %v5405_v6  ;;  %v4710_v23 = vmul.f32 %v5405_v6, %v5405_v6  ;;  %v4653_v10 = vsel %vm4625_vm5, %v5405_v6, 0.0 }
 0x303   : > { %v4546_v7 = vpop.f32.mrf.mxu0 }
 0x304   : > { %4940 = vst.msk [vmem:[%s6906_s15 + $0x38] sm:$0xf] %vm460_vm0, %v5269_v4  ;;  %v4649_v13 = vsel %vm4625_vm5, %v4546_v7, 0.0  ;;  %v4708_v3 = vmul.f32 %v4546_v7, %v4546_v7  ;;  %v5267_v15 = vpack.c.bf16 %v4546_v7, %v4546_v7  ;;  %v4755_v30 = vsel %vm4625_vm5, %v4710_v23, 0.0 }
 0x305   : > { %v4650_v16 = vadd.f32 %v4649_v13, %v4648_v58  ;;  %v5406_v18 = vpop.f32.mrf.mxu0 }
 0x306   : > { %v4751_v19 = vsel %vm4625_vm5, %v4708_v3, 0.0  ;;  %4938 = vst.msk [vmem:[%s6906_s15 + $0x30] sm:$0xf] %vm460_vm0, %v5267_v15  ;;  %v5270_v14 = vpack.c.bf16 %v5406_v18, %v5406_v18  ;;  %v4711_v20 = vmul.f32 %v5406_v18, %v5406_v18  ;;  %v4655_v31 = vsel %vm4625_vm5, %v5406_v18, 0.0 }
 0x307   : > { %v4752_v22 = vadd.f32 %v4751_v19, %v4750_v63  ;;  %v4549_v62 = vpop.f32.mrf.mxu0 }
 0x308   : > { %4941 = vst.msk [vmem:[%s6906_s15 + $0x3c] sm:$0xf] %vm460_vm0, %v5270_v14  ;;  %v4651_v25 = vsel %vm4625_vm5, %v4549_v62, 0.0  ;;  %v4709_v51 = vmul.f32 %v4549_v62, %v4549_v62  ;;  %v5268_v27 = vpack.c.bf16 %v4549_v62, %v4549_v62  ;;  %v4757_v49 = vsel %vm4625_vm5, %v4711_v20, 0.0 }
 0x309   : > { %v4652_v26 = vadd.f32 %v4651_v25, %v4650_v16 }
 0x30a   : > { %v4753_v8 = vsel %vm4625_vm5, %v4709_v51, 0.0  ;;  %4939 = vst.msk [vmem:[%s6906_s15 + $0x34] sm:$0xf] %vm460_vm0, %v5268_v27 }
 0x30b   : > { %v4654_v29 = vadd.f32 %v4653_v10, %v4652_v26  ;;  %v4754_v11 = vadd.f32 %v4753_v8, %v4752_v22 }
 0x30d   : > { %v4756_v32 = vadd.f32 %v4755_v30, %v4754_v11  ;;  %v4656_v60 = vadd.f32 %v4655_v31, %v4654_v29 }
 0x30f   : > { %v4758_v24 = vadd.f32 %v4757_v49, %v4756_v32 }
 0x32d   : > { %v5409_v34 = vpop.f32.mrf.mxu1 }
 0x32e   : > { %v5273_v35 = vpack.c.bf16 %v5409_v34, %v5409_v34  ;;  %v4714_v42 = vmul.f32 %v5409_v34, %v5409_v34  ;;  %v4661_v46 = vsel %vm4625_vm5, %v5409_v34, 0.0 }
 0x32f   : > { %v4562_v17 = vpop.f32.mrf.mxu1 }
 0x330   : > { %4944 = vst.msk [vmem:[%s6906_s15 + $0x48] sm:$0xf] %vm460_vm0, %v5273_v35  ;;  %v4657_v36 = vsel %vm4625_vm5, %v4562_v17, 0.0  ;;  %v4712_v21 = vmul.f32 %v4562_v17, %v4562_v17  ;;  %v5271_v12 = vpack.c.bf16 %v4562_v17, %v4562_v17  ;;  %v4763_v52 = vsel %vm4625_vm5, %v4714_v42, 0.0 }
 0x331   : > { %v4658_v37 = vadd.f32 %v4657_v36, %v4656_v60  ;;  %v5410_v33 = vpop.f32.mrf.mxu1 }
 0x332   : > { %v4759_v38 = vsel %vm4625_vm5, %v4712_v21, 0.0  ;;  %4942 = vst.msk [vmem:[%s6906_s15 + $0x40] sm:$0xf] %vm460_vm0, %v5271_v12  ;;  %v5274_v40 = vpack.c.bf16 %v5410_v33, %v5410_v33  ;;  %v4715_v48 = vmul.f32 %v5410_v33, %v5410_v33  ;;  %v4663_v57 = vsel %vm4625_vm5, %v5410_v33, 0.0 }
 0x333   : > { %v4760_v47 = vadd.f32 %v4759_v38, %v4758_v24  ;;  %v4565_v41 = vpop.f32.mrf.mxu1 }
 0x334   : > { %4945 = vst.msk [vmem:[%s6906_s15 + $0x4c] sm:$0xf] %vm460_vm0, %v5274_v40  ;;  %v4659_v28 = vsel %vm4625_vm5, %v4565_v41, 0.0  ;;  %v4713_v43 = vmul.f32 %v4565_v41, %v4565_v41  ;;  %v5272_v44 = vpack.c.bf16 %v4565_v41, %v4565_v41  ;;  %v4765_v61 = vsel %vm4625_vm5, %v4715_v48, 0.0 }
 0x335   : > { %v4660_v45 = vadd.f32 %v4659_v28, %v4658_v37 }
 0x336   : > { %v4761_v53 = vsel %vm4625_vm5, %v4713_v43, 0.0  ;;  %4943 = vst.msk [vmem:[%s6906_s15 + $0x44] sm:$0xf] %vm460_vm0, %v5272_v44 }
 0x337   : > { %v4662_v54 = vadd.f32 %v4661_v46, %v4660_v45  ;;  %v4762_v56 = vadd.f32 %v4761_v53, %v4760_v47 }
 0x339   : > { %v4764_v58 = vadd.f32 %v4763_v52, %v4762_v56  ;;  %v4664_v59 = vadd.f32 %v4663_v57, %v4662_v54 }
 0x33b   : > { %v4766_v63 = vadd.f32 %v4765_v61, %v4764_v58 }
 0x35d   : > { %v5413_v2 = vpop.f32.mrf.mxu1 }
 0x35e   : > { %v5277_v0 = vpack.c.bf16 %v5413_v2, %v5413_v2  ;;  %v4718_v3 = vmul.f32 %v5413_v2, %v5413_v2  ;;  %v4669_v14 = vsel %vm4625_vm5, %v5413_v2, 0.0 }
 0x35f   : > { %v4578_v9 = vpop.f32.mrf.mxu1 }
 0x360   : > { %4948 = vst.msk [vmem:[%s6906_s15 + $0x58] sm:$0xf] %vm460_vm0, %v5277_v0  ;;  %v4665_v55 = vsel %vm4625_vm5, %v4578_v9, 0.0  ;;  %v4716_v1 = vmul.f32 %v4578_v9, %v4578_v9  ;;  %v5275_v39 = vpack.c.bf16 %v4578_v9, %v4578_v9  ;;  %v4771_v51 = vsel %vm4625_vm5, %v4718_v3, 0.0 }
 0x361   : > { %v4666_v50 = vadd.f32 %v4665_v55, %v4664_v59  ;;  %v5414_v5 = vpop.f32.mrf.mxu1 }
 0x362   : > { %v4767_v6 = vsel %vm4625_vm5, %v4716_v1, 0.0  ;;  %4946 = vst.msk [vmem:[%s6906_s15 + $0x50] sm:$0xf] %vm460_vm0, %v5275_v39  ;;  %v5278_v4 = vpack.c.bf16 %v5414_v5, %v5414_v5  ;;  %v4719_v22 = vmul.f32 %v5414_v5, %v5414_v5  ;;  %v4671_v27 = vsel %vm4625_vm5, %v5414_v5, 0.0 }
 0x363   : > { %v4768_v7 = vadd.f32 %v4767_v6, %v4766_v63  ;;  %v4581_v13 = vpop.f32.mrf.mxu1 }
 0x364   : > { %4949 = vst.msk [vmem:[%s6906_s15 + $0x5c] sm:$0xf] %vm460_vm0, %v5278_v4  ;;  %v4667_v15 = vsel %vm4625_vm5, %v4581_v13, 0.0  ;;  %v4717_v16 = vmul.f32 %v4581_v13, %v4581_v13  ;;  %v5276_v18 = vpack.c.bf16 %v4581_v13, %v4581_v13  ;;  %v4773_v20 = vsel %vm4625_vm5, %v4719_v22, 0.0 }
 0x365   : > { %v4668_v19 = vadd.f32 %v4667_v15, %v4666_v50 }
 0x366   : > { %v4769_v62 = vsel %vm4625_vm5, %v4717_v16, 0.0  ;;  %4947 = vst.msk [vmem:[%s6906_s15 + $0x54] sm:$0xf] %vm460_vm0, %v5276_v18 }
 0x367   : > { %v4670_v23 = vadd.f32 %v4669_v14, %v4668_v19  ;;  %v4770_v25 = vadd.f32 %v4769_v62, %v4768_v7 }
 0x369   : > { %v4772_v26 = vadd.f32 %v4771_v51, %v4770_v25  ;;  %v4672_v10 = vadd.f32 %v4671_v27, %v4670_v23 }
 0x36b   : > { %v4774_v8 = vadd.f32 %v4773_v20, %v4772_v26 }
 0x38d   : > { %v5417_v29 = vpop.f32.mrf.mxu1 }
 0x38e   : > { %v5281_v11 = vpack.c.bf16 %v5417_v29, %v5417_v29  ;;  %v4722_v40 = vmul.f32 %v5417_v29, %v5417_v29  ;;  %v4677_v41 = vsel %vm4625_vm5, %v5417_v29, 0.0 }
 0x38f   : > { %v4594_v30 = vpop.f32.mrf.mxu1 }
 0x390   : > { %4952 = vst.msk [vmem:[%s6906_s15 + $0x68] sm:$0xf] %vm460_vm0, %v5281_v11  ;;  %v5279_v31 = vpack.c.bf16 %v4594_v30, %v4594_v30  ;;  %v4720_v34 = vmul.f32 %v4594_v30, %v4594_v30  ;;  %v4673_v35 = vsel %vm4625_vm5, %v4594_v30, 0.0  ;;  %v4779_v43 = vsel %vm4625_vm5, %v4722_v40, 0.0 }
 0x391   : > { %v5418_v32 = vpop.f32.mrf.mxu1  ;;  %v4674_v12 = vadd.f32 %v4673_v35, %v4672_v10 }
 0x392   : > { %4950 = vst.msk [vmem:[%s6906_s15 + $0x60] sm:$0xf] %vm460_vm0, %v5279_v31  ;;  %v5282_v60 = vpack.c.bf16 %v5418_v32, %v5418_v32  ;;  %v4775_v36 = vsel %vm4625_vm5, %v4720_v34, 0.0  ;;  %v4723_v44 = vmul.f32 %v5418_v32, %v5418_v32  ;;  %v4679_v53 = vsel %vm4625_vm5, %v5418_v32, 0.0 }
 0x393   : > { %v4597_v49 = vpop.f32.mrf.mxu1  ;;  %v4776_v33 = vadd.f32 %v4775_v36, %v4774_v8 }
 0x394   : > { %4953 = vst.msk [vmem:[%s6906_s15 + $0x6c] sm:$0xf] %vm460_vm0, %v5282_v60  ;;  %v5280_v24 = vpack.c.bf16 %v4597_v49, %v4597_v49  ;;  %v4721_v17 = vmul.f32 %v4597_v49, %v4597_v49  ;;  %v4675_v21 = vsel %vm4625_vm5, %v4597_v49, 0.0  ;;  %v4781_v59 = vsel %vm4625_vm5, %v4723_v44, 0.0 }
 0x395   : > { %v4676_v38 = vadd.f32 %v4675_v21, %v4674_v12 }
 0x396   : > { %4951 = vst.msk [vmem:[%s6906_s15 + $0x64] sm:$0xf] %vm460_vm0, %v5280_v24  ;;  %v4777_v37 = vsel %vm4625_vm5, %v4721_v17, 0.0 }
 0x397   : > { %v4778_v47 = vadd.f32 %v4777_v37, %v4776_v33  ;;  %v4678_v42 = vadd.f32 %v4677_v41, %v4676_v38 }
 0x399   : > { %v4780_v46 = vadd.f32 %v4779_v43, %v4778_v47  ;;  %v4680_v57 = vadd.f32 %v4679_v53, %v4678_v42 }
 0x39b   : > { %v4782_v0 = vadd.f32 %v4781_v59, %v4780_v46 }
 0x3bd   : > { %v5421_v28 = vpop.f32.mrf.mxu1 }
 0x3be   : > { %v5285_v45 = vpack.c.bf16 %v5421_v28, %v5421_v28  ;;  %v4726_v55 = vmul.f32 %v5421_v28, %v5421_v28  ;;  %v4685_v4 = vsel %vm4625_vm5, %v5421_v28, 0.0 }
 0x3bf   : > { %v4610_v48 = vpop.f32.mrf.mxu1 }
 0x3c0   : > { %4956 = vst.msk [vmem:[%s6906_s15 + $0x78] sm:$0xf] %vm460_vm0, %v5285_v45  ;;  %v4681_v54 = vsel %vm4625_vm5, %v4610_v48, 0.0  ;;  %v4724_v56 = vmul.f32 %v4610_v48, %v4610_v48  ;;  %v5283_v52 = vpack.c.bf16 %v4610_v48, %v4610_v48  ;;  %v4787_v16 = vsel %vm4625_vm5, %v4726_v55, 0.0 }
 0x3c1   : > { %v5422_v58 = vpop.f32.mrf.mxu1  ;;  %v4682_v2 = vadd.f32 %v4681_v54, %v4680_v57 }
 0x3c2   : > { %v4783_v61 = vsel %vm4625_vm5, %v4724_v56, 0.0  ;;  %4954 = vst.msk [vmem:[%s6906_s15 + $0x70] sm:$0xf] %vm460_vm0, %v5283_v52  ;;  %v5286_v63 = vpack.c.bf16 %v5422_v58, %v5422_v58  ;;  %v4727_v7 = vmul.f32 %v5422_v58, %v5422_v58  ;;  %v4687_v18 = vsel %vm4625_vm5, %v5422_v58, 0.0 }
 0x3c3   : > { %v4613_v9 = vpop.f32.mrf.mxu1  ;;  %v4784_v5 = vadd.f32 %v4783_v61, %v4782_v0 }
 0x3c4   : > { %4957 = vst.msk [vmem:[%s6906_s15 + $0x7c] sm:$0xf] %vm460_vm0, %v5286_v63  ;;  %v4683_v1 = vsel %vm4625_vm5, %v4613_v9, 0.0  ;;  %v4725_v39 = vmul.f32 %v4613_v9, %v4613_v9  ;;  %v5284_v50 = vpack.c.bf16 %v4613_v9, %v4613_v9  ;;  %v4789_v22 = vsel %vm4625_vm5, %v4727_v7, 0.0 }
 0x3c5   : > { %v4684_v6 = vadd.f32 %v4683_v1, %v4682_v2 }
 0x3c6   : > { %v4785_v13 = vsel %vm4625_vm5, %v4725_v39, 0.0  ;;  %4955 = vst.msk [vmem:[%s6906_s15 + $0x74] sm:$0xf] %vm460_vm0, %v5284_v50 }
 0x3c7   : > { %v4686_v3 = vadd.f32 %v4685_v4, %v4684_v6  ;;  %v4786_v15 = vadd.f32 %v4785_v13, %v4784_v5 }
 0x3c9   : > { %v4688_v19 = vadd.f32 %v4687_v18, %v4686_v3  ;;  %v4788_v14 = vadd.f32 %v4787_v16, %v4786_v15 }
 0x3cb   : > { %v4689_v62 = vrot.slane %v4688_v19, 4  ;;  %v4790_v23 = vadd.f32 %v4789_v22, %v4788_v14 }
 0x3cd   : > { %v4690_v25 = vadd.f32 %v4689_v62, %v4688_v19  ;;  %v4791_v51 = vrot.slane %v4790_v23, 4 }
 0x3cf   : > { %v4691_v27 = vrot.slane %v4690_v25, 2  ;;  %v4792_v26 = vadd.f32 %v4791_v51, %v4790_v23 }
 0x3d1   : > { %v4692_v10 = vadd.f32 %v4691_v27, %v4690_v25  ;;  %v4793_v20 = vrot.slane %v4792_v26, 2 }
 0x3d3   : > { %v4693_v8 = vrot.slane %v4692_v10, 1  ;;  %v4794_v29 = vadd.f32 %v4793_v20, %v4792_v26 }
 0x3d5   : > { %v4694_v11 = vadd.f32 %v4693_v8, %v4692_v10  ;;  %v4795_v30 = vrot.slane %v4794_v29, 1 }
 0x3d7   : > { %4695 = vst.msk [vmem:[%s265_s28] sm:$0x1] %vm463_vm1, %v4694_v11  ;;  %v4796_v31 = vadd.f32 %v4795_v30, %v4794_v29 }
 0x3d9   : > { %4797 = vst.msk [vmem:[%s268_s7] sm:$0x1] %vm463_vm1, %v4796_v31 }
 0x3da PF: > { %s17_s21 = sadd.s32 1, %s5475_s21  }
 0x3db   : > { %p14_p4 = scmp.ge.s32.totalorder %s17_s21, 4  }
 0x3dd   :  { %16 = sbr.rel (!%p14_p4) target bundleno = 1 (0x1), region = 93 }

</bundles_post_ra>
